<compile_context>
chip_gen: v5e
topology: v5e:2x2
jax: 0.10.0
libtpu: 0.0.40
codegen_flags: <defaults>
</compile_context>

<pallas_src>
import functools
import math

import jax
import jax.numpy as jnp
from jax.experimental import pallas as pl
from jax.experimental.pallas import tpu as pltpu

LN_EPS = 1e-5


def _layer_norm(v):
    # LayerNorm over the last dim, elementwise_affine=False, eps=1e-5.
    # Two-pass variance (matches torch.nn.LayerNorm / the reference; avoids
    # the mean(v*v)-mu^2 cancellation concern).
    mu = jnp.mean(v, axis=-1, keepdims=True)
    var = jnp.mean((v - mu) ** 2, axis=-1, keepdims=True)
    return (v - mu) * jax.lax.rsqrt(var + LN_EPS)


def _supervisor_kernel(h_init_ref, h_flat_ref,
                       wx_ref, bx_ref, whh_ref, bhh_ref,
                       sw_ref, sb_ref,
                       o_ref,
                       out_scratch,
                       *, num_layers, hidden_dim, batch, t0):
    Hd = hidden_dim
    H2 = 2 * Hd
    B = batch
    mxu_dt = wx_ref.dtype   # bf16 (or f32 if pack_params(mxu_dtype=float32))

    # Small bias broadcasts hoisted once (JAX won't CSE broadcast_in_dim).
    bx = [bx_ref[l][None, :] for l in range(num_layers)]     # (1, 3H) each
    bhh = [bhh_ref[l][None, :] for l in range(num_layers)]   # (1, 3H) each

    # ---- Layer 0 input projection hoisted across ALL timesteps:
    # one (t0*B, E) @ (E, 3H) dot + 2 LayerNorms, sliced per step below. ----
    x_all = h_flat_ref[...]                                   # (t0*B, E) f32
    xproj0 = jnp.dot(x_all.astype(mxu_dt), wx_ref[0],
                     preferred_element_type=jnp.float32) + bx[0]   # (t0*B, 3H)
    ln_i2h0_all = _layer_norm(xproj0[:, :H2])                 # (t0*B, 2H)
    ln_c1_0_all = _layer_norm(xproj0[:, H2:])                 # (t0*B, H)

    h0 = h_init_ref[...]                                      # (B, E) f32
    state = [h0 for _ in range(num_layers)]                   # vreg-carried

    # NOTE: t0 is small and a compile-time constant here; for long sequences
    # switch to lax.fori_loop with dynamic indexing to bound compile time.
    x = h0  # placeholder; overwritten by layer 0 before first use
    for t in range(t0):
        r0, r1 = t * B, (t + 1) * B
        for l in range(num_layers):
            h_prev = state[l]

            # Weight loads kept INSIDE the body (cheap vld, hides under
            # MXU/EUP latency) to keep vreg live ranges short.
            hproj = jnp.dot(h_prev.astype(mxu_dt), whh_ref[l],
                            preferred_element_type=jnp.float32) + bhh[l]
            ln_h2h = _layer_norm(hproj[:, :H2])               # (B, 2H)
            ln_c2 = _layer_norm(hproj[:, H2:])                # (B, H)

            if l == 0:
                ln_i2h = ln_i2h0_all[r0:r1]                   # precomputed
                ln_c1 = ln_c1_0_all[r0:r1]
            else:
                xproj = jnp.dot(x.astype(mxu_dt), wx_ref[l],
                                preferred_element_type=jnp.float32) + bx[l]
                ln_i2h = _layer_norm(xproj[:, :H2])
                ln_c1 = _layer_norm(xproj[:, H2:])

            gates = jax.nn.sigmoid(ln_i2h + ln_h2h)           # (B, 2H)
            z_t = gates[:, :Hd]                               # update gate
            r_t = gates[:, Hd:]                               # reset gate
            h_hat = jnp.tanh(ln_c1 + r_t * ln_c2)
            h_t = (1.0 - z_t) * h_prev + z_t * h_hat          # (B, H)

            state[l] = h_t
            x = h_t                                           # feeds layer l+1

        # Park this timestep's last-layer output in VMEM scratch so its vreg
        # is freed for the remainder of the recurrence.
        out_scratch[r0:r1, :] = x

    # One fused sup_linear + sigmoid over every timestep's output.
    flat = out_scratch[...]                                   # (t0*B, E)
    logits = jnp.dot(flat.astype(mxu_dt), sw_ref[...],
                     preferred_element_type=jnp.float32) + sb_ref[...]
    o_ref[...] = jax.nn.sigmoid(logits)


def pack_params(params, *, mxu_dtype=jnp.bfloat16):
    """One-time packing / casting (call at init, NOT on every forward):
    fuse [i2h | h_hat_W] -> (L, E, 3H) and [h2h | h_hat_U] -> (L, E, 3H);
    cast weight matrices to the MXU dtype (biases / h_init stay f32)."""
    return {
        "wx": jnp.concatenate([params["wi"], params["ww"]], -1).astype(mxu_dtype),
        "bx": jnp.concatenate([params["bi"], params["bw"]], -1),
        "whh": jnp.concatenate([params["wh"], params["wu"]], -1).astype(mxu_dtype),
        "bhh": jnp.concatenate([params["bh"], params["bu"]], -1),
        "sw": params["sw"].astype(mxu_dtype),
        "sb": params["sb"],
        "h_init": params["h_init"],
    }


def supervisor_forward(H, T, packed, *, num_layers, hidden_dim):
    """H: (B, S, E) float32, T: (B,) int32.  Returns (B, T[0], E).

    NOTE: t0 = int(T[0]) is concretized at trace time (matches the PyTorch
    `for t in range(T[0])` loop, assumes a uniform sequence length)."""
    B, S, E = H.shape
    assert E == hidden_dim
    t0 = int(T[0])

    # Time-major, flattened to (t0*B, E) so layer 0's projection is one dot.
    H_flat = jnp.transpose(H[:, :t0, :], (1, 0, 2)).reshape(t0 * B, E)

    kernel = functools.partial(_supervisor_kernel,
                               num_layers=num_layers,
                               hidden_dim=hidden_dim,
                               batch=B,
                               t0=t0)

    # Gridless call: every operand is a full-array VMEM block; the whole
    # recurrence lives in a single kernel invocation.
    out_flat = pl.pallas_call(
        kernel,
        out_shape=jax.ShapeDtypeStruct((t0 * B, E), jnp.float32),
        scratch_shapes=[pltpu.VMEM((t0 * B, E), jnp.float32)],
    )(packed["h_init"], H_flat,
      packed["wx"], packed["bx"], packed["whh"], packed["bhh"],
      packed["sw"], packed["sb"])

    # (t0*B, E) rows are t-major -> (t0, B, E) -> (B, t0, E)
    return jnp.transpose(out_flat.reshape(t0, B, E), (1, 0, 2))


def reference_forward(H, T, params, *, num_layers, hidden_dim):
    """Pure-JAX f32 reference mirroring the PyTorch forward semantics."""
    B, S, E = H.shape
    t0 = int(T[0])

    def ln(v):
        mu = jnp.mean(v, axis=-1, keepdims=True)
        var = jnp.mean((v - mu) ** 2, axis=-1, keepdims=True)
        return (v - mu) * jax.lax.rsqrt(var + LN_EPS)

    state = [params["h_init"] for _ in range(num_layers)]
    outs = []
    for t in range(t0):
        x = H[:, t, :]
        new_state = []
        for l in range(num_layers):
            h_prev = state[l]
            i2h = ln(x @ params["wi"][l] + params["bi"][l])
            h2h = ln(h_prev @ params["wh"][l] + params["bh"][l])
            gates = jax.nn.sigmoid(i2h + h2h)
            z = gates[:, :hidden_dim]
            r = gates[:, hidden_dim:]
            hw = ln(x @ params["ww"][l] + params["bw"][l])
            hu = ln(h_prev @ params["wu"][l] + params["bu"][l])
            h_hat = jnp.tanh(hw + r * hu)
            h_t = (1.0 - z) * h_prev + z * h_hat
            new_state.append(h_t)
            x = h_t
        state = new_state
        outs.append(x)
    H_o = jnp.stack(outs, axis=1)                             # (B, t0, E)
    logits = H_o @ params["sw"] + params["sb"][0]
    return jax.nn.sigmoid(logits)


def init_params(key, *, batch, num_layers, hidden_dim):
    """Deterministic synthetic parameters.

    PyTorch: LayerNormGRUCell params ~ U(-1/sqrt(H), 1/sqrt(H)); sup_linear
    weight = xavier_uniform, bias = 0; h_init = xavier_uniform (B, H)."""
    E, H2, L = hidden_dim, 2 * hidden_dim, num_layers
    std = 1.0 / math.sqrt(hidden_dim)
    ks = jax.random.split(key, 12)
    u = lambda k, shp: jax.random.uniform(k, shp, jnp.float32, -std, std)

    xav_bound_sw = math.sqrt(6.0 / (E + E))
    xav_bound_h0 = math.sqrt(6.0 / (batch + E))

    return {
        "wi": u(ks[0], (L, E, H2)), "bi": u(ks[1], (L, H2)),
        "wh": u(ks[2], (L, E, H2)), "bh": u(ks[3], (L, H2)),
        "ww": u(ks[4], (L, E, E)),  "bw": u(ks[5], (L, E)),
        "wu": u(ks[6], (L, E, E)),  "bu": u(ks[7], (L, E)),
        "sw": jax.random.uniform(ks[8], (E, E), jnp.float32,
                                 -xav_bound_sw, xav_bound_sw),
        "sb": jnp.zeros((1, E), jnp.float32),
        # TODO(synk): PyTorch draws a fresh xavier_uniform h_init (on CUDA)
        # every forward; here it is a deterministic parameter.
        "h_init": jax.random.uniform(ks[9], (batch, E), jnp.float32,
                                     -xav_bound_h0, xav_bound_h0),
    }


if __name__ == "__main__":
    B, S, HID, L = 8, 8, 32, 3

    key = jax.random.PRNGKey(0)
    k_h, k_p = jax.random.split(key)
    H = jax.random.normal(k_h, (B, S, HID), jnp.float32)
    T = jnp.full((B,), S, jnp.int32)
    params = init_params(k_p, batch=B, num_layers=L, hidden_dim=HID)

    # One-time weight fusion + bf16 cast (outside the per-call path).
    packed = pack_params(params, mxu_dtype=jnp.bfloat16)

    out = supervisor_forward(H, T, packed, num_layers=L, hidden_dim=HID)
    out = jax.block_until_ready(out)

    ref = reference_forward(H, T, params, num_layers=L, hidden_dim=HID)
    assert out.shape == (B, S, HID)
    # bf16 MXU operands vs. f32 reference -> relaxed tolerance (the f32 path
    # via pack_params(mxu_dtype=jnp.float32) matches at 1e-4).
    max_err = float(jnp.max(jnp.abs(out - ref)))
    assert jnp.allclose(out, ref, atol=2e-2, rtol=2e-2), (
        f"mismatch vs reference, max abs err = {max_err}")

    print("KERNEL_OK")
</pallas_src>

<mosaic_0001>
module attributes {stable_mosaic.version = 11 : i64} {
  func.func @_supervisor_kernel(%arg0: memref<8x32xf32, #tpu.memory_space<vmem>>, %arg1: memref<64x32xf32, #tpu.memory_space<vmem>>, %arg2: memref<3x32x96xbf16, #tpu.memory_space<vmem>>, %arg3: memref<3x96xf32, #tpu.memory_space<vmem>>, %arg4: memref<3x32x96xbf16, #tpu.memory_space<vmem>>, %arg5: memref<3x96xf32, #tpu.memory_space<vmem>>, %arg6: memref<32x32xbf16, #tpu.memory_space<vmem>>, %arg7: memref<1x32xf32, #tpu.memory_space<vmem>>, %arg8: memref<64x32xf32, #tpu.memory_space<vmem>>, %arg9: memref<64x32xf32, #tpu.memory_space<vmem>>) attributes {dimension_semantics = [], scalar_prefetch = 0 : i64, scratch_operands = 1 : i64, tpu.core_type = #tpu.core_type<tc>} {
    %c0 = arith.constant 0 : index
    %c0_0 = arith.constant 0 : index
    %0 = vector.load %arg3[%c0, %c0_0] : memref<3x96xf32, #tpu.memory_space<vmem>>, vector<1x96xf32>
    %1 = vector.shape_cast %0 : vector<1x96xf32> to vector<96xf32>
    %2 = vector.shape_cast %1 : vector<96xf32> to vector<1x96xf32>
    %c1 = arith.constant 1 : index
    %c0_1 = arith.constant 0 : index
    %3 = vector.load %arg3[%c1, %c0_1] : memref<3x96xf32, #tpu.memory_space<vmem>>, vector<1x96xf32>
    %4 = vector.shape_cast %3 : vector<1x96xf32> to vector<96xf32>
    %5 = vector.shape_cast %4 : vector<96xf32> to vector<1x96xf32>
    %c2 = arith.constant 2 : index
    %c0_2 = arith.constant 0 : index
    %6 = vector.load %arg3[%c2, %c0_2] : memref<3x96xf32, #tpu.memory_space<vmem>>, vector<1x96xf32>
    %7 = vector.shape_cast %6 : vector<1x96xf32> to vector<96xf32>
    %8 = vector.shape_cast %7 : vector<96xf32> to vector<1x96xf32>
    %c0_3 = arith.constant 0 : index
    %c0_4 = arith.constant 0 : index
    %9 = vector.load %arg5[%c0_3, %c0_4] : memref<3x96xf32, #tpu.memory_space<vmem>>, vector<1x96xf32>
    %10 = vector.shape_cast %9 : vector<1x96xf32> to vector<96xf32>
    %11 = vector.shape_cast %10 : vector<96xf32> to vector<1x96xf32>
    %c1_5 = arith.constant 1 : index
    %c0_6 = arith.constant 0 : index
    %12 = vector.load %arg5[%c1_5, %c0_6] : memref<3x96xf32, #tpu.memory_space<vmem>>, vector<1x96xf32>
    %13 = vector.shape_cast %12 : vector<1x96xf32> to vector<96xf32>
    %14 = vector.shape_cast %13 : vector<96xf32> to vector<1x96xf32>
    %c2_7 = arith.constant 2 : index
    %c0_8 = arith.constant 0 : index
    %15 = vector.load %arg5[%c2_7, %c0_8] : memref<3x96xf32, #tpu.memory_space<vmem>>, vector<1x96xf32>
    %16 = vector.shape_cast %15 : vector<1x96xf32> to vector<96xf32>
    %17 = vector.shape_cast %16 : vector<96xf32> to vector<1x96xf32>
    %c0_9 = arith.constant 0 : index
    %c0_10 = arith.constant 0 : index
    %18 = vector.load %arg1[%c0_9, %c0_10] : memref<64x32xf32, #tpu.memory_space<vmem>>, vector<64x32xf32>
    %19 = arith.truncf %18 : vector<64x32xf32> to vector<64x32xbf16>
    %c0_11 = arith.constant 0 : index
    %c0_12 = arith.constant 0 : index
    %c0_13 = arith.constant 0 : index
    %20 = vector.load %arg2[%c0_11, %c0_12, %c0_13] : memref<3x32x96xbf16, #tpu.memory_space<vmem>>, vector<1x32x96xbf16>
    %21 = vector.shape_cast %20 : vector<1x32x96xbf16> to vector<32x96xbf16>
    %cst = arith.constant dense<0.000000e+00> : vector<64x96xf32>
    %22 = tpu.matmul %19, %21, %cst {dimension_numbers = #tpu.dot_dimension_numbers<[1], [0], [0], [1], [0, 0, 1, 1], [], []>} : vector<64x32xbf16>, vector<32x96xbf16>, vector<64x96xf32> -> vector<64x96xf32>
    %23 = vector.broadcast %2 : vector<1x96xf32> to vector<64x96xf32>
    %24 = arith.addf %22, %23 : vector<64x96xf32>
    %25 = vector.extract_strided_slice %24 {offsets = [0, 0], sizes = [64, 64], strides = [1, 1]} : vector<64x96xf32> to vector<64x64xf32>
    %cst_14 = arith.constant dense<0.000000e+00> : vector<64xf32>
    %26 = vector.multi_reduction <add>, %25, %cst_14 [1] : vector<64x64xf32> to vector<64xf32>
    %27 = vector.shape_cast %26 : vector<64xf32> to vector<64x1xf32>
    %cst_15 = arith.constant 6.400000e+01 : f32
    %28 = vector.broadcast %cst_15 : f32 to vector<64x1xf32>
    %29 = arith.divf %27, %28 : vector<64x1xf32>
    %30 = vector.broadcast %29 : vector<64x1xf32> to vector<64x64xf32>
    %31 = arith.subf %25, %30 : vector<64x64xf32>
    %32 = arith.mulf %31, %31 : vector<64x64xf32>
    %cst_16 = arith.constant dense<0.000000e+00> : vector<64xf32>
    %33 = vector.multi_reduction <add>, %32, %cst_16 [1] : vector<64x64xf32> to vector<64xf32>
    %34 = vector.shape_cast %33 : vector<64xf32> to vector<64x1xf32>
    %cst_17 = arith.constant 6.400000e+01 : f32
    %35 = vector.broadcast %cst_17 : f32 to vector<64x1xf32>
    %36 = arith.divf %34, %35 : vector<64x1xf32>
    %37 = vector.broadcast %29 : vector<64x1xf32> to vector<64x64xf32>
    %38 = arith.subf %25, %37 : vector<64x64xf32>
    %cst_18 = arith.constant 9.99999974E-6 : f32
    %39 = vector.broadcast %cst_18 : f32 to vector<64x1xf32>
    %40 = arith.addf %36, %39 : vector<64x1xf32>
    %41 = math.rsqrt %40 : vector<64x1xf32>
    %42 = vector.broadcast %41 : vector<64x1xf32> to vector<64x64xf32>
    %43 = arith.mulf %38, %42 : vector<64x64xf32>
    %44 = vector.extract_strided_slice %24 {offsets = [0, 64], sizes = [64, 32], strides = [1, 1]} : vector<64x96xf32> to vector<64x32xf32>
    %cst_19 = arith.constant dense<0.000000e+00> : vector<64xf32>
    %45 = vector.multi_reduction <add>, %44, %cst_19 [1] : vector<64x32xf32> to vector<64xf32>
    %46 = vector.shape_cast %45 : vector<64xf32> to vector<64x1xf32>
    %cst_20 = arith.constant 3.200000e+01 : f32
    %47 = vector.broadcast %cst_20 : f32 to vector<64x1xf32>
    %48 = arith.divf %46, %47 : vector<64x1xf32>
    %49 = vector.broadcast %48 : vector<64x1xf32> to vector<64x32xf32>
    %50 = arith.subf %44, %49 : vector<64x32xf32>
    %51 = arith.mulf %50, %50 : vector<64x32xf32>
    %cst_21 = arith.constant dense<0.000000e+00> : vector<64xf32>
    %52 = vector.multi_reduction <add>, %51, %cst_21 [1] : vector<64x32xf32> to vector<64xf32>
    %53 = vector.shape_cast %52 : vector<64xf32> to vector<64x1xf32>
    %cst_22 = arith.constant 3.200000e+01 : f32
    %54 = vector.broadcast %cst_22 : f32 to vector<64x1xf32>
    %55 = arith.divf %53, %54 : vector<64x1xf32>
    %56 = vector.broadcast %48 : vector<64x1xf32> to vector<64x32xf32>
    %57 = arith.subf %44, %56 : vector<64x32xf32>
    %cst_23 = arith.constant 9.99999974E-6 : f32
    %58 = vector.broadcast %cst_23 : f32 to vector<64x1xf32>
    %59 = arith.addf %55, %58 : vector<64x1xf32>
    %60 = math.rsqrt %59 : vector<64x1xf32>
    %61 = vector.broadcast %60 : vector<64x1xf32> to vector<64x32xf32>
    %62 = arith.mulf %57, %61 : vector<64x32xf32>
    %c0_24 = arith.constant 0 : index
    %c0_25 = arith.constant 0 : index
    %63 = vector.load %arg0[%c0_24, %c0_25] : memref<8x32xf32, #tpu.memory_space<vmem>>, vector<8x32xf32>
    %64 = arith.truncf %63 : vector<8x32xf32> to vector<8x32xbf16>
    %c0_26 = arith.constant 0 : index
    %c0_27 = arith.constant 0 : index
    %c0_28 = arith.constant 0 : index
    %65 = vector.load %arg4[%c0_26, %c0_27, %c0_28] : memref<3x32x96xbf16, #tpu.memory_space<vmem>>, vector<1x32x96xbf16>
    %66 = vector.shape_cast %65 : vector<1x32x96xbf16> to vector<32x96xbf16>
    %cst_29 = arith.constant dense<0.000000e+00> : vector<8x96xf32>
    %67 = tpu.matmul %64, %66, %cst_29 {dimension_numbers = #tpu.dot_dimension_numbers<[1], [0], [0], [1], [0, 0, 1, 1], [], []>} : vector<8x32xbf16>, vector<32x96xbf16>, vector<8x96xf32> -> vector<8x96xf32>
    %68 = vector.broadcast %11 : vector<1x96xf32> to vector<8x96xf32>
    %69 = arith.addf %67, %68 : vector<8x96xf32>
    %70 = vector.extract_strided_slice %69 {offsets = [0, 0], sizes = [8, 64], strides = [1, 1]} : vector<8x96xf32> to vector<8x64xf32>
    %cst_30 = arith.constant dense<0.000000e+00> : vector<8xf32>
    %71 = vector.multi_reduction <add>, %70, %cst_30 [1] : vector<8x64xf32> to vector<8xf32>
    %72 = vector.shape_cast %71 : vector<8xf32> to vector<8x1xf32>
    %cst_31 = arith.constant 6.400000e+01 : f32
    %73 = vector.broadcast %cst_31 : f32 to vector<8x1xf32>
    %74 = arith.divf %72, %73 : vector<8x1xf32>
    %75 = vector.broadcast %74 : vector<8x1xf32> to vector<8x64xf32>
    %76 = arith.subf %70, %75 : vector<8x64xf32>
    %77 = arith.mulf %76, %76 : vector<8x64xf32>
    %cst_32 = arith.constant dense<0.000000e+00> : vector<8xf32>
    %78 = vector.multi_reduction <add>, %77, %cst_32 [1] : vector<8x64xf32> to vector<8xf32>
    %79 = vector.shape_cast %78 : vector<8xf32> to vector<8x1xf32>
    %cst_33 = arith.constant 6.400000e+01 : f32
    %80 = vector.broadcast %cst_33 : f32 to vector<8x1xf32>
    %81 = arith.divf %79, %80 : vector<8x1xf32>
    %82 = vector.broadcast %74 : vector<8x1xf32> to vector<8x64xf32>
    %83 = arith.subf %70, %82 : vector<8x64xf32>
    %cst_34 = arith.constant 9.99999974E-6 : f32
    %84 = vector.broadcast %cst_34 : f32 to vector<8x1xf32>
    %85 = arith.addf %81, %84 : vector<8x1xf32>
    %86 = math.rsqrt %85 : vector<8x1xf32>
    %87 = vector.broadcast %86 : vector<8x1xf32> to vector<8x64xf32>
    %88 = arith.mulf %83, %87 : vector<8x64xf32>
    %89 = vector.extract_strided_slice %69 {offsets = [0, 64], sizes = [8, 32], strides = [1, 1]} : vector<8x96xf32> to vector<8x32xf32>
    %cst_35 = arith.constant dense<0.000000e+00> : vector<8xf32>
    %90 = vector.multi_reduction <add>, %89, %cst_35 [1] : vector<8x32xf32> to vector<8xf32>
    %91 = vector.shape_cast %90 : vector<8xf32> to vector<8x1xf32>
    %cst_36 = arith.constant 3.200000e+01 : f32
    %92 = vector.broadcast %cst_36 : f32 to vector<8x1xf32>
    %93 = arith.divf %91, %92 : vector<8x1xf32>
    %94 = vector.broadcast %93 : vector<8x1xf32> to vector<8x32xf32>
    %95 = arith.subf %89, %94 : vector<8x32xf32>
    %96 = arith.mulf %95, %95 : vector<8x32xf32>
    %cst_37 = arith.constant dense<0.000000e+00> : vector<8xf32>
    %97 = vector.multi_reduction <add>, %96, %cst_37 [1] : vector<8x32xf32> to vector<8xf32>
    %98 = vector.shape_cast %97 : vector<8xf32> to vector<8x1xf32>
    %cst_38 = arith.constant 3.200000e+01 : f32
    %99 = vector.broadcast %cst_38 : f32 to vector<8x1xf32>
    %100 = arith.divf %98, %99 : vector<8x1xf32>
    %101 = vector.broadcast %93 : vector<8x1xf32> to vector<8x32xf32>
    %102 = arith.subf %89, %101 : vector<8x32xf32>
    %cst_39 = arith.constant 9.99999974E-6 : f32
    %103 = vector.broadcast %cst_39 : f32 to vector<8x1xf32>
    %104 = arith.addf %100, %103 : vector<8x1xf32>
    %105 = math.rsqrt %104 : vector<8x1xf32>
    %106 = vector.broadcast %105 : vector<8x1xf32> to vector<8x32xf32>
    %107 = arith.mulf %102, %106 : vector<8x32xf32>
    %108 = vector.extract_strided_slice %43 {offsets = [0, 0], sizes = [8, 64], strides = [1, 1]} : vector<64x64xf32> to vector<8x64xf32>
    %109 = vector.extract_strided_slice %62 {offsets = [0, 0], sizes = [8, 32], strides = [1, 1]} : vector<64x32xf32> to vector<8x32xf32>
    %110 = arith.addf %108, %88 : vector<8x64xf32>
    %111 = arith.negf %110 : vector<8x64xf32>
    %112 = math.exp %111 : vector<8x64xf32>
    %cst_40 = arith.constant 1.000000e+00 : f32
    %113 = vector.broadcast %cst_40 : f32 to vector<8x64xf32>
    %114 = arith.addf %113, %112 : vector<8x64xf32>
    %115 = arith.divf %113, %114 : vector<8x64xf32>
    %116 = vector.extract_strided_slice %115 {offsets = [0, 0], sizes = [8, 32], strides = [1, 1]} : vector<8x64xf32> to vector<8x32xf32>
    %117 = vector.extract_strided_slice %115 {offsets = [0, 32], sizes = [8, 32], strides = [1, 1]} : vector<8x64xf32> to vector<8x32xf32>
    %118 = arith.mulf %117, %107 : vector<8x32xf32>
    %119 = arith.addf %109, %118 : vector<8x32xf32>
    %120 = math.tanh %119 : vector<8x32xf32>
    %cst_41 = arith.constant 1.000000e+00 : f32
    %121 = vector.broadcast %cst_41 : f32 to vector<8x32xf32>
    %122 = arith.subf %121, %116 : vector<8x32xf32>
    %123 = arith.mulf %122, %63 : vector<8x32xf32>
    %124 = arith.mulf %116, %120 : vector<8x32xf32>
    %125 = arith.addf %123, %124 : vector<8x32xf32>
    %126 = arith.truncf %63 : vector<8x32xf32> to vector<8x32xbf16>
    %c1_42 = arith.constant 1 : index
    %c0_43 = arith.constant 0 : index
    %c0_44 = arith.constant 0 : index
    %127 = vector.load %arg4[%c1_42, %c0_43, %c0_44] : memref<3x32x96xbf16, #tpu.memory_space<vmem>>, vector<1x32x96xbf16>
    %128 = vector.shape_cast %127 : vector<1x32x96xbf16> to vector<32x96xbf16>
    %cst_45 = arith.constant dense<0.000000e+00> : vector<8x96xf32>
    %129 = tpu.matmul %126, %128, %cst_45 {dimension_numbers = #tpu.dot_dimension_numbers<[1], [0], [0], [1], [0, 0, 1, 1], [], []>} : vector<8x32xbf16>, vector<32x96xbf16>, vector<8x96xf32> -> vector<8x96xf32>
    %130 = vector.broadcast %14 : vector<1x96xf32> to vector<8x96xf32>
    %131 = arith.addf %129, %130 : vector<8x96xf32>
    %132 = vector.extract_strided_slice %131 {offsets = [0, 0], sizes = [8, 64], strides = [1, 1]} : vector<8x96xf32> to vector<8x64xf32>
    %cst_46 = arith.constant dense<0.000000e+00> : vector<8xf32>
    %133 = vector.multi_reduction <add>, %132, %cst_46 [1] : vector<8x64xf32> to vector<8xf32>
    %134 = vector.shape_cast %133 : vector<8xf32> to vector<8x1xf32>
    %cst_47 = arith.constant 6.400000e+01 : f32
    %135 = vector.broadcast %cst_47 : f32 to vector<8x1xf32>
    %136 = arith.divf %134, %135 : vector<8x1xf32>
    %137 = vector.broadcast %136 : vector<8x1xf32> to vector<8x64xf32>
    %138 = arith.subf %132, %137 : vector<8x64xf32>
    %139 = arith.mulf %138, %138 : vector<8x64xf32>
    %cst_48 = arith.constant dense<0.000000e+00> : vector<8xf32>
    %140 = vector.multi_reduction <add>, %139, %cst_48 [1] : vector<8x64xf32> to vector<8xf32>
    %141 = vector.shape_cast %140 : vector<8xf32> to vector<8x1xf32>
    %cst_49 = arith.constant 6.400000e+01 : f32
    %142 = vector.broadcast %cst_49 : f32 to vector<8x1xf32>
    %143 = arith.divf %141, %142 : vector<8x1xf32>
    %144 = vector.broadcast %136 : vector<8x1xf32> to vector<8x64xf32>
    %145 = arith.subf %132, %144 : vector<8x64xf32>
    %cst_50 = arith.constant 9.99999974E-6 : f32
    %146 = vector.broadcast %cst_50 : f32 to vector<8x1xf32>
    %147 = arith.addf %143, %146 : vector<8x1xf32>
    %148 = math.rsqrt %147 : vector<8x1xf32>
    %149 = vector.broadcast %148 : vector<8x1xf32> to vector<8x64xf32>
    %150 = arith.mulf %145, %149 : vector<8x64xf32>
    %151 = vector.extract_strided_slice %131 {offsets = [0, 64], sizes = [8, 32], strides = [1, 1]} : vector<8x96xf32> to vector<8x32xf32>
    %cst_51 = arith.constant dense<0.000000e+00> : vector<8xf32>
    %152 = vector.multi_reduction <add>, %151, %cst_51 [1] : vector<8x32xf32> to vector<8xf32>
    %153 = vector.shape_cast %152 : vector<8xf32> to vector<8x1xf32>
    %cst_52 = arith.constant 3.200000e+01 : f32
    %154 = vector.broadcast %cst_52 : f32 to vector<8x1xf32>
    %155 = arith.divf %153, %154 : vector<8x1xf32>
    %156 = vector.broadcast %155 : vector<8x1xf32> to vector<8x32xf32>
    %157 = arith.subf %151, %156 : vector<8x32xf32>
    %158 = arith.mulf %157, %157 : vector<8x32xf32>
    %cst_53 = arith.constant dense<0.000000e+00> : vector<8xf32>
    %159 = vector.multi_reduction <add>, %158, %cst_53 [1] : vector<8x32xf32> to vector<8xf32>
    %160 = vector.shape_cast %159 : vector<8xf32> to vector<8x1xf32>
    %cst_54 = arith.constant 3.200000e+01 : f32
    %161 = vector.broadcast %cst_54 : f32 to vector<8x1xf32>
    %162 = arith.divf %160, %161 : vector<8x1xf32>
    %163 = vector.broadcast %155 : vector<8x1xf32> to vector<8x32xf32>
    %164 = arith.subf %151, %163 : vector<8x32xf32>
    %cst_55 = arith.constant 9.99999974E-6 : f32
    %165 = vector.broadcast %cst_55 : f32 to vector<8x1xf32>
    %166 = arith.addf %162, %165 : vector<8x1xf32>
    %167 = math.rsqrt %166 : vector<8x1xf32>
    %168 = vector.broadcast %167 : vector<8x1xf32> to vector<8x32xf32>
    %169 = arith.mulf %164, %168 : vector<8x32xf32>
    %170 = arith.truncf %125 : vector<8x32xf32> to vector<8x32xbf16>
    %c1_56 = arith.constant 1 : index
    %c0_57 = arith.constant 0 : index
    %c0_58 = arith.constant 0 : index
    %171 = vector.load %arg2[%c1_56, %c0_57, %c0_58] : memref<3x32x96xbf16, #tpu.memory_space<vmem>>, vector<1x32x96xbf16>
    %172 = vector.shape_cast %171 : vector<1x32x96xbf16> to vector<32x96xbf16>
    %cst_59 = arith.constant dense<0.000000e+00> : vector<8x96xf32>
    %173 = tpu.matmul %170, %172, %cst_59 {dimension_numbers = #tpu.dot_dimension_numbers<[1], [0], [0], [1], [0, 0, 1, 1], [], []>} : vector<8x32xbf16>, vector<32x96xbf16>, vector<8x96xf32> -> vector<8x96xf32>
    %174 = vector.broadcast %5 : vector<1x96xf32> to vector<8x96xf32>
    %175 = arith.addf %173, %174 : vector<8x96xf32>
    %176 = vector.extract_strided_slice %175 {offsets = [0, 0], sizes = [8, 64], strides = [1, 1]} : vector<8x96xf32> to vector<8x64xf32>
    %cst_60 = arith.constant dense<0.000000e+00> : vector<8xf32>
    %177 = vector.multi_reduction <add>, %176, %cst_60 [1] : vector<8x64xf32> to vector<8xf32>
    %178 = vector.shape_cast %177 : vector<8xf32> to vector<8x1xf32>
    %cst_61 = arith.constant 6.400000e+01 : f32
    %179 = vector.broadcast %cst_61 : f32 to vector<8x1xf32>
    %180 = arith.divf %178, %179 : vector<8x1xf32>
    %181 = vector.broadcast %180 : vector<8x1xf32> to vector<8x64xf32>
    %182 = arith.subf %176, %181 : vector<8x64xf32>
    %183 = arith.mulf %182, %182 : vector<8x64xf32>
    %cst_62 = arith.constant dense<0.000000e+00> : vector<8xf32>
    %184 = vector.multi_reduction <add>, %183, %cst_62 [1] : vector<8x64xf32> to vector<8xf32>
    %185 = vector.shape_cast %184 : vector<8xf32> to vector<8x1xf32>
    %cst_63 = arith.constant 6.400000e+01 : f32
    %186 = vector.broadcast %cst_63 : f32 to vector<8x1xf32>
    %187 = arith.divf %185, %186 : vector<8x1xf32>
    %188 = vector.broadcast %180 : vector<8x1xf32> to vector<8x64xf32>
    %189 = arith.subf %176, %188 : vector<8x64xf32>
    %cst_64 = arith.constant 9.99999974E-6 : f32
    %190 = vector.broadcast %cst_64 : f32 to vector<8x1xf32>
    %191 = arith.addf %187, %190 : vector<8x1xf32>
    %192 = math.rsqrt %191 : vector<8x1xf32>
    %193 = vector.broadcast %192 : vector<8x1xf32> to vector<8x64xf32>
    %194 = arith.mulf %189, %193 : vector<8x64xf32>
    %195 = vector.extract_strided_slice %175 {offsets = [0, 64], sizes = [8, 32], strides = [1, 1]} : vector<8x96xf32> to vector<8x32xf32>
    %cst_65 = arith.constant dense<0.000000e+00> : vector<8xf32>
    %196 = vector.multi_reduction <add>, %195, %cst_65 [1] : vector<8x32xf32> to vector<8xf32>
    %197 = vector.shape_cast %196 : vector<8xf32> to vector<8x1xf32>
    %cst_66 = arith.constant 3.200000e+01 : f32
    %198 = vector.broadcast %cst_66 : f32 to vector<8x1xf32>
    %199 = arith.divf %197, %198 : vector<8x1xf32>
    %200 = vector.broadcast %199 : vector<8x1xf32> to vector<8x32xf32>
    %201 = arith.subf %195, %200 : vector<8x32xf32>
    %202 = arith.mulf %201, %201 : vector<8x32xf32>
    %cst_67 = arith.constant dense<0.000000e+00> : vector<8xf32>
    %203 = vector.multi_reduction <add>, %202, %cst_67 [1] : vector<8x32xf32> to vector<8xf32>
    %204 = vector.shape_cast %203 : vector<8xf32> to vector<8x1xf32>
    %cst_68 = arith.constant 3.200000e+01 : f32
    %205 = vector.broadcast %cst_68 : f32 to vector<8x1xf32>
    %206 = arith.divf %204, %205 : vector<8x1xf32>
    %207 = vector.broadcast %199 : vector<8x1xf32> to vector<8x32xf32>
    %208 = arith.subf %195, %207 : vector<8x32xf32>
    %cst_69 = arith.constant 9.99999974E-6 : f32
    %209 = vector.broadcast %cst_69 : f32 to vector<8x1xf32>
    %210 = arith.addf %206, %209 : vector<8x1xf32>
    %211 = math.rsqrt %210 : vector<8x1xf32>
    %212 = vector.broadcast %211 : vector<8x1xf32> to vector<8x32xf32>
    %213 = arith.mulf %208, %212 : vector<8x32xf32>
    %214 = arith.addf %194, %150 : vector<8x64xf32>
    %215 = arith.negf %214 : vector<8x64xf32>
    %216 = math.exp %215 : vector<8x64xf32>
    %cst_70 = arith.constant 1.000000e+00 : f32
    %217 = vector.broadcast %cst_70 : f32 to vector<8x64xf32>
    %218 = arith.addf %217, %216 : vector<8x64xf32>
    %219 = arith.divf %217, %218 : vector<8x64xf32>
    %220 = vector.extract_strided_slice %219 {offsets = [0, 0], sizes = [8, 32], strides = [1, 1]} : vector<8x64xf32> to vector<8x32xf32>
    %221 = vector.extract_strided_slice %219 {offsets = [0, 32], sizes = [8, 32], strides = [1, 1]} : vector<8x64xf32> to vector<8x32xf32>
    %222 = arith.mulf %221, %169 : vector<8x32xf32>
    %223 = arith.addf %213, %222 : vector<8x32xf32>
    %224 = math.tanh %223 : vector<8x32xf32>
    %cst_71 = arith.constant 1.000000e+00 : f32
    %225 = vector.broadcast %cst_71 : f32 to vector<8x32xf32>
    %226 = arith.subf %225, %220 : vector<8x32xf32>
    %227 = arith.mulf %226, %63 : vector<8x32xf32>
    %228 = arith.mulf %220, %224 : vector<8x32xf32>
    %229 = arith.addf %227, %228 : vector<8x32xf32>
    %230 = arith.truncf %63 : vector<8x32xf32> to vector<8x32xbf16>
    %c2_72 = arith.constant 2 : index
    %c0_73 = arith.constant 0 : index
    %c0_74 = arith.constant 0 : index
    %231 = vector.load %arg4[%c2_72, %c0_73, %c0_74] : memref<3x32x96xbf16, #tpu.memory_space<vmem>>, vector<1x32x96xbf16>
    %232 = vector.shape_cast %231 : vector<1x32x96xbf16> to vector<32x96xbf16>
    %cst_75 = arith.constant dense<0.000000e+00> : vector<8x96xf32>
    %233 = tpu.matmul %230, %232, %cst_75 {dimension_numbers = #tpu.dot_dimension_numbers<[1], [0], [0], [1], [0, 0, 1, 1], [], []>} : vector<8x32xbf16>, vector<32x96xbf16>, vector<8x96xf32> -> vector<8x96xf32>
    %234 = vector.broadcast %17 : vector<1x96xf32> to vector<8x96xf32>
    %235 = arith.addf %233, %234 : vector<8x96xf32>
    %236 = vector.extract_strided_slice %235 {offsets = [0, 0], sizes = [8, 64], strides = [1, 1]} : vector<8x96xf32> to vector<8x64xf32>
    %cst_76 = arith.constant dense<0.000000e+00> : vector<8xf32>
    %237 = vector.multi_reduction <add>, %236, %cst_76 [1] : vector<8x64xf32> to vector<8xf32>
    %238 = vector.shape_cast %237 : vector<8xf32> to vector<8x1xf32>
    %cst_77 = arith.constant 6.400000e+01 : f32
    %239 = vector.broadcast %cst_77 : f32 to vector<8x1xf32>
    %240 = arith.divf %238, %239 : vector<8x1xf32>
    %241 = vector.broadcast %240 : vector<8x1xf32> to vector<8x64xf32>
    %242 = arith.subf %236, %241 : vector<8x64xf32>
    %243 = arith.mulf %242, %242 : vector<8x64xf32>
    %cst_78 = arith.constant dense<0.000000e+00> : vector<8xf32>
    %244 = vector.multi_reduction <add>, %243, %cst_78 [1] : vector<8x64xf32> to vector<8xf32>
    %245 = vector.shape_cast %244 : vector<8xf32> to vector<8x1xf32>
    %cst_79 = arith.constant 6.400000e+01 : f32
    %246 = vector.broadcast %cst_79 : f32 to vector<8x1xf32>
    %247 = arith.divf %245, %246 : vector<8x1xf32>
    %248 = vector.broadcast %240 : vector<8x1xf32> to vector<8x64xf32>
    %249 = arith.subf %236, %248 : vector<8x64xf32>
    %cst_80 = arith.constant 9.99999974E-6 : f32
    %250 = vector.broadcast %cst_80 : f32 to vector<8x1xf32>
    %251 = arith.addf %247, %250 : vector<8x1xf32>
    %252 = math.rsqrt %251 : vector<8x1xf32>
    %253 = vector.broadcast %252 : vector<8x1xf32> to vector<8x64xf32>
    %254 = arith.mulf %249, %253 : vector<8x64xf32>
    %255 = vector.extract_strided_slice %235 {offsets = [0, 64], sizes = [8, 32], strides = [1, 1]} : vector<8x96xf32> to vector<8x32xf32>
    %cst_81 = arith.constant dense<0.000000e+00> : vector<8xf32>
    %256 = vector.multi_reduction <add>, %255, %cst_81 [1] : vector<8x32xf32> to vector<8xf32>
    %257 = vector.shape_cast %256 : vector<8xf32> to vector<8x1xf32>
    %cst_82 = arith.constant 3.200000e+01 : f32
    %258 = vector.broadcast %cst_82 : f32 to vector<8x1xf32>
    %259 = arith.divf %257, %258 : vector<8x1xf32>
    %260 = vector.broadcast %259 : vector<8x1xf32> to vector<8x32xf32>
    %261 = arith.subf %255, %260 : vector<8x32xf32>
    %262 = arith.mulf %261, %261 : vector<8x32xf32>
    %cst_83 = arith.constant dense<0.000000e+00> : vector<8xf32>
    %263 = vector.multi_reduction <add>, %262, %cst_83 [1] : vector<8x32xf32> to vector<8xf32>
    %264 = vector.shape_cast %263 : vector<8xf32> to vector<8x1xf32>
    %cst_84 = arith.constant 3.200000e+01 : f32
    %265 = vector.broadcast %cst_84 : f32 to vector<8x1xf32>
    %266 = arith.divf %264, %265 : vector<8x1xf32>
    %267 = vector.broadcast %259 : vector<8x1xf32> to vector<8x32xf32>
    %268 = arith.subf %255, %267 : vector<8x32xf32>
    %cst_85 = arith.constant 9.99999974E-6 : f32
    %269 = vector.broadcast %cst_85 : f32 to vector<8x1xf32>
    %270 = arith.addf %266, %269 : vector<8x1xf32>
    %271 = math.rsqrt %270 : vector<8x1xf32>
    %272 = vector.broadcast %271 : vector<8x1xf32> to vector<8x32xf32>
    %273 = arith.mulf %268, %272 : vector<8x32xf32>
    %274 = arith.truncf %229 : vector<8x32xf32> to vector<8x32xbf16>
    %c2_86 = arith.constant 2 : index
    %c0_87 = arith.constant 0 : index
    %c0_88 = arith.constant 0 : index
    %275 = vector.load %arg2[%c2_86, %c0_87, %c0_88] : memref<3x32x96xbf16, #tpu.memory_space<vmem>>, vector<1x32x96xbf16>
    %276 = vector.shape_cast %275 : vector<1x32x96xbf16> to vector<32x96xbf16>
    %cst_89 = arith.constant dense<0.000000e+00> : vector<8x96xf32>
    %277 = tpu.matmul %274, %276, %cst_89 {dimension_numbers = #tpu.dot_dimension_numbers<[1], [0], [0], [1], [0, 0, 1, 1], [], []>} : vector<8x32xbf16>, vector<32x96xbf16>, vector<8x96xf32> -> vector<8x96xf32>
    %278 = vector.broadcast %8 : vector<1x96xf32> to vector<8x96xf32>
    %279 = arith.addf %277, %278 : vector<8x96xf32>
    %280 = vector.extract_strided_slice %279 {offsets = [0, 0], sizes = [8, 64], strides = [1, 1]} : vector<8x96xf32> to vector<8x64xf32>
    %cst_90 = arith.constant dense<0.000000e+00> : vector<8xf32>
    %281 = vector.multi_reduction <add>, %280, %cst_90 [1] : vector<8x64xf32> to vector<8xf32>
    %282 = vector.shape_cast %281 : vector<8xf32> to vector<8x1xf32>
    %cst_91 = arith.constant 6.400000e+01 : f32
    %283 = vector.broadcast %cst_91 : f32 to vector<8x1xf32>
    %284 = arith.divf %282, %283 : vector<8x1xf32>
    %285 = vector.broadcast %284 : vector<8x1xf32> to vector<8x64xf32>
    %286 = arith.subf %280, %285 : vector<8x64xf32>
    %287 = arith.mulf %286, %286 : vector<8x64xf32>
    %cst_92 = arith.constant dense<0.000000e+00> : vector<8xf32>
    %288 = vector.multi_reduction <add>, %287, %cst_92 [1] : vector<8x64xf32> to vector<8xf32>
    %289 = vector.shape_cast %288 : vector<8xf32> to vector<8x1xf32>
    %cst_93 = arith.constant 6.400000e+01 : f32
    %290 = vector.broadcast %cst_93 : f32 to vector<8x1xf32>
    %291 = arith.divf %289, %290 : vector<8x1xf32>
    %292 = vector.broadcast %284 : vector<8x1xf32> to vector<8x64xf32>
    %293 = arith.subf %280, %292 : vector<8x64xf32>
    %cst_94 = arith.constant 9.99999974E-6 : f32
    %294 = vector.broadcast %cst_94 : f32 to vector<8x1xf32>
    %295 = arith.addf %291, %294 : vector<8x1xf32>
    %296 = math.rsqrt %295 : vector<8x1xf32>
    %297 = vector.broadcast %296 : vector<8x1xf32> to vector<8x64xf32>
    %298 = arith.mulf %293, %297 : vector<8x64xf32>
    %299 = vector.extract_strided_slice %279 {offsets = [0, 64], sizes = [8, 32], strides = [1, 1]} : vector<8x96xf32> to vector<8x32xf32>
    %cst_95 = arith.constant dense<0.000000e+00> : vector<8xf32>
    %300 = vector.multi_reduction <add>, %299, %cst_95 [1] : vector<8x32xf32> to vector<8xf32>
    %301 = vector.shape_cast %300 : vector<8xf32> to vector<8x1xf32>
    %cst_96 = arith.constant 3.200000e+01 : f32
    %302 = vector.broadcast %cst_96 : f32 to vector<8x1xf32>
    %303 = arith.divf %301, %302 : vector<8x1xf32>
    %304 = vector.broadcast %303 : vector<8x1xf32> to vector<8x32xf32>
    %305 = arith.subf %299, %304 : vector<8x32xf32>
    %306 = arith.mulf %305, %305 : vector<8x32xf32>
    %cst_97 = arith.constant dense<0.000000e+00> : vector<8xf32>
    %307 = vector.multi_reduction <add>, %306, %cst_97 [1] : vector<8x32xf32> to vector<8xf32>
    %308 = vector.shape_cast %307 : vector<8xf32> to vector<8x1xf32>
    %cst_98 = arith.constant 3.200000e+01 : f32
    %309 = vector.broadcast %cst_98 : f32 to vector<8x1xf32>
    %310 = arith.divf %308, %309 : vector<8x1xf32>
    %311 = vector.broadcast %303 : vector<8x1xf32> to vector<8x32xf32>
    %312 = arith.subf %299, %311 : vector<8x32xf32>
    %cst_99 = arith.constant 9.99999974E-6 : f32
    %313 = vector.broadcast %cst_99 : f32 to vector<8x1xf32>
    %314 = arith.addf %310, %313 : vector<8x1xf32>
    %315 = math.rsqrt %314 : vector<8x1xf32>
    %316 = vector.broadcast %315 : vector<8x1xf32> to vector<8x32xf32>
    %317 = arith.mulf %312, %316 : vector<8x32xf32>
    %318 = arith.addf %298, %254 : vector<8x64xf32>
    %319 = arith.negf %318 : vector<8x64xf32>
    %320 = math.exp %319 : vector<8x64xf32>
    %cst_100 = arith.constant 1.000000e+00 : f32
    %321 = vector.broadcast %cst_100 : f32 to vector<8x64xf32>
    %322 = arith.addf %321, %320 : vector<8x64xf32>
    %323 = arith.divf %321, %322 : vector<8x64xf32>
    %324 = vector.extract_strided_slice %323 {offsets = [0, 0], sizes = [8, 32], strides = [1, 1]} : vector<8x64xf32> to vector<8x32xf32>
    %325 = vector.extract_strided_slice %323 {offsets = [0, 32], sizes = [8, 32], strides = [1, 1]} : vector<8x64xf32> to vector<8x32xf32>
    %326 = arith.mulf %325, %273 : vector<8x32xf32>
    %327 = arith.addf %317, %326 : vector<8x32xf32>
    %328 = math.tanh %327 : vector<8x32xf32>
    %cst_101 = arith.constant 1.000000e+00 : f32
    %329 = vector.broadcast %cst_101 : f32 to vector<8x32xf32>
    %330 = arith.subf %329, %324 : vector<8x32xf32>
    %331 = arith.mulf %330, %63 : vector<8x32xf32>
    %332 = arith.mulf %324, %328 : vector<8x32xf32>
    %333 = arith.addf %331, %332 : vector<8x32xf32>
    %c0_102 = arith.constant 0 : index
    %c0_103 = arith.constant 0 : index
    %334 = vector.load %arg9[%c0_102, %c0_103] : memref<64x32xf32, #tpu.memory_space<vmem>>, vector<8x32xf32>
    tpu.vector_store %arg9[%c0_102, %c0_103], %333 {strides = array<i32>} : memref<64x32xf32, #tpu.memory_space<vmem>>, vector<8x32xf32>,
    %335 = arith.truncf %125 : vector<8x32xf32> to vector<8x32xbf16>
    %c0_104 = arith.constant 0 : index
    %c0_105 = arith.constant 0 : index
    %c0_106 = arith.constant 0 : index
    %336 = vector.load %arg4[%c0_104, %c0_105, %c0_106] : memref<3x32x96xbf16, #tpu.memory_space<vmem>>, vector<1x32x96xbf16>
    %337 = vector.shape_cast %336 : vector<1x32x96xbf16> to vector<32x96xbf16>
    %cst_107 = arith.constant dense<0.000000e+00> : vector<8x96xf32>
    %338 = tpu.matmul %335, %337, %cst_107 {dimension_numbers = #tpu.dot_dimension_numbers<[1], [0], [0], [1], [0, 0, 1, 1], [], []>} : vector<8x32xbf16>, vector<32x96xbf16>, vector<8x96xf32> -> vector<8x96xf32>
    %339 = vector.broadcast %11 : vector<1x96xf32> to vector<8x96xf32>
    %340 = arith.addf %338, %339 : vector<8x96xf32>
    %341 = vector.extract_strided_slice %340 {offsets = [0, 0], sizes = [8, 64], strides = [1, 1]} : vector<8x96xf32> to vector<8x64xf32>
    %cst_108 = arith.constant dense<0.000000e+00> : vector<8xf32>
    %342 = vector.multi_reduction <add>, %341, %cst_108 [1] : vector<8x64xf32> to vector<8xf32>
    %343 = vector.shape_cast %342 : vector<8xf32> to vector<8x1xf32>
    %cst_109 = arith.constant 6.400000e+01 : f32
    %344 = vector.broadcast %cst_109 : f32 to vector<8x1xf32>
    %345 = arith.divf %343, %344 : vector<8x1xf32>
    %346 = vector.broadcast %345 : vector<8x1xf32> to vector<8x64xf32>
    %347 = arith.subf %341, %346 : vector<8x64xf32>
    %348 = arith.mulf %347, %347 : vector<8x64xf32>
    %cst_110 = arith.constant dense<0.000000e+00> : vector<8xf32>
    %349 = vector.multi_reduction <add>, %348, %cst_110 [1] : vector<8x64xf32> to vector<8xf32>
    %350 = vector.shape_cast %349 : vector<8xf32> to vector<8x1xf32>
    %cst_111 = arith.constant 6.400000e+01 : f32
    %351 = vector.broadcast %cst_111 : f32 to vector<8x1xf32>
    %352 = arith.divf %350, %351 : vector<8x1xf32>
    %353 = vector.broadcast %345 : vector<8x1xf32> to vector<8x64xf32>
    %354 = arith.subf %341, %353 : vector<8x64xf32>
    %cst_112 = arith.constant 9.99999974E-6 : f32
    %355 = vector.broadcast %cst_112 : f32 to vector<8x1xf32>
    %356 = arith.addf %352, %355 : vector<8x1xf32>
    %357 = math.rsqrt %356 : vector<8x1xf32>
    %358 = vector.broadcast %357 : vector<8x1xf32> to vector<8x64xf32>
    %359 = arith.mulf %354, %358 : vector<8x64xf32>
    %360 = vector.extract_strided_slice %340 {offsets = [0, 64], sizes = [8, 32], strides = [1, 1]} : vector<8x96xf32> to vector<8x32xf32>
    %cst_113 = arith.constant dense<0.000000e+00> : vector<8xf32>
    %361 = vector.multi_reduction <add>, %360, %cst_113 [1] : vector<8x32xf32> to vector<8xf32>
    %362 = vector.shape_cast %361 : vector<8xf32> to vector<8x1xf32>
    %cst_114 = arith.constant 3.200000e+01 : f32
    %363 = vector.broadcast %cst_114 : f32 to vector<8x1xf32>
    %364 = arith.divf %362, %363 : vector<8x1xf32>
    %365 = vector.broadcast %364 : vector<8x1xf32> to vector<8x32xf32>
    %366 = arith.subf %360, %365 : vector<8x32xf32>
    %367 = arith.mulf %366, %366 : vector<8x32xf32>
    %cst_115 = arith.constant dense<0.000000e+00> : vector<8xf32>
    %368 = vector.multi_reduction <add>, %367, %cst_115 [1] : vector<8x32xf32> to vector<8xf32>
    %369 = vector.shape_cast %368 : vector<8xf32> to vector<8x1xf32>
    %cst_116 = arith.constant 3.200000e+01 : f32
    %370 = vector.broadcast %cst_116 : f32 to vector<8x1xf32>
    %371 = arith.divf %369, %370 : vector<8x1xf32>
    %372 = vector.broadcast %364 : vector<8x1xf32> to vector<8x32xf32>
    %373 = arith.subf %360, %372 : vector<8x32xf32>
    %cst_117 = arith.constant 9.99999974E-6 : f32
    %374 = vector.broadcast %cst_117 : f32 to vector<8x1xf32>
    %375 = arith.addf %371, %374 : vector<8x1xf32>
    %376 = math.rsqrt %375 : vector<8x1xf32>
    %377 = vector.broadcast %376 : vector<8x1xf32> to vector<8x32xf32>
    %378 = arith.mulf %373, %377 : vector<8x32xf32>
    %379 = vector.extract_strided_slice %43 {offsets = [8, 0], sizes = [8, 64], strides = [1, 1]} : vector<64x64xf32> to vector<8x64xf32>
    %380 = vector.extract_strided_slice %62 {offsets = [8, 0], sizes = [8, 32], strides = [1, 1]} : vector<64x32xf32> to vector<8x32xf32>
    %381 = arith.addf %379, %359 : vector<8x64xf32>
    %382 = arith.negf %381 : vector<8x64xf32>
    %383 = math.exp %382 : vector<8x64xf32>
    %cst_118 = arith.constant 1.000000e+00 : f32
    %384 = vector.broadcast %cst_118 : f32 to vector<8x64xf32>
    %385 = arith.addf %384, %383 : vector<8x64xf32>
    %386 = arith.divf %384, %385 : vector<8x64xf32>
    %387 = vector.extract_strided_slice %386 {offsets = [0, 0], sizes = [8, 32], strides = [1, 1]} : vector<8x64xf32> to vector<8x32xf32>
    %388 = vector.extract_strided_slice %386 {offsets = [0, 32], sizes = [8, 32], strides = [1, 1]} : vector<8x64xf32> to vector<8x32xf32>
    %389 = arith.mulf %388, %378 : vector<8x32xf32>
    %390 = arith.addf %380, %389 : vector<8x32xf32>
    %391 = math.tanh %390 : vector<8x32xf32>
    %cst_119 = arith.constant 1.000000e+00 : f32
    %392 = vector.broadcast %cst_119 : f32 to vector<8x32xf32>
    %393 = arith.subf %392, %387 : vector<8x32xf32>
    %394 = arith.mulf %393, %125 : vector<8x32xf32>
    %395 = arith.mulf %387, %391 : vector<8x32xf32>
    %396 = arith.addf %394, %395 : vector<8x32xf32>
    %397 = arith.truncf %229 : vector<8x32xf32> to vector<8x32xbf16>
    %c1_120 = arith.constant 1 : index
    %c0_121 = arith.constant 0 : index
    %c0_122 = arith.constant 0 : index
    %398 = vector.load %arg4[%c1_120, %c0_121, %c0_122] : memref<3x32x96xbf16, #tpu.memory_space<vmem>>, vector<1x32x96xbf16>
    %399 = vector.shape_cast %398 : vector<1x32x96xbf16> to vector<32x96xbf16>
    %cst_123 = arith.constant dense<0.000000e+00> : vector<8x96xf32>
    %400 = tpu.matmul %397, %399, %cst_123 {dimension_numbers = #tpu.dot_dimension_numbers<[1], [0], [0], [1], [0, 0, 1, 1], [], []>} : vector<8x32xbf16>, vector<32x96xbf16>, vector<8x96xf32> -> vector<8x96xf32>
    %401 = vector.broadcast %14 : vector<1x96xf32> to vector<8x96xf32>
    %402 = arith.addf %400, %401 : vector<8x96xf32>
    %403 = vector.extract_strided_slice %402 {offsets = [0, 0], sizes = [8, 64], strides = [1, 1]} : vector<8x96xf32> to vector<8x64xf32>
    %cst_124 = arith.constant dense<0.000000e+00> : vector<8xf32>
    %404 = vector.multi_reduction <add>, %403, %cst_124 [1] : vector<8x64xf32> to vector<8xf32>
    %405 = vector.shape_cast %404 : vector<8xf32> to vector<8x1xf32>
    %cst_125 = arith.constant 6.400000e+01 : f32
    %406 = vector.broadcast %cst_125 : f32 to vector<8x1xf32>
    %407 = arith.divf %405, %406 : vector<8x1xf32>
    %408 = vector.broadcast %407 : vector<8x1xf32> to vector<8x64xf32>
    %409 = arith.subf %403, %408 : vector<8x64xf32>
    %410 = arith.mulf %409, %409 : vector<8x64xf32>
    %cst_126 = arith.constant dense<0.000000e+00> : vector<8xf32>
    %411 = vector.multi_reduction <add>, %410, %cst_126 [1] : vector<8x64xf32> to vector<8xf32>
    %412 = vector.shape_cast %411 : vector<8xf32> to vector<8x1xf32>
    %cst_127 = arith.constant 6.400000e+01 : f32
    %413 = vector.broadcast %cst_127 : f32 to vector<8x1xf32>
    %414 = arith.divf %412, %413 : vector<8x1xf32>
    %415 = vector.broadcast %407 : vector<8x1xf32> to vector<8x64xf32>
    %416 = arith.subf %403, %415 : vector<8x64xf32>
    %cst_128 = arith.constant 9.99999974E-6 : f32
    %417 = vector.broadcast %cst_128 : f32 to vector<8x1xf32>
    %418 = arith.addf %414, %417 : vector<8x1xf32>
    %419 = math.rsqrt %418 : vector<8x1xf32>
    %420 = vector.broadcast %419 : vector<8x1xf32> to vector<8x64xf32>
    %421 = arith.mulf %416, %420 : vector<8x64xf32>
    %422 = vector.extract_strided_slice %402 {offsets = [0, 64], sizes = [8, 32], strides = [1, 1]} : vector<8x96xf32> to vector<8x32xf32>
    %cst_129 = arith.constant dense<0.000000e+00> : vector<8xf32>
    %423 = vector.multi_reduction <add>, %422, %cst_129 [1] : vector<8x32xf32> to vector<8xf32>
    %424 = vector.shape_cast %423 : vector<8xf32> to vector<8x1xf32>
    %cst_130 = arith.constant 3.200000e+01 : f32
    %425 = vector.broadcast %cst_130 : f32 to vector<8x1xf32>
    %426 = arith.divf %424, %425 : vector<8x1xf32>
    %427 = vector.broadcast %426 : vector<8x1xf32> to vector<8x32xf32>
    %428 = arith.subf %422, %427 : vector<8x32xf32>
    %429 = arith.mulf %428, %428 : vector<8x32xf32>
    %cst_131 = arith.constant dense<0.000000e+00> : vector<8xf32>
    %430 = vector.multi_reduction <add>, %429, %cst_131 [1] : vector<8x32xf32> to vector<8xf32>
    %431 = vector.shape_cast %430 : vector<8xf32> to vector<8x1xf32>
    %cst_132 = arith.constant 3.200000e+01 : f32
    %432 = vector.broadcast %cst_132 : f32 to vector<8x1xf32>
    %433 = arith.divf %431, %432 : vector<8x1xf32>
    %434 = vector.broadcast %426 : vector<8x1xf32> to vector<8x32xf32>
    %435 = arith.subf %422, %434 : vector<8x32xf32>
    %cst_133 = arith.constant 9.99999974E-6 : f32
    %436 = vector.broadcast %cst_133 : f32 to vector<8x1xf32>
    %437 = arith.addf %433, %436 : vector<8x1xf32>
    %438 = math.rsqrt %437 : vector<8x1xf32>
    %439 = vector.broadcast %438 : vector<8x1xf32> to vector<8x32xf32>
    %440 = arith.mulf %435, %439 : vector<8x32xf32>
    %441 = arith.truncf %396 : vector<8x32xf32> to vector<8x32xbf16>
    %c1_134 = arith.constant 1 : index
    %c0_135 = arith.constant 0 : index
    %c0_136 = arith.constant 0 : index
    %442 = vector.load %arg2[%c1_134, %c0_135, %c0_136] : memref<3x32x96xbf16, #tpu.memory_space<vmem>>, vector<1x32x96xbf16>
    %443 = vector.shape_cast %442 : vector<1x32x96xbf16> to vector<32x96xbf16>
    %cst_137 = arith.constant dense<0.000000e+00> : vector<8x96xf32>
    %444 = tpu.matmul %441, %443, %cst_137 {dimension_numbers = #tpu.dot_dimension_numbers<[1], [0], [0], [1], [0, 0, 1, 1], [], []>} : vector<8x32xbf16>, vector<32x96xbf16>, vector<8x96xf32> -> vector<8x96xf32>
    %445 = vector.broadcast %5 : vector<1x96xf32> to vector<8x96xf32>
    %446 = arith.addf %444, %445 : vector<8x96xf32>
    %447 = vector.extract_strided_slice %446 {offsets = [0, 0], sizes = [8, 64], strides = [1, 1]} : vector<8x96xf32> to vector<8x64xf32>
    %cst_138 = arith.constant dense<0.000000e+00> : vector<8xf32>
    %448 = vector.multi_reduction <add>, %447, %cst_138 [1] : vector<8x64xf32> to vector<8xf32>
    %449 = vector.shape_cast %448 : vector<8xf32> to vector<8x1xf32>
    %cst_139 = arith.constant 6.400000e+01 : f32
    %450 = vector.broadcast %cst_139 : f32 to vector<8x1xf32>
    %451 = arith.divf %449, %450 : vector<8x1xf32>
    %452 = vector.broadcast %451 : vector<8x1xf32> to vector<8x64xf32>
    %453 = arith.subf %447, %452 : vector<8x64xf32>
    %454 = arith.mulf %453, %453 : vector<8x64xf32>
    %cst_140 = arith.constant dense<0.000000e+00> : vector<8xf32>
    %455 = vector.multi_reduction <add>, %454, %cst_140 [1] : vector<8x64xf32> to vector<8xf32>
    %456 = vector.shape_cast %455 : vector<8xf32> to vector<8x1xf32>
    %cst_141 = arith.constant 6.400000e+01 : f32
    %457 = vector.broadcast %cst_141 : f32 to vector<8x1xf32>
    %458 = arith.divf %456, %457 : vector<8x1xf32>
    %459 = vector.broadcast %451 : vector<8x1xf32> to vector<8x64xf32>
    %460 = arith.subf %447, %459 : vector<8x64xf32>
    %cst_142 = arith.constant 9.99999974E-6 : f32
    %461 = vector.broadcast %cst_142 : f32 to vector<8x1xf32>
    %462 = arith.addf %458, %461 : vector<8x1xf32>
    %463 = math.rsqrt %462 : vector<8x1xf32>
    %464 = vector.broadcast %463 : vector<8x1xf32> to vector<8x64xf32>
    %465 = arith.mulf %460, %464 : vector<8x64xf32>
    %466 = vector.extract_strided_slice %446 {offsets = [0, 64], sizes = [8, 32], strides = [1, 1]} : vector<8x96xf32> to vector<8x32xf32>
    %cst_143 = arith.constant dense<0.000000e+00> : vector<8xf32>
    %467 = vector.multi_reduction <add>, %466, %cst_143 [1] : vector<8x32xf32> to vector<8xf32>
    %468 = vector.shape_cast %467 : vector<8xf32> to vector<8x1xf32>
    %cst_144 = arith.constant 3.200000e+01 : f32
    %469 = vector.broadcast %cst_144 : f32 to vector<8x1xf32>
    %470 = arith.divf %468, %469 : vector<8x1xf32>
    %471 = vector.broadcast %470 : vector<8x1xf32> to vector<8x32xf32>
    %472 = arith.subf %466, %471 : vector<8x32xf32>
    %473 = arith.mulf %472, %472 : vector<8x32xf32>
    %cst_145 = arith.constant dense<0.000000e+00> : vector<8xf32>
    %474 = vector.multi_reduction <add>, %473, %cst_145 [1] : vector<8x32xf32> to vector<8xf32>
    %475 = vector.shape_cast %474 : vector<8xf32> to vector<8x1xf32>
    %cst_146 = arith.constant 3.200000e+01 : f32
    %476 = vector.broadcast %cst_146 : f32 to vector<8x1xf32>
    %477 = arith.divf %475, %476 : vector<8x1xf32>
    %478 = vector.broadcast %470 : vector<8x1xf32> to vector<8x32xf32>
    %479 = arith.subf %466, %478 : vector<8x32xf32>
    %cst_147 = arith.constant 9.99999974E-6 : f32
    %480 = vector.broadcast %cst_147 : f32 to vector<8x1xf32>
    %481 = arith.addf %477, %480 : vector<8x1xf32>
    %482 = math.rsqrt %481 : vector<8x1xf32>
    %483 = vector.broadcast %482 : vector<8x1xf32> to vector<8x32xf32>
    %484 = arith.mulf %479, %483 : vector<8x32xf32>
    %485 = arith.addf %465, %421 : vector<8x64xf32>
    %486 = arith.negf %485 : vector<8x64xf32>
    %487 = math.exp %486 : vector<8x64xf32>
    %cst_148 = arith.constant 1.000000e+00 : f32
    %488 = vector.broadcast %cst_148 : f32 to vector<8x64xf32>
    %489 = arith.addf %488, %487 : vector<8x64xf32>
    %490 = arith.divf %488, %489 : vector<8x64xf32>
    %491 = vector.extract_strided_slice %490 {offsets = [0, 0], sizes = [8, 32], strides = [1, 1]} : vector<8x64xf32> to vector<8x32xf32>
    %492 = vector.extract_strided_slice %490 {offsets = [0, 32], sizes = [8, 32], strides = [1, 1]} : vector<8x64xf32> to vector<8x32xf32>
    %493 = arith.mulf %492, %440 : vector<8x32xf32>
    %494 = arith.addf %484, %493 : vector<8x32xf32>
    %495 = math.tanh %494 : vector<8x32xf32>
    %cst_149 = arith.constant 1.000000e+00 : f32
    %496 = vector.broadcast %cst_149 : f32 to vector<8x32xf32>
    %497 = arith.subf %496, %491 : vector<8x32xf32>
    %498 = arith.mulf %497, %229 : vector<8x32xf32>
    %499 = arith.mulf %491, %495 : vector<8x32xf32>
    %500 = arith.addf %498, %499 : vector<8x32xf32>
    %501 = arith.truncf %333 : vector<8x32xf32> to vector<8x32xbf16>
    %c2_150 = arith.constant 2 : index
    %c0_151 = arith.constant 0 : index
    %c0_152 = arith.constant 0 : index
    %502 = vector.load %arg4[%c2_150, %c0_151, %c0_152] : memref<3x32x96xbf16, #tpu.memory_space<vmem>>, vector<1x32x96xbf16>
    %503 = vector.shape_cast %502 : vector<1x32x96xbf16> to vector<32x96xbf16>
    %cst_153 = arith.constant dense<0.000000e+00> : vector<8x96xf32>
    %504 = tpu.matmul %501, %503, %cst_153 {dimension_numbers = #tpu.dot_dimension_numbers<[1], [0], [0], [1], [0, 0, 1, 1], [], []>} : vector<8x32xbf16>, vector<32x96xbf16>, vector<8x96xf32> -> vector<8x96xf32>
    %505 = vector.broadcast %17 : vector<1x96xf32> to vector<8x96xf32>
    %506 = arith.addf %504, %505 : vector<8x96xf32>
    %507 = vector.extract_strided_slice %506 {offsets = [0, 0], sizes = [8, 64], strides = [1, 1]} : vector<8x96xf32> to vector<8x64xf32>
    %cst_154 = arith.constant dense<0.000000e+00> : vector<8xf32>
    %508 = vector.multi_reduction <add>, %507, %cst_154 [1] : vector<8x64xf32> to vector<8xf32>
    %509 = vector.shape_cast %508 : vector<8xf32> to vector<8x1xf32>
    %cst_155 = arith.constant 6.400000e+01 : f32
    %510 = vector.broadcast %cst_155 : f32 to vector<8x1xf32>
    %511 = arith.divf %509, %510 : vector<8x1xf32>
    %512 = vector.broadcast %511 : vector<8x1xf32> to vector<8x64xf32>
    %513 = arith.subf %507, %512 : vector<8x64xf32>
    %514 = arith.mulf %513, %513 : vector<8x64xf32>
    %cst_156 = arith.constant dense<0.000000e+00> : vector<8xf32>
    %515 = vector.multi_reduction <add>, %514, %cst_156 [1] : vector<8x64xf32> to vector<8xf32>
    %516 = vector.shape_cast %515 : vector<8xf32> to vector<8x1xf32>
    %cst_157 = arith.constant 6.400000e+01 : f32
    %517 = vector.broadcast %cst_157 : f32 to vector<8x1xf32>
    %518 = arith.divf %516, %517 : vector<8x1xf32>
    %519 = vector.broadcast %511 : vector<8x1xf32> to vector<8x64xf32>
    %520 = arith.subf %507, %519 : vector<8x64xf32>
    %cst_158 = arith.constant 9.99999974E-6 : f32
    %521 = vector.broadcast %cst_158 : f32 to vector<8x1xf32>
    %522 = arith.addf %518, %521 : vector<8x1xf32>
    %523 = math.rsqrt %522 : vector<8x1xf32>
    %524 = vector.broadcast %523 : vector<8x1xf32> to vector<8x64xf32>
    %525 = arith.mulf %520, %524 : vector<8x64xf32>
    %526 = vector.extract_strided_slice %506 {offsets = [0, 64], sizes = [8, 32], strides = [1, 1]} : vector<8x96xf32> to vector<8x32xf32>
    %cst_159 = arith.constant dense<0.000000e+00> : vector<8xf32>
    %527 = vector.multi_reduction <add>, %526, %cst_159 [1] : vector<8x32xf32> to vector<8xf32>
    %528 = vector.shape_cast %527 : vector<8xf32> to vector<8x1xf32>
    %cst_160 = arith.constant 3.200000e+01 : f32
    %529 = vector.broadcast %cst_160 : f32 to vector<8x1xf32>
    %530 = arith.divf %528, %529 : vector<8x1xf32>
    %531 = vector.broadcast %530 : vector<8x1xf32> to vector<8x32xf32>
    %532 = arith.subf %526, %531 : vector<8x32xf32>
    %533 = arith.mulf %532, %532 : vector<8x32xf32>
    %cst_161 = arith.constant dense<0.000000e+00> : vector<8xf32>
    %534 = vector.multi_reduction <add>, %533, %cst_161 [1] : vector<8x32xf32> to vector<8xf32>
    %535 = vector.shape_cast %534 : vector<8xf32> to vector<8x1xf32>
    %cst_162 = arith.constant 3.200000e+01 : f32
    %536 = vector.broadcast %cst_162 : f32 to vector<8x1xf32>
    %537 = arith.divf %535, %536 : vector<8x1xf32>
    %538 = vector.broadcast %530 : vector<8x1xf32> to vector<8x32xf32>
    %539 = arith.subf %526, %538 : vector<8x32xf32>
    %cst_163 = arith.constant 9.99999974E-6 : f32
    %540 = vector.broadcast %cst_163 : f32 to vector<8x1xf32>
    %541 = arith.addf %537, %540 : vector<8x1xf32>
    %542 = math.rsqrt %541 : vector<8x1xf32>
    %543 = vector.broadcast %542 : vector<8x1xf32> to vector<8x32xf32>
    %544 = arith.mulf %539, %543 : vector<8x32xf32>
    %545 = arith.truncf %500 : vector<8x32xf32> to vector<8x32xbf16>
    %c2_164 = arith.constant 2 : index
    %c0_165 = arith.constant 0 : index
    %c0_166 = arith.constant 0 : index
    %546 = vector.load %arg2[%c2_164, %c0_165, %c0_166] : memref<3x32x96xbf16, #tpu.memory_space<vmem>>, vector<1x32x96xbf16>
    %547 = vector.shape_cast %546 : vector<1x32x96xbf16> to vector<32x96xbf16>
    %cst_167 = arith.constant dense<0.000000e+00> : vector<8x96xf32>
    %548 = tpu.matmul %545, %547, %cst_167 {dimension_numbers = #tpu.dot_dimension_numbers<[1], [0], [0], [1], [0, 0, 1, 1], [], []>} : vector<8x32xbf16>, vector<32x96xbf16>, vector<8x96xf32> -> vector<8x96xf32>
    %549 = vector.broadcast %8 : vector<1x96xf32> to vector<8x96xf32>
    %550 = arith.addf %548, %549 : vector<8x96xf32>
    %551 = vector.extract_strided_slice %550 {offsets = [0, 0], sizes = [8, 64], strides = [1, 1]} : vector<8x96xf32> to vector<8x64xf32>
    %cst_168 = arith.constant dense<0.000000e+00> : vector<8xf32>
    %552 = vector.multi_reduction <add>, %551, %cst_168 [1] : vector<8x64xf32> to vector<8xf32>
    %553 = vector.shape_cast %552 : vector<8xf32> to vector<8x1xf32>
    %cst_169 = arith.constant 6.400000e+01 : f32
    %554 = vector.broadcast %cst_169 : f32 to vector<8x1xf32>
    %555 = arith.divf %553, %554 : vector<8x1xf32>
    %556 = vector.broadcast %555 : vector<8x1xf32> to vector<8x64xf32>
    %557 = arith.subf %551, %556 : vector<8x64xf32>
    %558 = arith.mulf %557, %557 : vector<8x64xf32>
    %cst_170 = arith.constant dense<0.000000e+00> : vector<8xf32>
    %559 = vector.multi_reduction <add>, %558, %cst_170 [1] : vector<8x64xf32> to vector<8xf32>
    %560 = vector.shape_cast %559 : vector<8xf32> to vector<8x1xf32>
    %cst_171 = arith.constant 6.400000e+01 : f32
    %561 = vector.broadcast %cst_171 : f32 to vector<8x1xf32>
    %562 = arith.divf %560, %561 : vector<8x1xf32>
    %563 = vector.broadcast %555 : vector<8x1xf32> to vector<8x64xf32>
    %564 = arith.subf %551, %563 : vector<8x64xf32>
    %cst_172 = arith.constant 9.99999974E-6 : f32
    %565 = vector.broadcast %cst_172 : f32 to vector<8x1xf32>
    %566 = arith.addf %562, %565 : vector<8x1xf32>
    %567 = math.rsqrt %566 : vector<8x1xf32>
    %568 = vector.broadcast %567 : vector<8x1xf32> to vector<8x64xf32>
    %569 = arith.mulf %564, %568 : vector<8x64xf32>
    %570 = vector.extract_strided_slice %550 {offsets = [0, 64], sizes = [8, 32], strides = [1, 1]} : vector<8x96xf32> to vector<8x32xf32>
    %cst_173 = arith.constant dense<0.000000e+00> : vector<8xf32>
    %571 = vector.multi_reduction <add>, %570, %cst_173 [1] : vector<8x32xf32> to vector<8xf32>
    %572 = vector.shape_cast %571 : vector<8xf32> to vector<8x1xf32>
    %cst_174 = arith.constant 3.200000e+01 : f32
    %573 = vector.broadcast %cst_174 : f32 to vector<8x1xf32>
    %574 = arith.divf %572, %573 : vector<8x1xf32>
    %575 = vector.broadcast %574 : vector<8x1xf32> to vector<8x32xf32>
    %576 = arith.subf %570, %575 : vector<8x32xf32>
    %577 = arith.mulf %576, %576 : vector<8x32xf32>
    %cst_175 = arith.constant dense<0.000000e+00> : vector<8xf32>
    %578 = vector.multi_reduction <add>, %577, %cst_175 [1] : vector<8x32xf32> to vector<8xf32>
    %579 = vector.shape_cast %578 : vector<8xf32> to vector<8x1xf32>
    %cst_176 = arith.constant 3.200000e+01 : f32
    %580 = vector.broadcast %cst_176 : f32 to vector<8x1xf32>
    %581 = arith.divf %579, %580 : vector<8x1xf32>
    %582 = vector.broadcast %574 : vector<8x1xf32> to vector<8x32xf32>
    %583 = arith.subf %570, %582 : vector<8x32xf32>
    %cst_177 = arith.constant 9.99999974E-6 : f32
    %584 = vector.broadcast %cst_177 : f32 to vector<8x1xf32>
    %585 = arith.addf %581, %584 : vector<8x1xf32>
    %586 = math.rsqrt %585 : vector<8x1xf32>
    %587 = vector.broadcast %586 : vector<8x1xf32> to vector<8x32xf32>
    %588 = arith.mulf %583, %587 : vector<8x32xf32>
    %589 = arith.addf %569, %525 : vector<8x64xf32>
    %590 = arith.negf %589 : vector<8x64xf32>
    %591 = math.exp %590 : vector<8x64xf32>
    %cst_178 = arith.constant 1.000000e+00 : f32
    %592 = vector.broadcast %cst_178 : f32 to vector<8x64xf32>
    %593 = arith.addf %592, %591 : vector<8x64xf32>
    %594 = arith.divf %592, %593 : vector<8x64xf32>
    %595 = vector.extract_strided_slice %594 {offsets = [0, 0], sizes = [8, 32], strides = [1, 1]} : vector<8x64xf32> to vector<8x32xf32>
    %596 = vector.extract_strided_slice %594 {offsets = [0, 32], sizes = [8, 32], strides = [1, 1]} : vector<8x64xf32> to vector<8x32xf32>
    %597 = arith.mulf %596, %544 : vector<8x32xf32>
    %598 = arith.addf %588, %597 : vector<8x32xf32>
    %599 = math.tanh %598 : vector<8x32xf32>
    %cst_179 = arith.constant 1.000000e+00 : f32
    %600 = vector.broadcast %cst_179 : f32 to vector<8x32xf32>
    %601 = arith.subf %600, %595 : vector<8x32xf32>
    %602 = arith.mulf %601, %333 : vector<8x32xf32>
    %603 = arith.mulf %595, %599 : vector<8x32xf32>
    %604 = arith.addf %602, %603 : vector<8x32xf32>
    %c8 = arith.constant 8 : index
    %c0_180 = arith.constant 0 : index
    %605 = vector.load %arg9[%c8, %c0_180] : memref<64x32xf32, #tpu.memory_space<vmem>>, vector<8x32xf32>
    tpu.vector_store %arg9[%c8, %c0_180], %604 {strides = array<i32>} : memref<64x32xf32, #tpu.memory_space<vmem>>, vector<8x32xf32>,
    %606 = arith.truncf %396 : vector<8x32xf32> to vector<8x32xbf16>
    %c0_181 = arith.constant 0 : index
    %c0_182 = arith.constant 0 : index
    %c0_183 = arith.constant 0 : index
    %607 = vector.load %arg4[%c0_181, %c0_182, %c0_183] : memref<3x32x96xbf16, #tpu.memory_space<vmem>>, vector<1x32x96xbf16>
    %608 = vector.shape_cast %607 : vector<1x32x96xbf16> to vector<32x96xbf16>
    %cst_184 = arith.constant dense<0.000000e+00> : vector<8x96xf32>
    %609 = tpu.matmul %606, %608, %cst_184 {dimension_numbers = #tpu.dot_dimension_numbers<[1], [0], [0], [1], [0, 0, 1, 1], [], []>} : vector<8x32xbf16>, vector<32x96xbf16>, vector<8x96xf32> -> vector<8x96xf32>
    %610 = vector.broadcast %11 : vector<1x96xf32> to vector<8x96xf32>
    %611 = arith.addf %609, %610 : vector<8x96xf32>
    %612 = vector.extract_strided_slice %611 {offsets = [0, 0], sizes = [8, 64], strides = [1, 1]} : vector<8x96xf32> to vector<8x64xf32>
    %cst_185 = arith.constant dense<0.000000e+00> : vector<8xf32>
    %613 = vector.multi_reduction <add>, %612, %cst_185 [1] : vector<8x64xf32> to vector<8xf32>
    %614 = vector.shape_cast %613 : vector<8xf32> to vector<8x1xf32>
    %cst_186 = arith.constant 6.400000e+01 : f32
    %615 = vector.broadcast %cst_186 : f32 to vector<8x1xf32>
    %616 = arith.divf %614, %615 : vector<8x1xf32>
    %617 = vector.broadcast %616 : vector<8x1xf32> to vector<8x64xf32>
    %618 = arith.subf %612, %617 : vector<8x64xf32>
    %619 = arith.mulf %618, %618 : vector<8x64xf32>
    %cst_187 = arith.constant dense<0.000000e+00> : vector<8xf32>
    %620 = vector.multi_reduction <add>, %619, %cst_187 [1] : vector<8x64xf32> to vector<8xf32>
    %621 = vector.shape_cast %620 : vector<8xf32> to vector<8x1xf32>
    %cst_188 = arith.constant 6.400000e+01 : f32
    %622 = vector.broadcast %cst_188 : f32 to vector<8x1xf32>
    %623 = arith.divf %621, %622 : vector<8x1xf32>
    %624 = vector.broadcast %616 : vector<8x1xf32> to vector<8x64xf32>
    %625 = arith.subf %612, %624 : vector<8x64xf32>
    %cst_189 = arith.constant 9.99999974E-6 : f32
    %626 = vector.broadcast %cst_189 : f32 to vector<8x1xf32>
    %627 = arith.addf %623, %626 : vector<8x1xf32>
    %628 = math.rsqrt %627 : vector<8x1xf32>
    %629 = vector.broadcast %628 : vector<8x1xf32> to vector<8x64xf32>
    %630 = arith.mulf %625, %629 : vector<8x64xf32>
    %631 = vector.extract_strided_slice %611 {offsets = [0, 64], sizes = [8, 32], strides = [1, 1]} : vector<8x96xf32> to vector<8x32xf32>
    %cst_190 = arith.constant dense<0.000000e+00> : vector<8xf32>
    %632 = vector.multi_reduction <add>, %631, %cst_190 [1] : vector<8x32xf32> to vector<8xf32>
    %633 = vector.shape_cast %632 : vector<8xf32> to vector<8x1xf32>
    %cst_191 = arith.constant 3.200000e+01 : f32
    %634 = vector.broadcast %cst_191 : f32 to vector<8x1xf32>
    %635 = arith.divf %633, %634 : vector<8x1xf32>
    %636 = vector.broadcast %635 : vector<8x1xf32> to vector<8x32xf32>
    %637 = arith.subf %631, %636 : vector<8x32xf32>
    %638 = arith.mulf %637, %637 : vector<8x32xf32>
    %cst_192 = arith.constant dense<0.000000e+00> : vector<8xf32>
    %639 = vector.multi_reduction <add>, %638, %cst_192 [1] : vector<8x32xf32> to vector<8xf32>
    %640 = vector.shape_cast %639 : vector<8xf32> to vector<8x1xf32>
    %cst_193 = arith.constant 3.200000e+01 : f32
    %641 = vector.broadcast %cst_193 : f32 to vector<8x1xf32>
    %642 = arith.divf %640, %641 : vector<8x1xf32>
    %643 = vector.broadcast %635 : vector<8x1xf32> to vector<8x32xf32>
    %644 = arith.subf %631, %643 : vector<8x32xf32>
    %cst_194 = arith.constant 9.99999974E-6 : f32
    %645 = vector.broadcast %cst_194 : f32 to vector<8x1xf32>
    %646 = arith.addf %642, %645 : vector<8x1xf32>
    %647 = math.rsqrt %646 : vector<8x1xf32>
    %648 = vector.broadcast %647 : vector<8x1xf32> to vector<8x32xf32>
    %649 = arith.mulf %644, %648 : vector<8x32xf32>
    %650 = vector.extract_strided_slice %43 {offsets = [16, 0], sizes = [8, 64], strides = [1, 1]} : vector<64x64xf32> to vector<8x64xf32>
    %651 = vector.extract_strided_slice %62 {offsets = [16, 0], sizes = [8, 32], strides = [1, 1]} : vector<64x32xf32> to vector<8x32xf32>
    %652 = arith.addf %650, %630 : vector<8x64xf32>
    %653 = arith.negf %652 : vector<8x64xf32>
    %654 = math.exp %653 : vector<8x64xf32>
    %cst_195 = arith.constant 1.000000e+00 : f32
    %655 = vector.broadcast %cst_195 : f32 to vector<8x64xf32>
    %656 = arith.addf %655, %654 : vector<8x64xf32>
    %657 = arith.divf %655, %656 : vector<8x64xf32>
    %658 = vector.extract_strided_slice %657 {offsets = [0, 0], sizes = [8, 32], strides = [1, 1]} : vector<8x64xf32> to vector<8x32xf32>
    %659 = vector.extract_strided_slice %657 {offsets = [0, 32], sizes = [8, 32], strides = [1, 1]} : vector<8x64xf32> to vector<8x32xf32>
    %660 = arith.mulf %659, %649 : vector<8x32xf32>
    %661 = arith.addf %651, %660 : vector<8x32xf32>
    %662 = math.tanh %661 : vector<8x32xf32>
    %cst_196 = arith.constant 1.000000e+00 : f32
    %663 = vector.broadcast %cst_196 : f32 to vector<8x32xf32>
    %664 = arith.subf %663, %658 : vector<8x32xf32>
    %665 = arith.mulf %664, %396 : vector<8x32xf32>
    %666 = arith.mulf %658, %662 : vector<8x32xf32>
    %667 = arith.addf %665, %666 : vector<8x32xf32>
    %668 = arith.truncf %500 : vector<8x32xf32> to vector<8x32xbf16>
    %c1_197 = arith.constant 1 : index
    %c0_198 = arith.constant 0 : index
    %c0_199 = arith.constant 0 : index
    %669 = vector.load %arg4[%c1_197, %c0_198, %c0_199] : memref<3x32x96xbf16, #tpu.memory_space<vmem>>, vector<1x32x96xbf16>
    %670 = vector.shape_cast %669 : vector<1x32x96xbf16> to vector<32x96xbf16>
    %cst_200 = arith.constant dense<0.000000e+00> : vector<8x96xf32>
    %671 = tpu.matmul %668, %670, %cst_200 {dimension_numbers = #tpu.dot_dimension_numbers<[1], [0], [0], [1], [0, 0, 1, 1], [], []>} : vector<8x32xbf16>, vector<32x96xbf16>, vector<8x96xf32> -> vector<8x96xf32>
    %672 = vector.broadcast %14 : vector<1x96xf32> to vector<8x96xf32>
    %673 = arith.addf %671, %672 : vector<8x96xf32>
    %674 = vector.extract_strided_slice %673 {offsets = [0, 0], sizes = [8, 64], strides = [1, 1]} : vector<8x96xf32> to vector<8x64xf32>
    %cst_201 = arith.constant dense<0.000000e+00> : vector<8xf32>
    %675 = vector.multi_reduction <add>, %674, %cst_201 [1] : vector<8x64xf32> to vector<8xf32>
    %676 = vector.shape_cast %675 : vector<8xf32> to vector<8x1xf32>
    %cst_202 = arith.constant 6.400000e+01 : f32
    %677 = vector.broadcast %cst_202 : f32 to vector<8x1xf32>
    %678 = arith.divf %676, %677 : vector<8x1xf32>
    %679 = vector.broadcast %678 : vector<8x1xf32> to vector<8x64xf32>
    %680 = arith.subf %674, %679 : vector<8x64xf32>
    %681 = arith.mulf %680, %680 : vector<8x64xf32>
    %cst_203 = arith.constant dense<0.000000e+00> : vector<8xf32>
    %682 = vector.multi_reduction <add>, %681, %cst_203 [1] : vector<8x64xf32> to vector<8xf32>
    %683 = vector.shape_cast %682 : vector<8xf32> to vector<8x1xf32>
    %cst_204 = arith.constant 6.400000e+01 : f32
    %684 = vector.broadcast %cst_204 : f32 to vector<8x1xf32>
    %685 = arith.divf %683, %684 : vector<8x1xf32>
    %686 = vector.broadcast %678 : vector<8x1xf32> to vector<8x64xf32>
    %687 = arith.subf %674, %686 : vector<8x64xf32>
    %cst_205 = arith.constant 9.99999974E-6 : f32
    %688 = vector.broadcast %cst_205 : f32 to vector<8x1xf32>
    %689 = arith.addf %685, %688 : vector<8x1xf32>
    %690 = math.rsqrt %689 : vector<8x1xf32>
    %691 = vector.broadcast %690 : vector<8x1xf32> to vector<8x64xf32>
    %692 = arith.mulf %687, %691 : vector<8x64xf32>
    %693 = vector.extract_strided_slice %673 {offsets = [0, 64], sizes = [8, 32], strides = [1, 1]} : vector<8x96xf32> to vector<8x32xf32>
    %cst_206 = arith.constant dense<0.000000e+00> : vector<8xf32>
    %694 = vector.multi_reduction <add>, %693, %cst_206 [1] : vector<8x32xf32> to vector<8xf32>
    %695 = vector.shape_cast %694 : vector<8xf32> to vector<8x1xf32>
    %cst_207 = arith.constant 3.200000e+01 : f32
    %696 = vector.broadcast %cst_207 : f32 to vector<8x1xf32>
    %697 = arith.divf %695, %696 : vector<8x1xf32>
    %698 = vector.broadcast %697 : vector<8x1xf32> to vector<8x32xf32>
    %699 = arith.subf %693, %698 : vector<8x32xf32>
    %700 = arith.mulf %699, %699 : vector<8x32xf32>
    %cst_208 = arith.constant dense<0.000000e+00> : vector<8xf32>
    %701 = vector.multi_reduction <add>, %700, %cst_208 [1] : vector<8x32xf32> to vector<8xf32>
    %702 = vector.shape_cast %701 : vector<8xf32> to vector<8x1xf32>
    %cst_209 = arith.constant 3.200000e+01 : f32
    %703 = vector.broadcast %cst_209 : f32 to vector<8x1xf32>
    %704 = arith.divf %702, %703 : vector<8x1xf32>
    %705 = vector.broadcast %697 : vector<8x1xf32> to vector<8x32xf32>
    %706 = arith.subf %693, %705 : vector<8x32xf32>
    %cst_210 = arith.constant 9.99999974E-6 : f32
    %707 = vector.broadcast %cst_210 : f32 to vector<8x1xf32>
    %708 = arith.addf %704, %707 : vector<8x1xf32>
    %709 = math.rsqrt %708 : vector<8x1xf32>
    %710 = vector.broadcast %709 : vector<8x1xf32> to vector<8x32xf32>
    %711 = arith.mulf %706, %710 : vector<8x32xf32>
    %712 = arith.truncf %667 : vector<8x32xf32> to vector<8x32xbf16>
    %c1_211 = arith.constant 1 : index
    %c0_212 = arith.constant 0 : index
    %c0_213 = arith.constant 0 : index
    %713 = vector.load %arg2[%c1_211, %c0_212, %c0_213] : memref<3x32x96xbf16, #tpu.memory_space<vmem>>, vector<1x32x96xbf16>
    %714 = vector.shape_cast %713 : vector<1x32x96xbf16> to vector<32x96xbf16>
    %cst_214 = arith.constant dense<0.000000e+00> : vector<8x96xf32>
    %715 = tpu.matmul %712, %714, %cst_214 {dimension_numbers = #tpu.dot_dimension_numbers<[1], [0], [0], [1], [0, 0, 1, 1], [], []>} : vector<8x32xbf16>, vector<32x96xbf16>, vector<8x96xf32> -> vector<8x96xf32>
    %716 = vector.broadcast %5 : vector<1x96xf32> to vector<8x96xf32>
    %717 = arith.addf %715, %716 : vector<8x96xf32>
    %718 = vector.extract_strided_slice %717 {offsets = [0, 0], sizes = [8, 64], strides = [1, 1]} : vector<8x96xf32> to vector<8x64xf32>
    %cst_215 = arith.constant dense<0.000000e+00> : vector<8xf32>
    %719 = vector.multi_reduction <add>, %718, %cst_215 [1] : vector<8x64xf32> to vector<8xf32>
    %720 = vector.shape_cast %719 : vector<8xf32> to vector<8x1xf32>
    %cst_216 = arith.constant 6.400000e+01 : f32
    %721 = vector.broadcast %cst_216 : f32 to vector<8x1xf32>
    %722 = arith.divf %720, %721 : vector<8x1xf32>
    %723 = vector.broadcast %722 : vector<8x1xf32> to vector<8x64xf32>
    %724 = arith.subf %718, %723 : vector<8x64xf32>
    %725 = arith.mulf %724, %724 : vector<8x64xf32>
    %cst_217 = arith.constant dense<0.000000e+00> : vector<8xf32>
    %726 = vector.multi_reduction <add>, %725, %cst_217 [1] : vector<8x64xf32> to vector<8xf32>
    %727 = vector.shape_cast %726 : vector<8xf32> to vector<8x1xf32>
    %cst_218 = arith.constant 6.400000e+01 : f32
    %728 = vector.broadcast %cst_218 : f32 to vector<8x1xf32>
    %729 = arith.divf %727, %728 : vector<8x1xf32>
    %730 = vector.broadcast %722 : vector<8x1xf32> to vector<8x64xf32>
    %731 = arith.subf %718, %730 : vector<8x64xf32>
    %cst_219 = arith.constant 9.99999974E-6 : f32
    %732 = vector.broadcast %cst_219 : f32 to vector<8x1xf32>
    %733 = arith.addf %729, %732 : vector<8x1xf32>
    %734 = math.rsqrt %733 : vector<8x1xf32>
    %735 = vector.broadcast %734 : vector<8x1xf32> to vector<8x64xf32>
    %736 = arith.mulf %731, %735 : vector<8x64xf32>
    %737 = vector.extract_strided_slice %717 {offsets = [0, 64], sizes = [8, 32], strides = [1, 1]} : vector<8x96xf32> to vector<8x32xf32>
    %cst_220 = arith.constant dense<0.000000e+00> : vector<8xf32>
    %738 = vector.multi_reduction <add>, %737, %cst_220 [1] : vector<8x32xf32> to vector<8xf32>
    %739 = vector.shape_cast %738 : vector<8xf32> to vector<8x1xf32>
    %cst_221 = arith.constant 3.200000e+01 : f32
    %740 = vector.broadcast %cst_221 : f32 to vector<8x1xf32>
    %741 = arith.divf %739, %740 : vector<8x1xf32>
    %742 = vector.broadcast %741 : vector<8x1xf32> to vector<8x32xf32>
    %743 = arith.subf %737, %742 : vector<8x32xf32>
    %744 = arith.mulf %743, %743 : vector<8x32xf32>
    %cst_222 = arith.constant dense<0.000000e+00> : vector<8xf32>
    %745 = vector.multi_reduction <add>, %744, %cst_222 [1] : vector<8x32xf32> to vector<8xf32>
    %746 = vector.shape_cast %745 : vector<8xf32> to vector<8x1xf32>
    %cst_223 = arith.constant 3.200000e+01 : f32
    %747 = vector.broadcast %cst_223 : f32 to vector<8x1xf32>
    %748 = arith.divf %746, %747 : vector<8x1xf32>
    %749 = vector.broadcast %741 : vector<8x1xf32> to vector<8x32xf32>
    %750 = arith.subf %737, %749 : vector<8x32xf32>
    %cst_224 = arith.constant 9.99999974E-6 : f32
    %751 = vector.broadcast %cst_224 : f32 to vector<8x1xf32>
    %752 = arith.addf %748, %751 : vector<8x1xf32>
    %753 = math.rsqrt %752 : vector<8x1xf32>
    %754 = vector.broadcast %753 : vector<8x1xf32> to vector<8x32xf32>
    %755 = arith.mulf %750, %754 : vector<8x32xf32>
    %756 = arith.addf %736, %692 : vector<8x64xf32>
    %757 = arith.negf %756 : vector<8x64xf32>
    %758 = math.exp %757 : vector<8x64xf32>
    %cst_225 = arith.constant 1.000000e+00 : f32
    %759 = vector.broadcast %cst_225 : f32 to vector<8x64xf32>
    %760 = arith.addf %759, %758 : vector<8x64xf32>
    %761 = arith.divf %759, %760 : vector<8x64xf32>
    %762 = vector.extract_strided_slice %761 {offsets = [0, 0], sizes = [8, 32], strides = [1, 1]} : vector<8x64xf32> to vector<8x32xf32>
    %763 = vector.extract_strided_slice %761 {offsets = [0, 32], sizes = [8, 32], strides = [1, 1]} : vector<8x64xf32> to vector<8x32xf32>
    %764 = arith.mulf %763, %711 : vector<8x32xf32>
    %765 = arith.addf %755, %764 : vector<8x32xf32>
    %766 = math.tanh %765 : vector<8x32xf32>
    %cst_226 = arith.constant 1.000000e+00 : f32
    %767 = vector.broadcast %cst_226 : f32 to vector<8x32xf32>
    %768 = arith.subf %767, %762 : vector<8x32xf32>
    %769 = arith.mulf %768, %500 : vector<8x32xf32>
    %770 = arith.mulf %762, %766 : vector<8x32xf32>
    %771 = arith.addf %769, %770 : vector<8x32xf32>
    %772 = arith.truncf %604 : vector<8x32xf32> to vector<8x32xbf16>
    %c2_227 = arith.constant 2 : index
    %c0_228 = arith.constant 0 : index
    %c0_229 = arith.constant 0 : index
    %773 = vector.load %arg4[%c2_227, %c0_228, %c0_229] : memref<3x32x96xbf16, #tpu.memory_space<vmem>>, vector<1x32x96xbf16>
    %774 = vector.shape_cast %773 : vector<1x32x96xbf16> to vector<32x96xbf16>
    %cst_230 = arith.constant dense<0.000000e+00> : vector<8x96xf32>
    %775 = tpu.matmul %772, %774, %cst_230 {dimension_numbers = #tpu.dot_dimension_numbers<[1], [0], [0], [1], [0, 0, 1, 1], [], []>} : vector<8x32xbf16>, vector<32x96xbf16>, vector<8x96xf32> -> vector<8x96xf32>
    %776 = vector.broadcast %17 : vector<1x96xf32> to vector<8x96xf32>
    %777 = arith.addf %775, %776 : vector<8x96xf32>
    %778 = vector.extract_strided_slice %777 {offsets = [0, 0], sizes = [8, 64], strides = [1, 1]} : vector<8x96xf32> to vector<8x64xf32>
    %cst_231 = arith.constant dense<0.000000e+00> : vector<8xf32>
    %779 = vector.multi_reduction <add>, %778, %cst_231 [1] : vector<8x64xf32> to vector<8xf32>
    %780 = vector.shape_cast %779 : vector<8xf32> to vector<8x1xf32>
    %cst_232 = arith.constant 6.400000e+01 : f32
    %781 = vector.broadcast %cst_232 : f32 to vector<8x1xf32>
    %782 = arith.divf %780, %781 : vector<8x1xf32>
    %783 = vector.broadcast %782 : vector<8x1xf32> to vector<8x64xf32>
    %784 = arith.subf %778, %783 : vector<8x64xf32>
    %785 = arith.mulf %784, %784 : vector<8x64xf32>
    %cst_233 = arith.constant dense<0.000000e+00> : vector<8xf32>
    %786 = vector.multi_reduction <add>, %785, %cst_233 [1] : vector<8x64xf32> to vector<8xf32>
    %787 = vector.shape_cast %786 : vector<8xf32> to vector<8x1xf32>
    %cst_234 = arith.constant 6.400000e+01 : f32
    %788 = vector.broadcast %cst_234 : f32 to vector<8x1xf32>
    %789 = arith.divf %787, %788 : vector<8x1xf32>
    %790 = vector.broadcast %782 : vector<8x1xf32> to vector<8x64xf32>
    %791 = arith.subf %778, %790 : vector<8x64xf32>
    %cst_235 = arith.constant 9.99999974E-6 : f32
    %792 = vector.broadcast %cst_235 : f32 to vector<8x1xf32>
    %793 = arith.addf %789, %792 : vector<8x1xf32>
    %794 = math.rsqrt %793 : vector<8x1xf32>
    %795 = vector.broadcast %794 : vector<8x1xf32> to vector<8x64xf32>
    %796 = arith.mulf %791, %795 : vector<8x64xf32>
    %797 = vector.extract_strided_slice %777 {offsets = [0, 64], sizes = [8, 32], strides = [1, 1]} : vector<8x96xf32> to vector<8x32xf32>
    %cst_236 = arith.constant dense<0.000000e+00> : vector<8xf32>
    %798 = vector.multi_reduction <add>, %797, %cst_236 [1] : vector<8x32xf32> to vector<8xf32>
    %799 = vector.shape_cast %798 : vector<8xf32> to vector<8x1xf32>
    %cst_237 = arith.constant 3.200000e+01 : f32
    %800 = vector.broadcast %cst_237 : f32 to vector<8x1xf32>
    %801 = arith.divf %799, %800 : vector<8x1xf32>
    %802 = vector.broadcast %801 : vector<8x1xf32> to vector<8x32xf32>
    %803 = arith.subf %797, %802 : vector<8x32xf32>
    %804 = arith.mulf %803, %803 : vector<8x32xf32>
    %cst_238 = arith.constant dense<0.000000e+00> : vector<8xf32>
    %805 = vector.multi_reduction <add>, %804, %cst_238 [1] : vector<8x32xf32> to vector<8xf32>
    %806 = vector.shape_cast %805 : vector<8xf32> to vector<8x1xf32>
    %cst_239 = arith.constant 3.200000e+01 : f32
    %807 = vector.broadcast %cst_239 : f32 to vector<8x1xf32>
    %808 = arith.divf %806, %807 : vector<8x1xf32>
    %809 = vector.broadcast %801 : vector<8x1xf32> to vector<8x32xf32>
    %810 = arith.subf %797, %809 : vector<8x32xf32>
    %cst_240 = arith.constant 9.99999974E-6 : f32
    %811 = vector.broadcast %cst_240 : f32 to vector<8x1xf32>
    %812 = arith.addf %808, %811 : vector<8x1xf32>
    %813 = math.rsqrt %812 : vector<8x1xf32>
    %814 = vector.broadcast %813 : vector<8x1xf32> to vector<8x32xf32>
    %815 = arith.mulf %810, %814 : vector<8x32xf32>
    %816 = arith.truncf %771 : vector<8x32xf32> to vector<8x32xbf16>
    %c2_241 = arith.constant 2 : index
    %c0_242 = arith.constant 0 : index
    %c0_243 = arith.constant 0 : index
    %817 = vector.load %arg2[%c2_241, %c0_242, %c0_243] : memref<3x32x96xbf16, #tpu.memory_space<vmem>>, vector<1x32x96xbf16>
    %818 = vector.shape_cast %817 : vector<1x32x96xbf16> to vector<32x96xbf16>
    %cst_244 = arith.constant dense<0.000000e+00> : vector<8x96xf32>
    %819 = tpu.matmul %816, %818, %cst_244 {dimension_numbers = #tpu.dot_dimension_numbers<[1], [0], [0], [1], [0, 0, 1, 1], [], []>} : vector<8x32xbf16>, vector<32x96xbf16>, vector<8x96xf32> -> vector<8x96xf32>
    %820 = vector.broadcast %8 : vector<1x96xf32> to vector<8x96xf32>
    %821 = arith.addf %819, %820 : vector<8x96xf32>
    %822 = vector.extract_strided_slice %821 {offsets = [0, 0], sizes = [8, 64], strides = [1, 1]} : vector<8x96xf32> to vector<8x64xf32>
    %cst_245 = arith.constant dense<0.000000e+00> : vector<8xf32>
    %823 = vector.multi_reduction <add>, %822, %cst_245 [1] : vector<8x64xf32> to vector<8xf32>
    %824 = vector.shape_cast %823 : vector<8xf32> to vector<8x1xf32>
    %cst_246 = arith.constant 6.400000e+01 : f32
    %825 = vector.broadcast %cst_246 : f32 to vector<8x1xf32>
    %826 = arith.divf %824, %825 : vector<8x1xf32>
    %827 = vector.broadcast %826 : vector<8x1xf32> to vector<8x64xf32>
    %828 = arith.subf %822, %827 : vector<8x64xf32>
    %829 = arith.mulf %828, %828 : vector<8x64xf32>
    %cst_247 = arith.constant dense<0.000000e+00> : vector<8xf32>
    %830 = vector.multi_reduction <add>, %829, %cst_247 [1] : vector<8x64xf32> to vector<8xf32>
    %831 = vector.shape_cast %830 : vector<8xf32> to vector<8x1xf32>
    %cst_248 = arith.constant 6.400000e+01 : f32
    %832 = vector.broadcast %cst_248 : f32 to vector<8x1xf32>
    %833 = arith.divf %831, %832 : vector<8x1xf32>
    %834 = vector.broadcast %826 : vector<8x1xf32> to vector<8x64xf32>
    %835 = arith.subf %822, %834 : vector<8x64xf32>
    %cst_249 = arith.constant 9.99999974E-6 : f32
    %836 = vector.broadcast %cst_249 : f32 to vector<8x1xf32>
    %837 = arith.addf %833, %836 : vector<8x1xf32>
    %838 = math.rsqrt %837 : vector<8x1xf32>
    %839 = vector.broadcast %838 : vector<8x1xf32> to vector<8x64xf32>
    %840 = arith.mulf %835, %839 : vector<8x64xf32>
    %841 = vector.extract_strided_slice %821 {offsets = [0, 64], sizes = [8, 32], strides = [1, 1]} : vector<8x96xf32> to vector<8x32xf32>
    %cst_250 = arith.constant dense<0.000000e+00> : vector<8xf32>
    %842 = vector.multi_reduction <add>, %841, %cst_250 [1] : vector<8x32xf32> to vector<8xf32>
    %843 = vector.shape_cast %842 : vector<8xf32> to vector<8x1xf32>
    %cst_251 = arith.constant 3.200000e+01 : f32
    %844 = vector.broadcast %cst_251 : f32 to vector<8x1xf32>
    %845 = arith.divf %843, %844 : vector<8x1xf32>
    %846 = vector.broadcast %845 : vector<8x1xf32> to vector<8x32xf32>
    %847 = arith.subf %841, %846 : vector<8x32xf32>
    %848 = arith.mulf %847, %847 : vector<8x32xf32>
    %cst_252 = arith.constant dense<0.000000e+00> : vector<8xf32>
    %849 = vector.multi_reduction <add>, %848, %cst_252 [1] : vector<8x32xf32> to vector<8xf32>
    %850 = vector.shape_cast %849 : vector<8xf32> to vector<8x1xf32>
    %cst_253 = arith.constant 3.200000e+01 : f32
    %851 = vector.broadcast %cst_253 : f32 to vector<8x1xf32>
    %852 = arith.divf %850, %851 : vector<8x1xf32>
    %853 = vector.broadcast %845 : vector<8x1xf32> to vector<8x32xf32>
    %854 = arith.subf %841, %853 : vector<8x32xf32>
    %cst_254 = arith.constant 9.99999974E-6 : f32
    %855 = vector.broadcast %cst_254 : f32 to vector<8x1xf32>
    %856 = arith.addf %852, %855 : vector<8x1xf32>
    %857 = math.rsqrt %856 : vector<8x1xf32>
    %858 = vector.broadcast %857 : vector<8x1xf32> to vector<8x32xf32>
    %859 = arith.mulf %854, %858 : vector<8x32xf32>
    %860 = arith.addf %840, %796 : vector<8x64xf32>
    %861 = arith.negf %860 : vector<8x64xf32>
    %862 = math.exp %861 : vector<8x64xf32>
    %cst_255 = arith.constant 1.000000e+00 : f32
    %863 = vector.broadcast %cst_255 : f32 to vector<8x64xf32>
    %864 = arith.addf %863, %862 : vector<8x64xf32>
    %865 = arith.divf %863, %864 : vector<8x64xf32>
    %866 = vector.extract_strided_slice %865 {offsets = [0, 0], sizes = [8, 32], strides = [1, 1]} : vector<8x64xf32> to vector<8x32xf32>
    %867 = vector.extract_strided_slice %865 {offsets = [0, 32], sizes = [8, 32], strides = [1, 1]} : vector<8x64xf32> to vector<8x32xf32>
    %868 = arith.mulf %867, %815 : vector<8x32xf32>
    %869 = arith.addf %859, %868 : vector<8x32xf32>
    %870 = math.tanh %869 : vector<8x32xf32>
    %cst_256 = arith.constant 1.000000e+00 : f32
    %871 = vector.broadcast %cst_256 : f32 to vector<8x32xf32>
    %872 = arith.subf %871, %866 : vector<8x32xf32>
    %873 = arith.mulf %872, %604 : vector<8x32xf32>
    %874 = arith.mulf %866, %870 : vector<8x32xf32>
    %875 = arith.addf %873, %874 : vector<8x32xf32>
    %c16 = arith.constant 16 : index
    %c0_257 = arith.constant 0 : index
    %876 = vector.load %arg9[%c16, %c0_257] : memref<64x32xf32, #tpu.memory_space<vmem>>, vector<8x32xf32>
    tpu.vector_store %arg9[%c16, %c0_257], %875 {strides = array<i32>} : memref<64x32xf32, #tpu.memory_space<vmem>>, vector<8x32xf32>,
    %877 = arith.truncf %667 : vector<8x32xf32> to vector<8x32xbf16>
    %c0_258 = arith.constant 0 : index
    %c0_259 = arith.constant 0 : index
    %c0_260 = arith.constant 0 : index
    %878 = vector.load %arg4[%c0_258, %c0_259, %c0_260] : memref<3x32x96xbf16, #tpu.memory_space<vmem>>, vector<1x32x96xbf16>
    %879 = vector.shape_cast %878 : vector<1x32x96xbf16> to vector<32x96xbf16>
    %cst_261 = arith.constant dense<0.000000e+00> : vector<8x96xf32>
    %880 = tpu.matmul %877, %879, %cst_261 {dimension_numbers = #tpu.dot_dimension_numbers<[1], [0], [0], [1], [0, 0, 1, 1], [], []>} : vector<8x32xbf16>, vector<32x96xbf16>, vector<8x96xf32> -> vector<8x96xf32>
    %881 = vector.broadcast %11 : vector<1x96xf32> to vector<8x96xf32>
    %882 = arith.addf %880, %881 : vector<8x96xf32>
    %883 = vector.extract_strided_slice %882 {offsets = [0, 0], sizes = [8, 64], strides = [1, 1]} : vector<8x96xf32> to vector<8x64xf32>
    %cst_262 = arith.constant dense<0.000000e+00> : vector<8xf32>
    %884 = vector.multi_reduction <add>, %883, %cst_262 [1] : vector<8x64xf32> to vector<8xf32>
    %885 = vector.shape_cast %884 : vector<8xf32> to vector<8x1xf32>
    %cst_263 = arith.constant 6.400000e+01 : f32
    %886 = vector.broadcast %cst_263 : f32 to vector<8x1xf32>
    %887 = arith.divf %885, %886 : vector<8x1xf32>
    %888 = vector.broadcast %887 : vector<8x1xf32> to vector<8x64xf32>
    %889 = arith.subf %883, %888 : vector<8x64xf32>
    %890 = arith.mulf %889, %889 : vector<8x64xf32>
    %cst_264 = arith.constant dense<0.000000e+00> : vector<8xf32>
    %891 = vector.multi_reduction <add>, %890, %cst_264 [1] : vector<8x64xf32> to vector<8xf32>
    %892 = vector.shape_cast %891 : vector<8xf32> to vector<8x1xf32>
    %cst_265 = arith.constant 6.400000e+01 : f32
    %893 = vector.broadcast %cst_265 : f32 to vector<8x1xf32>
    %894 = arith.divf %892, %893 : vector<8x1xf32>
    %895 = vector.broadcast %887 : vector<8x1xf32> to vector<8x64xf32>
    %896 = arith.subf %883, %895 : vector<8x64xf32>
    %cst_266 = arith.constant 9.99999974E-6 : f32
    %897 = vector.broadcast %cst_266 : f32 to vector<8x1xf32>
    %898 = arith.addf %894, %897 : vector<8x1xf32>
    %899 = math.rsqrt %898 : vector<8x1xf32>
    %900 = vector.broadcast %899 : vector<8x1xf32> to vector<8x64xf32>
    %901 = arith.mulf %896, %900 : vector<8x64xf32>
    %902 = vector.extract_strided_slice %882 {offsets = [0, 64], sizes = [8, 32], strides = [1, 1]} : vector<8x96xf32> to vector<8x32xf32>
    %cst_267 = arith.constant dense<0.000000e+00> : vector<8xf32>
    %903 = vector.multi_reduction <add>, %902, %cst_267 [1] : vector<8x32xf32> to vector<8xf32>
    %904 = vector.shape_cast %903 : vector<8xf32> to vector<8x1xf32>
    %cst_268 = arith.constant 3.200000e+01 : f32
    %905 = vector.broadcast %cst_268 : f32 to vector<8x1xf32>
    %906 = arith.divf %904, %905 : vector<8x1xf32>
    %907 = vector.broadcast %906 : vector<8x1xf32> to vector<8x32xf32>
    %908 = arith.subf %902, %907 : vector<8x32xf32>
    %909 = arith.mulf %908, %908 : vector<8x32xf32>
    %cst_269 = arith.constant dense<0.000000e+00> : vector<8xf32>
    %910 = vector.multi_reduction <add>, %909, %cst_269 [1] : vector<8x32xf32> to vector<8xf32>
    %911 = vector.shape_cast %910 : vector<8xf32> to vector<8x1xf32>
    %cst_270 = arith.constant 3.200000e+01 : f32
    %912 = vector.broadcast %cst_270 : f32 to vector<8x1xf32>
    %913 = arith.divf %911, %912 : vector<8x1xf32>
    %914 = vector.broadcast %906 : vector<8x1xf32> to vector<8x32xf32>
    %915 = arith.subf %902, %914 : vector<8x32xf32>
    %cst_271 = arith.constant 9.99999974E-6 : f32
    %916 = vector.broadcast %cst_271 : f32 to vector<8x1xf32>
    %917 = arith.addf %913, %916 : vector<8x1xf32>
    %918 = math.rsqrt %917 : vector<8x1xf32>
    %919 = vector.broadcast %918 : vector<8x1xf32> to vector<8x32xf32>
    %920 = arith.mulf %915, %919 : vector<8x32xf32>
    %921 = vector.extract_strided_slice %43 {offsets = [24, 0], sizes = [8, 64], strides = [1, 1]} : vector<64x64xf32> to vector<8x64xf32>
    %922 = vector.extract_strided_slice %62 {offsets = [24, 0], sizes = [8, 32], strides = [1, 1]} : vector<64x32xf32> to vector<8x32xf32>
    %923 = arith.addf %921, %901 : vector<8x64xf32>
    %924 = arith.negf %923 : vector<8x64xf32>
    %925 = math.exp %924 : vector<8x64xf32>
    %cst_272 = arith.constant 1.000000e+00 : f32
    %926 = vector.broadcast %cst_272 : f32 to vector<8x64xf32>
    %927 = arith.addf %926, %925 : vector<8x64xf32>
    %928 = arith.divf %926, %927 : vector<8x64xf32>
    %929 = vector.extract_strided_slice %928 {offsets = [0, 0], sizes = [8, 32], strides = [1, 1]} : vector<8x64xf32> to vector<8x32xf32>
    %930 = vector.extract_strided_slice %928 {offsets = [0, 32], sizes = [8, 32], strides = [1, 1]} : vector<8x64xf32> to vector<8x32xf32>
    %931 = arith.mulf %930, %920 : vector<8x32xf32>
    %932 = arith.addf %922, %931 : vector<8x32xf32>
    %933 = math.tanh %932 : vector<8x32xf32>
    %cst_273 = arith.constant 1.000000e+00 : f32
    %934 = vector.broadcast %cst_273 : f32 to vector<8x32xf32>
    %935 = arith.subf %934, %929 : vector<8x32xf32>
    %936 = arith.mulf %935, %667 : vector<8x32xf32>
    %937 = arith.mulf %929, %933 : vector<8x32xf32>
    %938 = arith.addf %936, %937 : vector<8x32xf32>
    %939 = arith.truncf %771 : vector<8x32xf32> to vector<8x32xbf16>
    %c1_274 = arith.constant 1 : index
    %c0_275 = arith.constant 0 : index
    %c0_276 = arith.constant 0 : index
    %940 = vector.load %arg4[%c1_274, %c0_275, %c0_276] : memref<3x32x96xbf16, #tpu.memory_space<vmem>>, vector<1x32x96xbf16>
    %941 = vector.shape_cast %940 : vector<1x32x96xbf16> to vector<32x96xbf16>
    %cst_277 = arith.constant dense<0.000000e+00> : vector<8x96xf32>
    %942 = tpu.matmul %939, %941, %cst_277 {dimension_numbers = #tpu.dot_dimension_numbers<[1], [0], [0], [1], [0, 0, 1, 1], [], []>} : vector<8x32xbf16>, vector<32x96xbf16>, vector<8x96xf32> -> vector<8x96xf32>
    %943 = vector.broadcast %14 : vector<1x96xf32> to vector<8x96xf32>
    %944 = arith.addf %942, %943 : vector<8x96xf32>
    %945 = vector.extract_strided_slice %944 {offsets = [0, 0], sizes = [8, 64], strides = [1, 1]} : vector<8x96xf32> to vector<8x64xf32>
    %cst_278 = arith.constant dense<0.000000e+00> : vector<8xf32>
    %946 = vector.multi_reduction <add>, %945, %cst_278 [1] : vector<8x64xf32> to vector<8xf32>
    %947 = vector.shape_cast %946 : vector<8xf32> to vector<8x1xf32>
    %cst_279 = arith.constant 6.400000e+01 : f32
    %948 = vector.broadcast %cst_279 : f32 to vector<8x1xf32>
    %949 = arith.divf %947, %948 : vector<8x1xf32>
    %950 = vector.broadcast %949 : vector<8x1xf32> to vector<8x64xf32>
    %951 = arith.subf %945, %950 : vector<8x64xf32>
    %952 = arith.mulf %951, %951 : vector<8x64xf32>
    %cst_280 = arith.constant dense<0.000000e+00> : vector<8xf32>
    %953 = vector.multi_reduction <add>, %952, %cst_280 [1] : vector<8x64xf32> to vector<8xf32>
    %954 = vector.shape_cast %953 : vector<8xf32> to vector<8x1xf32>
    %cst_281 = arith.constant 6.400000e+01 : f32
    %955 = vector.broadcast %cst_281 : f32 to vector<8x1xf32>
    %956 = arith.divf %954, %955 : vector<8x1xf32>
    %957 = vector.broadcast %949 : vector<8x1xf32> to vector<8x64xf32>
    %958 = arith.subf %945, %957 : vector<8x64xf32>
    %cst_282 = arith.constant 9.99999974E-6 : f32
    %959 = vector.broadcast %cst_282 : f32 to vector<8x1xf32>
    %960 = arith.addf %956, %959 : vector<8x1xf32>
    %961 = math.rsqrt %960 : vector<8x1xf32>
    %962 = vector.broadcast %961 : vector<8x1xf32> to vector<8x64xf32>
    %963 = arith.mulf %958, %962 : vector<8x64xf32>
    %964 = vector.extract_strided_slice %944 {offsets = [0, 64], sizes = [8, 32], strides = [1, 1]} : vector<8x96xf32> to vector<8x32xf32>
    %cst_283 = arith.constant dense<0.000000e+00> : vector<8xf32>
    %965 = vector.multi_reduction <add>, %964, %cst_283 [1] : vector<8x32xf32> to vector<8xf32>
    %966 = vector.shape_cast %965 : vector<8xf32> to vector<8x1xf32>
    %cst_284 = arith.constant 3.200000e+01 : f32
    %967 = vector.broadcast %cst_284 : f32 to vector<8x1xf32>
    %968 = arith.divf %966, %967 : vector<8x1xf32>
    %969 = vector.broadcast %968 : vector<8x1xf32> to vector<8x32xf32>
    %970 = arith.subf %964, %969 : vector<8x32xf32>
    %971 = arith.mulf %970, %970 : vector<8x32xf32>
    %cst_285 = arith.constant dense<0.000000e+00> : vector<8xf32>
    %972 = vector.multi_reduction <add>, %971, %cst_285 [1] : vector<8x32xf32> to vector<8xf32>
    %973 = vector.shape_cast %972 : vector<8xf32> to vector<8x1xf32>
    %cst_286 = arith.constant 3.200000e+01 : f32
    %974 = vector.broadcast %cst_286 : f32 to vector<8x1xf32>
    %975 = arith.divf %973, %974 : vector<8x1xf32>
    %976 = vector.broadcast %968 : vector<8x1xf32> to vector<8x32xf32>
    %977 = arith.subf %964, %976 : vector<8x32xf32>
    %cst_287 = arith.constant 9.99999974E-6 : f32
    %978 = vector.broadcast %cst_287 : f32 to vector<8x1xf32>
    %979 = arith.addf %975, %978 : vector<8x1xf32>
    %980 = math.rsqrt %979 : vector<8x1xf32>
    %981 = vector.broadcast %980 : vector<8x1xf32> to vector<8x32xf32>
    %982 = arith.mulf %977, %981 : vector<8x32xf32>
    %983 = arith.truncf %938 : vector<8x32xf32> to vector<8x32xbf16>
    %c1_288 = arith.constant 1 : index
    %c0_289 = arith.constant 0 : index
    %c0_290 = arith.constant 0 : index
    %984 = vector.load %arg2[%c1_288, %c0_289, %c0_290] : memref<3x32x96xbf16, #tpu.memory_space<vmem>>, vector<1x32x96xbf16>
    %985 = vector.shape_cast %984 : vector<1x32x96xbf16> to vector<32x96xbf16>
    %cst_291 = arith.constant dense<0.000000e+00> : vector<8x96xf32>
    %986 = tpu.matmul %983, %985, %cst_291 {dimension_numbers = #tpu.dot_dimension_numbers<[1], [0], [0], [1], [0, 0, 1, 1], [], []>} : vector<8x32xbf16>, vector<32x96xbf16>, vector<8x96xf32> -> vector<8x96xf32>
    %987 = vector.broadcast %5 : vector<1x96xf32> to vector<8x96xf32>
    %988 = arith.addf %986, %987 : vector<8x96xf32>
    %989 = vector.extract_strided_slice %988 {offsets = [0, 0], sizes = [8, 64], strides = [1, 1]} : vector<8x96xf32> to vector<8x64xf32>
    %cst_292 = arith.constant dense<0.000000e+00> : vector<8xf32>
    %990 = vector.multi_reduction <add>, %989, %cst_292 [1] : vector<8x64xf32> to vector<8xf32>
    %991 = vector.shape_cast %990 : vector<8xf32> to vector<8x1xf32>
    %cst_293 = arith.constant 6.400000e+01 : f32
    %992 = vector.broadcast %cst_293 : f32 to vector<8x1xf32>
    %993 = arith.divf %991, %992 : vector<8x1xf32>
    %994 = vector.broadcast %993 : vector<8x1xf32> to vector<8x64xf32>
    %995 = arith.subf %989, %994 : vector<8x64xf32>
    %996 = arith.mulf %995, %995 : vector<8x64xf32>
    %cst_294 = arith.constant dense<0.000000e+00> : vector<8xf32>
    %997 = vector.multi_reduction <add>, %996, %cst_294 [1] : vector<8x64xf32> to vector<8xf32>
    %998 = vector.shape_cast %997 : vector<8xf32> to vector<8x1xf32>
    %cst_295 = arith.constant 6.400000e+01 : f32
    %999 = vector.broadcast %cst_295 : f32 to vector<8x1xf32>
    %1000 = arith.divf %998, %999 : vector<8x1xf32>
    %1001 = vector.broadcast %993 : vector<8x1xf32> to vector<8x64xf32>
    %1002 = arith.subf %989, %1001 : vector<8x64xf32>
    %cst_296 = arith.constant 9.99999974E-6 : f32
    %1003 = vector.broadcast %cst_296 : f32 to vector<8x1xf32>
    %1004 = arith.addf %1000, %1003 : vector<8x1xf32>
    %1005 = math.rsqrt %1004 : vector<8x1xf32>
    %1006 = vector.broadcast %1005 : vector<8x1xf32> to vector<8x64xf32>
    %1007 = arith.mulf %1002, %1006 : vector<8x64xf32>
    %1008 = vector.extract_strided_slice %988 {offsets = [0, 64], sizes = [8, 32], strides = [1, 1]} : vector<8x96xf32> to vector<8x32xf32>
    %cst_297 = arith.constant dense<0.000000e+00> : vector<8xf32>
    %1009 = vector.multi_reduction <add>, %1008, %cst_297 [1] : vector<8x32xf32> to vector<8xf32>
    %1010 = vector.shape_cast %1009 : vector<8xf32> to vector<8x1xf32>
    %cst_298 = arith.constant 3.200000e+01 : f32
    %1011 = vector.broadcast %cst_298 : f32 to vector<8x1xf32>
    %1012 = arith.divf %1010, %1011 : vector<8x1xf32>
    %1013 = vector.broadcast %1012 : vector<8x1xf32> to vector<8x32xf32>
    %1014 = arith.subf %1008, %1013 : vector<8x32xf32>
    %1015 = arith.mulf %1014, %1014 : vector<8x32xf32>
    %cst_299 = arith.constant dense<0.000000e+00> : vector<8xf32>
    %1016 = vector.multi_reduction <add>, %1015, %cst_299 [1] : vector<8x32xf32> to vector<8xf32>
    %1017 = vector.shape_cast %1016 : vector<8xf32> to vector<8x1xf32>
    %cst_300 = arith.constant 3.200000e+01 : f32
    %1018 = vector.broadcast %cst_300 : f32 to vector<8x1xf32>
    %1019 = arith.divf %1017, %1018 : vector<8x1xf32>
    %1020 = vector.broadcast %1012 : vector<8x1xf32> to vector<8x32xf32>
    %1021 = arith.subf %1008, %1020 : vector<8x32xf32>
    %cst_301 = arith.constant 9.99999974E-6 : f32
    %1022 = vector.broadcast %cst_301 : f32 to vector<8x1xf32>
    %1023 = arith.addf %1019, %1022 : vector<8x1xf32>
    %1024 = math.rsqrt %1023 : vector<8x1xf32>
    %1025 = vector.broadcast %1024 : vector<8x1xf32> to vector<8x32xf32>
    %1026 = arith.mulf %1021, %1025 : vector<8x32xf32>
    %1027 = arith.addf %1007, %963 : vector<8x64xf32>
    %1028 = arith.negf %1027 : vector<8x64xf32>
    %1029 = math.exp %1028 : vector<8x64xf32>
    %cst_302 = arith.constant 1.000000e+00 : f32
    %1030 = vector.broadcast %cst_302 : f32 to vector<8x64xf32>
    %1031 = arith.addf %1030, %1029 : vector<8x64xf32>
    %1032 = arith.divf %1030, %1031 : vector<8x64xf32>
    %1033 = vector.extract_strided_slice %1032 {offsets = [0, 0], sizes = [8, 32], strides = [1, 1]} : vector<8x64xf32> to vector<8x32xf32>
    %1034 = vector.extract_strided_slice %1032 {offsets = [0, 32], sizes = [8, 32], strides = [1, 1]} : vector<8x64xf32> to vector<8x32xf32>
    %1035 = arith.mulf %1034, %982 : vector<8x32xf32>
    %1036 = arith.addf %1026, %1035 : vector<8x32xf32>
    %1037 = math.tanh %1036 : vector<8x32xf32>
    %cst_303 = arith.constant 1.000000e+00 : f32
    %1038 = vector.broadcast %cst_303 : f32 to vector<8x32xf32>
    %1039 = arith.subf %1038, %1033 : vector<8x32xf32>
    %1040 = arith.mulf %1039, %771 : vector<8x32xf32>
    %1041 = arith.mulf %1033, %1037 : vector<8x32xf32>
    %1042 = arith.addf %1040, %1041 : vector<8x32xf32>
    %1043 = arith.truncf %875 : vector<8x32xf32> to vector<8x32xbf16>
    %c2_304 = arith.constant 2 : index
    %c0_305 = arith.constant 0 : index
    %c0_306 = arith.constant 0 : index
    %1044 = vector.load %arg4[%c2_304, %c0_305, %c0_306] : memref<3x32x96xbf16, #tpu.memory_space<vmem>>, vector<1x32x96xbf16>
    %1045 = vector.shape_cast %1044 : vector<1x32x96xbf16> to vector<32x96xbf16>
    %cst_307 = arith.constant dense<0.000000e+00> : vector<8x96xf32>
    %1046 = tpu.matmul %1043, %1045, %cst_307 {dimension_numbers = #tpu.dot_dimension_numbers<[1], [0], [0], [1], [0, 0, 1, 1], [], []>} : vector<8x32xbf16>, vector<32x96xbf16>, vector<8x96xf32> -> vector<8x96xf32>
    %1047 = vector.broadcast %17 : vector<1x96xf32> to vector<8x96xf32>
    %1048 = arith.addf %1046, %1047 : vector<8x96xf32>
    %1049 = vector.extract_strided_slice %1048 {offsets = [0, 0], sizes = [8, 64], strides = [1, 1]} : vector<8x96xf32> to vector<8x64xf32>
    %cst_308 = arith.constant dense<0.000000e+00> : vector<8xf32>
    %1050 = vector.multi_reduction <add>, %1049, %cst_308 [1] : vector<8x64xf32> to vector<8xf32>
    %1051 = vector.shape_cast %1050 : vector<8xf32> to vector<8x1xf32>
    %cst_309 = arith.constant 6.400000e+01 : f32
    %1052 = vector.broadcast %cst_309 : f32 to vector<8x1xf32>
    %1053 = arith.divf %1051, %1052 : vector<8x1xf32>
    %1054 = vector.broadcast %1053 : vector<8x1xf32> to vector<8x64xf32>
    %1055 = arith.subf %1049, %1054 : vector<8x64xf32>
    %1056 = arith.mulf %1055, %1055 : vector<8x64xf32>
    %cst_310 = arith.constant dense<0.000000e+00> : vector<8xf32>
    %1057 = vector.multi_reduction <add>, %1056, %cst_310 [1] : vector<8x64xf32> to vector<8xf32>
    %1058 = vector.shape_cast %1057 : vector<8xf32> to vector<8x1xf32>
    %cst_311 = arith.constant 6.400000e+01 : f32
    %1059 = vector.broadcast %cst_311 : f32 to vector<8x1xf32>
    %1060 = arith.divf %1058, %1059 : vector<8x1xf32>
    %1061 = vector.broadcast %1053 : vector<8x1xf32> to vector<8x64xf32>
    %1062 = arith.subf %1049, %1061 : vector<8x64xf32>
    %cst_312 = arith.constant 9.99999974E-6 : f32
    %1063 = vector.broadcast %cst_312 : f32 to vector<8x1xf32>
    %1064 = arith.addf %1060, %1063 : vector<8x1xf32>
    %1065 = math.rsqrt %1064 : vector<8x1xf32>
    %1066 = vector.broadcast %1065 : vector<8x1xf32> to vector<8x64xf32>
    %1067 = arith.mulf %1062, %1066 : vector<8x64xf32>
    %1068 = vector.extract_strided_slice %1048 {offsets = [0, 64], sizes = [8, 32], strides = [1, 1]} : vector<8x96xf32> to vector<8x32xf32>
    %cst_313 = arith.constant dense<0.000000e+00> : vector<8xf32>
    %1069 = vector.multi_reduction <add>, %1068, %cst_313 [1] : vector<8x32xf32> to vector<8xf32>
    %1070 = vector.shape_cast %1069 : vector<8xf32> to vector<8x1xf32>
    %cst_314 = arith.constant 3.200000e+01 : f32
    %1071 = vector.broadcast %cst_314 : f32 to vector<8x1xf32>
    %1072 = arith.divf %1070, %1071 : vector<8x1xf32>
    %1073 = vector.broadcast %1072 : vector<8x1xf32> to vector<8x32xf32>
    %1074 = arith.subf %1068, %1073 : vector<8x32xf32>
    %1075 = arith.mulf %1074, %1074 : vector<8x32xf32>
    %cst_315 = arith.constant dense<0.000000e+00> : vector<8xf32>
    %1076 = vector.multi_reduction <add>, %1075, %cst_315 [1] : vector<8x32xf32> to vector<8xf32>
    %1077 = vector.shape_cast %1076 : vector<8xf32> to vector<8x1xf32>
    %cst_316 = arith.constant 3.200000e+01 : f32
    %1078 = vector.broadcast %cst_316 : f32 to vector<8x1xf32>
    %1079 = arith.divf %1077, %1078 : vector<8x1xf32>
    %1080 = vector.broadcast %1072 : vector<8x1xf32> to vector<8x32xf32>
    %1081 = arith.subf %1068, %1080 : vector<8x32xf32>
    %cst_317 = arith.constant 9.99999974E-6 : f32
    %1082 = vector.broadcast %cst_317 : f32 to vector<8x1xf32>
    %1083 = arith.addf %1079, %1082 : vector<8x1xf32>
    %1084 = math.rsqrt %1083 : vector<8x1xf32>
    %1085 = vector.broadcast %1084 : vector<8x1xf32> to vector<8x32xf32>
    %1086 = arith.mulf %1081, %1085 : vector<8x32xf32>
    %1087 = arith.truncf %1042 : vector<8x32xf32> to vector<8x32xbf16>
    %c2_318 = arith.constant 2 : index
    %c0_319 = arith.constant 0 : index
    %c0_320 = arith.constant 0 : index
    %1088 = vector.load %arg2[%c2_318, %c0_319, %c0_320] : memref<3x32x96xbf16, #tpu.memory_space<vmem>>, vector<1x32x96xbf16>
    %1089 = vector.shape_cast %1088 : vector<1x32x96xbf16> to vector<32x96xbf16>
    %cst_321 = arith.constant dense<0.000000e+00> : vector<8x96xf32>
    %1090 = tpu.matmul %1087, %1089, %cst_321 {dimension_numbers = #tpu.dot_dimension_numbers<[1], [0], [0], [1], [0, 0, 1, 1], [], []>} : vector<8x32xbf16>, vector<32x96xbf16>, vector<8x96xf32> -> vector<8x96xf32>
    %1091 = vector.broadcast %8 : vector<1x96xf32> to vector<8x96xf32>
    %1092 = arith.addf %1090, %1091 : vector<8x96xf32>
    %1093 = vector.extract_strided_slice %1092 {offsets = [0, 0], sizes = [8, 64], strides = [1, 1]} : vector<8x96xf32> to vector<8x64xf32>
    %cst_322 = arith.constant dense<0.000000e+00> : vector<8xf32>
    %1094 = vector.multi_reduction <add>, %1093, %cst_322 [1] : vector<8x64xf32> to vector<8xf32>
    %1095 = vector.shape_cast %1094 : vector<8xf32> to vector<8x1xf32>
    %cst_323 = arith.constant 6.400000e+01 : f32
    %1096 = vector.broadcast %cst_323 : f32 to vector<8x1xf32>
    %1097 = arith.divf %1095, %1096 : vector<8x1xf32>
    %1098 = vector.broadcast %1097 : vector<8x1xf32> to vector<8x64xf32>
    %1099 = arith.subf %1093, %1098 : vector<8x64xf32>
    %1100 = arith.mulf %1099, %1099 : vector<8x64xf32>
    %cst_324 = arith.constant dense<0.000000e+00> : vector<8xf32>
    %1101 = vector.multi_reduction <add>, %1100, %cst_324 [1] : vector<8x64xf32> to vector<8xf32>
    %1102 = vector.shape_cast %1101 : vector<8xf32> to vector<8x1xf32>
    %cst_325 = arith.constant 6.400000e+01 : f32
    %1103 = vector.broadcast %cst_325 : f32 to vector<8x1xf32>
    %1104 = arith.divf %1102, %1103 : vector<8x1xf32>
    %1105 = vector.broadcast %1097 : vector<8x1xf32> to vector<8x64xf32>
    %1106 = arith.subf %1093, %1105 : vector<8x64xf32>
    %cst_326 = arith.constant 9.99999974E-6 : f32
    %1107 = vector.broadcast %cst_326 : f32 to vector<8x1xf32>
    %1108 = arith.addf %1104, %1107 : vector<8x1xf32>
    %1109 = math.rsqrt %1108 : vector<8x1xf32>
    %1110 = vector.broadcast %1109 : vector<8x1xf32> to vector<8x64xf32>
    %1111 = arith.mulf %1106, %1110 : vector<8x64xf32>
    %1112 = vector.extract_strided_slice %1092 {offsets = [0, 64], sizes = [8, 32], strides = [1, 1]} : vector<8x96xf32> to vector<8x32xf32>
    %cst_327 = arith.constant dense<0.000000e+00> : vector<8xf32>
    %1113 = vector.multi_reduction <add>, %1112, %cst_327 [1] : vector<8x32xf32> to vector<8xf32>
    %1114 = vector.shape_cast %1113 : vector<8xf32> to vector<8x1xf32>
    %cst_328 = arith.constant 3.200000e+01 : f32
    %1115 = vector.broadcast %cst_328 : f32 to vector<8x1xf32>
    %1116 = arith.divf %1114, %1115 : vector<8x1xf32>
    %1117 = vector.broadcast %1116 : vector<8x1xf32> to vector<8x32xf32>
    %1118 = arith.subf %1112, %1117 : vector<8x32xf32>
    %1119 = arith.mulf %1118, %1118 : vector<8x32xf32>
    %cst_329 = arith.constant dense<0.000000e+00> : vector<8xf32>
    %1120 = vector.multi_reduction <add>, %1119, %cst_329 [1] : vector<8x32xf32> to vector<8xf32>
    %1121 = vector.shape_cast %1120 : vector<8xf32> to vector<8x1xf32>
    %cst_330 = arith.constant 3.200000e+01 : f32
    %1122 = vector.broadcast %cst_330 : f32 to vector<8x1xf32>
    %1123 = arith.divf %1121, %1122 : vector<8x1xf32>
    %1124 = vector.broadcast %1116 : vector<8x1xf32> to vector<8x32xf32>
    %1125 = arith.subf %1112, %1124 : vector<8x32xf32>
    %cst_331 = arith.constant 9.99999974E-6 : f32
    %1126 = vector.broadcast %cst_331 : f32 to vector<8x1xf32>
    %1127 = arith.addf %1123, %1126 : vector<8x1xf32>
    %1128 = math.rsqrt %1127 : vector<8x1xf32>
    %1129 = vector.broadcast %1128 : vector<8x1xf32> to vector<8x32xf32>
    %1130 = arith.mulf %1125, %1129 : vector<8x32xf32>
    %1131 = arith.addf %1111, %1067 : vector<8x64xf32>
    %1132 = arith.negf %1131 : vector<8x64xf32>
    %1133 = math.exp %1132 : vector<8x64xf32>
    %cst_332 = arith.constant 1.000000e+00 : f32
    %1134 = vector.broadcast %cst_332 : f32 to vector<8x64xf32>
    %1135 = arith.addf %1134, %1133 : vector<8x64xf32>
    %1136 = arith.divf %1134, %1135 : vector<8x64xf32>
    %1137 = vector.extract_strided_slice %1136 {offsets = [0, 0], sizes = [8, 32], strides = [1, 1]} : vector<8x64xf32> to vector<8x32xf32>
    %1138 = vector.extract_strided_slice %1136 {offsets = [0, 32], sizes = [8, 32], strides = [1, 1]} : vector<8x64xf32> to vector<8x32xf32>
    %1139 = arith.mulf %1138, %1086 : vector<8x32xf32>
    %1140 = arith.addf %1130, %1139 : vector<8x32xf32>
    %1141 = math.tanh %1140 : vector<8x32xf32>
    %cst_333 = arith.constant 1.000000e+00 : f32
    %1142 = vector.broadcast %cst_333 : f32 to vector<8x32xf32>
    %1143 = arith.subf %1142, %1137 : vector<8x32xf32>
    %1144 = arith.mulf %1143, %875 : vector<8x32xf32>
    %1145 = arith.mulf %1137, %1141 : vector<8x32xf32>
    %1146 = arith.addf %1144, %1145 : vector<8x32xf32>
    %c24 = arith.constant 24 : index
    %c0_334 = arith.constant 0 : index
    %1147 = vector.load %arg9[%c24, %c0_334] : memref<64x32xf32, #tpu.memory_space<vmem>>, vector<8x32xf32>
    tpu.vector_store %arg9[%c24, %c0_334], %1146 {strides = array<i32>} : memref<64x32xf32, #tpu.memory_space<vmem>>, vector<8x32xf32>,
    %1148 = arith.truncf %938 : vector<8x32xf32> to vector<8x32xbf16>
    %c0_335 = arith.constant 0 : index
    %c0_336 = arith.constant 0 : index
    %c0_337 = arith.constant 0 : index
    %1149 = vector.load %arg4[%c0_335, %c0_336, %c0_337] : memref<3x32x96xbf16, #tpu.memory_space<vmem>>, vector<1x32x96xbf16>
    %1150 = vector.shape_cast %1149 : vector<1x32x96xbf16> to vector<32x96xbf16>
    %cst_338 = arith.constant dense<0.000000e+00> : vector<8x96xf32>
    %1151 = tpu.matmul %1148, %1150, %cst_338 {dimension_numbers = #tpu.dot_dimension_numbers<[1], [0], [0], [1], [0, 0, 1, 1], [], []>} : vector<8x32xbf16>, vector<32x96xbf16>, vector<8x96xf32> -> vector<8x96xf32>
    %1152 = vector.broadcast %11 : vector<1x96xf32> to vector<8x96xf32>
    %1153 = arith.addf %1151, %1152 : vector<8x96xf32>
    %1154 = vector.extract_strided_slice %1153 {offsets = [0, 0], sizes = [8, 64], strides = [1, 1]} : vector<8x96xf32> to vector<8x64xf32>
    %cst_339 = arith.constant dense<0.000000e+00> : vector<8xf32>
    %1155 = vector.multi_reduction <add>, %1154, %cst_339 [1] : vector<8x64xf32> to vector<8xf32>
    %1156 = vector.shape_cast %1155 : vector<8xf32> to vector<8x1xf32>
    %cst_340 = arith.constant 6.400000e+01 : f32
    %1157 = vector.broadcast %cst_340 : f32 to vector<8x1xf32>
    %1158 = arith.divf %1156, %1157 : vector<8x1xf32>
    %1159 = vector.broadcast %1158 : vector<8x1xf32> to vector<8x64xf32>
    %1160 = arith.subf %1154, %1159 : vector<8x64xf32>
    %1161 = arith.mulf %1160, %1160 : vector<8x64xf32>
    %cst_341 = arith.constant dense<0.000000e+00> : vector<8xf32>
    %1162 = vector.multi_reduction <add>, %1161, %cst_341 [1] : vector<8x64xf32> to vector<8xf32>
    %1163 = vector.shape_cast %1162 : vector<8xf32> to vector<8x1xf32>
    %cst_342 = arith.constant 6.400000e+01 : f32
    %1164 = vector.broadcast %cst_342 : f32 to vector<8x1xf32>
    %1165 = arith.divf %1163, %1164 : vector<8x1xf32>
    %1166 = vector.broadcast %1158 : vector<8x1xf32> to vector<8x64xf32>
    %1167 = arith.subf %1154, %1166 : vector<8x64xf32>
    %cst_343 = arith.constant 9.99999974E-6 : f32
    %1168 = vector.broadcast %cst_343 : f32 to vector<8x1xf32>
    %1169 = arith.addf %1165, %1168 : vector<8x1xf32>
    %1170 = math.rsqrt %1169 : vector<8x1xf32>
    %1171 = vector.broadcast %1170 : vector<8x1xf32> to vector<8x64xf32>
    %1172 = arith.mulf %1167, %1171 : vector<8x64xf32>
    %1173 = vector.extract_strided_slice %1153 {offsets = [0, 64], sizes = [8, 32], strides = [1, 1]} : vector<8x96xf32> to vector<8x32xf32>
    %cst_344 = arith.constant dense<0.000000e+00> : vector<8xf32>
    %1174 = vector.multi_reduction <add>, %1173, %cst_344 [1] : vector<8x32xf32> to vector<8xf32>
    %1175 = vector.shape_cast %1174 : vector<8xf32> to vector<8x1xf32>
    %cst_345 = arith.constant 3.200000e+01 : f32
    %1176 = vector.broadcast %cst_345 : f32 to vector<8x1xf32>
    %1177 = arith.divf %1175, %1176 : vector<8x1xf32>
    %1178 = vector.broadcast %1177 : vector<8x1xf32> to vector<8x32xf32>
    %1179 = arith.subf %1173, %1178 : vector<8x32xf32>
    %1180 = arith.mulf %1179, %1179 : vector<8x32xf32>
    %cst_346 = arith.constant dense<0.000000e+00> : vector<8xf32>
    %1181 = vector.multi_reduction <add>, %1180, %cst_346 [1] : vector<8x32xf32> to vector<8xf32>
    %1182 = vector.shape_cast %1181 : vector<8xf32> to vector<8x1xf32>
    %cst_347 = arith.constant 3.200000e+01 : f32
    %1183 = vector.broadcast %cst_347 : f32 to vector<8x1xf32>
    %1184 = arith.divf %1182, %1183 : vector<8x1xf32>
    %1185 = vector.broadcast %1177 : vector<8x1xf32> to vector<8x32xf32>
    %1186 = arith.subf %1173, %1185 : vector<8x32xf32>
    %cst_348 = arith.constant 9.99999974E-6 : f32
    %1187 = vector.broadcast %cst_348 : f32 to vector<8x1xf32>
    %1188 = arith.addf %1184, %1187 : vector<8x1xf32>
    %1189 = math.rsqrt %1188 : vector<8x1xf32>
    %1190 = vector.broadcast %1189 : vector<8x1xf32> to vector<8x32xf32>
    %1191 = arith.mulf %1186, %1190 : vector<8x32xf32>
    %1192 = vector.extract_strided_slice %43 {offsets = [32, 0], sizes = [8, 64], strides = [1, 1]} : vector<64x64xf32> to vector<8x64xf32>
    %1193 = vector.extract_strided_slice %62 {offsets = [32, 0], sizes = [8, 32], strides = [1, 1]} : vector<64x32xf32> to vector<8x32xf32>
    %1194 = arith.addf %1192, %1172 : vector<8x64xf32>
    %1195 = arith.negf %1194 : vector<8x64xf32>
    %1196 = math.exp %1195 : vector<8x64xf32>
    %cst_349 = arith.constant 1.000000e+00 : f32
    %1197 = vector.broadcast %cst_349 : f32 to vector<8x64xf32>
    %1198 = arith.addf %1197, %1196 : vector<8x64xf32>
    %1199 = arith.divf %1197, %1198 : vector<8x64xf32>
    %1200 = vector.extract_strided_slice %1199 {offsets = [0, 0], sizes = [8, 32], strides = [1, 1]} : vector<8x64xf32> to vector<8x32xf32>
    %1201 = vector.extract_strided_slice %1199 {offsets = [0, 32], sizes = [8, 32], strides = [1, 1]} : vector<8x64xf32> to vector<8x32xf32>
    %1202 = arith.mulf %1201, %1191 : vector<8x32xf32>
    %1203 = arith.addf %1193, %1202 : vector<8x32xf32>
    %1204 = math.tanh %1203 : vector<8x32xf32>
    %cst_350 = arith.constant 1.000000e+00 : f32
    %1205 = vector.broadcast %cst_350 : f32 to vector<8x32xf32>
    %1206 = arith.subf %1205, %1200 : vector<8x32xf32>
    %1207 = arith.mulf %1206, %938 : vector<8x32xf32>
    %1208 = arith.mulf %1200, %1204 : vector<8x32xf32>
    %1209 = arith.addf %1207, %1208 : vector<8x32xf32>
    %1210 = arith.truncf %1042 : vector<8x32xf32> to vector<8x32xbf16>
    %c1_351 = arith.constant 1 : index
    %c0_352 = arith.constant 0 : index
    %c0_353 = arith.constant 0 : index
    %1211 = vector.load %arg4[%c1_351, %c0_352, %c0_353] : memref<3x32x96xbf16, #tpu.memory_space<vmem>>, vector<1x32x96xbf16>
    %1212 = vector.shape_cast %1211 : vector<1x32x96xbf16> to vector<32x96xbf16>
    %cst_354 = arith.constant dense<0.000000e+00> : vector<8x96xf32>
    %1213 = tpu.matmul %1210, %1212, %cst_354 {dimension_numbers = #tpu.dot_dimension_numbers<[1], [0], [0], [1], [0, 0, 1, 1], [], []>} : vector<8x32xbf16>, vector<32x96xbf16>, vector<8x96xf32> -> vector<8x96xf32>
    %1214 = vector.broadcast %14 : vector<1x96xf32> to vector<8x96xf32>
    %1215 = arith.addf %1213, %1214 : vector<8x96xf32>
    %1216 = vector.extract_strided_slice %1215 {offsets = [0, 0], sizes = [8, 64], strides = [1, 1]} : vector<8x96xf32> to vector<8x64xf32>
    %cst_355 = arith.constant dense<0.000000e+00> : vector<8xf32>
    %1217 = vector.multi_reduction <add>, %1216, %cst_355 [1] : vector<8x64xf32> to vector<8xf32>
    %1218 = vector.shape_cast %1217 : vector<8xf32> to vector<8x1xf32>
    %cst_356 = arith.constant 6.400000e+01 : f32
    %1219 = vector.broadcast %cst_356 : f32 to vector<8x1xf32>
    %1220 = arith.divf %1218, %1219 : vector<8x1xf32>
    %1221 = vector.broadcast %1220 : vector<8x1xf32> to vector<8x64xf32>
    %1222 = arith.subf %1216, %1221 : vector<8x64xf32>
    %1223 = arith.mulf %1222, %1222 : vector<8x64xf32>
    %cst_357 = arith.constant dense<0.000000e+00> : vector<8xf32>
    %1224 = vector.multi_reduction <add>, %1223, %cst_357 [1] : vector<8x64xf32> to vector<8xf32>
    %1225 = vector.shape_cast %1224 : vector<8xf32> to vector<8x1xf32>
    %cst_358 = arith.constant 6.400000e+01 : f32
    %1226 = vector.broadcast %cst_358 : f32 to vector<8x1xf32>
    %1227 = arith.divf %1225, %1226 : vector<8x1xf32>
    %1228 = vector.broadcast %1220 : vector<8x1xf32> to vector<8x64xf32>
    %1229 = arith.subf %1216, %1228 : vector<8x64xf32>
    %cst_359 = arith.constant 9.99999974E-6 : f32
    %1230 = vector.broadcast %cst_359 : f32 to vector<8x1xf32>
    %1231 = arith.addf %1227, %1230 : vector<8x1xf32>
    %1232 = math.rsqrt %1231 : vector<8x1xf32>
    %1233 = vector.broadcast %1232 : vector<8x1xf32> to vector<8x64xf32>
    %1234 = arith.mulf %1229, %1233 : vector<8x64xf32>
    %1235 = vector.extract_strided_slice %1215 {offsets = [0, 64], sizes = [8, 32], strides = [1, 1]} : vector<8x96xf32> to vector<8x32xf32>
    %cst_360 = arith.constant dense<0.000000e+00> : vector<8xf32>
    %1236 = vector.multi_reduction <add>, %1235, %cst_360 [1] : vector<8x32xf32> to vector<8xf32>
    %1237 = vector.shape_cast %1236 : vector<8xf32> to vector<8x1xf32>
    %cst_361 = arith.constant 3.200000e+01 : f32
    %1238 = vector.broadcast %cst_361 : f32 to vector<8x1xf32>
    %1239 = arith.divf %1237, %1238 : vector<8x1xf32>
    %1240 = vector.broadcast %1239 : vector<8x1xf32> to vector<8x32xf32>
    %1241 = arith.subf %1235, %1240 : vector<8x32xf32>
    %1242 = arith.mulf %1241, %1241 : vector<8x32xf32>
    %cst_362 = arith.constant dense<0.000000e+00> : vector<8xf32>
    %1243 = vector.multi_reduction <add>, %1242, %cst_362 [1] : vector<8x32xf32> to vector<8xf32>
    %1244 = vector.shape_cast %1243 : vector<8xf32> to vector<8x1xf32>
    %cst_363 = arith.constant 3.200000e+01 : f32
    %1245 = vector.broadcast %cst_363 : f32 to vector<8x1xf32>
    %1246 = arith.divf %1244, %1245 : vector<8x1xf32>
    %1247 = vector.broadcast %1239 : vector<8x1xf32> to vector<8x32xf32>
    %1248 = arith.subf %1235, %1247 : vector<8x32xf32>
    %cst_364 = arith.constant 9.99999974E-6 : f32
    %1249 = vector.broadcast %cst_364 : f32 to vector<8x1xf32>
    %1250 = arith.addf %1246, %1249 : vector<8x1xf32>
    %1251 = math.rsqrt %1250 : vector<8x1xf32>
    %1252 = vector.broadcast %1251 : vector<8x1xf32> to vector<8x32xf32>
    %1253 = arith.mulf %1248, %1252 : vector<8x32xf32>
    %1254 = arith.truncf %1209 : vector<8x32xf32> to vector<8x32xbf16>
    %c1_365 = arith.constant 1 : index
    %c0_366 = arith.constant 0 : index
    %c0_367 = arith.constant 0 : index
    %1255 = vector.load %arg2[%c1_365, %c0_366, %c0_367] : memref<3x32x96xbf16, #tpu.memory_space<vmem>>, vector<1x32x96xbf16>
    %1256 = vector.shape_cast %1255 : vector<1x32x96xbf16> to vector<32x96xbf16>
    %cst_368 = arith.constant dense<0.000000e+00> : vector<8x96xf32>
    %1257 = tpu.matmul %1254, %1256, %cst_368 {dimension_numbers = #tpu.dot_dimension_numbers<[1], [0], [0], [1], [0, 0, 1, 1], [], []>} : vector<8x32xbf16>, vector<32x96xbf16>, vector<8x96xf32> -> vector<8x96xf32>
    %1258 = vector.broadcast %5 : vector<1x96xf32> to vector<8x96xf32>
    %1259 = arith.addf %1257, %1258 : vector<8x96xf32>
    %1260 = vector.extract_strided_slice %1259 {offsets = [0, 0], sizes = [8, 64], strides = [1, 1]} : vector<8x96xf32> to vector<8x64xf32>
    %cst_369 = arith.constant dense<0.000000e+00> : vector<8xf32>
    %1261 = vector.multi_reduction <add>, %1260, %cst_369 [1] : vector<8x64xf32> to vector<8xf32>
    %1262 = vector.shape_cast %1261 : vector<8xf32> to vector<8x1xf32>
    %cst_370 = arith.constant 6.400000e+01 : f32
    %1263 = vector.broadcast %cst_370 : f32 to vector<8x1xf32>
    %1264 = arith.divf %1262, %1263 : vector<8x1xf32>
    %1265 = vector.broadcast %1264 : vector<8x1xf32> to vector<8x64xf32>
    %1266 = arith.subf %1260, %1265 : vector<8x64xf32>
    %1267 = arith.mulf %1266, %1266 : vector<8x64xf32>
    %cst_371 = arith.constant dense<0.000000e+00> : vector<8xf32>
    %1268 = vector.multi_reduction <add>, %1267, %cst_371 [1] : vector<8x64xf32> to vector<8xf32>
    %1269 = vector.shape_cast %1268 : vector<8xf32> to vector<8x1xf32>
    %cst_372 = arith.constant 6.400000e+01 : f32
    %1270 = vector.broadcast %cst_372 : f32 to vector<8x1xf32>
    %1271 = arith.divf %1269, %1270 : vector<8x1xf32>
    %1272 = vector.broadcast %1264 : vector<8x1xf32> to vector<8x64xf32>
    %1273 = arith.subf %1260, %1272 : vector<8x64xf32>
    %cst_373 = arith.constant 9.99999974E-6 : f32
    %1274 = vector.broadcast %cst_373 : f32 to vector<8x1xf32>
    %1275 = arith.addf %1271, %1274 : vector<8x1xf32>
    %1276 = math.rsqrt %1275 : vector<8x1xf32>
    %1277 = vector.broadcast %1276 : vector<8x1xf32> to vector<8x64xf32>
    %1278 = arith.mulf %1273, %1277 : vector<8x64xf32>
    %1279 = vector.extract_strided_slice %1259 {offsets = [0, 64], sizes = [8, 32], strides = [1, 1]} : vector<8x96xf32> to vector<8x32xf32>
    %cst_374 = arith.constant dense<0.000000e+00> : vector<8xf32>
    %1280 = vector.multi_reduction <add>, %1279, %cst_374 [1] : vector<8x32xf32> to vector<8xf32>
    %1281 = vector.shape_cast %1280 : vector<8xf32> to vector<8x1xf32>
    %cst_375 = arith.constant 3.200000e+01 : f32
    %1282 = vector.broadcast %cst_375 : f32 to vector<8x1xf32>
    %1283 = arith.divf %1281, %1282 : vector<8x1xf32>
    %1284 = vector.broadcast %1283 : vector<8x1xf32> to vector<8x32xf32>
    %1285 = arith.subf %1279, %1284 : vector<8x32xf32>
    %1286 = arith.mulf %1285, %1285 : vector<8x32xf32>
    %cst_376 = arith.constant dense<0.000000e+00> : vector<8xf32>
    %1287 = vector.multi_reduction <add>, %1286, %cst_376 [1] : vector<8x32xf32> to vector<8xf32>
    %1288 = vector.shape_cast %1287 : vector<8xf32> to vector<8x1xf32>
    %cst_377 = arith.constant 3.200000e+01 : f32
    %1289 = vector.broadcast %cst_377 : f32 to vector<8x1xf32>
    %1290 = arith.divf %1288, %1289 : vector<8x1xf32>
    %1291 = vector.broadcast %1283 : vector<8x1xf32> to vector<8x32xf32>
    %1292 = arith.subf %1279, %1291 : vector<8x32xf32>
    %cst_378 = arith.constant 9.99999974E-6 : f32
    %1293 = vector.broadcast %cst_378 : f32 to vector<8x1xf32>
    %1294 = arith.addf %1290, %1293 : vector<8x1xf32>
    %1295 = math.rsqrt %1294 : vector<8x1xf32>
    %1296 = vector.broadcast %1295 : vector<8x1xf32> to vector<8x32xf32>
    %1297 = arith.mulf %1292, %1296 : vector<8x32xf32>
    %1298 = arith.addf %1278, %1234 : vector<8x64xf32>
    %1299 = arith.negf %1298 : vector<8x64xf32>
    %1300 = math.exp %1299 : vector<8x64xf32>
    %cst_379 = arith.constant 1.000000e+00 : f32
    %1301 = vector.broadcast %cst_379 : f32 to vector<8x64xf32>
    %1302 = arith.addf %1301, %1300 : vector<8x64xf32>
    %1303 = arith.divf %1301, %1302 : vector<8x64xf32>
    %1304 = vector.extract_strided_slice %1303 {offsets = [0, 0], sizes = [8, 32], strides = [1, 1]} : vector<8x64xf32> to vector<8x32xf32>
    %1305 = vector.extract_strided_slice %1303 {offsets = [0, 32], sizes = [8, 32], strides = [1, 1]} : vector<8x64xf32> to vector<8x32xf32>
    %1306 = arith.mulf %1305, %1253 : vector<8x32xf32>
    %1307 = arith.addf %1297, %1306 : vector<8x32xf32>
    %1308 = math.tanh %1307 : vector<8x32xf32>
    %cst_380 = arith.constant 1.000000e+00 : f32
    %1309 = vector.broadcast %cst_380 : f32 to vector<8x32xf32>
    %1310 = arith.subf %1309, %1304 : vector<8x32xf32>
    %1311 = arith.mulf %1310, %1042 : vector<8x32xf32>
    %1312 = arith.mulf %1304, %1308 : vector<8x32xf32>
    %1313 = arith.addf %1311, %1312 : vector<8x32xf32>
    %1314 = arith.truncf %1146 : vector<8x32xf32> to vector<8x32xbf16>
    %c2_381 = arith.constant 2 : index
    %c0_382 = arith.constant 0 : index
    %c0_383 = arith.constant 0 : index
    %1315 = vector.load %arg4[%c2_381, %c0_382, %c0_383] : memref<3x32x96xbf16, #tpu.memory_space<vmem>>, vector<1x32x96xbf16>
    %1316 = vector.shape_cast %1315 : vector<1x32x96xbf16> to vector<32x96xbf16>
    %cst_384 = arith.constant dense<0.000000e+00> : vector<8x96xf32>
    %1317 = tpu.matmul %1314, %1316, %cst_384 {dimension_numbers = #tpu.dot_dimension_numbers<[1], [0], [0], [1], [0, 0, 1, 1], [], []>} : vector<8x32xbf16>, vector<32x96xbf16>, vector<8x96xf32> -> vector<8x96xf32>
    %1318 = vector.broadcast %17 : vector<1x96xf32> to vector<8x96xf32>
    %1319 = arith.addf %1317, %1318 : vector<8x96xf32>
    %1320 = vector.extract_strided_slice %1319 {offsets = [0, 0], sizes = [8, 64], strides = [1, 1]} : vector<8x96xf32> to vector<8x64xf32>
    %cst_385 = arith.constant dense<0.000000e+00> : vector<8xf32>
    %1321 = vector.multi_reduction <add>, %1320, %cst_385 [1] : vector<8x64xf32> to vector<8xf32>
    %1322 = vector.shape_cast %1321 : vector<8xf32> to vector<8x1xf32>
    %cst_386 = arith.constant 6.400000e+01 : f32
    %1323 = vector.broadcast %cst_386 : f32 to vector<8x1xf32>
    %1324 = arith.divf %1322, %1323 : vector<8x1xf32>
    %1325 = vector.broadcast %1324 : vector<8x1xf32> to vector<8x64xf32>
    %1326 = arith.subf %1320, %1325 : vector<8x64xf32>
    %1327 = arith.mulf %1326, %1326 : vector<8x64xf32>
    %cst_387 = arith.constant dense<0.000000e+00> : vector<8xf32>
    %1328 = vector.multi_reduction <add>, %1327, %cst_387 [1] : vector<8x64xf32> to vector<8xf32>
    %1329 = vector.shape_cast %1328 : vector<8xf32> to vector<8x1xf32>
    %cst_388 = arith.constant 6.400000e+01 : f32
    %1330 = vector.broadcast %cst_388 : f32 to vector<8x1xf32>
    %1331 = arith.divf %1329, %1330 : vector<8x1xf32>
    %1332 = vector.broadcast %1324 : vector<8x1xf32> to vector<8x64xf32>
    %1333 = arith.subf %1320, %1332 : vector<8x64xf32>
    %cst_389 = arith.constant 9.99999974E-6 : f32
    %1334 = vector.broadcast %cst_389 : f32 to vector<8x1xf32>
    %1335 = arith.addf %1331, %1334 : vector<8x1xf32>
    %1336 = math.rsqrt %1335 : vector<8x1xf32>
    %1337 = vector.broadcast %1336 : vector<8x1xf32> to vector<8x64xf32>
    %1338 = arith.mulf %1333, %1337 : vector<8x64xf32>
    %1339 = vector.extract_strided_slice %1319 {offsets = [0, 64], sizes = [8, 32], strides = [1, 1]} : vector<8x96xf32> to vector<8x32xf32>
    %cst_390 = arith.constant dense<0.000000e+00> : vector<8xf32>
    %1340 = vector.multi_reduction <add>, %1339, %cst_390 [1] : vector<8x32xf32> to vector<8xf32>
    %1341 = vector.shape_cast %1340 : vector<8xf32> to vector<8x1xf32>
    %cst_391 = arith.constant 3.200000e+01 : f32
    %1342 = vector.broadcast %cst_391 : f32 to vector<8x1xf32>
    %1343 = arith.divf %1341, %1342 : vector<8x1xf32>
    %1344 = vector.broadcast %1343 : vector<8x1xf32> to vector<8x32xf32>
    %1345 = arith.subf %1339, %1344 : vector<8x32xf32>
    %1346 = arith.mulf %1345, %1345 : vector<8x32xf32>
    %cst_392 = arith.constant dense<0.000000e+00> : vector<8xf32>
    %1347 = vector.multi_reduction <add>, %1346, %cst_392 [1] : vector<8x32xf32> to vector<8xf32>
    %1348 = vector.shape_cast %1347 : vector<8xf32> to vector<8x1xf32>
    %cst_393 = arith.constant 3.200000e+01 : f32
    %1349 = vector.broadcast %cst_393 : f32 to vector<8x1xf32>
    %1350 = arith.divf %1348, %1349 : vector<8x1xf32>
    %1351 = vector.broadcast %1343 : vector<8x1xf32> to vector<8x32xf32>
    %1352 = arith.subf %1339, %1351 : vector<8x32xf32>
    %cst_394 = arith.constant 9.99999974E-6 : f32
    %1353 = vector.broadcast %cst_394 : f32 to vector<8x1xf32>
    %1354 = arith.addf %1350, %1353 : vector<8x1xf32>
    %1355 = math.rsqrt %1354 : vector<8x1xf32>
    %1356 = vector.broadcast %1355 : vector<8x1xf32> to vector<8x32xf32>
    %1357 = arith.mulf %1352, %1356 : vector<8x32xf32>
    %1358 = arith.truncf %1313 : vector<8x32xf32> to vector<8x32xbf16>
    %c2_395 = arith.constant 2 : index
    %c0_396 = arith.constant 0 : index
    %c0_397 = arith.constant 0 : index
    %1359 = vector.load %arg2[%c2_395, %c0_396, %c0_397] : memref<3x32x96xbf16, #tpu.memory_space<vmem>>, vector<1x32x96xbf16>
    %1360 = vector.shape_cast %1359 : vector<1x32x96xbf16> to vector<32x96xbf16>
    %cst_398 = arith.constant dense<0.000000e+00> : vector<8x96xf32>
    %1361 = tpu.matmul %1358, %1360, %cst_398 {dimension_numbers = #tpu.dot_dimension_numbers<[1], [0], [0], [1], [0, 0, 1, 1], [], []>} : vector<8x32xbf16>, vector<32x96xbf16>, vector<8x96xf32> -> vector<8x96xf32>
    %1362 = vector.broadcast %8 : vector<1x96xf32> to vector<8x96xf32>
    %1363 = arith.addf %1361, %1362 : vector<8x96xf32>
    %1364 = vector.extract_strided_slice %1363 {offsets = [0, 0], sizes = [8, 64], strides = [1, 1]} : vector<8x96xf32> to vector<8x64xf32>
    %cst_399 = arith.constant dense<0.000000e+00> : vector<8xf32>
    %1365 = vector.multi_reduction <add>, %1364, %cst_399 [1] : vector<8x64xf32> to vector<8xf32>
    %1366 = vector.shape_cast %1365 : vector<8xf32> to vector<8x1xf32>
    %cst_400 = arith.constant 6.400000e+01 : f32
    %1367 = vector.broadcast %cst_400 : f32 to vector<8x1xf32>
    %1368 = arith.divf %1366, %1367 : vector<8x1xf32>
    %1369 = vector.broadcast %1368 : vector<8x1xf32> to vector<8x64xf32>
    %1370 = arith.subf %1364, %1369 : vector<8x64xf32>
    %1371 = arith.mulf %1370, %1370 : vector<8x64xf32>
    %cst_401 = arith.constant dense<0.000000e+00> : vector<8xf32>
    %1372 = vector.multi_reduction <add>, %1371, %cst_401 [1] : vector<8x64xf32> to vector<8xf32>
    %1373 = vector.shape_cast %1372 : vector<8xf32> to vector<8x1xf32>
    %cst_402 = arith.constant 6.400000e+01 : f32
    %1374 = vector.broadcast %cst_402 : f32 to vector<8x1xf32>
    %1375 = arith.divf %1373, %1374 : vector<8x1xf32>
    %1376 = vector.broadcast %1368 : vector<8x1xf32> to vector<8x64xf32>
    %1377 = arith.subf %1364, %1376 : vector<8x64xf32>
    %cst_403 = arith.constant 9.99999974E-6 : f32
    %1378 = vector.broadcast %cst_403 : f32 to vector<8x1xf32>
    %1379 = arith.addf %1375, %1378 : vector<8x1xf32>
    %1380 = math.rsqrt %1379 : vector<8x1xf32>
    %1381 = vector.broadcast %1380 : vector<8x1xf32> to vector<8x64xf32>
    %1382 = arith.mulf %1377, %1381 : vector<8x64xf32>
    %1383 = vector.extract_strided_slice %1363 {offsets = [0, 64], sizes = [8, 32], strides = [1, 1]} : vector<8x96xf32> to vector<8x32xf32>
    %cst_404 = arith.constant dense<0.000000e+00> : vector<8xf32>
    %1384 = vector.multi_reduction <add>, %1383, %cst_404 [1] : vector<8x32xf32> to vector<8xf32>
    %1385 = vector.shape_cast %1384 : vector<8xf32> to vector<8x1xf32>
    %cst_405 = arith.constant 3.200000e+01 : f32
    %1386 = vector.broadcast %cst_405 : f32 to vector<8x1xf32>
    %1387 = arith.divf %1385, %1386 : vector<8x1xf32>
    %1388 = vector.broadcast %1387 : vector<8x1xf32> to vector<8x32xf32>
    %1389 = arith.subf %1383, %1388 : vector<8x32xf32>
    %1390 = arith.mulf %1389, %1389 : vector<8x32xf32>
    %cst_406 = arith.constant dense<0.000000e+00> : vector<8xf32>
    %1391 = vector.multi_reduction <add>, %1390, %cst_406 [1] : vector<8x32xf32> to vector<8xf32>
    %1392 = vector.shape_cast %1391 : vector<8xf32> to vector<8x1xf32>
    %cst_407 = arith.constant 3.200000e+01 : f32
    %1393 = vector.broadcast %cst_407 : f32 to vector<8x1xf32>
    %1394 = arith.divf %1392, %1393 : vector<8x1xf32>
    %1395 = vector.broadcast %1387 : vector<8x1xf32> to vector<8x32xf32>
    %1396 = arith.subf %1383, %1395 : vector<8x32xf32>
    %cst_408 = arith.constant 9.99999974E-6 : f32
    %1397 = vector.broadcast %cst_408 : f32 to vector<8x1xf32>
    %1398 = arith.addf %1394, %1397 : vector<8x1xf32>
    %1399 = math.rsqrt %1398 : vector<8x1xf32>
    %1400 = vector.broadcast %1399 : vector<8x1xf32> to vector<8x32xf32>
    %1401 = arith.mulf %1396, %1400 : vector<8x32xf32>
    %1402 = arith.addf %1382, %1338 : vector<8x64xf32>
    %1403 = arith.negf %1402 : vector<8x64xf32>
    %1404 = math.exp %1403 : vector<8x64xf32>
    %cst_409 = arith.constant 1.000000e+00 : f32
    %1405 = vector.broadcast %cst_409 : f32 to vector<8x64xf32>
    %1406 = arith.addf %1405, %1404 : vector<8x64xf32>
    %1407 = arith.divf %1405, %1406 : vector<8x64xf32>
    %1408 = vector.extract_strided_slice %1407 {offsets = [0, 0], sizes = [8, 32], strides = [1, 1]} : vector<8x64xf32> to vector<8x32xf32>
    %1409 = vector.extract_strided_slice %1407 {offsets = [0, 32], sizes = [8, 32], strides = [1, 1]} : vector<8x64xf32> to vector<8x32xf32>
    %1410 = arith.mulf %1409, %1357 : vector<8x32xf32>
    %1411 = arith.addf %1401, %1410 : vector<8x32xf32>
    %1412 = math.tanh %1411 : vector<8x32xf32>
    %cst_410 = arith.constant 1.000000e+00 : f32
    %1413 = vector.broadcast %cst_410 : f32 to vector<8x32xf32>
    %1414 = arith.subf %1413, %1408 : vector<8x32xf32>
    %1415 = arith.mulf %1414, %1146 : vector<8x32xf32>
    %1416 = arith.mulf %1408, %1412 : vector<8x32xf32>
    %1417 = arith.addf %1415, %1416 : vector<8x32xf32>
    %c32 = arith.constant 32 : index
    %c0_411 = arith.constant 0 : index
    %1418 = vector.load %arg9[%c32, %c0_411] : memref<64x32xf32, #tpu.memory_space<vmem>>, vector<8x32xf32>
    tpu.vector_store %arg9[%c32, %c0_411], %1417 {strides = array<i32>} : memref<64x32xf32, #tpu.memory_space<vmem>>, vector<8x32xf32>,
    %1419 = arith.truncf %1209 : vector<8x32xf32> to vector<8x32xbf16>
    %c0_412 = arith.constant 0 : index
    %c0_413 = arith.constant 0 : index
    %c0_414 = arith.constant 0 : index
    %1420 = vector.load %arg4[%c0_412, %c0_413, %c0_414] : memref<3x32x96xbf16, #tpu.memory_space<vmem>>, vector<1x32x96xbf16>
    %1421 = vector.shape_cast %1420 : vector<1x32x96xbf16> to vector<32x96xbf16>
    %cst_415 = arith.constant dense<0.000000e+00> : vector<8x96xf32>
    %1422 = tpu.matmul %1419, %1421, %cst_415 {dimension_numbers = #tpu.dot_dimension_numbers<[1], [0], [0], [1], [0, 0, 1, 1], [], []>} : vector<8x32xbf16>, vector<32x96xbf16>, vector<8x96xf32> -> vector<8x96xf32>
    %1423 = vector.broadcast %11 : vector<1x96xf32> to vector<8x96xf32>
    %1424 = arith.addf %1422, %1423 : vector<8x96xf32>
    %1425 = vector.extract_strided_slice %1424 {offsets = [0, 0], sizes = [8, 64], strides = [1, 1]} : vector<8x96xf32> to vector<8x64xf32>
    %cst_416 = arith.constant dense<0.000000e+00> : vector<8xf32>
    %1426 = vector.multi_reduction <add>, %1425, %cst_416 [1] : vector<8x64xf32> to vector<8xf32>
    %1427 = vector.shape_cast %1426 : vector<8xf32> to vector<8x1xf32>
    %cst_417 = arith.constant 6.400000e+01 : f32
    %1428 = vector.broadcast %cst_417 : f32 to vector<8x1xf32>
    %1429 = arith.divf %1427, %1428 : vector<8x1xf32>
    %1430 = vector.broadcast %1429 : vector<8x1xf32> to vector<8x64xf32>
    %1431 = arith.subf %1425, %1430 : vector<8x64xf32>
    %1432 = arith.mulf %1431, %1431 : vector<8x64xf32>
    %cst_418 = arith.constant dense<0.000000e+00> : vector<8xf32>
    %1433 = vector.multi_reduction <add>, %1432, %cst_418 [1] : vector<8x64xf32> to vector<8xf32>
    %1434 = vector.shape_cast %1433 : vector<8xf32> to vector<8x1xf32>
    %cst_419 = arith.constant 6.400000e+01 : f32
    %1435 = vector.broadcast %cst_419 : f32 to vector<8x1xf32>
    %1436 = arith.divf %1434, %1435 : vector<8x1xf32>
    %1437 = vector.broadcast %1429 : vector<8x1xf32> to vector<8x64xf32>
    %1438 = arith.subf %1425, %1437 : vector<8x64xf32>
    %cst_420 = arith.constant 9.99999974E-6 : f32
    %1439 = vector.broadcast %cst_420 : f32 to vector<8x1xf32>
    %1440 = arith.addf %1436, %1439 : vector<8x1xf32>
    %1441 = math.rsqrt %1440 : vector<8x1xf32>
    %1442 = vector.broadcast %1441 : vector<8x1xf32> to vector<8x64xf32>
    %1443 = arith.mulf %1438, %1442 : vector<8x64xf32>
    %1444 = vector.extract_strided_slice %1424 {offsets = [0, 64], sizes = [8, 32], strides = [1, 1]} : vector<8x96xf32> to vector<8x32xf32>
    %cst_421 = arith.constant dense<0.000000e+00> : vector<8xf32>
    %1445 = vector.multi_reduction <add>, %1444, %cst_421 [1] : vector<8x32xf32> to vector<8xf32>
    %1446 = vector.shape_cast %1445 : vector<8xf32> to vector<8x1xf32>
    %cst_422 = arith.constant 3.200000e+01 : f32
    %1447 = vector.broadcast %cst_422 : f32 to vector<8x1xf32>
    %1448 = arith.divf %1446, %1447 : vector<8x1xf32>
    %1449 = vector.broadcast %1448 : vector<8x1xf32> to vector<8x32xf32>
    %1450 = arith.subf %1444, %1449 : vector<8x32xf32>
    %1451 = arith.mulf %1450, %1450 : vector<8x32xf32>
    %cst_423 = arith.constant dense<0.000000e+00> : vector<8xf32>
    %1452 = vector.multi_reduction <add>, %1451, %cst_423 [1] : vector<8x32xf32> to vector<8xf32>
    %1453 = vector.shape_cast %1452 : vector<8xf32> to vector<8x1xf32>
    %cst_424 = arith.constant 3.200000e+01 : f32
    %1454 = vector.broadcast %cst_424 : f32 to vector<8x1xf32>
    %1455 = arith.divf %1453, %1454 : vector<8x1xf32>
    %1456 = vector.broadcast %1448 : vector<8x1xf32> to vector<8x32xf32>
    %1457 = arith.subf %1444, %1456 : vector<8x32xf32>
    %cst_425 = arith.constant 9.99999974E-6 : f32
    %1458 = vector.broadcast %cst_425 : f32 to vector<8x1xf32>
    %1459 = arith.addf %1455, %1458 : vector<8x1xf32>
    %1460 = math.rsqrt %1459 : vector<8x1xf32>
    %1461 = vector.broadcast %1460 : vector<8x1xf32> to vector<8x32xf32>
    %1462 = arith.mulf %1457, %1461 : vector<8x32xf32>
    %1463 = vector.extract_strided_slice %43 {offsets = [40, 0], sizes = [8, 64], strides = [1, 1]} : vector<64x64xf32> to vector<8x64xf32>
    %1464 = vector.extract_strided_slice %62 {offsets = [40, 0], sizes = [8, 32], strides = [1, 1]} : vector<64x32xf32> to vector<8x32xf32>
    %1465 = arith.addf %1463, %1443 : vector<8x64xf32>
    %1466 = arith.negf %1465 : vector<8x64xf32>
    %1467 = math.exp %1466 : vector<8x64xf32>
    %cst_426 = arith.constant 1.000000e+00 : f32
    %1468 = vector.broadcast %cst_426 : f32 to vector<8x64xf32>
    %1469 = arith.addf %1468, %1467 : vector<8x64xf32>
    %1470 = arith.divf %1468, %1469 : vector<8x64xf32>
    %1471 = vector.extract_strided_slice %1470 {offsets = [0, 0], sizes = [8, 32], strides = [1, 1]} : vector<8x64xf32> to vector<8x32xf32>
    %1472 = vector.extract_strided_slice %1470 {offsets = [0, 32], sizes = [8, 32], strides = [1, 1]} : vector<8x64xf32> to vector<8x32xf32>
    %1473 = arith.mulf %1472, %1462 : vector<8x32xf32>
    %1474 = arith.addf %1464, %1473 : vector<8x32xf32>
    %1475 = math.tanh %1474 : vector<8x32xf32>
    %cst_427 = arith.constant 1.000000e+00 : f32
    %1476 = vector.broadcast %cst_427 : f32 to vector<8x32xf32>
    %1477 = arith.subf %1476, %1471 : vector<8x32xf32>
    %1478 = arith.mulf %1477, %1209 : vector<8x32xf32>
    %1479 = arith.mulf %1471, %1475 : vector<8x32xf32>
    %1480 = arith.addf %1478, %1479 : vector<8x32xf32>
    %1481 = arith.truncf %1313 : vector<8x32xf32> to vector<8x32xbf16>
    %c1_428 = arith.constant 1 : index
    %c0_429 = arith.constant 0 : index
    %c0_430 = arith.constant 0 : index
    %1482 = vector.load %arg4[%c1_428, %c0_429, %c0_430] : memref<3x32x96xbf16, #tpu.memory_space<vmem>>, vector<1x32x96xbf16>
    %1483 = vector.shape_cast %1482 : vector<1x32x96xbf16> to vector<32x96xbf16>
    %cst_431 = arith.constant dense<0.000000e+00> : vector<8x96xf32>
    %1484 = tpu.matmul %1481, %1483, %cst_431 {dimension_numbers = #tpu.dot_dimension_numbers<[1], [0], [0], [1], [0, 0, 1, 1], [], []>} : vector<8x32xbf16>, vector<32x96xbf16>, vector<8x96xf32> -> vector<8x96xf32>
    %1485 = vector.broadcast %14 : vector<1x96xf32> to vector<8x96xf32>
    %1486 = arith.addf %1484, %1485 : vector<8x96xf32>
    %1487 = vector.extract_strided_slice %1486 {offsets = [0, 0], sizes = [8, 64], strides = [1, 1]} : vector<8x96xf32> to vector<8x64xf32>
    %cst_432 = arith.constant dense<0.000000e+00> : vector<8xf32>
    %1488 = vector.multi_reduction <add>, %1487, %cst_432 [1] : vector<8x64xf32> to vector<8xf32>
    %1489 = vector.shape_cast %1488 : vector<8xf32> to vector<8x1xf32>
    %cst_433 = arith.constant 6.400000e+01 : f32
    %1490 = vector.broadcast %cst_433 : f32 to vector<8x1xf32>
    %1491 = arith.divf %1489, %1490 : vector<8x1xf32>
    %1492 = vector.broadcast %1491 : vector<8x1xf32> to vector<8x64xf32>
    %1493 = arith.subf %1487, %1492 : vector<8x64xf32>
    %1494 = arith.mulf %1493, %1493 : vector<8x64xf32>
    %cst_434 = arith.constant dense<0.000000e+00> : vector<8xf32>
    %1495 = vector.multi_reduction <add>, %1494, %cst_434 [1] : vector<8x64xf32> to vector<8xf32>
    %1496 = vector.shape_cast %1495 : vector<8xf32> to vector<8x1xf32>
    %cst_435 = arith.constant 6.400000e+01 : f32
    %1497 = vector.broadcast %cst_435 : f32 to vector<8x1xf32>
    %1498 = arith.divf %1496, %1497 : vector<8x1xf32>
    %1499 = vector.broadcast %1491 : vector<8x1xf32> to vector<8x64xf32>
    %1500 = arith.subf %1487, %1499 : vector<8x64xf32>
    %cst_436 = arith.constant 9.99999974E-6 : f32
    %1501 = vector.broadcast %cst_436 : f32 to vector<8x1xf32>
    %1502 = arith.addf %1498, %1501 : vector<8x1xf32>
    %1503 = math.rsqrt %1502 : vector<8x1xf32>
    %1504 = vector.broadcast %1503 : vector<8x1xf32> to vector<8x64xf32>
    %1505 = arith.mulf %1500, %1504 : vector<8x64xf32>
    %1506 = vector.extract_strided_slice %1486 {offsets = [0, 64], sizes = [8, 32], strides = [1, 1]} : vector<8x96xf32> to vector<8x32xf32>
    %cst_437 = arith.constant dense<0.000000e+00> : vector<8xf32>
    %1507 = vector.multi_reduction <add>, %1506, %cst_437 [1] : vector<8x32xf32> to vector<8xf32>
    %1508 = vector.shape_cast %1507 : vector<8xf32> to vector<8x1xf32>
    %cst_438 = arith.constant 3.200000e+01 : f32
    %1509 = vector.broadcast %cst_438 : f32 to vector<8x1xf32>
    %1510 = arith.divf %1508, %1509 : vector<8x1xf32>
    %1511 = vector.broadcast %1510 : vector<8x1xf32> to vector<8x32xf32>
    %1512 = arith.subf %1506, %1511 : vector<8x32xf32>
    %1513 = arith.mulf %1512, %1512 : vector<8x32xf32>
    %cst_439 = arith.constant dense<0.000000e+00> : vector<8xf32>
    %1514 = vector.multi_reduction <add>, %1513, %cst_439 [1] : vector<8x32xf32> to vector<8xf32>
    %1515 = vector.shape_cast %1514 : vector<8xf32> to vector<8x1xf32>
    %cst_440 = arith.constant 3.200000e+01 : f32
    %1516 = vector.broadcast %cst_440 : f32 to vector<8x1xf32>
    %1517 = arith.divf %1515, %1516 : vector<8x1xf32>
    %1518 = vector.broadcast %1510 : vector<8x1xf32> to vector<8x32xf32>
    %1519 = arith.subf %1506, %1518 : vector<8x32xf32>
    %cst_441 = arith.constant 9.99999974E-6 : f32
    %1520 = vector.broadcast %cst_441 : f32 to vector<8x1xf32>
    %1521 = arith.addf %1517, %1520 : vector<8x1xf32>
    %1522 = math.rsqrt %1521 : vector<8x1xf32>
    %1523 = vector.broadcast %1522 : vector<8x1xf32> to vector<8x32xf32>
    %1524 = arith.mulf %1519, %1523 : vector<8x32xf32>
    %1525 = arith.truncf %1480 : vector<8x32xf32> to vector<8x32xbf16>
    %c1_442 = arith.constant 1 : index
    %c0_443 = arith.constant 0 : index
    %c0_444 = arith.constant 0 : index
    %1526 = vector.load %arg2[%c1_442, %c0_443, %c0_444] : memref<3x32x96xbf16, #tpu.memory_space<vmem>>, vector<1x32x96xbf16>
    %1527 = vector.shape_cast %1526 : vector<1x32x96xbf16> to vector<32x96xbf16>
    %cst_445 = arith.constant dense<0.000000e+00> : vector<8x96xf32>
    %1528 = tpu.matmul %1525, %1527, %cst_445 {dimension_numbers = #tpu.dot_dimension_numbers<[1], [0], [0], [1], [0, 0, 1, 1], [], []>} : vector<8x32xbf16>, vector<32x96xbf16>, vector<8x96xf32> -> vector<8x96xf32>
    %1529 = vector.broadcast %5 : vector<1x96xf32> to vector<8x96xf32>
    %1530 = arith.addf %1528, %1529 : vector<8x96xf32>
    %1531 = vector.extract_strided_slice %1530 {offsets = [0, 0], sizes = [8, 64], strides = [1, 1]} : vector<8x96xf32> to vector<8x64xf32>
    %cst_446 = arith.constant dense<0.000000e+00> : vector<8xf32>
    %1532 = vector.multi_reduction <add>, %1531, %cst_446 [1] : vector<8x64xf32> to vector<8xf32>
    %1533 = vector.shape_cast %1532 : vector<8xf32> to vector<8x1xf32>
    %cst_447 = arith.constant 6.400000e+01 : f32
    %1534 = vector.broadcast %cst_447 : f32 to vector<8x1xf32>
    %1535 = arith.divf %1533, %1534 : vector<8x1xf32>
    %1536 = vector.broadcast %1535 : vector<8x1xf32> to vector<8x64xf32>
    %1537 = arith.subf %1531, %1536 : vector<8x64xf32>
    %1538 = arith.mulf %1537, %1537 : vector<8x64xf32>
    %cst_448 = arith.constant dense<0.000000e+00> : vector<8xf32>
    %1539 = vector.multi_reduction <add>, %1538, %cst_448 [1] : vector<8x64xf32> to vector<8xf32>
    %1540 = vector.shape_cast %1539 : vector<8xf32> to vector<8x1xf32>
    %cst_449 = arith.constant 6.400000e+01 : f32
    %1541 = vector.broadcast %cst_449 : f32 to vector<8x1xf32>
    %1542 = arith.divf %1540, %1541 : vector<8x1xf32>
    %1543 = vector.broadcast %1535 : vector<8x1xf32> to vector<8x64xf32>
    %1544 = arith.subf %1531, %1543 : vector<8x64xf32>
    %cst_450 = arith.constant 9.99999974E-6 : f32
    %1545 = vector.broadcast %cst_450 : f32 to vector<8x1xf32>
    %1546 = arith.addf %1542, %1545 : vector<8x1xf32>
    %1547 = math.rsqrt %1546 : vector<8x1xf32>
    %1548 = vector.broadcast %1547 : vector<8x1xf32> to vector<8x64xf32>
    %1549 = arith.mulf %1544, %1548 : vector<8x64xf32>
    %1550 = vector.extract_strided_slice %1530 {offsets = [0, 64], sizes = [8, 32], strides = [1, 1]} : vector<8x96xf32> to vector<8x32xf32>
    %cst_451 = arith.constant dense<0.000000e+00> : vector<8xf32>
    %1551 = vector.multi_reduction <add>, %1550, %cst_451 [1] : vector<8x32xf32> to vector<8xf32>
    %1552 = vector.shape_cast %1551 : vector<8xf32> to vector<8x1xf32>
    %cst_452 = arith.constant 3.200000e+01 : f32
    %1553 = vector.broadcast %cst_452 : f32 to vector<8x1xf32>
    %1554 = arith.divf %1552, %1553 : vector<8x1xf32>
    %1555 = vector.broadcast %1554 : vector<8x1xf32> to vector<8x32xf32>
    %1556 = arith.subf %1550, %1555 : vector<8x32xf32>
    %1557 = arith.mulf %1556, %1556 : vector<8x32xf32>
    %cst_453 = arith.constant dense<0.000000e+00> : vector<8xf32>
    %1558 = vector.multi_reduction <add>, %1557, %cst_453 [1] : vector<8x32xf32> to vector<8xf32>
    %1559 = vector.shape_cast %1558 : vector<8xf32> to vector<8x1xf32>
    %cst_454 = arith.constant 3.200000e+01 : f32
    %1560 = vector.broadcast %cst_454 : f32 to vector<8x1xf32>
    %1561 = arith.divf %1559, %1560 : vector<8x1xf32>
    %1562 = vector.broadcast %1554 : vector<8x1xf32> to vector<8x32xf32>
    %1563 = arith.subf %1550, %1562 : vector<8x32xf32>
    %cst_455 = arith.constant 9.99999974E-6 : f32
    %1564 = vector.broadcast %cst_455 : f32 to vector<8x1xf32>
    %1565 = arith.addf %1561, %1564 : vector<8x1xf32>
    %1566 = math.rsqrt %1565 : vector<8x1xf32>
    %1567 = vector.broadcast %1566 : vector<8x1xf32> to vector<8x32xf32>
    %1568 = arith.mulf %1563, %1567 : vector<8x32xf32>
    %1569 = arith.addf %1549, %1505 : vector<8x64xf32>
    %1570 = arith.negf %1569 : vector<8x64xf32>
    %1571 = math.exp %1570 : vector<8x64xf32>
    %cst_456 = arith.constant 1.000000e+00 : f32
    %1572 = vector.broadcast %cst_456 : f32 to vector<8x64xf32>
    %1573 = arith.addf %1572, %1571 : vector<8x64xf32>
    %1574 = arith.divf %1572, %1573 : vector<8x64xf32>
    %1575 = vector.extract_strided_slice %1574 {offsets = [0, 0], sizes = [8, 32], strides = [1, 1]} : vector<8x64xf32> to vector<8x32xf32>
    %1576 = vector.extract_strided_slice %1574 {offsets = [0, 32], sizes = [8, 32], strides = [1, 1]} : vector<8x64xf32> to vector<8x32xf32>
    %1577 = arith.mulf %1576, %1524 : vector<8x32xf32>
    %1578 = arith.addf %1568, %1577 : vector<8x32xf32>
    %1579 = math.tanh %1578 : vector<8x32xf32>
    %cst_457 = arith.constant 1.000000e+00 : f32
    %1580 = vector.broadcast %cst_457 : f32 to vector<8x32xf32>
    %1581 = arith.subf %1580, %1575 : vector<8x32xf32>
    %1582 = arith.mulf %1581, %1313 : vector<8x32xf32>
    %1583 = arith.mulf %1575, %1579 : vector<8x32xf32>
    %1584 = arith.addf %1582, %1583 : vector<8x32xf32>
    %1585 = arith.truncf %1417 : vector<8x32xf32> to vector<8x32xbf16>
    %c2_458 = arith.constant 2 : index
    %c0_459 = arith.constant 0 : index
    %c0_460 = arith.constant 0 : index
    %1586 = vector.load %arg4[%c2_458, %c0_459, %c0_460] : memref<3x32x96xbf16, #tpu.memory_space<vmem>>, vector<1x32x96xbf16>
    %1587 = vector.shape_cast %1586 : vector<1x32x96xbf16> to vector<32x96xbf16>
    %cst_461 = arith.constant dense<0.000000e+00> : vector<8x96xf32>
    %1588 = tpu.matmul %1585, %1587, %cst_461 {dimension_numbers = #tpu.dot_dimension_numbers<[1], [0], [0], [1], [0, 0, 1, 1], [], []>} : vector<8x32xbf16>, vector<32x96xbf16>, vector<8x96xf32> -> vector<8x96xf32>
    %1589 = vector.broadcast %17 : vector<1x96xf32> to vector<8x96xf32>
    %1590 = arith.addf %1588, %1589 : vector<8x96xf32>
    %1591 = vector.extract_strided_slice %1590 {offsets = [0, 0], sizes = [8, 64], strides = [1, 1]} : vector<8x96xf32> to vector<8x64xf32>
    %cst_462 = arith.constant dense<0.000000e+00> : vector<8xf32>
    %1592 = vector.multi_reduction <add>, %1591, %cst_462 [1] : vector<8x64xf32> to vector<8xf32>
    %1593 = vector.shape_cast %1592 : vector<8xf32> to vector<8x1xf32>
    %cst_463 = arith.constant 6.400000e+01 : f32
    %1594 = vector.broadcast %cst_463 : f32 to vector<8x1xf32>
    %1595 = arith.divf %1593, %1594 : vector<8x1xf32>
    %1596 = vector.broadcast %1595 : vector<8x1xf32> to vector<8x64xf32>
    %1597 = arith.subf %1591, %1596 : vector<8x64xf32>
    %1598 = arith.mulf %1597, %1597 : vector<8x64xf32>
    %cst_464 = arith.constant dense<0.000000e+00> : vector<8xf32>
    %1599 = vector.multi_reduction <add>, %1598, %cst_464 [1] : vector<8x64xf32> to vector<8xf32>
    %1600 = vector.shape_cast %1599 : vector<8xf32> to vector<8x1xf32>
    %cst_465 = arith.constant 6.400000e+01 : f32
    %1601 = vector.broadcast %cst_465 : f32 to vector<8x1xf32>
    %1602 = arith.divf %1600, %1601 : vector<8x1xf32>
    %1603 = vector.broadcast %1595 : vector<8x1xf32> to vector<8x64xf32>
    %1604 = arith.subf %1591, %1603 : vector<8x64xf32>
    %cst_466 = arith.constant 9.99999974E-6 : f32
    %1605 = vector.broadcast %cst_466 : f32 to vector<8x1xf32>
    %1606 = arith.addf %1602, %1605 : vector<8x1xf32>
    %1607 = math.rsqrt %1606 : vector<8x1xf32>
    %1608 = vector.broadcast %1607 : vector<8x1xf32> to vector<8x64xf32>
    %1609 = arith.mulf %1604, %1608 : vector<8x64xf32>
    %1610 = vector.extract_strided_slice %1590 {offsets = [0, 64], sizes = [8, 32], strides = [1, 1]} : vector<8x96xf32> to vector<8x32xf32>
    %cst_467 = arith.constant dense<0.000000e+00> : vector<8xf32>
    %1611 = vector.multi_reduction <add>, %1610, %cst_467 [1] : vector<8x32xf32> to vector<8xf32>
    %1612 = vector.shape_cast %1611 : vector<8xf32> to vector<8x1xf32>
    %cst_468 = arith.constant 3.200000e+01 : f32
    %1613 = vector.broadcast %cst_468 : f32 to vector<8x1xf32>
    %1614 = arith.divf %1612, %1613 : vector<8x1xf32>
    %1615 = vector.broadcast %1614 : vector<8x1xf32> to vector<8x32xf32>
    %1616 = arith.subf %1610, %1615 : vector<8x32xf32>
    %1617 = arith.mulf %1616, %1616 : vector<8x32xf32>
    %cst_469 = arith.constant dense<0.000000e+00> : vector<8xf32>
    %1618 = vector.multi_reduction <add>, %1617, %cst_469 [1] : vector<8x32xf32> to vector<8xf32>
    %1619 = vector.shape_cast %1618 : vector<8xf32> to vector<8x1xf32>
    %cst_470 = arith.constant 3.200000e+01 : f32
    %1620 = vector.broadcast %cst_470 : f32 to vector<8x1xf32>
    %1621 = arith.divf %1619, %1620 : vector<8x1xf32>
    %1622 = vector.broadcast %1614 : vector<8x1xf32> to vector<8x32xf32>
    %1623 = arith.subf %1610, %1622 : vector<8x32xf32>
    %cst_471 = arith.constant 9.99999974E-6 : f32
    %1624 = vector.broadcast %cst_471 : f32 to vector<8x1xf32>
    %1625 = arith.addf %1621, %1624 : vector<8x1xf32>
    %1626 = math.rsqrt %1625 : vector<8x1xf32>
    %1627 = vector.broadcast %1626 : vector<8x1xf32> to vector<8x32xf32>
    %1628 = arith.mulf %1623, %1627 : vector<8x32xf32>
    %1629 = arith.truncf %1584 : vector<8x32xf32> to vector<8x32xbf16>
    %c2_472 = arith.constant 2 : index
    %c0_473 = arith.constant 0 : index
    %c0_474 = arith.constant 0 : index
    %1630 = vector.load %arg2[%c2_472, %c0_473, %c0_474] : memref<3x32x96xbf16, #tpu.memory_space<vmem>>, vector<1x32x96xbf16>
    %1631 = vector.shape_cast %1630 : vector<1x32x96xbf16> to vector<32x96xbf16>
    %cst_475 = arith.constant dense<0.000000e+00> : vector<8x96xf32>
    %1632 = tpu.matmul %1629, %1631, %cst_475 {dimension_numbers = #tpu.dot_dimension_numbers<[1], [0], [0], [1], [0, 0, 1, 1], [], []>} : vector<8x32xbf16>, vector<32x96xbf16>, vector<8x96xf32> -> vector<8x96xf32>
    %1633 = vector.broadcast %8 : vector<1x96xf32> to vector<8x96xf32>
    %1634 = arith.addf %1632, %1633 : vector<8x96xf32>
    %1635 = vector.extract_strided_slice %1634 {offsets = [0, 0], sizes = [8, 64], strides = [1, 1]} : vector<8x96xf32> to vector<8x64xf32>
    %cst_476 = arith.constant dense<0.000000e+00> : vector<8xf32>
    %1636 = vector.multi_reduction <add>, %1635, %cst_476 [1] : vector<8x64xf32> to vector<8xf32>
    %1637 = vector.shape_cast %1636 : vector<8xf32> to vector<8x1xf32>
    %cst_477 = arith.constant 6.400000e+01 : f32
    %1638 = vector.broadcast %cst_477 : f32 to vector<8x1xf32>
    %1639 = arith.divf %1637, %1638 : vector<8x1xf32>
    %1640 = vector.broadcast %1639 : vector<8x1xf32> to vector<8x64xf32>
    %1641 = arith.subf %1635, %1640 : vector<8x64xf32>
    %1642 = arith.mulf %1641, %1641 : vector<8x64xf32>
    %cst_478 = arith.constant dense<0.000000e+00> : vector<8xf32>
    %1643 = vector.multi_reduction <add>, %1642, %cst_478 [1] : vector<8x64xf32> to vector<8xf32>
    %1644 = vector.shape_cast %1643 : vector<8xf32> to vector<8x1xf32>
    %cst_479 = arith.constant 6.400000e+01 : f32
    %1645 = vector.broadcast %cst_479 : f32 to vector<8x1xf32>
    %1646 = arith.divf %1644, %1645 : vector<8x1xf32>
    %1647 = vector.broadcast %1639 : vector<8x1xf32> to vector<8x64xf32>
    %1648 = arith.subf %1635, %1647 : vector<8x64xf32>
    %cst_480 = arith.constant 9.99999974E-6 : f32
    %1649 = vector.broadcast %cst_480 : f32 to vector<8x1xf32>
    %1650 = arith.addf %1646, %1649 : vector<8x1xf32>
    %1651 = math.rsqrt %1650 : vector<8x1xf32>
    %1652 = vector.broadcast %1651 : vector<8x1xf32> to vector<8x64xf32>
    %1653 = arith.mulf %1648, %1652 : vector<8x64xf32>
    %1654 = vector.extract_strided_slice %1634 {offsets = [0, 64], sizes = [8, 32], strides = [1, 1]} : vector<8x96xf32> to vector<8x32xf32>
    %cst_481 = arith.constant dense<0.000000e+00> : vector<8xf32>
    %1655 = vector.multi_reduction <add>, %1654, %cst_481 [1] : vector<8x32xf32> to vector<8xf32>
    %1656 = vector.shape_cast %1655 : vector<8xf32> to vector<8x1xf32>
    %cst_482 = arith.constant 3.200000e+01 : f32
    %1657 = vector.broadcast %cst_482 : f32 to vector<8x1xf32>
    %1658 = arith.divf %1656, %1657 : vector<8x1xf32>
    %1659 = vector.broadcast %1658 : vector<8x1xf32> to vector<8x32xf32>
    %1660 = arith.subf %1654, %1659 : vector<8x32xf32>
    %1661 = arith.mulf %1660, %1660 : vector<8x32xf32>
    %cst_483 = arith.constant dense<0.000000e+00> : vector<8xf32>
    %1662 = vector.multi_reduction <add>, %1661, %cst_483 [1] : vector<8x32xf32> to vector<8xf32>
    %1663 = vector.shape_cast %1662 : vector<8xf32> to vector<8x1xf32>
    %cst_484 = arith.constant 3.200000e+01 : f32
    %1664 = vector.broadcast %cst_484 : f32 to vector<8x1xf32>
    %1665 = arith.divf %1663, %1664 : vector<8x1xf32>
    %1666 = vector.broadcast %1658 : vector<8x1xf32> to vector<8x32xf32>
    %1667 = arith.subf %1654, %1666 : vector<8x32xf32>
    %cst_485 = arith.constant 9.99999974E-6 : f32
    %1668 = vector.broadcast %cst_485 : f32 to vector<8x1xf32>
    %1669 = arith.addf %1665, %1668 : vector<8x1xf32>
    %1670 = math.rsqrt %1669 : vector<8x1xf32>
    %1671 = vector.broadcast %1670 : vector<8x1xf32> to vector<8x32xf32>
    %1672 = arith.mulf %1667, %1671 : vector<8x32xf32>
    %1673 = arith.addf %1653, %1609 : vector<8x64xf32>
    %1674 = arith.negf %1673 : vector<8x64xf32>
    %1675 = math.exp %1674 : vector<8x64xf32>
    %cst_486 = arith.constant 1.000000e+00 : f32
    %1676 = vector.broadcast %cst_486 : f32 to vector<8x64xf32>
    %1677 = arith.addf %1676, %1675 : vector<8x64xf32>
    %1678 = arith.divf %1676, %1677 : vector<8x64xf32>
    %1679 = vector.extract_strided_slice %1678 {offsets = [0, 0], sizes = [8, 32], strides = [1, 1]} : vector<8x64xf32> to vector<8x32xf32>
    %1680 = vector.extract_strided_slice %1678 {offsets = [0, 32], sizes = [8, 32], strides = [1, 1]} : vector<8x64xf32> to vector<8x32xf32>
    %1681 = arith.mulf %1680, %1628 : vector<8x32xf32>
    %1682 = arith.addf %1672, %1681 : vector<8x32xf32>
    %1683 = math.tanh %1682 : vector<8x32xf32>
    %cst_487 = arith.constant 1.000000e+00 : f32
    %1684 = vector.broadcast %cst_487 : f32 to vector<8x32xf32>
    %1685 = arith.subf %1684, %1679 : vector<8x32xf32>
    %1686 = arith.mulf %1685, %1417 : vector<8x32xf32>
    %1687 = arith.mulf %1679, %1683 : vector<8x32xf32>
    %1688 = arith.addf %1686, %1687 : vector<8x32xf32>
    %c40 = arith.constant 40 : index
    %c0_488 = arith.constant 0 : index
    %1689 = vector.load %arg9[%c40, %c0_488] : memref<64x32xf32, #tpu.memory_space<vmem>>, vector<8x32xf32>
    tpu.vector_store %arg9[%c40, %c0_488], %1688 {strides = array<i32>} : memref<64x32xf32, #tpu.memory_space<vmem>>, vector<8x32xf32>,
    %1690 = arith.truncf %1480 : vector<8x32xf32> to vector<8x32xbf16>
    %c0_489 = arith.constant 0 : index
    %c0_490 = arith.constant 0 : index
    %c0_491 = arith.constant 0 : index
    %1691 = vector.load %arg4[%c0_489, %c0_490, %c0_491] : memref<3x32x96xbf16, #tpu.memory_space<vmem>>, vector<1x32x96xbf16>
    %1692 = vector.shape_cast %1691 : vector<1x32x96xbf16> to vector<32x96xbf16>
    %cst_492 = arith.constant dense<0.000000e+00> : vector<8x96xf32>
    %1693 = tpu.matmul %1690, %1692, %cst_492 {dimension_numbers = #tpu.dot_dimension_numbers<[1], [0], [0], [1], [0, 0, 1, 1], [], []>} : vector<8x32xbf16>, vector<32x96xbf16>, vector<8x96xf32> -> vector<8x96xf32>
    %1694 = vector.broadcast %11 : vector<1x96xf32> to vector<8x96xf32>
    %1695 = arith.addf %1693, %1694 : vector<8x96xf32>
    %1696 = vector.extract_strided_slice %1695 {offsets = [0, 0], sizes = [8, 64], strides = [1, 1]} : vector<8x96xf32> to vector<8x64xf32>
    %cst_493 = arith.constant dense<0.000000e+00> : vector<8xf32>
    %1697 = vector.multi_reduction <add>, %1696, %cst_493 [1] : vector<8x64xf32> to vector<8xf32>
    %1698 = vector.shape_cast %1697 : vector<8xf32> to vector<8x1xf32>
    %cst_494 = arith.constant 6.400000e+01 : f32
    %1699 = vector.broadcast %cst_494 : f32 to vector<8x1xf32>
    %1700 = arith.divf %1698, %1699 : vector<8x1xf32>
    %1701 = vector.broadcast %1700 : vector<8x1xf32> to vector<8x64xf32>
    %1702 = arith.subf %1696, %1701 : vector<8x64xf32>
    %1703 = arith.mulf %1702, %1702 : vector<8x64xf32>
    %cst_495 = arith.constant dense<0.000000e+00> : vector<8xf32>
    %1704 = vector.multi_reduction <add>, %1703, %cst_495 [1] : vector<8x64xf32> to vector<8xf32>
    %1705 = vector.shape_cast %1704 : vector<8xf32> to vector<8x1xf32>
    %cst_496 = arith.constant 6.400000e+01 : f32
    %1706 = vector.broadcast %cst_496 : f32 to vector<8x1xf32>
    %1707 = arith.divf %1705, %1706 : vector<8x1xf32>
    %1708 = vector.broadcast %1700 : vector<8x1xf32> to vector<8x64xf32>
    %1709 = arith.subf %1696, %1708 : vector<8x64xf32>
    %cst_497 = arith.constant 9.99999974E-6 : f32
    %1710 = vector.broadcast %cst_497 : f32 to vector<8x1xf32>
    %1711 = arith.addf %1707, %1710 : vector<8x1xf32>
    %1712 = math.rsqrt %1711 : vector<8x1xf32>
    %1713 = vector.broadcast %1712 : vector<8x1xf32> to vector<8x64xf32>
    %1714 = arith.mulf %1709, %1713 : vector<8x64xf32>
    %1715 = vector.extract_strided_slice %1695 {offsets = [0, 64], sizes = [8, 32], strides = [1, 1]} : vector<8x96xf32> to vector<8x32xf32>
    %cst_498 = arith.constant dense<0.000000e+00> : vector<8xf32>
    %1716 = vector.multi_reduction <add>, %1715, %cst_498 [1] : vector<8x32xf32> to vector<8xf32>
    %1717 = vector.shape_cast %1716 : vector<8xf32> to vector<8x1xf32>
    %cst_499 = arith.constant 3.200000e+01 : f32
    %1718 = vector.broadcast %cst_499 : f32 to vector<8x1xf32>
    %1719 = arith.divf %1717, %1718 : vector<8x1xf32>
    %1720 = vector.broadcast %1719 : vector<8x1xf32> to vector<8x32xf32>
    %1721 = arith.subf %1715, %1720 : vector<8x32xf32>
    %1722 = arith.mulf %1721, %1721 : vector<8x32xf32>
    %cst_500 = arith.constant dense<0.000000e+00> : vector<8xf32>
    %1723 = vector.multi_reduction <add>, %1722, %cst_500 [1] : vector<8x32xf32> to vector<8xf32>
    %1724 = vector.shape_cast %1723 : vector<8xf32> to vector<8x1xf32>
    %cst_501 = arith.constant 3.200000e+01 : f32
    %1725 = vector.broadcast %cst_501 : f32 to vector<8x1xf32>
    %1726 = arith.divf %1724, %1725 : vector<8x1xf32>
    %1727 = vector.broadcast %1719 : vector<8x1xf32> to vector<8x32xf32>
    %1728 = arith.subf %1715, %1727 : vector<8x32xf32>
    %cst_502 = arith.constant 9.99999974E-6 : f32
    %1729 = vector.broadcast %cst_502 : f32 to vector<8x1xf32>
    %1730 = arith.addf %1726, %1729 : vector<8x1xf32>
    %1731 = math.rsqrt %1730 : vector<8x1xf32>
    %1732 = vector.broadcast %1731 : vector<8x1xf32> to vector<8x32xf32>
    %1733 = arith.mulf %1728, %1732 : vector<8x32xf32>
    %1734 = vector.extract_strided_slice %43 {offsets = [48, 0], sizes = [8, 64], strides = [1, 1]} : vector<64x64xf32> to vector<8x64xf32>
    %1735 = vector.extract_strided_slice %62 {offsets = [48, 0], sizes = [8, 32], strides = [1, 1]} : vector<64x32xf32> to vector<8x32xf32>
    %1736 = arith.addf %1734, %1714 : vector<8x64xf32>
    %1737 = arith.negf %1736 : vector<8x64xf32>
    %1738 = math.exp %1737 : vector<8x64xf32>
    %cst_503 = arith.constant 1.000000e+00 : f32
    %1739 = vector.broadcast %cst_503 : f32 to vector<8x64xf32>
    %1740 = arith.addf %1739, %1738 : vector<8x64xf32>
    %1741 = arith.divf %1739, %1740 : vector<8x64xf32>
    %1742 = vector.extract_strided_slice %1741 {offsets = [0, 0], sizes = [8, 32], strides = [1, 1]} : vector<8x64xf32> to vector<8x32xf32>
    %1743 = vector.extract_strided_slice %1741 {offsets = [0, 32], sizes = [8, 32], strides = [1, 1]} : vector<8x64xf32> to vector<8x32xf32>
    %1744 = arith.mulf %1743, %1733 : vector<8x32xf32>
    %1745 = arith.addf %1735, %1744 : vector<8x32xf32>
    %1746 = math.tanh %1745 : vector<8x32xf32>
    %cst_504 = arith.constant 1.000000e+00 : f32
    %1747 = vector.broadcast %cst_504 : f32 to vector<8x32xf32>
    %1748 = arith.subf %1747, %1742 : vector<8x32xf32>
    %1749 = arith.mulf %1748, %1480 : vector<8x32xf32>
    %1750 = arith.mulf %1742, %1746 : vector<8x32xf32>
    %1751 = arith.addf %1749, %1750 : vector<8x32xf32>
    %1752 = arith.truncf %1584 : vector<8x32xf32> to vector<8x32xbf16>
    %c1_505 = arith.constant 1 : index
    %c0_506 = arith.constant 0 : index
    %c0_507 = arith.constant 0 : index
    %1753 = vector.load %arg4[%c1_505, %c0_506, %c0_507] : memref<3x32x96xbf16, #tpu.memory_space<vmem>>, vector<1x32x96xbf16>
    %1754 = vector.shape_cast %1753 : vector<1x32x96xbf16> to vector<32x96xbf16>
    %cst_508 = arith.constant dense<0.000000e+00> : vector<8x96xf32>
    %1755 = tpu.matmul %1752, %1754, %cst_508 {dimension_numbers = #tpu.dot_dimension_numbers<[1], [0], [0], [1], [0, 0, 1, 1], [], []>} : vector<8x32xbf16>, vector<32x96xbf16>, vector<8x96xf32> -> vector<8x96xf32>
    %1756 = vector.broadcast %14 : vector<1x96xf32> to vector<8x96xf32>
    %1757 = arith.addf %1755, %1756 : vector<8x96xf32>
    %1758 = vector.extract_strided_slice %1757 {offsets = [0, 0], sizes = [8, 64], strides = [1, 1]} : vector<8x96xf32> to vector<8x64xf32>
    %cst_509 = arith.constant dense<0.000000e+00> : vector<8xf32>
    %1759 = vector.multi_reduction <add>, %1758, %cst_509 [1] : vector<8x64xf32> to vector<8xf32>
    %1760 = vector.shape_cast %1759 : vector<8xf32> to vector<8x1xf32>
    %cst_510 = arith.constant 6.400000e+01 : f32
    %1761 = vector.broadcast %cst_510 : f32 to vector<8x1xf32>
    %1762 = arith.divf %1760, %1761 : vector<8x1xf32>
    %1763 = vector.broadcast %1762 : vector<8x1xf32> to vector<8x64xf32>
    %1764 = arith.subf %1758, %1763 : vector<8x64xf32>
    %1765 = arith.mulf %1764, %1764 : vector<8x64xf32>
    %cst_511 = arith.constant dense<0.000000e+00> : vector<8xf32>
    %1766 = vector.multi_reduction <add>, %1765, %cst_511 [1] : vector<8x64xf32> to vector<8xf32>
    %1767 = vector.shape_cast %1766 : vector<8xf32> to vector<8x1xf32>
    %cst_512 = arith.constant 6.400000e+01 : f32
    %1768 = vector.broadcast %cst_512 : f32 to vector<8x1xf32>
    %1769 = arith.divf %1767, %1768 : vector<8x1xf32>
    %1770 = vector.broadcast %1762 : vector<8x1xf32> to vector<8x64xf32>
    %1771 = arith.subf %1758, %1770 : vector<8x64xf32>
    %cst_513 = arith.constant 9.99999974E-6 : f32
    %1772 = vector.broadcast %cst_513 : f32 to vector<8x1xf32>
    %1773 = arith.addf %1769, %1772 : vector<8x1xf32>
    %1774 = math.rsqrt %1773 : vector<8x1xf32>
    %1775 = vector.broadcast %1774 : vector<8x1xf32> to vector<8x64xf32>
    %1776 = arith.mulf %1771, %1775 : vector<8x64xf32>
    %1777 = vector.extract_strided_slice %1757 {offsets = [0, 64], sizes = [8, 32], strides = [1, 1]} : vector<8x96xf32> to vector<8x32xf32>
    %cst_514 = arith.constant dense<0.000000e+00> : vector<8xf32>
    %1778 = vector.multi_reduction <add>, %1777, %cst_514 [1] : vector<8x32xf32> to vector<8xf32>
    %1779 = vector.shape_cast %1778 : vector<8xf32> to vector<8x1xf32>
    %cst_515 = arith.constant 3.200000e+01 : f32
    %1780 = vector.broadcast %cst_515 : f32 to vector<8x1xf32>
    %1781 = arith.divf %1779, %1780 : vector<8x1xf32>
    %1782 = vector.broadcast %1781 : vector<8x1xf32> to vector<8x32xf32>
    %1783 = arith.subf %1777, %1782 : vector<8x32xf32>
    %1784 = arith.mulf %1783, %1783 : vector<8x32xf32>
    %cst_516 = arith.constant dense<0.000000e+00> : vector<8xf32>
    %1785 = vector.multi_reduction <add>, %1784, %cst_516 [1] : vector<8x32xf32> to vector<8xf32>
    %1786 = vector.shape_cast %1785 : vector<8xf32> to vector<8x1xf32>
    %cst_517 = arith.constant 3.200000e+01 : f32
    %1787 = vector.broadcast %cst_517 : f32 to vector<8x1xf32>
    %1788 = arith.divf %1786, %1787 : vector<8x1xf32>
    %1789 = vector.broadcast %1781 : vector<8x1xf32> to vector<8x32xf32>
    %1790 = arith.subf %1777, %1789 : vector<8x32xf32>
    %cst_518 = arith.constant 9.99999974E-6 : f32
    %1791 = vector.broadcast %cst_518 : f32 to vector<8x1xf32>
    %1792 = arith.addf %1788, %1791 : vector<8x1xf32>
    %1793 = math.rsqrt %1792 : vector<8x1xf32>
    %1794 = vector.broadcast %1793 : vector<8x1xf32> to vector<8x32xf32>
    %1795 = arith.mulf %1790, %1794 : vector<8x32xf32>
    %1796 = arith.truncf %1751 : vector<8x32xf32> to vector<8x32xbf16>
    %c1_519 = arith.constant 1 : index
    %c0_520 = arith.constant 0 : index
    %c0_521 = arith.constant 0 : index
    %1797 = vector.load %arg2[%c1_519, %c0_520, %c0_521] : memref<3x32x96xbf16, #tpu.memory_space<vmem>>, vector<1x32x96xbf16>
    %1798 = vector.shape_cast %1797 : vector<1x32x96xbf16> to vector<32x96xbf16>
    %cst_522 = arith.constant dense<0.000000e+00> : vector<8x96xf32>
    %1799 = tpu.matmul %1796, %1798, %cst_522 {dimension_numbers = #tpu.dot_dimension_numbers<[1], [0], [0], [1], [0, 0, 1, 1], [], []>} : vector<8x32xbf16>, vector<32x96xbf16>, vector<8x96xf32> -> vector<8x96xf32>
    %1800 = vector.broadcast %5 : vector<1x96xf32> to vector<8x96xf32>
    %1801 = arith.addf %1799, %1800 : vector<8x96xf32>
    %1802 = vector.extract_strided_slice %1801 {offsets = [0, 0], sizes = [8, 64], strides = [1, 1]} : vector<8x96xf32> to vector<8x64xf32>
    %cst_523 = arith.constant dense<0.000000e+00> : vector<8xf32>
    %1803 = vector.multi_reduction <add>, %1802, %cst_523 [1] : vector<8x64xf32> to vector<8xf32>
    %1804 = vector.shape_cast %1803 : vector<8xf32> to vector<8x1xf32>
    %cst_524 = arith.constant 6.400000e+01 : f32
    %1805 = vector.broadcast %cst_524 : f32 to vector<8x1xf32>
    %1806 = arith.divf %1804, %1805 : vector<8x1xf32>
    %1807 = vector.broadcast %1806 : vector<8x1xf32> to vector<8x64xf32>
    %1808 = arith.subf %1802, %1807 : vector<8x64xf32>
    %1809 = arith.mulf %1808, %1808 : vector<8x64xf32>
    %cst_525 = arith.constant dense<0.000000e+00> : vector<8xf32>
    %1810 = vector.multi_reduction <add>, %1809, %cst_525 [1] : vector<8x64xf32> to vector<8xf32>
    %1811 = vector.shape_cast %1810 : vector<8xf32> to vector<8x1xf32>
    %cst_526 = arith.constant 6.400000e+01 : f32
    %1812 = vector.broadcast %cst_526 : f32 to vector<8x1xf32>
    %1813 = arith.divf %1811, %1812 : vector<8x1xf32>
    %1814 = vector.broadcast %1806 : vector<8x1xf32> to vector<8x64xf32>
    %1815 = arith.subf %1802, %1814 : vector<8x64xf32>
    %cst_527 = arith.constant 9.99999974E-6 : f32
    %1816 = vector.broadcast %cst_527 : f32 to vector<8x1xf32>
    %1817 = arith.addf %1813, %1816 : vector<8x1xf32>
    %1818 = math.rsqrt %1817 : vector<8x1xf32>
    %1819 = vector.broadcast %1818 : vector<8x1xf32> to vector<8x64xf32>
    %1820 = arith.mulf %1815, %1819 : vector<8x64xf32>
    %1821 = vector.extract_strided_slice %1801 {offsets = [0, 64], sizes = [8, 32], strides = [1, 1]} : vector<8x96xf32> to vector<8x32xf32>
    %cst_528 = arith.constant dense<0.000000e+00> : vector<8xf32>
    %1822 = vector.multi_reduction <add>, %1821, %cst_528 [1] : vector<8x32xf32> to vector<8xf32>
    %1823 = vector.shape_cast %1822 : vector<8xf32> to vector<8x1xf32>
    %cst_529 = arith.constant 3.200000e+01 : f32
    %1824 = vector.broadcast %cst_529 : f32 to vector<8x1xf32>
    %1825 = arith.divf %1823, %1824 : vector<8x1xf32>
    %1826 = vector.broadcast %1825 : vector<8x1xf32> to vector<8x32xf32>
    %1827 = arith.subf %1821, %1826 : vector<8x32xf32>
    %1828 = arith.mulf %1827, %1827 : vector<8x32xf32>
    %cst_530 = arith.constant dense<0.000000e+00> : vector<8xf32>
    %1829 = vector.multi_reduction <add>, %1828, %cst_530 [1] : vector<8x32xf32> to vector<8xf32>
    %1830 = vector.shape_cast %1829 : vector<8xf32> to vector<8x1xf32>
    %cst_531 = arith.constant 3.200000e+01 : f32
    %1831 = vector.broadcast %cst_531 : f32 to vector<8x1xf32>
    %1832 = arith.divf %1830, %1831 : vector<8x1xf32>
    %1833 = vector.broadcast %1825 : vector<8x1xf32> to vector<8x32xf32>
    %1834 = arith.subf %1821, %1833 : vector<8x32xf32>
    %cst_532 = arith.constant 9.99999974E-6 : f32
    %1835 = vector.broadcast %cst_532 : f32 to vector<8x1xf32>
    %1836 = arith.addf %1832, %1835 : vector<8x1xf32>
    %1837 = math.rsqrt %1836 : vector<8x1xf32>
    %1838 = vector.broadcast %1837 : vector<8x1xf32> to vector<8x32xf32>
    %1839 = arith.mulf %1834, %1838 : vector<8x32xf32>
    %1840 = arith.addf %1820, %1776 : vector<8x64xf32>
    %1841 = arith.negf %1840 : vector<8x64xf32>
    %1842 = math.exp %1841 : vector<8x64xf32>
    %cst_533 = arith.constant 1.000000e+00 : f32
    %1843 = vector.broadcast %cst_533 : f32 to vector<8x64xf32>
    %1844 = arith.addf %1843, %1842 : vector<8x64xf32>
    %1845 = arith.divf %1843, %1844 : vector<8x64xf32>
    %1846 = vector.extract_strided_slice %1845 {offsets = [0, 0], sizes = [8, 32], strides = [1, 1]} : vector<8x64xf32> to vector<8x32xf32>
    %1847 = vector.extract_strided_slice %1845 {offsets = [0, 32], sizes = [8, 32], strides = [1, 1]} : vector<8x64xf32> to vector<8x32xf32>
    %1848 = arith.mulf %1847, %1795 : vector<8x32xf32>
    %1849 = arith.addf %1839, %1848 : vector<8x32xf32>
    %1850 = math.tanh %1849 : vector<8x32xf32>
    %cst_534 = arith.constant 1.000000e+00 : f32
    %1851 = vector.broadcast %cst_534 : f32 to vector<8x32xf32>
    %1852 = arith.subf %1851, %1846 : vector<8x32xf32>
    %1853 = arith.mulf %1852, %1584 : vector<8x32xf32>
    %1854 = arith.mulf %1846, %1850 : vector<8x32xf32>
    %1855 = arith.addf %1853, %1854 : vector<8x32xf32>
    %1856 = arith.truncf %1688 : vector<8x32xf32> to vector<8x32xbf16>
    %c2_535 = arith.constant 2 : index
    %c0_536 = arith.constant 0 : index
    %c0_537 = arith.constant 0 : index
    %1857 = vector.load %arg4[%c2_535, %c0_536, %c0_537] : memref<3x32x96xbf16, #tpu.memory_space<vmem>>, vector<1x32x96xbf16>
    %1858 = vector.shape_cast %1857 : vector<1x32x96xbf16> to vector<32x96xbf16>
    %cst_538 = arith.constant dense<0.000000e+00> : vector<8x96xf32>
    %1859 = tpu.matmul %1856, %1858, %cst_538 {dimension_numbers = #tpu.dot_dimension_numbers<[1], [0], [0], [1], [0, 0, 1, 1], [], []>} : vector<8x32xbf16>, vector<32x96xbf16>, vector<8x96xf32> -> vector<8x96xf32>
    %1860 = vector.broadcast %17 : vector<1x96xf32> to vector<8x96xf32>
    %1861 = arith.addf %1859, %1860 : vector<8x96xf32>
    %1862 = vector.extract_strided_slice %1861 {offsets = [0, 0], sizes = [8, 64], strides = [1, 1]} : vector<8x96xf32> to vector<8x64xf32>
    %cst_539 = arith.constant dense<0.000000e+00> : vector<8xf32>
    %1863 = vector.multi_reduction <add>, %1862, %cst_539 [1] : vector<8x64xf32> to vector<8xf32>
    %1864 = vector.shape_cast %1863 : vector<8xf32> to vector<8x1xf32>
    %cst_540 = arith.constant 6.400000e+01 : f32
    %1865 = vector.broadcast %cst_540 : f32 to vector<8x1xf32>
    %1866 = arith.divf %1864, %1865 : vector<8x1xf32>
    %1867 = vector.broadcast %1866 : vector<8x1xf32> to vector<8x64xf32>
    %1868 = arith.subf %1862, %1867 : vector<8x64xf32>
    %1869 = arith.mulf %1868, %1868 : vector<8x64xf32>
    %cst_541 = arith.constant dense<0.000000e+00> : vector<8xf32>
    %1870 = vector.multi_reduction <add>, %1869, %cst_541 [1] : vector<8x64xf32> to vector<8xf32>
    %1871 = vector.shape_cast %1870 : vector<8xf32> to vector<8x1xf32>
    %cst_542 = arith.constant 6.400000e+01 : f32
    %1872 = vector.broadcast %cst_542 : f32 to vector<8x1xf32>
    %1873 = arith.divf %1871, %1872 : vector<8x1xf32>
    %1874 = vector.broadcast %1866 : vector<8x1xf32> to vector<8x64xf32>
    %1875 = arith.subf %1862, %1874 : vector<8x64xf32>
    %cst_543 = arith.constant 9.99999974E-6 : f32
    %1876 = vector.broadcast %cst_543 : f32 to vector<8x1xf32>
    %1877 = arith.addf %1873, %1876 : vector<8x1xf32>
    %1878 = math.rsqrt %1877 : vector<8x1xf32>
    %1879 = vector.broadcast %1878 : vector<8x1xf32> to vector<8x64xf32>
    %1880 = arith.mulf %1875, %1879 : vector<8x64xf32>
    %1881 = vector.extract_strided_slice %1861 {offsets = [0, 64], sizes = [8, 32], strides = [1, 1]} : vector<8x96xf32> to vector<8x32xf32>
    %cst_544 = arith.constant dense<0.000000e+00> : vector<8xf32>
    %1882 = vector.multi_reduction <add>, %1881, %cst_544 [1] : vector<8x32xf32> to vector<8xf32>
    %1883 = vector.shape_cast %1882 : vector<8xf32> to vector<8x1xf32>
    %cst_545 = arith.constant 3.200000e+01 : f32
    %1884 = vector.broadcast %cst_545 : f32 to vector<8x1xf32>
    %1885 = arith.divf %1883, %1884 : vector<8x1xf32>
    %1886 = vector.broadcast %1885 : vector<8x1xf32> to vector<8x32xf32>
    %1887 = arith.subf %1881, %1886 : vector<8x32xf32>
    %1888 = arith.mulf %1887, %1887 : vector<8x32xf32>
    %cst_546 = arith.constant dense<0.000000e+00> : vector<8xf32>
    %1889 = vector.multi_reduction <add>, %1888, %cst_546 [1] : vector<8x32xf32> to vector<8xf32>
    %1890 = vector.shape_cast %1889 : vector<8xf32> to vector<8x1xf32>
    %cst_547 = arith.constant 3.200000e+01 : f32
    %1891 = vector.broadcast %cst_547 : f32 to vector<8x1xf32>
    %1892 = arith.divf %1890, %1891 : vector<8x1xf32>
    %1893 = vector.broadcast %1885 : vector<8x1xf32> to vector<8x32xf32>
    %1894 = arith.subf %1881, %1893 : vector<8x32xf32>
    %cst_548 = arith.constant 9.99999974E-6 : f32
    %1895 = vector.broadcast %cst_548 : f32 to vector<8x1xf32>
    %1896 = arith.addf %1892, %1895 : vector<8x1xf32>
    %1897 = math.rsqrt %1896 : vector<8x1xf32>
    %1898 = vector.broadcast %1897 : vector<8x1xf32> to vector<8x32xf32>
    %1899 = arith.mulf %1894, %1898 : vector<8x32xf32>
    %1900 = arith.truncf %1855 : vector<8x32xf32> to vector<8x32xbf16>
    %c2_549 = arith.constant 2 : index
    %c0_550 = arith.constant 0 : index
    %c0_551 = arith.constant 0 : index
    %1901 = vector.load %arg2[%c2_549, %c0_550, %c0_551] : memref<3x32x96xbf16, #tpu.memory_space<vmem>>, vector<1x32x96xbf16>
    %1902 = vector.shape_cast %1901 : vector<1x32x96xbf16> to vector<32x96xbf16>
    %cst_552 = arith.constant dense<0.000000e+00> : vector<8x96xf32>
    %1903 = tpu.matmul %1900, %1902, %cst_552 {dimension_numbers = #tpu.dot_dimension_numbers<[1], [0], [0], [1], [0, 0, 1, 1], [], []>} : vector<8x32xbf16>, vector<32x96xbf16>, vector<8x96xf32> -> vector<8x96xf32>
    %1904 = vector.broadcast %8 : vector<1x96xf32> to vector<8x96xf32>
    %1905 = arith.addf %1903, %1904 : vector<8x96xf32>
    %1906 = vector.extract_strided_slice %1905 {offsets = [0, 0], sizes = [8, 64], strides = [1, 1]} : vector<8x96xf32> to vector<8x64xf32>
    %cst_553 = arith.constant dense<0.000000e+00> : vector<8xf32>
    %1907 = vector.multi_reduction <add>, %1906, %cst_553 [1] : vector<8x64xf32> to vector<8xf32>
    %1908 = vector.shape_cast %1907 : vector<8xf32> to vector<8x1xf32>
    %cst_554 = arith.constant 6.400000e+01 : f32
    %1909 = vector.broadcast %cst_554 : f32 to vector<8x1xf32>
    %1910 = arith.divf %1908, %1909 : vector<8x1xf32>
    %1911 = vector.broadcast %1910 : vector<8x1xf32> to vector<8x64xf32>
    %1912 = arith.subf %1906, %1911 : vector<8x64xf32>
    %1913 = arith.mulf %1912, %1912 : vector<8x64xf32>
    %cst_555 = arith.constant dense<0.000000e+00> : vector<8xf32>
    %1914 = vector.multi_reduction <add>, %1913, %cst_555 [1] : vector<8x64xf32> to vector<8xf32>
    %1915 = vector.shape_cast %1914 : vector<8xf32> to vector<8x1xf32>
    %cst_556 = arith.constant 6.400000e+01 : f32
    %1916 = vector.broadcast %cst_556 : f32 to vector<8x1xf32>
    %1917 = arith.divf %1915, %1916 : vector<8x1xf32>
    %1918 = vector.broadcast %1910 : vector<8x1xf32> to vector<8x64xf32>
    %1919 = arith.subf %1906, %1918 : vector<8x64xf32>
    %cst_557 = arith.constant 9.99999974E-6 : f32
    %1920 = vector.broadcast %cst_557 : f32 to vector<8x1xf32>
    %1921 = arith.addf %1917, %1920 : vector<8x1xf32>
    %1922 = math.rsqrt %1921 : vector<8x1xf32>
    %1923 = vector.broadcast %1922 : vector<8x1xf32> to vector<8x64xf32>
    %1924 = arith.mulf %1919, %1923 : vector<8x64xf32>
    %1925 = vector.extract_strided_slice %1905 {offsets = [0, 64], sizes = [8, 32], strides = [1, 1]} : vector<8x96xf32> to vector<8x32xf32>
    %cst_558 = arith.constant dense<0.000000e+00> : vector<8xf32>
    %1926 = vector.multi_reduction <add>, %1925, %cst_558 [1] : vector<8x32xf32> to vector<8xf32>
    %1927 = vector.shape_cast %1926 : vector<8xf32> to vector<8x1xf32>
    %cst_559 = arith.constant 3.200000e+01 : f32
    %1928 = vector.broadcast %cst_559 : f32 to vector<8x1xf32>
    %1929 = arith.divf %1927, %1928 : vector<8x1xf32>
    %1930 = vector.broadcast %1929 : vector<8x1xf32> to vector<8x32xf32>
    %1931 = arith.subf %1925, %1930 : vector<8x32xf32>
    %1932 = arith.mulf %1931, %1931 : vector<8x32xf32>
    %cst_560 = arith.constant dense<0.000000e+00> : vector<8xf32>
    %1933 = vector.multi_reduction <add>, %1932, %cst_560 [1] : vector<8x32xf32> to vector<8xf32>
    %1934 = vector.shape_cast %1933 : vector<8xf32> to vector<8x1xf32>
    %cst_561 = arith.constant 3.200000e+01 : f32
    %1935 = vector.broadcast %cst_561 : f32 to vector<8x1xf32>
    %1936 = arith.divf %1934, %1935 : vector<8x1xf32>
    %1937 = vector.broadcast %1929 : vector<8x1xf32> to vector<8x32xf32>
    %1938 = arith.subf %1925, %1937 : vector<8x32xf32>
    %cst_562 = arith.constant 9.99999974E-6 : f32
    %1939 = vector.broadcast %cst_562 : f32 to vector<8x1xf32>
    %1940 = arith.addf %1936, %1939 : vector<8x1xf32>
    %1941 = math.rsqrt %1940 : vector<8x1xf32>
    %1942 = vector.broadcast %1941 : vector<8x1xf32> to vector<8x32xf32>
    %1943 = arith.mulf %1938, %1942 : vector<8x32xf32>
    %1944 = arith.addf %1924, %1880 : vector<8x64xf32>
    %1945 = arith.negf %1944 : vector<8x64xf32>
    %1946 = math.exp %1945 : vector<8x64xf32>
    %cst_563 = arith.constant 1.000000e+00 : f32
    %1947 = vector.broadcast %cst_563 : f32 to vector<8x64xf32>
    %1948 = arith.addf %1947, %1946 : vector<8x64xf32>
    %1949 = arith.divf %1947, %1948 : vector<8x64xf32>
    %1950 = vector.extract_strided_slice %1949 {offsets = [0, 0], sizes = [8, 32], strides = [1, 1]} : vector<8x64xf32> to vector<8x32xf32>
    %1951 = vector.extract_strided_slice %1949 {offsets = [0, 32], sizes = [8, 32], strides = [1, 1]} : vector<8x64xf32> to vector<8x32xf32>
    %1952 = arith.mulf %1951, %1899 : vector<8x32xf32>
    %1953 = arith.addf %1943, %1952 : vector<8x32xf32>
    %1954 = math.tanh %1953 : vector<8x32xf32>
    %cst_564 = arith.constant 1.000000e+00 : f32
    %1955 = vector.broadcast %cst_564 : f32 to vector<8x32xf32>
    %1956 = arith.subf %1955, %1950 : vector<8x32xf32>
    %1957 = arith.mulf %1956, %1688 : vector<8x32xf32>
    %1958 = arith.mulf %1950, %1954 : vector<8x32xf32>
    %1959 = arith.addf %1957, %1958 : vector<8x32xf32>
    %c48 = arith.constant 48 : index
    %c0_565 = arith.constant 0 : index
    %1960 = vector.load %arg9[%c48, %c0_565] : memref<64x32xf32, #tpu.memory_space<vmem>>, vector<8x32xf32>
    tpu.vector_store %arg9[%c48, %c0_565], %1959 {strides = array<i32>} : memref<64x32xf32, #tpu.memory_space<vmem>>, vector<8x32xf32>,
    %1961 = arith.truncf %1751 : vector<8x32xf32> to vector<8x32xbf16>
    %c0_566 = arith.constant 0 : index
    %c0_567 = arith.constant 0 : index
    %c0_568 = arith.constant 0 : index
    %1962 = vector.load %arg4[%c0_566, %c0_567, %c0_568] : memref<3x32x96xbf16, #tpu.memory_space<vmem>>, vector<1x32x96xbf16>
    %1963 = vector.shape_cast %1962 : vector<1x32x96xbf16> to vector<32x96xbf16>
    %cst_569 = arith.constant dense<0.000000e+00> : vector<8x96xf32>
    %1964 = tpu.matmul %1961, %1963, %cst_569 {dimension_numbers = #tpu.dot_dimension_numbers<[1], [0], [0], [1], [0, 0, 1, 1], [], []>} : vector<8x32xbf16>, vector<32x96xbf16>, vector<8x96xf32> -> vector<8x96xf32>
    %1965 = vector.broadcast %11 : vector<1x96xf32> to vector<8x96xf32>
    %1966 = arith.addf %1964, %1965 : vector<8x96xf32>
    %1967 = vector.extract_strided_slice %1966 {offsets = [0, 0], sizes = [8, 64], strides = [1, 1]} : vector<8x96xf32> to vector<8x64xf32>
    %cst_570 = arith.constant dense<0.000000e+00> : vector<8xf32>
    %1968 = vector.multi_reduction <add>, %1967, %cst_570 [1] : vector<8x64xf32> to vector<8xf32>
    %1969 = vector.shape_cast %1968 : vector<8xf32> to vector<8x1xf32>
    %cst_571 = arith.constant 6.400000e+01 : f32
    %1970 = vector.broadcast %cst_571 : f32 to vector<8x1xf32>
    %1971 = arith.divf %1969, %1970 : vector<8x1xf32>
    %1972 = vector.broadcast %1971 : vector<8x1xf32> to vector<8x64xf32>
    %1973 = arith.subf %1967, %1972 : vector<8x64xf32>
    %1974 = arith.mulf %1973, %1973 : vector<8x64xf32>
    %cst_572 = arith.constant dense<0.000000e+00> : vector<8xf32>
    %1975 = vector.multi_reduction <add>, %1974, %cst_572 [1] : vector<8x64xf32> to vector<8xf32>
    %1976 = vector.shape_cast %1975 : vector<8xf32> to vector<8x1xf32>
    %cst_573 = arith.constant 6.400000e+01 : f32
    %1977 = vector.broadcast %cst_573 : f32 to vector<8x1xf32>
    %1978 = arith.divf %1976, %1977 : vector<8x1xf32>
    %1979 = vector.broadcast %1971 : vector<8x1xf32> to vector<8x64xf32>
    %1980 = arith.subf %1967, %1979 : vector<8x64xf32>
    %cst_574 = arith.constant 9.99999974E-6 : f32
    %1981 = vector.broadcast %cst_574 : f32 to vector<8x1xf32>
    %1982 = arith.addf %1978, %1981 : vector<8x1xf32>
    %1983 = math.rsqrt %1982 : vector<8x1xf32>
    %1984 = vector.broadcast %1983 : vector<8x1xf32> to vector<8x64xf32>
    %1985 = arith.mulf %1980, %1984 : vector<8x64xf32>
    %1986 = vector.extract_strided_slice %1966 {offsets = [0, 64], sizes = [8, 32], strides = [1, 1]} : vector<8x96xf32> to vector<8x32xf32>
    %cst_575 = arith.constant dense<0.000000e+00> : vector<8xf32>
    %1987 = vector.multi_reduction <add>, %1986, %cst_575 [1] : vector<8x32xf32> to vector<8xf32>
    %1988 = vector.shape_cast %1987 : vector<8xf32> to vector<8x1xf32>
    %cst_576 = arith.constant 3.200000e+01 : f32
    %1989 = vector.broadcast %cst_576 : f32 to vector<8x1xf32>
    %1990 = arith.divf %1988, %1989 : vector<8x1xf32>
    %1991 = vector.broadcast %1990 : vector<8x1xf32> to vector<8x32xf32>
    %1992 = arith.subf %1986, %1991 : vector<8x32xf32>
    %1993 = arith.mulf %1992, %1992 : vector<8x32xf32>
    %cst_577 = arith.constant dense<0.000000e+00> : vector<8xf32>
    %1994 = vector.multi_reduction <add>, %1993, %cst_577 [1] : vector<8x32xf32> to vector<8xf32>
    %1995 = vector.shape_cast %1994 : vector<8xf32> to vector<8x1xf32>
    %cst_578 = arith.constant 3.200000e+01 : f32
    %1996 = vector.broadcast %cst_578 : f32 to vector<8x1xf32>
    %1997 = arith.divf %1995, %1996 : vector<8x1xf32>
    %1998 = vector.broadcast %1990 : vector<8x1xf32> to vector<8x32xf32>
    %1999 = arith.subf %1986, %1998 : vector<8x32xf32>
    %cst_579 = arith.constant 9.99999974E-6 : f32
    %2000 = vector.broadcast %cst_579 : f32 to vector<8x1xf32>
    %2001 = arith.addf %1997, %2000 : vector<8x1xf32>
    %2002 = math.rsqrt %2001 : vector<8x1xf32>
    %2003 = vector.broadcast %2002 : vector<8x1xf32> to vector<8x32xf32>
    %2004 = arith.mulf %1999, %2003 : vector<8x32xf32>
    %2005 = vector.extract_strided_slice %43 {offsets = [56, 0], sizes = [8, 64], strides = [1, 1]} : vector<64x64xf32> to vector<8x64xf32>
    %2006 = vector.extract_strided_slice %62 {offsets = [56, 0], sizes = [8, 32], strides = [1, 1]} : vector<64x32xf32> to vector<8x32xf32>
    %2007 = arith.addf %2005, %1985 : vector<8x64xf32>
    %2008 = arith.negf %2007 : vector<8x64xf32>
    %2009 = math.exp %2008 : vector<8x64xf32>
    %cst_580 = arith.constant 1.000000e+00 : f32
    %2010 = vector.broadcast %cst_580 : f32 to vector<8x64xf32>
    %2011 = arith.addf %2010, %2009 : vector<8x64xf32>
    %2012 = arith.divf %2010, %2011 : vector<8x64xf32>
    %2013 = vector.extract_strided_slice %2012 {offsets = [0, 0], sizes = [8, 32], strides = [1, 1]} : vector<8x64xf32> to vector<8x32xf32>
    %2014 = vector.extract_strided_slice %2012 {offsets = [0, 32], sizes = [8, 32], strides = [1, 1]} : vector<8x64xf32> to vector<8x32xf32>
    %2015 = arith.mulf %2014, %2004 : vector<8x32xf32>
    %2016 = arith.addf %2006, %2015 : vector<8x32xf32>
    %2017 = math.tanh %2016 : vector<8x32xf32>
    %cst_581 = arith.constant 1.000000e+00 : f32
    %2018 = vector.broadcast %cst_581 : f32 to vector<8x32xf32>
    %2019 = arith.subf %2018, %2013 : vector<8x32xf32>
    %2020 = arith.mulf %2019, %1751 : vector<8x32xf32>
    %2021 = arith.mulf %2013, %2017 : vector<8x32xf32>
    %2022 = arith.addf %2020, %2021 : vector<8x32xf32>
    %2023 = arith.truncf %1855 : vector<8x32xf32> to vector<8x32xbf16>
    %c1_582 = arith.constant 1 : index
    %c0_583 = arith.constant 0 : index
    %c0_584 = arith.constant 0 : index
    %2024 = vector.load %arg4[%c1_582, %c0_583, %c0_584] : memref<3x32x96xbf16, #tpu.memory_space<vmem>>, vector<1x32x96xbf16>
    %2025 = vector.shape_cast %2024 : vector<1x32x96xbf16> to vector<32x96xbf16>
    %cst_585 = arith.constant dense<0.000000e+00> : vector<8x96xf32>
    %2026 = tpu.matmul %2023, %2025, %cst_585 {dimension_numbers = #tpu.dot_dimension_numbers<[1], [0], [0], [1], [0, 0, 1, 1], [], []>} : vector<8x32xbf16>, vector<32x96xbf16>, vector<8x96xf32> -> vector<8x96xf32>
    %2027 = vector.broadcast %14 : vector<1x96xf32> to vector<8x96xf32>
    %2028 = arith.addf %2026, %2027 : vector<8x96xf32>
    %2029 = vector.extract_strided_slice %2028 {offsets = [0, 0], sizes = [8, 64], strides = [1, 1]} : vector<8x96xf32> to vector<8x64xf32>
    %cst_586 = arith.constant dense<0.000000e+00> : vector<8xf32>
    %2030 = vector.multi_reduction <add>, %2029, %cst_586 [1] : vector<8x64xf32> to vector<8xf32>
    %2031 = vector.shape_cast %2030 : vector<8xf32> to vector<8x1xf32>
    %cst_587 = arith.constant 6.400000e+01 : f32
    %2032 = vector.broadcast %cst_587 : f32 to vector<8x1xf32>
    %2033 = arith.divf %2031, %2032 : vector<8x1xf32>
    %2034 = vector.broadcast %2033 : vector<8x1xf32> to vector<8x64xf32>
    %2035 = arith.subf %2029, %2034 : vector<8x64xf32>
    %2036 = arith.mulf %2035, %2035 : vector<8x64xf32>
    %cst_588 = arith.constant dense<0.000000e+00> : vector<8xf32>
    %2037 = vector.multi_reduction <add>, %2036, %cst_588 [1] : vector<8x64xf32> to vector<8xf32>
    %2038 = vector.shape_cast %2037 : vector<8xf32> to vector<8x1xf32>
    %cst_589 = arith.constant 6.400000e+01 : f32
    %2039 = vector.broadcast %cst_589 : f32 to vector<8x1xf32>
    %2040 = arith.divf %2038, %2039 : vector<8x1xf32>
    %2041 = vector.broadcast %2033 : vector<8x1xf32> to vector<8x64xf32>
    %2042 = arith.subf %2029, %2041 : vector<8x64xf32>
    %cst_590 = arith.constant 9.99999974E-6 : f32
    %2043 = vector.broadcast %cst_590 : f32 to vector<8x1xf32>
    %2044 = arith.addf %2040, %2043 : vector<8x1xf32>
    %2045 = math.rsqrt %2044 : vector<8x1xf32>
    %2046 = vector.broadcast %2045 : vector<8x1xf32> to vector<8x64xf32>
    %2047 = arith.mulf %2042, %2046 : vector<8x64xf32>
    %2048 = vector.extract_strided_slice %2028 {offsets = [0, 64], sizes = [8, 32], strides = [1, 1]} : vector<8x96xf32> to vector<8x32xf32>
    %cst_591 = arith.constant dense<0.000000e+00> : vector<8xf32>
    %2049 = vector.multi_reduction <add>, %2048, %cst_591 [1] : vector<8x32xf32> to vector<8xf32>
    %2050 = vector.shape_cast %2049 : vector<8xf32> to vector<8x1xf32>
    %cst_592 = arith.constant 3.200000e+01 : f32
    %2051 = vector.broadcast %cst_592 : f32 to vector<8x1xf32>
    %2052 = arith.divf %2050, %2051 : vector<8x1xf32>
    %2053 = vector.broadcast %2052 : vector<8x1xf32> to vector<8x32xf32>
    %2054 = arith.subf %2048, %2053 : vector<8x32xf32>
    %2055 = arith.mulf %2054, %2054 : vector<8x32xf32>
    %cst_593 = arith.constant dense<0.000000e+00> : vector<8xf32>
    %2056 = vector.multi_reduction <add>, %2055, %cst_593 [1] : vector<8x32xf32> to vector<8xf32>
    %2057 = vector.shape_cast %2056 : vector<8xf32> to vector<8x1xf32>
    %cst_594 = arith.constant 3.200000e+01 : f32
    %2058 = vector.broadcast %cst_594 : f32 to vector<8x1xf32>
    %2059 = arith.divf %2057, %2058 : vector<8x1xf32>
    %2060 = vector.broadcast %2052 : vector<8x1xf32> to vector<8x32xf32>
    %2061 = arith.subf %2048, %2060 : vector<8x32xf32>
    %cst_595 = arith.constant 9.99999974E-6 : f32
    %2062 = vector.broadcast %cst_595 : f32 to vector<8x1xf32>
    %2063 = arith.addf %2059, %2062 : vector<8x1xf32>
    %2064 = math.rsqrt %2063 : vector<8x1xf32>
    %2065 = vector.broadcast %2064 : vector<8x1xf32> to vector<8x32xf32>
    %2066 = arith.mulf %2061, %2065 : vector<8x32xf32>
    %2067 = arith.truncf %2022 : vector<8x32xf32> to vector<8x32xbf16>
    %c1_596 = arith.constant 1 : index
    %c0_597 = arith.constant 0 : index
    %c0_598 = arith.constant 0 : index
    %2068 = vector.load %arg2[%c1_596, %c0_597, %c0_598] : memref<3x32x96xbf16, #tpu.memory_space<vmem>>, vector<1x32x96xbf16>
    %2069 = vector.shape_cast %2068 : vector<1x32x96xbf16> to vector<32x96xbf16>
    %cst_599 = arith.constant dense<0.000000e+00> : vector<8x96xf32>
    %2070 = tpu.matmul %2067, %2069, %cst_599 {dimension_numbers = #tpu.dot_dimension_numbers<[1], [0], [0], [1], [0, 0, 1, 1], [], []>} : vector<8x32xbf16>, vector<32x96xbf16>, vector<8x96xf32> -> vector<8x96xf32>
    %2071 = vector.broadcast %5 : vector<1x96xf32> to vector<8x96xf32>
    %2072 = arith.addf %2070, %2071 : vector<8x96xf32>
    %2073 = vector.extract_strided_slice %2072 {offsets = [0, 0], sizes = [8, 64], strides = [1, 1]} : vector<8x96xf32> to vector<8x64xf32>
    %cst_600 = arith.constant dense<0.000000e+00> : vector<8xf32>
    %2074 = vector.multi_reduction <add>, %2073, %cst_600 [1] : vector<8x64xf32> to vector<8xf32>
    %2075 = vector.shape_cast %2074 : vector<8xf32> to vector<8x1xf32>
    %cst_601 = arith.constant 6.400000e+01 : f32
    %2076 = vector.broadcast %cst_601 : f32 to vector<8x1xf32>
    %2077 = arith.divf %2075, %2076 : vector<8x1xf32>
    %2078 = vector.broadcast %2077 : vector<8x1xf32> to vector<8x64xf32>
    %2079 = arith.subf %2073, %2078 : vector<8x64xf32>
    %2080 = arith.mulf %2079, %2079 : vector<8x64xf32>
    %cst_602 = arith.constant dense<0.000000e+00> : vector<8xf32>
    %2081 = vector.multi_reduction <add>, %2080, %cst_602 [1] : vector<8x64xf32> to vector<8xf32>
    %2082 = vector.shape_cast %2081 : vector<8xf32> to vector<8x1xf32>
    %cst_603 = arith.constant 6.400000e+01 : f32
    %2083 = vector.broadcast %cst_603 : f32 to vector<8x1xf32>
    %2084 = arith.divf %2082, %2083 : vector<8x1xf32>
    %2085 = vector.broadcast %2077 : vector<8x1xf32> to vector<8x64xf32>
    %2086 = arith.subf %2073, %2085 : vector<8x64xf32>
    %cst_604 = arith.constant 9.99999974E-6 : f32
    %2087 = vector.broadcast %cst_604 : f32 to vector<8x1xf32>
    %2088 = arith.addf %2084, %2087 : vector<8x1xf32>
    %2089 = math.rsqrt %2088 : vector<8x1xf32>
    %2090 = vector.broadcast %2089 : vector<8x1xf32> to vector<8x64xf32>
    %2091 = arith.mulf %2086, %2090 : vector<8x64xf32>
    %2092 = vector.extract_strided_slice %2072 {offsets = [0, 64], sizes = [8, 32], strides = [1, 1]} : vector<8x96xf32> to vector<8x32xf32>
    %cst_605 = arith.constant dense<0.000000e+00> : vector<8xf32>
    %2093 = vector.multi_reduction <add>, %2092, %cst_605 [1] : vector<8x32xf32> to vector<8xf32>
    %2094 = vector.shape_cast %2093 : vector<8xf32> to vector<8x1xf32>
    %cst_606 = arith.constant 3.200000e+01 : f32
    %2095 = vector.broadcast %cst_606 : f32 to vector<8x1xf32>
    %2096 = arith.divf %2094, %2095 : vector<8x1xf32>
    %2097 = vector.broadcast %2096 : vector<8x1xf32> to vector<8x32xf32>
    %2098 = arith.subf %2092, %2097 : vector<8x32xf32>
    %2099 = arith.mulf %2098, %2098 : vector<8x32xf32>
    %cst_607 = arith.constant dense<0.000000e+00> : vector<8xf32>
    %2100 = vector.multi_reduction <add>, %2099, %cst_607 [1] : vector<8x32xf32> to vector<8xf32>
    %2101 = vector.shape_cast %2100 : vector<8xf32> to vector<8x1xf32>
    %cst_608 = arith.constant 3.200000e+01 : f32
    %2102 = vector.broadcast %cst_608 : f32 to vector<8x1xf32>
    %2103 = arith.divf %2101, %2102 : vector<8x1xf32>
    %2104 = vector.broadcast %2096 : vector<8x1xf32> to vector<8x32xf32>
    %2105 = arith.subf %2092, %2104 : vector<8x32xf32>
    %cst_609 = arith.constant 9.99999974E-6 : f32
    %2106 = vector.broadcast %cst_609 : f32 to vector<8x1xf32>
    %2107 = arith.addf %2103, %2106 : vector<8x1xf32>
    %2108 = math.rsqrt %2107 : vector<8x1xf32>
    %2109 = vector.broadcast %2108 : vector<8x1xf32> to vector<8x32xf32>
    %2110 = arith.mulf %2105, %2109 : vector<8x32xf32>
    %2111 = arith.addf %2091, %2047 : vector<8x64xf32>
    %2112 = arith.negf %2111 : vector<8x64xf32>
    %2113 = math.exp %2112 : vector<8x64xf32>
    %cst_610 = arith.constant 1.000000e+00 : f32
    %2114 = vector.broadcast %cst_610 : f32 to vector<8x64xf32>
    %2115 = arith.addf %2114, %2113 : vector<8x64xf32>
    %2116 = arith.divf %2114, %2115 : vector<8x64xf32>
    %2117 = vector.extract_strided_slice %2116 {offsets = [0, 0], sizes = [8, 32], strides = [1, 1]} : vector<8x64xf32> to vector<8x32xf32>
    %2118 = vector.extract_strided_slice %2116 {offsets = [0, 32], sizes = [8, 32], strides = [1, 1]} : vector<8x64xf32> to vector<8x32xf32>
    %2119 = arith.mulf %2118, %2066 : vector<8x32xf32>
    %2120 = arith.addf %2110, %2119 : vector<8x32xf32>
    %2121 = math.tanh %2120 : vector<8x32xf32>
    %cst_611 = arith.constant 1.000000e+00 : f32
    %2122 = vector.broadcast %cst_611 : f32 to vector<8x32xf32>
    %2123 = arith.subf %2122, %2117 : vector<8x32xf32>
    %2124 = arith.mulf %2123, %1855 : vector<8x32xf32>
    %2125 = arith.mulf %2117, %2121 : vector<8x32xf32>
    %2126 = arith.addf %2124, %2125 : vector<8x32xf32>
    %2127 = arith.truncf %1959 : vector<8x32xf32> to vector<8x32xbf16>
    %c2_612 = arith.constant 2 : index
    %c0_613 = arith.constant 0 : index
    %c0_614 = arith.constant 0 : index
    %2128 = vector.load %arg4[%c2_612, %c0_613, %c0_614] : memref<3x32x96xbf16, #tpu.memory_space<vmem>>, vector<1x32x96xbf16>
    %2129 = vector.shape_cast %2128 : vector<1x32x96xbf16> to vector<32x96xbf16>
    %cst_615 = arith.constant dense<0.000000e+00> : vector<8x96xf32>
    %2130 = tpu.matmul %2127, %2129, %cst_615 {dimension_numbers = #tpu.dot_dimension_numbers<[1], [0], [0], [1], [0, 0, 1, 1], [], []>} : vector<8x32xbf16>, vector<32x96xbf16>, vector<8x96xf32> -> vector<8x96xf32>
    %2131 = vector.broadcast %17 : vector<1x96xf32> to vector<8x96xf32>
    %2132 = arith.addf %2130, %2131 : vector<8x96xf32>
    %2133 = vector.extract_strided_slice %2132 {offsets = [0, 0], sizes = [8, 64], strides = [1, 1]} : vector<8x96xf32> to vector<8x64xf32>
    %cst_616 = arith.constant dense<0.000000e+00> : vector<8xf32>
    %2134 = vector.multi_reduction <add>, %2133, %cst_616 [1] : vector<8x64xf32> to vector<8xf32>
    %2135 = vector.shape_cast %2134 : vector<8xf32> to vector<8x1xf32>
    %cst_617 = arith.constant 6.400000e+01 : f32
    %2136 = vector.broadcast %cst_617 : f32 to vector<8x1xf32>
    %2137 = arith.divf %2135, %2136 : vector<8x1xf32>
    %2138 = vector.broadcast %2137 : vector<8x1xf32> to vector<8x64xf32>
    %2139 = arith.subf %2133, %2138 : vector<8x64xf32>
    %2140 = arith.mulf %2139, %2139 : vector<8x64xf32>
    %cst_618 = arith.constant dense<0.000000e+00> : vector<8xf32>
    %2141 = vector.multi_reduction <add>, %2140, %cst_618 [1] : vector<8x64xf32> to vector<8xf32>
    %2142 = vector.shape_cast %2141 : vector<8xf32> to vector<8x1xf32>
    %cst_619 = arith.constant 6.400000e+01 : f32
    %2143 = vector.broadcast %cst_619 : f32 to vector<8x1xf32>
    %2144 = arith.divf %2142, %2143 : vector<8x1xf32>
    %2145 = vector.broadcast %2137 : vector<8x1xf32> to vector<8x64xf32>
    %2146 = arith.subf %2133, %2145 : vector<8x64xf32>
    %cst_620 = arith.constant 9.99999974E-6 : f32
    %2147 = vector.broadcast %cst_620 : f32 to vector<8x1xf32>
    %2148 = arith.addf %2144, %2147 : vector<8x1xf32>
    %2149 = math.rsqrt %2148 : vector<8x1xf32>
    %2150 = vector.broadcast %2149 : vector<8x1xf32> to vector<8x64xf32>
    %2151 = arith.mulf %2146, %2150 : vector<8x64xf32>
    %2152 = vector.extract_strided_slice %2132 {offsets = [0, 64], sizes = [8, 32], strides = [1, 1]} : vector<8x96xf32> to vector<8x32xf32>
    %cst_621 = arith.constant dense<0.000000e+00> : vector<8xf32>
    %2153 = vector.multi_reduction <add>, %2152, %cst_621 [1] : vector<8x32xf32> to vector<8xf32>
    %2154 = vector.shape_cast %2153 : vector<8xf32> to vector<8x1xf32>
    %cst_622 = arith.constant 3.200000e+01 : f32
    %2155 = vector.broadcast %cst_622 : f32 to vector<8x1xf32>
    %2156 = arith.divf %2154, %2155 : vector<8x1xf32>
    %2157 = vector.broadcast %2156 : vector<8x1xf32> to vector<8x32xf32>
    %2158 = arith.subf %2152, %2157 : vector<8x32xf32>
    %2159 = arith.mulf %2158, %2158 : vector<8x32xf32>
    %cst_623 = arith.constant dense<0.000000e+00> : vector<8xf32>
    %2160 = vector.multi_reduction <add>, %2159, %cst_623 [1] : vector<8x32xf32> to vector<8xf32>
    %2161 = vector.shape_cast %2160 : vector<8xf32> to vector<8x1xf32>
    %cst_624 = arith.constant 3.200000e+01 : f32
    %2162 = vector.broadcast %cst_624 : f32 to vector<8x1xf32>
    %2163 = arith.divf %2161, %2162 : vector<8x1xf32>
    %2164 = vector.broadcast %2156 : vector<8x1xf32> to vector<8x32xf32>
    %2165 = arith.subf %2152, %2164 : vector<8x32xf32>
    %cst_625 = arith.constant 9.99999974E-6 : f32
    %2166 = vector.broadcast %cst_625 : f32 to vector<8x1xf32>
    %2167 = arith.addf %2163, %2166 : vector<8x1xf32>
    %2168 = math.rsqrt %2167 : vector<8x1xf32>
    %2169 = vector.broadcast %2168 : vector<8x1xf32> to vector<8x32xf32>
    %2170 = arith.mulf %2165, %2169 : vector<8x32xf32>
    %2171 = arith.truncf %2126 : vector<8x32xf32> to vector<8x32xbf16>
    %c2_626 = arith.constant 2 : index
    %c0_627 = arith.constant 0 : index
    %c0_628 = arith.constant 0 : index
    %2172 = vector.load %arg2[%c2_626, %c0_627, %c0_628] : memref<3x32x96xbf16, #tpu.memory_space<vmem>>, vector<1x32x96xbf16>
    %2173 = vector.shape_cast %2172 : vector<1x32x96xbf16> to vector<32x96xbf16>
    %cst_629 = arith.constant dense<0.000000e+00> : vector<8x96xf32>
    %2174 = tpu.matmul %2171, %2173, %cst_629 {dimension_numbers = #tpu.dot_dimension_numbers<[1], [0], [0], [1], [0, 0, 1, 1], [], []>} : vector<8x32xbf16>, vector<32x96xbf16>, vector<8x96xf32> -> vector<8x96xf32>
    %2175 = vector.broadcast %8 : vector<1x96xf32> to vector<8x96xf32>
    %2176 = arith.addf %2174, %2175 : vector<8x96xf32>
    %2177 = vector.extract_strided_slice %2176 {offsets = [0, 0], sizes = [8, 64], strides = [1, 1]} : vector<8x96xf32> to vector<8x64xf32>
    %cst_630 = arith.constant dense<0.000000e+00> : vector<8xf32>
    %2178 = vector.multi_reduction <add>, %2177, %cst_630 [1] : vector<8x64xf32> to vector<8xf32>
    %2179 = vector.shape_cast %2178 : vector<8xf32> to vector<8x1xf32>
    %cst_631 = arith.constant 6.400000e+01 : f32
    %2180 = vector.broadcast %cst_631 : f32 to vector<8x1xf32>
    %2181 = arith.divf %2179, %2180 : vector<8x1xf32>
    %2182 = vector.broadcast %2181 : vector<8x1xf32> to vector<8x64xf32>
    %2183 = arith.subf %2177, %2182 : vector<8x64xf32>
    %2184 = arith.mulf %2183, %2183 : vector<8x64xf32>
    %cst_632 = arith.constant dense<0.000000e+00> : vector<8xf32>
    %2185 = vector.multi_reduction <add>, %2184, %cst_632 [1] : vector<8x64xf32> to vector<8xf32>
    %2186 = vector.shape_cast %2185 : vector<8xf32> to vector<8x1xf32>
    %cst_633 = arith.constant 6.400000e+01 : f32
    %2187 = vector.broadcast %cst_633 : f32 to vector<8x1xf32>
    %2188 = arith.divf %2186, %2187 : vector<8x1xf32>
    %2189 = vector.broadcast %2181 : vector<8x1xf32> to vector<8x64xf32>
    %2190 = arith.subf %2177, %2189 : vector<8x64xf32>
    %cst_634 = arith.constant 9.99999974E-6 : f32
    %2191 = vector.broadcast %cst_634 : f32 to vector<8x1xf32>
    %2192 = arith.addf %2188, %2191 : vector<8x1xf32>
    %2193 = math.rsqrt %2192 : vector<8x1xf32>
    %2194 = vector.broadcast %2193 : vector<8x1xf32> to vector<8x64xf32>
    %2195 = arith.mulf %2190, %2194 : vector<8x64xf32>
    %2196 = vector.extract_strided_slice %2176 {offsets = [0, 64], sizes = [8, 32], strides = [1, 1]} : vector<8x96xf32> to vector<8x32xf32>
    %cst_635 = arith.constant dense<0.000000e+00> : vector<8xf32>
    %2197 = vector.multi_reduction <add>, %2196, %cst_635 [1] : vector<8x32xf32> to vector<8xf32>
    %2198 = vector.shape_cast %2197 : vector<8xf32> to vector<8x1xf32>
    %cst_636 = arith.constant 3.200000e+01 : f32
    %2199 = vector.broadcast %cst_636 : f32 to vector<8x1xf32>
    %2200 = arith.divf %2198, %2199 : vector<8x1xf32>
    %2201 = vector.broadcast %2200 : vector<8x1xf32> to vector<8x32xf32>
    %2202 = arith.subf %2196, %2201 : vector<8x32xf32>
    %2203 = arith.mulf %2202, %2202 : vector<8x32xf32>
    %cst_637 = arith.constant dense<0.000000e+00> : vector<8xf32>
    %2204 = vector.multi_reduction <add>, %2203, %cst_637 [1] : vector<8x32xf32> to vector<8xf32>
    %2205 = vector.shape_cast %2204 : vector<8xf32> to vector<8x1xf32>
    %cst_638 = arith.constant 3.200000e+01 : f32
    %2206 = vector.broadcast %cst_638 : f32 to vector<8x1xf32>
    %2207 = arith.divf %2205, %2206 : vector<8x1xf32>
    %2208 = vector.broadcast %2200 : vector<8x1xf32> to vector<8x32xf32>
    %2209 = arith.subf %2196, %2208 : vector<8x32xf32>
    %cst_639 = arith.constant 9.99999974E-6 : f32
    %2210 = vector.broadcast %cst_639 : f32 to vector<8x1xf32>
    %2211 = arith.addf %2207, %2210 : vector<8x1xf32>
    %2212 = math.rsqrt %2211 : vector<8x1xf32>
    %2213 = vector.broadcast %2212 : vector<8x1xf32> to vector<8x32xf32>
    %2214 = arith.mulf %2209, %2213 : vector<8x32xf32>
    %2215 = arith.addf %2195, %2151 : vector<8x64xf32>
    %2216 = arith.negf %2215 : vector<8x64xf32>
    %2217 = math.exp %2216 : vector<8x64xf32>
    %cst_640 = arith.constant 1.000000e+00 : f32
    %2218 = vector.broadcast %cst_640 : f32 to vector<8x64xf32>
    %2219 = arith.addf %2218, %2217 : vector<8x64xf32>
    %2220 = arith.divf %2218, %2219 : vector<8x64xf32>
    %2221 = vector.extract_strided_slice %2220 {offsets = [0, 0], sizes = [8, 32], strides = [1, 1]} : vector<8x64xf32> to vector<8x32xf32>
    %2222 = vector.extract_strided_slice %2220 {offsets = [0, 32], sizes = [8, 32], strides = [1, 1]} : vector<8x64xf32> to vector<8x32xf32>
    %2223 = arith.mulf %2222, %2170 : vector<8x32xf32>
    %2224 = arith.addf %2214, %2223 : vector<8x32xf32>
    %2225 = math.tanh %2224 : vector<8x32xf32>
    %cst_641 = arith.constant 1.000000e+00 : f32
    %2226 = vector.broadcast %cst_641 : f32 to vector<8x32xf32>
    %2227 = arith.subf %2226, %2221 : vector<8x32xf32>
    %2228 = arith.mulf %2227, %1959 : vector<8x32xf32>
    %2229 = arith.mulf %2221, %2225 : vector<8x32xf32>
    %2230 = arith.addf %2228, %2229 : vector<8x32xf32>
    %c56 = arith.constant 56 : index
    %c0_642 = arith.constant 0 : index
    %2231 = vector.load %arg9[%c56, %c0_642] : memref<64x32xf32, #tpu.memory_space<vmem>>, vector<8x32xf32>
    tpu.vector_store %arg9[%c56, %c0_642], %2230 {strides = array<i32>} : memref<64x32xf32, #tpu.memory_space<vmem>>, vector<8x32xf32>,
    %c0_643 = arith.constant 0 : index
    %c0_644 = arith.constant 0 : index
    %2232 = vector.load %arg9[%c0_643, %c0_644] : memref<64x32xf32, #tpu.memory_space<vmem>>, vector<64x32xf32>
    %2233 = arith.truncf %2232 : vector<64x32xf32> to vector<64x32xbf16>
    %c0_645 = arith.constant 0 : index
    %c0_646 = arith.constant 0 : index
    %2234 = vector.load %arg6[%c0_645, %c0_646] : memref<32x32xbf16, #tpu.memory_space<vmem>>, vector<32x32xbf16>
    %cst_647 = arith.constant dense<0.000000e+00> : vector<64x32xf32>
    %2235 = tpu.matmul %2233, %2234, %cst_647 {dimension_numbers = #tpu.dot_dimension_numbers<[1], [0], [0], [1], [0, 0, 1, 1], [], []>} : vector<64x32xbf16>, vector<32x32xbf16>, vector<64x32xf32> -> vector<64x32xf32>
    %c0_648 = arith.constant 0 : index
    %c0_649 = arith.constant 0 : index
    %2236 = vector.load %arg7[%c0_648, %c0_649] : memref<1x32xf32, #tpu.memory_space<vmem>>, vector<1x32xf32>
    %2237 = vector.broadcast %2236 : vector<1x32xf32> to vector<64x32xf32>
    %2238 = arith.addf %2235, %2237 : vector<64x32xf32>
    %2239 = arith.negf %2238 : vector<64x32xf32>
    %2240 = math.exp %2239 : vector<64x32xf32>
    %cst_650 = arith.constant 1.000000e+00 : f32
    %2241 = vector.broadcast %cst_650 : f32 to vector<64x32xf32>
    %2242 = arith.addf %2241, %2240 : vector<64x32xf32>
    %2243 = arith.divf %2241, %2242 : vector<64x32xf32>
    %c0_651 = arith.constant 0 : index
    %c0_652 = arith.constant 0 : index
    %2244 = vector.load %arg8[%c0_651, %c0_652] : memref<64x32xf32, #tpu.memory_space<vmem>>, vector<64x32xf32>
    tpu.vector_store %arg8[%c0_651, %c0_652], %2243 {strides = array<i32>} : memref<64x32xf32, #tpu.memory_space<vmem>>, vector<64x32xf32>,
    return
  }
}

</mosaic_0001>

<bundles_post_ra>
// kernel: tpu_custom_call.1
= control target key start
LH: loop header
LB: loop body
LE: loop exit
PB: predicated region body
PF: predicated region fallthrough
CT: control target
= control target key end

     0   :  { %13 = vsyncpa [#allocation4], 0  ;;  %s8285_s0 = inlined_call_operand.hbm [shape: f32[8,32], index: 0, kind: input, shape index: {}]   ;;  %s8286_s1 = inlined_call_operand.vmem [shape: f32[64,32], index: 1, kind: input, shape index: {}]   ;;  %s8287_s2 = inlined_call_operand.vmem [shape: bf16[3,32,96], index: 2, kind: input, shape index: {}]   ;;  %s8288_s3 = inlined_call_operand.hbm [shape: f32[3,96], index: 3, kind: input, shape index: {}]   ;;  %s8289_s4 = inlined_call_operand.vmem [shape: bf16[3,32,96], index: 4, kind: input, shape index: {}]   ;;  %s8290_s5 = inlined_call_operand.hbm [shape: f32[3,96], index: 5, kind: input, shape index: {}]   ;;  %s8291_s6 = inlined_call_operand.hbm [shape: bf16[32,32], index: 6, kind: input, shape index: {}]   ;;  %s8292_s7 = inlined_call_operand.vmem [shape: f32[1,32], index: 7, kind: input, shape index: {}]   ;;  %s8293_s8 = inlined_call_operand.vmem [shape: f32[64,32], index: 8, kind: output, shape index: {}]  }
   0x1   :  { %14 = vsyncpa [#allocation6], 0  ;;  %s36_s29 = sshll.u32 %s8288_s3, 4  ;;  %s37_s29 = int_to_ptr.hbm [resolvable:$true] %s36_s29 }
   0x2   :  { %15 = vsyncpa [#allocation9], 0  ;;  %s6272_s30 = smov [#allocation5]   ;;  %s21_s12 = sshll.u32 %s8285_s0, 4  ;;  %s22_s12 = int_to_ptr.hbm [resolvable:$true] %s21_s12 }
   0x3   :  { %s38_s9 = sshll.u32 %s6272_s30, 4  ;;  %s6273_s13 = smov [#allocation3]   ;;  %s39_s9 = int_to_ptr.vmem [resolvable:$true] %s38_s9 }
   0x4   :  { %41 = dma.hbm_to_vmem [thread:$0]  %s37_s29, 64, %s39_s9, [#allocation6]  }
   0x5   :  { %s23_s14 = sshll.u32 %s6273_s13, 4  ;;  %s49_s17 = sshll.u32 %s8290_s5, 4  ;;  %s24_s14 = int_to_ptr.vmem [resolvable:$true] %s23_s14  ;;  %s50_s17 = int_to_ptr.hbm [resolvable:$true] %s49_s17 }
   0x6   :  { %26 = dma.hbm_to_vmem [thread:$0]  %s22_s12, 128, %s24_s14, [#allocation4]  }
   0x7   :  { %s59_s19 = sshll.u32 %s8291_s6, 4  ;;  %s6274_s20 = smov [#allocation7]   ;;  %s60_s19 = int_to_ptr.hbm [resolvable:$true] %s59_s19 }
   0x8   :  { %s51_s21 = sshll.u32 %s6274_s20, 4  ;;  %s6275_s0 = smov [#allocation8]   ;;  %s52_s21 = int_to_ptr.vmem [resolvable:$true] %s51_s21 }
   0x9   :  { %54 = dma.hbm_to_vmem [thread:$0]  %s50_s17, 64, %s52_s21, [#allocation6]  }
   0xa   :  { %s61_s22 = sshll.u32 %s6275_s0, 4  ;;  %s6276_s23 = smov 64   ;;  %s62_s22 = int_to_ptr.vmem [resolvable:$true] %s61_s22 }
   0xb   :  { %s6277_s24 = smov 4  }
   0xc   :  { %67 = dma.hbm_to_vmem [thread:$0]  %s60_s19, 256, %s62_s22, [#allocation9], %s6276_s23, %s6276_s23, %s6277_s24  }
   0xd   :  { %6266 = dma.done.wait [#allocation4], 128  }
   0xe   :  { %6267 = vsyncadd [#allocation4], 4294967168 }
   0xf   :  { %6268 = dma.done.wait [#allocation6], 128  }
  0x10   :  { %6269 = vsyncadd [#allocation6], 4294967168 }
  0x11   :  { %6270 = dma.done.wait [#allocation9], 256  }
  0x12   :  { %6271 = vsyncadd [#allocation9], 4294967040  ;;  %v5670_v0 = vld [vmem:[%s8287_s2 + $0x8] sm:$0xff]  ;;  %v5669_v1 = vld [vmem:[%s8287_s2] sm:$0xff]  ;;  %vm122_vm0 = vcmask 261120   ;;  %vm164_vm1 = vcmask 523264  }
  0x13   :  { %v93_v2 = vld [vmem:[%s8286_s1] sm:$0xff]  ;;  %141 = vmatpush.bf16.msra.mxu0 %v5670_v0  ;;  %5753 = vmatpush.bf16.msra.mxu1 %v5670_v0  ;;  %v94_v3 = vld [vmem:[%s8286_s1 + $0x8] sm:$0xff]  ;;  %v95_v4 = vld [vmem:[%s8286_s1 + $0x10] sm:$0xff]  ;;  %v6278_v23 = vmov 64.0   ;;  %v6279_v42 = vmov 32.0   ;;  %s6280_s24 = smov 96  }
  0x14   :  { %v96_v5 = vld [vmem:[%s8286_s1 + $0x18] sm:$0xff]  ;;  %v5672_v6 = vld [vmem:[%s8289_s4 + $0x8] sm:$0xff]  ;;  %5754 = vmatpush.bf16.msra.mxu2 %v5670_v0  ;;  %5755 = vmatpush.bf16.msra.mxu3 %v5670_v0  ;;  %v101_v7 = vpack.c.bf16 %v94_v3, %v93_v2  ;;  %v5671_v9 = vld [vmem:[%s8289_s4] sm:$0xff]  ;;  %5776 = vrcp.f32 %v6278_v23  ;;  %s6281_s5 = smov 32  }
  0x15   :  { %v102_v8 = vpack.c.bf16 %v96_v5, %v95_v4  ;;  %v6367_v10 = vld [vmem:[#allocation3] sm:$0xff]  ;;  %v6375_v12 = vld [vmem:[#allocation5] ss:$0 sm:$0xff]  ;;  %v6388_v18 = vld [vmem:[#allocation7] ss:$0 sm:$0xff]  ;;  %5778 = vrcp.f32 %v6279_v42 }
  0x16   :  { %v6371_v11 = vpack.c.bf16 %v6367_v10, %v6367_v10  ;;  %v97_v55 = vld [vmem:[%s8286_s1 + $0x20] sm:$0xff]  ;;  %v98_v56 = vld [vmem:[%s8286_s1 + $0x28] sm:$0xff]  ;;  %v5674_v57 = vld [vmem:[%s8289_s4 + $0x18] sm:$0xff] }
  0x17   :  { %142 = vmatpush.bf16.msra.mxu0 %v5669_v1  ;;  %5756 = vmatpush.bf16.msra.mxu1 %v5669_v1  ;;  %v103_v58 = vpack.c.bf16 %v98_v56, %v97_v55  ;;  %v5673_v61 = vld [vmem:[%s8289_s4 + $0x10] sm:$0xff] }
  0x18   :  { %5757 = vmatpush.bf16.msra.mxu2 %v5669_v1  ;;  %5758 = vmatpush.bf16.msra.mxu3 %v5669_v1 }
  0x1a   :  { %5133 = vmatmul.msk.bf16.vlgmr.msra.gmra.mxu0 %vm122_vm0, %v101_v7  ;;  %5134 = vmatmul.msk.bf16.vlgmr.msra.gmra.mxu1 %vm122_vm0, %v102_v8  ;;  %v5777_v24 = vpop.eup %5776 }
  0x1b   :  { %623 = vmatpush.bf16.msrb.mxu1 %v5672_v6  ;;  %v190_v25 = vmul.f32 64.0, %v5777_v24  ;;  %vm194_vm2 = vweird.f32 %v5777_v24  ;;  %v5779_v43 = vpop.eup %5778  ;;  %5135 = vmatmul.msk.bf16.vlgmr.msra.gmra.mxu2 %vm122_vm0, %v103_v58 }
  0x1c   :  { %v405_v44 = vmul.f32 32.0, %v5779_v43  ;;  %vm409_vm3 = vweird.f32 %v5779_v43  ;;  %745 = vmatpush.bf16.msrb.mxu2 %v5674_v57 }
  0x1d   :  { %v191_v26 = vsub.f32 1.0, %v190_v25  ;;  %v6444_v25 = vld [vmem:[#allocation7 + $0x1] ss:$0 sm:$0xff] }
  0x1e   :  { %v406_v45 = vsub.f32 1.0, %v405_v44 }
  0x1f   :  { %624 = vmatpush.bf16.msrb.mxu1 %v5671_v9  ;;  %v192_v27 = vmul.f32 %v5777_v24, %v191_v26 }
  0x20   :  { %v407_v46 = vmul.f32 %v5779_v43, %v406_v45  ;;  %746 = vmatpush.bf16.msrb.mxu2 %v5673_v61 }
  0x21   :  { %v193_v28 = vadd.f32 %v5777_v24, %v192_v27 }
  0x22   :  { %v408_v47 = vadd.f32 %v5779_v43, %v407_v46 }
  0x23   :  { %v6393_v29 = vsel %vm194_vm2, %v5777_v24, %v193_v28 }
  0x24   :  { %v6409_v48 = vsel %vm409_vm3, %v5779_v43, %v408_v47 }
  0x2a   :  { %5145 = vmatmul.msk.bf16.vlgmr.msrb.gmra.mxu1 %vm122_vm0, %v6371_v11 }
  0x2b   :  { %5159 = vmatmul.msk.bf16.vlgmr.msrb.gmra.mxu2 %vm122_vm0, %v6371_v11 }
  0x97   :  { %v144_v13 = vpop.f32.mrf.mxu0  ;;  %v6377_v14 = vpop.f32.mrf.mxu1 }
  0x98   :  { %v6380_v15 = vadd.f32 %v6375_v12, %v144_v13 }
  0x9a   :  { %v165_v16 = vsel %vm164_vm1, %v6380_v15, 0.0  ;;  %356 = vrot.lane.b32.xlu1 %v6380_v15, %s6276_s23 }
  0x9b   :  { %166 = vadd.xlane.f32.xlu2 %v165_v16 }
  0x9e   :  { %v6438_v8 = vpop.f32.mrf.mxu2 }
  0x9f   :  { %v6386_v17 = vpop.f32.mrf.mxu1 }
  0xa7   :  { %v626_v19 = vpop.f32.mrf.mxu1 }
  0xa8   :  { %v627_v20 = vadd.f32 %v6388_v18, %v626_v19 }
  0xaa   :  { %653 = vrot.lane.b32.xlu0 %v627_v20, %s6276_s23  ;;  %v630_v21 = vsel %vm164_vm1, %v627_v20, 0.0 }
  0xab   :  { %631 = vadd.xlane.f32.xlu2 %v630_v21 }
  0xaf   :  { %v628_v22 = vpop.f32.mrf.mxu1 }
 0x10c   :  { %v357_v53 = vpop.permute.xlu1 %356 }
 0x10d   :  { %v380_v54 = vsel %vm122_vm0, %v357_v53, 0.0 }
 0x10e   :  { %v167_v30 = vpop.xlane.xlu2 %166 }
 0x10f   :  { %v196_v31 = vmul.f32 %v6393_v29, %v167_v30 }
 0x111   :  { %v6397_v32 = vsub.f32 %v6380_v15, %v196_v31 }
 0x113   :  { %v212_v33 = vmul.f32 %v6397_v32, %v6397_v32 }
 0x115   :  { %v220_v34 = vsel %vm164_vm1, %v212_v33, 0.0 }
 0x116   :  { %221 = vadd.xlane.f32.xlu2 %v220_v34 }
 0x11c   :  { %v654_v35 = vpop.permute.xlu0 %653 }
 0x11d   :  { %v656_v36 = vsel %vm122_vm0, %v654_v35, 0.0 }
 0x11e   :  { %657 = vadd.xlane.f32.xlu0 %v656_v36  ;;  %v632_v37 = vpop.xlane.xlu2 %631 }
 0x11f   :  { %v633_v38 = vmul.f32 %v632_v37, %v6393_v29 }
 0x121   :  { %v6404_v39 = vsub.f32 %v627_v20, %v633_v38 }
 0x123   :  { %v635_v40 = vmul.f32 %v6404_v39, %v6404_v39 }
 0x125   :  { %v636_v41 = vsel %vm164_vm1, %v635_v40, 0.0 }
 0x126   :  { %637 = vadd.xlane.f32.xlu2 %v636_v41 }
 0x189   :  { %v222_v2 = vpop.xlane.xlu2 %221 }
 0x18a   :  { %v244_v31 = vmul.f32 %v222_v2, %v6393_v29 }
 0x18c   :  { %v252_v34 = vadd.f32 1e-05, %v244_v31  ;;  %v99_v31 = vld [vmem:[%s8286_s1 + $0x30] sm:$0xff] }
 0x18e   :  { %vm266_vm7 = vweird.f32 %v252_v34 }
 0x191   :  { %v658_v49 = vpop.xlane.xlu0 %657 }
 0x192   :  { %v659_v50 = vmul.f32 %v658_v49, %v6409_v48 }
 0x194   :  { %v660_v51 = vsub.f32 %v627_v20, %v659_v50  ;;  %v6440_v20 = vpop.f32.mrf.mxu2 }
 0x196   :  { %v661_v52 = vmul.f32 %v660_v51, %v660_v51 }
 0x198   :  { %663 = vrot.lane.b32.xlu1 %v661_v52, %s6276_s23 }
 0x199   :  { %v638_v3 = vpop.xlane.xlu2 %637 }
 0x19a   :  { %v639_v30 = vmul.f32 %v638_v3, %v6393_v29 }
 0x19c   :  { %v748_v26 = vpop.f32.mrf.mxu2  ;;  %v640_v33 = vadd.f32 1e-05, %v639_v30 }
 0x19d   :  { %v6447_v27 = vadd.f32 %v6444_v25, %v748_v26 }
 0x19e   :  { %vm647_vm11 = vweird.f32 %v640_v33 }
 0x1a4   :  { %v750_v28 = vpop.f32.mrf.mxu2 }
 0x1c2   :  { %381 = vadd.xlane.f32.xlu1 %v380_v54 }
 0x20a   :  { %v664_v59 = vpop.permute.xlu1 %663 }
 0x20b   :  { %v666_v60 = vsel %vm122_vm0, %v664_v59, 0.0 }
 0x20c   :  { %667 = vadd.xlane.f32.xlu2 %v666_v60 }
 0x235   :  { %v382_v62 = vpop.xlane.xlu1 %381 }
 0x236   :  { %v411_v63 = vmul.f32 %v6409_v48, %v382_v62 }
 0x238   :  { %v6432_v0 = vsub.f32 %v6380_v15, %v411_v63 }
 0x23a   :  { %v427_v1 = vmul.f32 %v6432_v0, %v6432_v0 }
 0x23c   :  { %443 = vrot.lane.b32.xlu2 %v427_v1, %s6276_s23 }
 0x27f   :  { %v668_v4 = vpop.xlane.xlu2 %667 }
 0x280   :  { %v669_v5 = vmul.f32 %v668_v4, %v6409_v48 }
 0x282   :  { %v670_v6 = vadd.f32 1e-05, %v669_v5 }
 0x284   :  { %5780 = vrsqrt.f32 %v670_v6  ;;  %vm677_vm5 = vweird.f32 %v670_v6 }
 0x285   :  { %5782 = vrsqrt.f32 %v640_v33 }
 0x286   :  { %5784 = vrsqrt.f32 %v252_v34 }
 0x28a   :  { %v5781_v7 = vpop.eup %5780 }
 0x28b   :  { %v672_v9 = vmul.f32 %v5781_v7, %v670_v6  ;;  %vm678_vm4 = vweird.f32 %v5781_v7  ;;  %v5783_v35 = vpop.eup %5782 }
 0x28c   :  { %vm679_vm6 = vmor %vm677_vm5, %vm678_vm4  ;;  %v5785_v36 = vpop.eup %5784  ;;  %v642_v37 = vmul.f32 %v5783_v35, %v640_v33  ;;  %vm648_vm9 = vweird.f32 %v5783_v35  ;;  %v100_v33 = vld [vmem:[%s8286_s1 + $0x38] sm:$0xff] }
 0x28d   :  { %v673_v13 = vmul.f32 %v5781_v7, %v672_v9  ;;  %v261_v38 = vmul.f32 %v5785_v36, %v252_v34  ;;  %vm267_vm8 = vweird.f32 %v5785_v36  ;;  %vm649_vm12 = vmor %vm647_vm11, %vm648_vm9  ;;  %v5676_v34 = vld [vmem:[%s8287_s2 + $0x18] sm:$0xff] }
 0x28e   :  { %v643_v40 = vmul.f32 %v5783_v35, %v642_v37  ;;  %vm268_vm10 = vmor %vm266_vm7, %vm267_vm8  ;;  %832 = vmatpush.bf16.msrb.mxu3 %v5676_v34 }
 0x28f   :  { %v674_v16 = vmul.f32 0.5, %v673_v13  ;;  %v262_v41 = vmul.f32 %v5785_v36, %v261_v38 }
 0x290   :  { %v644_v42 = vmul.f32 0.5, %v643_v40 }
 0x291   :  { %v675_v15 = vsub.f32 1.5, %v674_v16  ;;  %v263_v43 = vmul.f32 0.5, %v262_v41  ;;  %v5682_v41 = vld [vmem:[%s8289_s4 + $0x8] sm:$0xff] }
 0x292   :  { %v645_v44 = vsub.f32 1.5, %v644_v42  ;;  %v5681_v42 = vld [vmem:[%s8289_s4] sm:$0xff] }
 0x293   :  { %v676_v19 = vmul.f32 %v5781_v7, %v675_v15  ;;  %v264_v45 = vsub.f32 1.5, %v263_v43 }
 0x294   :  { %v646_v46 = vmul.f32 %v5783_v35, %v645_v44 }
 0x295   :  { %v680_v21 = vsel %vm679_vm6, %v5781_v7, %v676_v19  ;;  %v265_v47 = vmul.f32 %v5785_v36, %v264_v45 }
 0x296   :  { %v444_v22 = vpop.permute.xlu2 %443  ;;  %v681_v23 = vmul.f32 %v680_v21, %v660_v51  ;;  %v650_v49 = vsel %vm649_vm12, %v5783_v35, %v646_v46  ;;  %v104_v35 = vpack.c.bf16 %v100_v33, %v99_v31 }
 0x297   :  { %v467_v24 = vsel %vm122_vm0, %v444_v22, 0.0  ;;  %v269_v50 = vsel %vm268_vm10, %v5785_v36, %v265_v47  ;;  %v651_v51 = vmul.f32 %v650_v49, %v6404_v39 }
 0x298   :  { %703 = vrot.lane.b32.xlu0 %v681_v23, %s6280_s24  ;;  %468 = vadd.xlane.f32.xlu1 %v467_v24  ;;  %v340_v52 = vmul.f32 %v269_v50, %v6397_v32 }
 0x299   :  { %5136 = vmatmul.msk.bf16.vlgmr.msra.gmra.mxu3 %vm122_vm0, %v104_v35 }
 0x29a   :  { %v682_v53 = vadd.f32 %v651_v51, %v340_v52 }
 0x29c   :  { %v5146_v54 = vmul.f32 -1.442695, %v682_v53 }
 0x29e   :  { %5786 = vpow2.f32 %v5146_v54  ;;  %v6498_v54 = vld [vmem:[#allocation5 + $0x1] ss:$0 sm:$0xff] }
 0x2a0   :  { %775 = vrot.lane.b32.xlu0 %v6447_v27, %s6276_s23 }
 0x2a4   :  { %v5787_v55 = vpop.eup %5786 }
 0x2a5   :  { %v686_v56 = vadd.f32 1.0, %v5787_v55 }
 0x2a7   :  { %5788 = vrcp.f32 %v686_v56  ;;  %v698_v62 = vand.u32 2147483648, %v686_v56  ;;  %vm692_vm14 = vweird.f32 %v686_v56  ;;  %v696_v63 = vand.u32 2147483647, %v686_v56 }
 0x2a9   :  { %v699_v39 = vor.u32 1.1754944e-38, %v698_v62  ;;  %vm697_vm2 = vcmp.eq.f32.partialorder %v696_v63, 8.507059e+37 }
 0x2ad   :  { %v5789_v57 = vpop.eup %5788 }
 0x2ae   :  { %v688_v58 = vmul.f32 %v5789_v57, %v686_v56  ;;  %vm693_vm13 = vweird.f32 %v5789_v57 }
 0x2af   :  { %vm694_vm15 = vmor %vm692_vm14, %vm693_vm13 }
 0x2b0   :  { %v689_v59 = vsub.f32 1.0, %v688_v58  ;;  %v146_v58 = vpop.f32.mrf.mxu0 }
 0x2b2   :  { %v690_v60 = vmul.f32 %v5789_v57, %v689_v59  ;;  %v6503_v59 = vadd.f32 %v6375_v12, %v146_v58 }
 0x2b4   :  { %v691_v61 = vadd.f32 %v5789_v57, %v690_v60 }
 0x2b6   :  { %v695_v1 = vsel %vm694_vm15, %v5789_v57, %v691_v61  ;;  %v168_v61 = vsel %vm164_vm1, %v6503_v59, 0.0 }
 0x2b7   :  { %v700_v32 = vsel %vm697_vm2, %v699_v39, %v695_v1  ;;  %v752_v39 = vsel %vm164_vm1, %v6447_v27, 0.0 }
 0x2b8   :  { %v713_v43 = vsub.f32 1.0, %v700_v32 }
 0x2ba   :  { %v714_v45 = vmul.f32 %v713_v43, %v6367_v10 }
 0x30a   :  { %v704_v2 = vpop.permute.xlu0 %703 }
 0x30b   :  { %v706_v3 = vmul.f32 %v704_v2, %v700_v32  ;;  %v469_v6 = vpop.xlane.xlu1 %468 }
 0x30c   :  { %v491_v7 = vmul.f32 %v469_v6, %v6409_v48 }
 0x30d   :  { %708 = vrot.lane.b32.xlu2 %v706_v3, %s6281_s5 }
 0x30e   :  { %v499_v9 = vadd.f32 1e-05, %v491_v7 }
 0x310   :  { %5790 = vrsqrt.f32 %v499_v9  ;;  %vm513_vm4 = vweird.f32 %v499_v9 }
 0x312   :  { %v776_v4 = vpop.permute.xlu0 %775 }
 0x313   :  { %v778_v5 = vsel %vm122_vm0, %v776_v4, 0.0 }
 0x316   :  { %v5791_v13 = vpop.eup %5790 }
 0x317   :  { %v508_v16 = vmul.f32 %v5791_v13, %v499_v9  ;;  %vm514_vm3 = vweird.f32 %v5791_v13 }
 0x318   :  { %vm515_vm5 = vmor %vm513_vm4, %vm514_vm3 }
 0x319   :  { %v509_v15 = vmul.f32 %v5791_v13, %v508_v16 }
 0x31b   :  { %v510_v19 = vmul.f32 0.5, %v509_v15 }
 0x31c   :  { %v6494_v52 = vpop.f32.mrf.mxu3 }
 0x31d   :  { %v511_v21 = vsub.f32 1.5, %v510_v19 }
 0x31f   :  { %v512_v22 = vmul.f32 %v5791_v13, %v511_v21 }
 0x321   :  { %v516_v23 = vsel %vm515_vm5, %v5791_v13, %v512_v22 }
 0x322   :  { %v587_v24 = vmul.f32 %v516_v23, %v6432_v0  ;;  %v5675_v0 = vld [vmem:[%s8287_s2 + $0x10] sm:$0xff] }
 0x323   :  { %833 = vmatpush.bf16.msrb.mxu3 %v5675_v0 }
 0x324   :  { %v6496_v53 = vpop.f32.mrf.mxu3 }
 0x327   :  { %1162 = vmatpush.bf16.msra.mxu3 %v5682_v41 }
 0x32b   :  { %1163 = vmatpush.bf16.msra.mxu3 %v5681_v42 }
 0x336   :  { %779 = vadd.xlane.f32.xlu2 %v778_v5 }
 0x367   :  { %v709_v26 = vpop.permute.xlu2 %708 }
 0x368   :  { %v711_v28 = vadd.f32 %v709_v26, %v587_v24 }
 0x36a   :  { %5792 = vtanh.f32 %v711_v28 }
 0x370   :  { %v5793_v30 = vpop.eup %5792 }
 0x371   :  { %716 = vrot.lane.b32.xlu1 %v5793_v30, %s6276_s23 }
 0x3a9   :  { %v780_v36 = vpop.xlane.xlu2 %779 }
 0x3aa   :  { %v781_v37 = vmul.f32 %v780_v36, %v6409_v48 }
 0x3ac   :  { %v6475_v38 = vsub.f32 %v6447_v27, %v781_v37 }
 0x3ae   :  { %v783_v40 = vmul.f32 %v6475_v38, %v6475_v38 }
 0x3b0   :  { %785 = vrot.lane.b32.xlu1 %v783_v40, %s6276_s23 }
 0x3e3   :  { %v717_v44 = vpop.permute.xlu1 %716 }
 0x3e4   :  { %v719_v46 = vmul.f32 %v717_v44, %v700_v32 }
 0x3e6   :  { %v6487_v47 = vadd.f32 %v719_v46, %v714_v45 }
 0x3e8   :  { %v804_v49 = vpack.c.bf16 %v6487_v47, %v6487_v47 }
 0x3ea   :  { %5172 = vmatmul.msk.bf16.vlgmr.msrb.gmra.mxu3 %vm122_vm0, %v804_v49 }
 0x3fa   :  { %5209 = vmatmul.msk.bf16.vlgmr.msra.gmra.mxu3 %vm122_vm0, %v804_v49 }
 0x422   :  { %v786_v50 = vpop.permute.xlu1 %785 }
 0x423   :  { %v788_v51 = vsel %vm122_vm0, %v786_v50, 0.0 }
 0x424   :  { %789 = vadd.xlane.f32.xlu2 %v788_v51 }
 0x46d   :  { %v835_v55 = vpop.f32.mrf.mxu3 }
 0x46e   :  { %v836_v56 = vadd.f32 %v6498_v54, %v835_v55 }
 0x470   :  { %v839_v57 = vsel %vm164_vm1, %v836_v56, 0.0 }
 0x471   :  { %840 = vadd.xlane.f32.xlu1 %v839_v57 }
 0x475   :  { %v837_v60 = vpop.f32.mrf.mxu3 }
 0x479   :  { %169 = vadd.xlane.f32.xlu1 %v168_v61 }
 0x47d   :  { %v1165_v62 = vpop.f32.mrf.mxu3 }
 0x47e   :  { %v1166_v63 = vadd.f32 %v6388_v18, %v1165_v62 }
 0x480   :  { %1192 = vrot.lane.b32.xlu0 %v1166_v63, %s6276_s23  ;;  %v1169_v7 = vsel %vm164_vm1, %v1166_v63, 0.0 }
 0x485   :  { %v1167_v1 = vpop.f32.mrf.mxu3 }
 0x488   :  { %862 = vrot.lane.b32.xlu0 %v836_v56, %s6276_s23 }
 0x497   :  { %v790_v0 = vpop.xlane.xlu2 %789 }
 0x498   :  { %v791_v49 = vmul.f32 %v790_v0, %v6409_v48 }
 0x49a   :  { %v792_v50 = vadd.f32 1e-05, %v791_v49 }
 0x49c   :  { %5794 = vrsqrt.f32 %v792_v50  ;;  %vm799_vm6 = vweird.f32 %v792_v50 }
 0x4a2   :  { %v5795_v51 = vpop.eup %5794 }
 0x4a3   :  { %v794_v55 = vmul.f32 %v5795_v51, %v792_v50  ;;  %vm800_vm7 = vweird.f32 %v5795_v51 }
 0x4a4   :  { %vm801_vm8 = vmor %vm799_vm6, %vm800_vm7 }
 0x4a5   :  { %v795_v57 = vmul.f32 %v5795_v51, %v794_v55 }
 0x4a7   :  { %v796_v58 = vmul.f32 0.5, %v795_v57 }
 0x4a9   :  { %v797_v60 = vsub.f32 1.5, %v796_v58 }
 0x4ab   :  { %v798_v61 = vmul.f32 %v5795_v51, %v797_v60 }
 0x4ad   :  { %v802_v62 = vsel %vm801_vm8, %v5795_v51, %v798_v61 }
 0x4b2   :  { %753 = vadd.xlane.f32.xlu0 %v752_v39 }
 0x4c6   :  { %358 = vrot.lane.b32.xlu0 %v6503_v59, %s6276_s23 }
 0x4e4   :  { %v841_v12 = vpop.xlane.xlu1 %840 }
 0x4e5   :  { %v842_v32 = vmul.f32 %v841_v12, %v6393_v29 }
 0x4e7   :  { %v6515_v2 = vsub.f32 %v836_v56, %v842_v32 }
 0x4e9   :  { %v844_v18 = vmul.f32 %v6515_v2, %v6515_v2 }
 0x4eb   :  { %v845_v3 = vsel %vm164_vm1, %v844_v18, 0.0  ;;  %v5678_v18 = vld [vmem:[%s8289_s4 + $0x28] sm:$0xff] }
 0x4ec   :  { %846 = vadd.xlane.f32.xlu1 %v845_v3  ;;  %v170_v4 = vpop.xlane.xlu1 %169  ;;  %954 = vmatpush.bf16.msra.mxu1 %v5678_v18 }
 0x4ed   :  { %v197_v5 = vmul.f32 %v6393_v29, %v170_v4  ;;  %v5677_v4 = vld [vmem:[%s8289_s4 + $0x20] sm:$0xff] }
 0x4ef   :  { %v6522_v6 = vsub.f32 %v6503_v59, %v197_v5 }
 0x4f0   :  { %1170 = vadd.xlane.f32.xlu0 %v1169_v7  ;;  %955 = vmatpush.bf16.msra.mxu1 %v5677_v4 }
 0x4f1   :  { %v213_v9 = vmul.f32 %v6522_v6, %v6522_v6 }
 0x4f2   :  { %v1193_v16 = vpop.permute.xlu0 %1192 }
 0x4f3   :  { %v223_v13 = vsel %vm164_vm1, %v213_v9, 0.0  ;;  %v1195_v28 = vsel %vm122_vm0, %v1193_v16, 0.0  ;;  %5186 = vmatmul.msk.bf16.vlgmr.msra.gmra.mxu1 %vm122_vm0, %v6371_v11 }
 0x4f8   :  { %224 = vadd.xlane.f32.xlu0 %v223_v13 }
 0x4fa   :  { %v863_v15 = vpop.permute.xlu0 %862 }
 0x4fb   :  { %v865_v26 = vsel %vm122_vm0, %v863_v15, 0.0 }
 0x525   :  { %v754_v19 = vpop.xlane.xlu0 %753 }
 0x526   :  { %v755_v21 = vmul.f32 %v754_v19, %v6393_v29 }
 0x528   :  { %v6530_v22 = vsub.f32 %v6447_v27, %v755_v21 }
 0x52a   :  { %v757_v23 = vmul.f32 %v6530_v22, %v6530_v22 }
 0x52c   :  { %v758_v24 = vsel %vm164_vm1, %v757_v23, 0.0 }
 0x52d   :  { %759 = vadd.xlane.f32.xlu2 %v758_v24 }
 0x535   :  { %866 = vadd.xlane.f32.xlu2 %v865_v26 }
 0x538   :  { %v359_v30 = vpop.permute.xlu0 %358 }
 0x53d   :  { %1196 = vadd.xlane.f32.xlu2 %v1195_v28 }
 0x55f   :  { %v847_v1 = vpop.xlane.xlu1 %846 }
 0x560   :  { %v848_v12 = vmul.f32 %v847_v1, %v6393_v29 }
 0x562   :  { %v849_v3 = vadd.f32 1e-05, %v848_v12 }
 0x563   :  { %v1171_v31 = vpop.xlane.xlu0 %1170 }
 0x564   :  { %v1172_v33 = vmul.f32 %v1171_v31, %v6393_v29  ;;  %vm856_vm13 = vweird.f32 %v849_v3 }
 0x566   :  { %v6538_v34 = vsub.f32 %v1166_v63, %v1172_v33 }
 0x568   :  { %v1174_v27 = vmul.f32 %v6538_v34, %v6538_v34 }
 0x56a   :  { %v1175_v35 = vsel %vm164_vm1, %v1174_v27, 0.0 }
 0x56b   :  { %1176 = vadd.xlane.f32.xlu0 %v1175_v35 }
 0x5a0   :  { %v760_v36 = vpop.xlane.xlu2 %759 }
 0x5a1   :  { %v761_v39 = vmul.f32 %v760_v36, %v6393_v29 }
 0x5a3   :  { %v762_v32 = vadd.f32 1e-05, %v761_v39 }
 0x5a5   :  { %5796 = vrsqrt.f32 %v762_v32  ;;  %vm769_vm11 = vweird.f32 %v762_v32 }
 0x5a6   :  { %5798 = vrsqrt.f32 %v849_v3 }
 0x5a8   :  { %v867_v37 = vpop.xlane.xlu2 %866 }
 0x5a9   :  { %v868_v40 = vmul.f32 %v867_v37, %v6409_v48 }
 0x5ab   :  { %v6544_v41 = vsub.f32 %v836_v56, %v868_v40  ;;  %v383_v56 = vsel %vm122_vm0, %v359_v30, 0.0 }
 0x5ad   :  { %v870_v42 = vmul.f32 %v6544_v41, %v6544_v41 }
 0x5af   :  { %872 = vrot.lane.b32.xlu1 %v870_v42, %s6276_s23 }
 0x5b0   :  { %v1197_v43 = vpop.xlane.xlu2 %1196 }
 0x5b1   :  { %v1198_v44 = vmul.f32 %v1197_v43, %v6409_v48 }
 0x5b3   :  { %v6550_v45 = vsub.f32 %v1166_v63, %v1198_v44  ;;  %v803_v63 = vmul.f32 %v802_v62, %v6475_v38  ;;  %v5797_v38 = vpop.eup %5796 }
 0x5b4   :  { %v5799_v5 = vpop.eup %5798  ;;  %v764_v7 = vmul.f32 %v5797_v38, %v762_v32  ;;  %vm770_vm9 = vweird.f32 %v5797_v38  ;;  %v225_v32 = vpop.xlane.xlu0 %224 }
 0x5b5   :  { %v1200_v46 = vmul.f32 %v6550_v45, %v6550_v45  ;;  %v851_v9 = vmul.f32 %v5799_v5, %v849_v3  ;;  %vm857_vm10 = vweird.f32 %v5799_v5  ;;  %vm771_vm12 = vmor %vm769_vm11, %vm770_vm9 }
 0x5b6   :  { %v765_v15 = vmul.f32 %v5797_v38, %v764_v7  ;;  %vm858_vm14 = vmor %vm856_vm13, %vm857_vm10 }
 0x5b7   :  { %1202 = vrot.lane.b32.xlu2 %v1200_v46, %s6276_s23  ;;  %v852_v19 = vmul.f32 %v5799_v5, %v851_v9 }
 0x5b8   :  { %v766_v21 = vmul.f32 0.5, %v765_v15  ;;  %v245_v15 = vmul.f32 %v225_v32, %v6393_v29 }
 0x5b9   :  { %v853_v23 = vmul.f32 0.5, %v852_v19 }
 0x5ba   :  { %v767_v24 = vsub.f32 1.5, %v766_v21  ;;  %v253_v21 = vadd.f32 1e-05, %v245_v15 }
 0x5bb   :  { %v854_v26 = vsub.f32 1.5, %v853_v23 }
 0x5bc   :  { %v768_v28 = vmul.f32 %v5797_v38, %v767_v24 }
 0x5bd   :  { %v855_v30 = vmul.f32 %v5799_v5, %v854_v26 }
 0x5be   :  { %v772_v33 = vsel %vm771_vm12, %v5797_v38, %v768_v28  ;;  %vm276_vm12 = vweird.f32 %v253_v21 }
 0x5bf   :  { %v859_v27 = vsel %vm858_vm14, %v5799_v5, %v855_v30  ;;  %v773_v35 = vmul.f32 %v772_v33, %v6530_v22 }
 0x5c0   :  { %v860_v0 = vmul.f32 %v859_v27, %v6515_v2  ;;  %v957_v27 = vpop.f32.mrf.mxu1 }
 0x5c2   :  { %v891_v36 = vadd.f32 %v860_v0, %v773_v35 }
 0x5c4   :  { %v5173_v37 = vmul.f32 -1.442695, %v891_v36 }
 0x5c6   :  { %5800 = vpow2.f32 %v5173_v37 }
 0x5cc   :  { %v5801_v40 = vpop.eup %5800 }
 0x5cd   :  { %v895_v42 = vadd.f32 1.0, %v5801_v40 }
 0x5cf   :  { %5802 = vrcp.f32 %v895_v42  ;;  %vm901_vm2 = vweird.f32 %v895_v42  ;;  %v905_v2 = vand.u32 2147483647, %v895_v42 }
 0x5d1   :  { %vm906_vm4 = vcmp.eq.f32.partialorder %v905_v2, 8.507059e+37 }
 0x5d5   :  { %v5803_v43 = vpop.eup %5802 }
 0x5d6   :  { %v897_v44 = vmul.f32 %v5803_v43, %v895_v42  ;;  %vm902_vm15 = vweird.f32 %v5803_v43 }
 0x5d7   :  { %vm903_vm3 = vmor %vm901_vm2, %vm902_vm15 }
 0x5d8   :  { %v898_v46 = vsub.f32 1.0, %v897_v44 }
 0x5da   :  { %v899_v49 = vmul.f32 %v5803_v43, %v898_v46 }
 0x5dc   :  { %v900_v55 = vadd.f32 %v5803_v43, %v899_v49 }
 0x5de   :  { %v904_v58 = vsel %vm903_vm3, %v5803_v43, %v900_v55  ;;  %v1177_v5 = vpop.xlane.xlu0 %1176 }
 0x5df   :  { %v1178_v9 = vmul.f32 %v1177_v5, %v6393_v29 }
 0x5e0   :  { %384 = vadd.xlane.f32.xlu2 %v383_v56  ;;  %v907_v56 = vand.u32 2147483648, %v895_v42  ;;  %v959_v42 = vpop.f32.mrf.mxu1 }
 0x5e1   :  { %v1179_v19 = vadd.f32 1e-05, %v1178_v9 }
 0x5e2   :  { %v908_v60 = vor.u32 1.1754944e-38, %v907_v56 }
 0x5e3   :  { %vm1186_vm10 = vweird.f32 %v1179_v19 }
 0x5e4   :  { %v6580_v62 = vsel %vm906_vm4, %v908_v60, %v904_v58 }
 0x5f8   :  { %912 = vrot.lane.b32.xlu2 %v803_v63, %s6280_s24 }
 0x611   :  { %v1203_v13 = vpop.permute.xlu2 %1202 }
 0x612   :  { %v1205_v16 = vsel %vm122_vm0, %v1203_v13, 0.0 }
 0x613   :  { %1206 = vadd.xlane.f32.xlu1 %v1205_v16 }
 0x621   :  { %v873_v31 = vpop.permute.xlu1 %872 }
 0x622   :  { %v875_v11 = vsel %vm122_vm0, %v873_v31, 0.0 }
 0x623   :  { %876 = vadd.xlane.f32.xlu0 %v875_v11 }
 0x653   :  { %v385_v50 = vpop.xlane.xlu2 %384 }
 0x654   :  { %v412_v51 = vmul.f32 %v6409_v48, %v385_v50 }
 0x656   :  { %v6575_v22 = vsub.f32 %v6503_v59, %v412_v51 }
 0x658   :  { %v428_v57 = vmul.f32 %v6575_v22, %v6575_v22 }
 0x65a   :  { %445 = vrot.lane.b32.xlu0 %v428_v57, %s6276_s23 }
 0x65b   :  { %v913_v61 = vpop.permute.xlu2 %912 }
 0x65c   :  { %v915_v63 = vmul.f32 %v913_v61, %v6580_v62  ;;  %v6592_v61 = vld [vmem:[#allocation7 + $0x2] ss:$0 sm:$0xff] }
 0x65e   :  { %917 = vrot.lane.b32.xlu1 %v915_v63, %s6281_s5 }
 0x686   :  { %v1207_v59 = vpop.xlane.xlu1 %1206 }
 0x687   :  { %v1208_v1 = vmul.f32 %v1207_v59, %v6409_v48 }
 0x689   :  { %v1209_v39 = vadd.f32 1e-05, %v1208_v1 }
 0x68b   :  { %5804 = vrsqrt.f32 %v1209_v39  ;;  %vm1216_vm6 = vweird.f32 %v1209_v39 }
 0x68c   :  { %5806 = vrsqrt.f32 %v1179_v19 }
 0x68d   :  { %5808 = vrsqrt.f32 %v253_v21 }
 0x691   :  { %v5805_v12 = vpop.eup %5804 }
 0x692   :  { %v1211_v18 = vmul.f32 %v5805_v12, %v1209_v39  ;;  %vm1217_vm5 = vweird.f32 %v5805_v12  ;;  %v5807_v26 = vpop.eup %5806 }
 0x693   :  { %vm1218_vm7 = vmor %vm1216_vm6, %vm1217_vm5  ;;  %v5809_v30 = vpop.eup %5808  ;;  %v1181_v31 = vmul.f32 %v5807_v26, %v1179_v19  ;;  %vm1187_vm8 = vweird.f32 %v5807_v26 }
 0x694   :  { %v1212_v3 = vmul.f32 %v5805_v12, %v1211_v18  ;;  %v271_v11 = vmul.f32 %v5809_v30, %v253_v21  ;;  %vm277_vm9 = vweird.f32 %v5809_v30  ;;  %vm1188_vm11 = vmor %vm1186_vm10, %vm1187_vm8 }
 0x695   :  { %v1182_v33 = vmul.f32 %v5807_v26, %v1181_v31  ;;  %vm278_vm13 = vmor %vm276_vm12, %vm277_vm9  ;;  %v5679_v31 = vld [vmem:[%s8287_s2 + $0x20] sm:$0xff] }
 0x696   :  { %v1213_v4 = vmul.f32 0.5, %v1212_v3  ;;  %v877_v23 = vpop.xlane.xlu0 %876 }
 0x697   :  { %v878_v24 = vmul.f32 %v877_v23, %v6409_v48  ;;  %v1183_v0 = vmul.f32 0.5, %v1182_v33  ;;  %v922_v33 = vsub.f32 1.0, %v6580_v62 }
 0x698   :  { %v1214_v38 = vsub.f32 1.5, %v1213_v4 }
 0x699   :  { %v879_v28 = vadd.f32 1e-05, %v878_v24  ;;  %v1184_v40 = vsub.f32 1.5, %v1183_v0 }
 0x69a   :  { %v1215_v7 = vmul.f32 %v5805_v12, %v1214_v38 }
 0x69b   :  { %5810 = vrsqrt.f32 %v879_v28  ;;  %v1185_v46 = vmul.f32 %v5807_v26, %v1184_v40  ;;  %vm886_vm15 = vweird.f32 %v879_v28 }
 0x69c   :  { %v1219_v13 = vsel %vm1218_vm7, %v5805_v12, %v1215_v7  ;;  %v5684_v7 = vld [vmem:[%s8289_s4 + $0x18] sm:$0xff] }
 0x69d   :  { %v1220_v16 = vmul.f32 %v1219_v13, %v6550_v45  ;;  %v272_v45 = vmul.f32 %v5809_v30, %v271_v11  ;;  %v1189_v51 = vsel %vm1188_vm11, %v5807_v26, %v1185_v46  ;;  %1282 = vmatpush.bf16.msrb.mxu1 %v5684_v7  ;;  %v5683_v11 = vld [vmem:[%s8289_s4 + $0x10] sm:$0xff] }
 0x69e   :  { %v1190_v56 = vmul.f32 %v1189_v51, %v6538_v34  ;;  %v6597_v34 = vadd.f32 %v6592_v61, %v957_v27 }
 0x69f   :  { %1242 = vrot.lane.b32.xlu2 %v1220_v16, %s6280_s24  ;;  %v273_v36 = vmul.f32 0.5, %v272_v45  ;;  %v923_v45 = vmul.f32 %v922_v33, %v6367_v10 }
 0x6a0   :  { %v961_v18 = vsel %vm164_vm1, %v6597_v34, 0.0 }
 0x6a1   :  { %v5811_v35 = vpop.eup %5810  ;;  %v274_v43 = vsub.f32 1.5, %v273_v36  ;;  %1283 = vmatpush.bf16.msrb.mxu1 %v5683_v11 }
 0x6a2   :  { %v881_v37 = vmul.f32 %v5811_v35, %v879_v28  ;;  %vm887_vm14 = vweird.f32 %v5811_v35 }
 0x6a3   :  { %v275_v49 = vmul.f32 %v5809_v30, %v274_v43  ;;  %vm888_vm2 = vmor %vm886_vm15, %vm887_vm14 }
 0x6a4   :  { %v882_v44 = vmul.f32 %v5811_v35, %v881_v37 }
 0x6a5   :  { %v279_v55 = vsel %vm278_vm13, %v5809_v30, %v275_v49 }
 0x6a6   :  { %v883_v50 = vmul.f32 0.5, %v882_v44  ;;  %v341_v57 = vmul.f32 %v279_v55, %v6522_v6 }
 0x6a8   :  { %v884_v2 = vsub.f32 1.5, %v883_v50  ;;  %v1221_v58 = vadd.f32 %v1190_v56, %v341_v57 }
 0x6aa   :  { %v885_v60 = vmul.f32 %v5811_v35, %v884_v2  ;;  %v5210_v63 = vmul.f32 -1.442695, %v1221_v58 }
 0x6ac   :  { %v889_v1 = vsel %vm888_vm2, %v5811_v35, %v885_v60  ;;  %5812 = vpow2.f32 %v5210_v63 }
 0x6ad   :  { %v890_v12 = vmul.f32 %v889_v1, %v6544_v41  ;;  %v5680_v41 = vld [vmem:[%s8287_s2 + $0x28] sm:$0xff] }
 0x6ae   :  { %1041 = vmatpush.bf16.msra.mxu2 %v5680_v41 }
 0x6b2   :  { %v5813_v3 = vpop.eup %5812  ;;  %1042 = vmatpush.bf16.msra.mxu2 %v5679_v31 }
 0x6b3   :  { %v1225_v38 = vadd.f32 1.0, %v5813_v3 }
 0x6b5   :  { %v1237_v19 = vand.u32 2147483648, %v1225_v38  ;;  %vm1231_vm4 = vweird.f32 %v1225_v38  ;;  %v1235_v21 = vand.u32 2147483647, %v1225_v38 }
 0x6b7   :  { %v1238_v24 = vor.u32 1.1754944e-38, %v1237_v19  ;;  %vm1236_vm6 = vcmp.eq.f32.partialorder %v1235_v21, 8.507059e+37 }
 0x6cc   :  { %v446_v59 = vpop.permute.xlu0 %445 }
 0x6cd   :  { %v470_v39 = vsel %vm122_vm0, %v446_v59, 0.0 }
 0x6ce   :  { %471 = vadd.xlane.f32.xlu0 %v470_v39 }
 0x6d0   :  { %v918_v6 = vpop.permute.xlu1 %917 }
 0x6d1   :  { %v920_v32 = vadd.f32 %v918_v6, %v890_v12  ;;  %v5685_v12 = vld [vmem:[%s8287_s2 + $0x10] sm:$0xff] }
 0x6d3   :  { %5814 = vtanh.f32 %v920_v32  ;;  %v5692_v32 = vld [vmem:[%s8289_s4 + $0x8] sm:$0xff] }
 0x6d4   :  { %5816 = vrcp.f32 %v1225_v38 }
 0x6d6   :  { %962 = vadd.xlane.f32.xlu0 %v961_v18  ;;  %v5691_v18 = vld [vmem:[%s8289_s4] sm:$0xff] }
 0x6d9   :  { %v5815_v4 = vpop.eup %5814 }
 0x6da   :  { %925 = vrot.lane.b32.xlu2 %v5815_v4, %s6276_s23  ;;  %v5817_v5 = vpop.eup %5816 }
 0x6db   :  { %v1227_v9 = vmul.f32 %v5817_v5, %v1225_v38  ;;  %vm1232_vm3 = vweird.f32 %v5817_v5 }
 0x6dc   :  { %vm1233_vm5 = vmor %vm1231_vm4, %vm1232_vm3 }
 0x6dd   :  { %v1228_v13 = vsub.f32 1.0, %v1227_v9 }
 0x6df   :  { %v1229_v16 = vmul.f32 %v5817_v5, %v1228_v13 }
 0x6e1   :  { %v1230_v15 = vadd.f32 %v5817_v5, %v1229_v16 }
 0x6e3   :  { %v1234_v23 = vsel %vm1233_vm5, %v5817_v5, %v1230_v15 }
 0x6e4   :  { %v1239_v26 = vsel %vm1236_vm6, %v1238_v24, %v1234_v23  ;;  %v6668_v24 = vld [vmem:[#allocation5 + $0x2] ss:$0 sm:$0xff] }
 0x6e5   :  { %v1252_v5 = vsub.f32 1.0, %v1239_v26 }
 0x6e7   :  { %v1253_v7 = vmul.f32 %v1252_v5, %v6487_v47  ;;  %v6712_v5 = vld [vmem:[#allocation5] ss:$0 sm:$0xff] }
 0x6f9   :  { %v1243_v28 = vpop.permute.xlu2 %1242 }
 0x6fa   :  { %v1245_v30 = vmul.f32 %v1243_v28, %v1239_v26 }
 0x6fc   :  { %1247 = vrot.lane.b32.xlu1 %v1245_v30, %s6281_s5 }
 0x704   :  { %984 = vrot.lane.b32.xlu1 %v6597_v34, %s6276_s23 }
 0x734   :  { %v926_v27 = vpop.permute.xlu2 %925 }
 0x735   :  { %v928_v35 = vmul.f32 %v926_v27, %v6580_v62 }
 0x737   :  { %v6620_v0 = vadd.f32 %v928_v35, %v923_v45 }
 0x739   :  { %v1013_v36 = vpack.c.bf16 %v6620_v0, %v6620_v0 }
 0x73b   :  { %5199 = vmatmul.msk.bf16.vlgmr.msra.gmra.mxu2 %vm122_vm0, %v1013_v36  ;;  %5223 = vmatmul.msk.bf16.vlgmr.msrb.gmra.mxu1 %vm122_vm0, %v1013_v36 }
 0x741   :  { %v472_v37 = vpop.xlane.xlu0 %471 }
 0x742   :  { %v492_v40 = vmul.f32 %v472_v37, %v6409_v48 }
 0x744   :  { %v500_v42 = vadd.f32 1e-05, %v492_v40 }
 0x746   :  { %5818 = vrsqrt.f32 %v500_v42  ;;  %vm523_vm8 = vweird.f32 %v500_v42 }
 0x749   :  { %v963_v57 = vpop.xlane.xlu0 %962 }
 0x74a   :  { %v964_v60 = vmul.f32 %v963_v57, %v6393_v29 }
 0x74c   :  { %v5819_v43 = vpop.eup %5818  ;;  %v6632_v59 = vsub.f32 %v6597_v34, %v964_v60 }
 0x74d   :  { %v518_v44 = vmul.f32 %v5819_v43, %v500_v42  ;;  %vm524_vm7 = vweird.f32 %v5819_v43  ;;  %v6681_v42 = vld [vmem:[#allocation7] ss:$0 sm:$0xff] }
 0x74e   :  { %vm525_vm9 = vmor %vm523_vm8, %vm524_vm7  ;;  %v966_v1 = vmul.f32 %v6632_v59, %v6632_v59 }
 0x74f   :  { %v519_v46 = vmul.f32 %v5819_v43, %v518_v44 }
 0x750   :  { %v967_v39 = vsel %vm164_vm1, %v966_v1, 0.0 }
 0x751   :  { %v520_v10 = vmul.f32 0.5, %v519_v46 }
 0x753   :  { %v521_v49 = vsub.f32 1.5, %v520_v10 }
 0x755   :  { %v522_v62 = vmul.f32 %v5819_v43, %v521_v49 }
 0x757   :  { %v526_v50 = vsel %vm525_vm9, %v5819_v43, %v522_v62 }
 0x758   :  { %v588_v51 = vmul.f32 %v526_v50, %v6575_v22  ;;  %v5686_v22 = vld [vmem:[%s8287_s2 + $0x18] sm:$0xff] }
 0x759   :  { %1367 = vmatpush.bf16.msrb.mxu2 %v5686_v22 }
 0x75d   :  { %1368 = vmatpush.bf16.msrb.mxu2 %v5685_v12 }
 0x761   :  { %1697 = vmatpush.bf16.msra.mxu2 %v5692_v32 }
 0x765   :  { %1698 = vmatpush.bf16.msra.mxu2 %v5691_v18 }
 0x76e   :  { %v1248_v55 = vpop.permute.xlu1 %1247 }
 0x76f   :  { %v1250_v56 = vadd.f32 %v1248_v55, %v588_v51 }
 0x771   :  { %5820 = vtanh.f32 %v1250_v56 }
 0x776   :  { %v985_v58 = vpop.permute.xlu1 %984 }
 0x777   :  { %v5821_v2 = vpop.eup %5820  ;;  %v987_v63 = vsel %vm122_vm0, %v985_v58, 0.0 }
 0x778   :  { %1255 = vrot.lane.b32.xlu2 %v5821_v2, %s6276_s23 }
 0x7a1   :  { %988 = vadd.xlane.f32.xlu2 %v987_v63 }
 0x7a9   :  { %968 = vadd.xlane.f32.xlu2 %v967_v39 }
 0x7b8   :  { %v1285_v6 = vpop.f32.mrf.mxu1 }
 0x7b9   :  { %v6664_v47 = vadd.f32 %v6444_v25, %v1285_v6 }
 0x7bb   :  { %v1289_v58 = vsel %vm164_vm1, %v6664_v47, 0.0 }
 0x7be   :  { %v1044_v3 = vpop.f32.mrf.mxu2 }
 0x7c0   :  { %v1287_v4 = vpop.f32.mrf.mxu1 }
 0x7c6   :  { %v1046_v38 = vpop.f32.mrf.mxu2 }
 0x7d2   :  { %v1256_v41 = vpop.permute.xlu2 %1255 }
 0x7d3   :  { %v1258_v9 = vmul.f32 %v1256_v41, %v1239_v26  ;;  %v1045_v26 = vadd.f32 %v6668_v24, %v1044_v3  ;;  %v6716_v41 = vadd.f32 %v6712_v5, %v6377_v14 }
 0x7d5   :  { %v6650_v13 = vadd.f32 %v1258_v9, %v1253_v7 }
 0x7d7   :  { %v1341_v16 = vpack.c.bf16 %v6650_v13, %v6650_v13 }
 0x7d9   :  { %5236 = vmatmul.msk.bf16.vlgmr.msrb.gmra.mxu2 %vm122_vm0, %v1341_v16 }
 0x7e9   :  { %5273 = vmatmul.msk.bf16.vlgmr.msra.gmra.mxu2 %vm122_vm0, %v1341_v16 }
 0x814   :  { %v989_v15 = vpop.xlane.xlu2 %988 }
 0x815   :  { %v990_v19 = vmul.f32 %v989_v15, %v6409_v48 }
 0x817   :  { %v6658_v21 = vsub.f32 %v6597_v34, %v990_v19  ;;  %v1048_v34 = vsel %vm164_vm1, %v1045_v26, 0.0 }
 0x819   :  { %v992_v23 = vmul.f32 %v6658_v21, %v6658_v21 }
 0x81b   :  { %994 = vrot.lane.b32.xlu1 %v992_v23, %s6276_s23 }
 0x81c   :  { %v969_v55 = vpop.xlane.xlu2 %968 }
 0x823   :  { %1312 = vrot.lane.b32.xlu1 %v6664_v47, %s6276_s23 }
 0x82b   :  { %1071 = vrot.lane.b32.xlu1 %v1045_v26, %s6276_s23 }
 0x855   :  { %1049 = vadd.xlane.f32.xlu1 %v1048_v34 }
 0x85c   :  { %v1370_v28 = vpop.f32.mrf.mxu2 }
 0x85d   :  { %v6677_v37 = vadd.f32 %v6498_v54, %v1370_v28 }
 0x85f   :  { %v1374_v40 = vsel %vm164_vm1, %v6677_v37, 0.0 }
 0x864   :  { %v1372_v30 = vpop.f32.mrf.mxu2 }
 0x86c   :  { %v1700_v31 = vpop.f32.mrf.mxu2 }
 0x86d   :  { %v6684_v43 = vadd.f32 %v6681_v42, %v1700_v31 }
 0x874   :  { %v1702_v11 = vpop.f32.mrf.mxu2 }
 0x88d   :  { %v995_v33 = vpop.permute.xlu1 %994 }
 0x88e   :  { %v997_v25 = vsel %vm122_vm0, %v995_v33, 0.0 }
 0x88f   :  { %998 = vadd.xlane.f32.xlu0 %v997_v25 }
 0x895   :  { %v1313_v27 = vpop.permute.xlu1 %1312 }
 0x896   :  { %v1315_v45 = vsel %vm122_vm0, %v1313_v27, 0.0 }
 0x897   :  { %1316 = vadd.xlane.f32.xlu0 %v1315_v45 }
 0x89d   :  { %v1072_v35 = vpop.permute.xlu1 %1071 }
 0x89e   :  { %v1074_v36 = vsel %vm122_vm0, %v1072_v35, 0.0 }
 0x89f   :  { %1075 = vadd.xlane.f32.xlu2 %v1074_v36 }
 0x8a7   :  { %1375 = vadd.xlane.f32.xlu2 %v1374_v40 }
 0x8bf   :  { %1727 = vrot.lane.b32.xlu2 %v6684_v43, %s6276_s23 }
 0x8c8   :  { %v1050_v44 = vpop.xlane.xlu1 %1049 }
 0x8c9   :  { %v1051_v46 = vmul.f32 %v1050_v44, %v6393_v29 }
 0x8cb   :  { %v6689_v10 = vsub.f32 %v1045_v26, %v1051_v46 }
 0x8cd   :  { %v1053_v54 = vmul.f32 %v6689_v10, %v6689_v10 }
 0x8cf   :  { %v1054_v49 = vsel %vm164_vm1, %v1053_v54, 0.0 }
 0x8d0   :  { %1055 = vadd.xlane.f32.xlu0 %v1054_v49 }
 0x8e4   :  { %1397 = vrot.lane.b32.xlu0 %v6677_v37, %s6276_s23 }
 0x902   :  { %v999_v62 = vpop.xlane.xlu0 %998 }
 0x903   :  { %v1000_v50 = vmul.f32 %v999_v62, %v6409_v48 }
 0x905   :  { %v1001_v51 = vadd.f32 1e-05, %v1000_v50 }
 0x907   :  { %5822 = vrsqrt.f32 %v1001_v51  ;;  %vm1008_vm11 = vweird.f32 %v1001_v51 }
 0x90a   :  { %v1317_v56 = vpop.xlane.xlu0 %1316 }
 0x90b   :  { %v1318_v2 = vmul.f32 %v1317_v56, %v6409_v48 }
 0x90d   :  { %v5823_v57 = vpop.eup %5822  ;;  %v6701_v60 = vsub.f32 %v6664_v47, %v1318_v2 }
 0x90e   :  { %v1003_v63 = vmul.f32 %v5823_v57, %v1001_v51  ;;  %1290 = vadd.xlane.f32.xlu0 %v1289_v58  ;;  %vm1009_vm10 = vweird.f32 %v5823_v57 }
 0x90f   :  { %v1320_v1 = vmul.f32 %v6701_v60, %v6701_v60  ;;  %vm1010_vm12 = vmor %vm1008_vm11, %vm1009_vm10 }
 0x910   :  { %v1004_v22 = vmul.f32 %v5823_v57, %v1003_v63 }
 0x911   :  { %1322 = vrot.lane.b32.xlu1 %v1320_v1, %s6276_s23 }
 0x912   :  { %v1005_v39 = vmul.f32 0.5, %v1004_v22  ;;  %v1076_v12 = vpop.xlane.xlu2 %1075 }
 0x913   :  { %v1077_v6 = vmul.f32 %v1076_v12, %v6409_v48 }
 0x914   :  { %v1006_v32 = vsub.f32 1.5, %v1005_v39 }
 0x915   :  { %v6707_v18 = vsub.f32 %v1045_v26, %v1077_v6  ;;  %v970_v26 = vmul.f32 %v969_v55, %v6393_v29 }
 0x916   :  { %v1007_v4 = vmul.f32 %v5823_v57, %v1006_v32 }
 0x917   :  { %v1079_v3 = vmul.f32 %v6707_v18, %v6707_v18  ;;  %v971_v14 = vadd.f32 1e-05, %v970_v26 }
 0x918   :  { %v1011_v38 = vsel %vm1010_vm12, %v5823_v57, %v1007_v4 }
 0x919   :  { %1081 = vrot.lane.b32.xlu1 %v1079_v3, %s6276_s23  ;;  %v1012_v7 = vmul.f32 %v1011_v38, %v6658_v21  ;;  %vm978_vm3 = vweird.f32 %v971_v14 }
 0x91a   :  { %v1376_v9 = vpop.xlane.xlu2 %1375 }
 0x91b   :  { %v1377_v39 = vmul.f32 %v1376_v9, %v6393_v29 }
 0x91d   :  { %v6738_v12 = vsub.f32 %v6677_v37, %v1377_v39 }
 0x91f   :  { %v1379_v32 = vmul.f32 %v6738_v12, %v6738_v12 }
 0x921   :  { %360 = vrot.lane.b32.xlu1 %v6716_v41, %s6276_s23  ;;  %v1380_v4 = vsel %vm164_vm1, %v1379_v32, 0.0 }
 0x922   :  { %1121 = vrot.lane.b32.xlu0 %v1012_v7, %s6280_s24  ;;  %v1728_v16 = vpop.permute.xlu2 %1727 }
 0x923   :  { %v1730_v15 = vsel %vm122_vm0, %v1728_v16, 0.0 }
 0x943   :  { %v1056_v19 = vpop.xlane.xlu0 %1055 }
 0x944   :  { %v1057_v23 = vmul.f32 %v1056_v19, %v6393_v29 }
 0x946   :  { %v1058_v34 = vadd.f32 1e-05, %v1057_v23 }
 0x948   :  { %5824 = vrsqrt.f32 %v1058_v34  ;;  %vm1065_vm15 = vweird.f32 %v1058_v34 }
 0x949   :  { %5826 = vrsqrt.f32 %v971_v14 }
 0x94b   :  { %1731 = vadd.xlane.f32.xlu1 %v1730_v15 }
 0x94e   :  { %v5825_v21 = vpop.eup %5824 }
 0x94f   :  { %v5827_v28 = vpop.eup %5826  ;;  %v1060_v30 = vmul.f32 %v5825_v21, %v1058_v34  ;;  %vm1066_vm13 = vweird.f32 %v5825_v21 }
 0x950   :  { %v973_v31 = vmul.f32 %v5827_v28, %v971_v14  ;;  %vm979_vm14 = vweird.f32 %v5827_v28  ;;  %vm1067_vm2 = vmor %vm1065_vm15, %vm1066_vm13 }
 0x951   :  { %v1061_v11 = vmul.f32 %v5825_v21, %v1060_v30  ;;  %vm980_vm4 = vmor %vm978_vm3, %vm979_vm14 }
 0x952   :  { %v974_v33 = vmul.f32 %v5827_v28, %v973_v31 }
 0x953   :  { %v1062_v25 = vmul.f32 0.5, %v1061_v11 }
 0x954   :  { %v975_v27 = vmul.f32 0.5, %v974_v33 }
 0x955   :  { %v1063_v45 = vsub.f32 1.5, %v1062_v25  ;;  %v171_v25 = vsel %vm164_vm1, %v6716_v41, 0.0 }
 0x956   :  { %v976_v35 = vsub.f32 1.5, %v975_v27  ;;  %v1398_v44 = vpop.permute.xlu0 %1397  ;;  %v1704_v27 = vsel %vm164_vm1, %v6684_v43, 0.0 }
 0x957   :  { %v1064_v36 = vmul.f32 %v5825_v21, %v1063_v45  ;;  %v1400_v6 = vsel %vm122_vm0, %v1398_v44, 0.0 }
 0x958   :  { %v977_v40 = vmul.f32 %v5827_v28, %v976_v35 }
 0x959   :  { %v1068_v46 = vsel %vm1067_vm2, %v5825_v21, %v1064_v36 }
 0x95a   :  { %v981_v54 = vsel %vm980_vm4, %v5827_v28, %v977_v40  ;;  %v1069_v49 = vmul.f32 %v1068_v46, %v6689_v10 }
 0x95b   :  { %v982_v62 = vmul.f32 %v981_v54, %v6632_v59 }
 0x95d   :  { %v1100_v50 = vadd.f32 %v1069_v49, %v982_v62 }
 0x95f   :  { %v5200_v58 = vmul.f32 -1.442695, %v1100_v50 }
 0x961   :  { %5828 = vpow2.f32 %v5200_v58 }
 0x967   :  { %v5829_v22 = vpop.eup %5828 }
 0x981   :  { %v1291_v51 = vpop.xlane.xlu0 %1290 }
 0x982   :  { %v1292_v55 = vmul.f32 %v1291_v51, %v6393_v29 }
 0x983   :  { %v1323_v56 = vpop.permute.xlu1 %1322 }
 0x984   :  { %v6729_v2 = vsub.f32 %v6664_v47, %v1292_v55  ;;  %v1325_v57 = vsel %vm122_vm0, %v1323_v56, 0.0  ;;  %v1104_v47 = vadd.f32 1.0, %v5829_v22 }
 0x985   :  { %1326 = vadd.xlane.f32.xlu2 %v1325_v57 }
 0x986   :  { %v1294_v63 = vmul.f32 %v6729_v2, %v6729_v2  ;;  %5830 = vrcp.f32 %v1104_v47  ;;  %v1116_v9 = vand.u32 2147483648, %v1104_v47  ;;  %vm1110_vm6 = vweird.f32 %v1104_v47 }
 0x987   :  { %v1114_v19 = vand.u32 2147483647, %v1104_v47 }
 0x988   :  { %v1295_v1 = vsel %vm164_vm1, %v1294_v63, 0.0  ;;  %v1117_v34 = vor.u32 1.1754944e-38, %v1116_v9 }
 0x989   :  { %1296 = vadd.xlane.f32.xlu0 %v1295_v1  ;;  %vm1115_vm8 = vcmp.eq.f32.partialorder %v1114_v19, 8.507059e+37 }
 0x98b   :  { %v1082_v59 = vpop.permute.xlu1 %1081 }
 0x98c   :  { %v1084_v10 = vsel %vm122_vm0, %v1082_v59, 0.0  ;;  %v5831_v3 = vpop.eup %5830 }
 0x98d   :  { %1085 = vadd.xlane.f32.xlu2 %v1084_v10  ;;  %v1106_v38 = vmul.f32 %v5831_v3, %v1104_v47  ;;  %vm1111_vm5 = vweird.f32 %v5831_v3 }
 0x98e   :  { %vm1112_vm7 = vmor %vm1110_vm6, %vm1111_vm5 }
 0x98f   :  { %v1107_v7 = vsub.f32 1.0, %v1106_v38 }
 0x991   :  { %v1108_v16 = vmul.f32 %v5831_v3, %v1107_v7 }
 0x993   :  { %v1109_v15 = vadd.f32 %v5831_v3, %v1108_v16  ;;  %v6748_v28 = vpop.permute.xlu1 %360 }
 0x994   :  { %v1122_v26 = vpop.permute.xlu0 %1121 }
 0x995   :  { %1401 = vadd.xlane.f32.xlu2 %v1400_v6  ;;  %v1113_v23 = vsel %vm1112_vm7, %v5831_v3, %v1109_v15 }
 0x996   :  { %v6744_v14 = vsel %vm1115_vm8, %v1117_v34, %v1113_v23 }
 0x997   :  { %v1124_v21 = vmul.f32 %v1122_v26, %v6744_v14 }
 0x99d   :  { %1381 = vadd.xlane.f32.xlu2 %v1380_v4 }
 0x9b5   :  { %1126 = vrot.lane.b32.xlu2 %v1124_v21, %s6281_s5 }
 0x9be   :  { %v1732_v30 = vpop.xlane.xlu1 %1731 }
 0x9bf   :  { %v1733_v31 = vmul.f32 %v1732_v30, %v6409_v48 }
 0x9c1   :  { %v6752_v11 = vsub.f32 %v6684_v43, %v1733_v31 }
 0x9c3   :  { %v1735_v33 = vmul.f32 %v6752_v11, %v6752_v11 }
 0x9c5   :  { %1737 = vrot.lane.b32.xlu1 %v1735_v33, %s6276_s23 }
 0x9de   :  { %172 = vadd.xlane.f32.xlu2 %v171_v25 }
 0x9ef   :  { %1705 = vadd.xlane.f32.xlu1 %v1704_v27 }
 0x9f8   :  { %v1327_v45 = vpop.xlane.xlu2 %1326 }
 0x9f9   :  { %v1328_v35 = vmul.f32 %v1327_v45, %v6409_v48 }
 0x9fb   :  { %v1329_v36 = vadd.f32 1e-05, %v1328_v35 }
 0x9fc   :  { %v1297_v15 = vpop.xlane.xlu0 %1296 }
 0x9fd   :  { %5832 = vrsqrt.f32 %v1329_v36  ;;  %vm1336_vm10 = vweird.f32 %v1329_v36  ;;  %v1298_v19 = vmul.f32 %v1297_v15, %v6393_v29 }
 0x9ff   :  { %v1299_v26 = vadd.f32 1e-05, %v1298_v19 }
 0xa00   :  { %v1086_v40 = vpop.xlane.xlu2 %1085 }
 0xa01   :  { %v1087_v44 = vmul.f32 %v1086_v40, %v6409_v48  ;;  %vm1306_vm5 = vweird.f32 %v1299_v26 }
 0xa03   :  { %v5833_v46 = vpop.eup %5832  ;;  %v1088_v54 = vadd.f32 1e-05, %v1087_v44 }
 0xa04   :  { %v1331_v49 = vmul.f32 %v5833_v46, %v1329_v36  ;;  %vm1337_vm9 = vweird.f32 %v5833_v46 }
 0xa05   :  { %5834 = vrsqrt.f32 %v1088_v54  ;;  %vm1338_vm11 = vmor %vm1336_vm10, %vm1337_vm9  ;;  %vm1095_vm13 = vweird.f32 %v1088_v54 }
 0xa06   :  { %v1332_v62 = vmul.f32 %v5833_v46, %v1331_v49 }
 0xa08   :  { %v1333_v50 = vmul.f32 0.5, %v1332_v62  ;;  %v1402_v51 = vpop.xlane.xlu2 %1401 }
 0xa09   :  { %v1403_v55 = vmul.f32 %v1402_v51, %v6409_v48 }
 0xa0a   :  { %v1334_v56 = vsub.f32 1.5, %v1333_v50 }
 0xa0b   :  { %v5835_v57 = vpop.eup %5834  ;;  %v6765_v58 = vsub.f32 %v6677_v37, %v1403_v55 }
 0xa0c   :  { %v1090_v63 = vmul.f32 %v5835_v57, %v1088_v54  ;;  %v1335_v10 = vmul.f32 %v5833_v46, %v1334_v56  ;;  %vm1096_vm12 = vweird.f32 %v5835_v57 }
 0xa0d   :  { %v1405_v1 = vmul.f32 %v6765_v58, %v6765_v58  ;;  %vm1097_vm14 = vmor %vm1095_vm13, %vm1096_vm12 }
 0xa0e   :  { %v1091_v59 = vmul.f32 %v5835_v57, %v1090_v63  ;;  %v1339_v6 = vsel %vm1338_vm11, %v5833_v46, %v1335_v10 }
 0xa0f   :  { %1407 = vrot.lane.b32.xlu0 %v1405_v1, %s6276_s23  ;;  %v1340_v37 = vmul.f32 %v1339_v6, %v6701_v60 }
 0xa10   :  { %v1092_v22 = vmul.f32 0.5, %v1091_v59  ;;  %v1382_v39 = vpop.xlane.xlu2 %1381 }
 0xa11   :  { %v1383_v9 = vmul.f32 %v1382_v39, %v6393_v29 }
 0xa12   :  { %v1093_v47 = vsub.f32 1.5, %v1092_v22 }
 0xa13   :  { %v1384_v23 = vadd.f32 1e-05, %v1383_v9 }
 0xa14   :  { %v1094_v32 = vmul.f32 %v5835_v57, %v1093_v47  ;;  %v5688_v47 = vld [vmem:[%s8289_s4 + $0x28] sm:$0xff] }
 0xa15   :  { %vm1391_vm3 = vweird.f32 %v1384_v23  ;;  %1491 = vmatpush.bf16.msrb.mxu3 %v5688_v47 }
 0xa16   :  { %v1098_v3 = vsel %vm1097_vm14, %v5835_v57, %v1094_v32 }
 0xa17   :  { %1447 = vrot.lane.b32.xlu0 %v1340_v37, %s6280_s24  ;;  %v1099_v4 = vmul.f32 %v1098_v3, %v6707_v18  ;;  %v386_v18 = vsel %vm122_vm0, %v6748_v28, 0.0 }
 0xa18   :  { %v1127_v38 = vpop.permute.xlu2 %1126 }
 0xa19   :  { %v1129_v7 = vadd.f32 %v1127_v38, %v1099_v4 }
 0xa1b   :  { %5836 = vtanh.f32 %v1129_v7 }
 0xa1c   :  { %5838 = vrsqrt.f32 %v1384_v23 }
 0xa1d   :  { %5840 = vrsqrt.f32 %v1299_v26 }
 0xa21   :  { %v5837_v16 = vpop.eup %5836 }
 0xa22   :  { %1134 = vrot.lane.b32.xlu1 %v5837_v16, %s6276_s23  ;;  %v5839_v60 = vpop.eup %5838 }
 0xa23   :  { %v5841_v34 = vpop.eup %5840  ;;  %v1386_v21 = vmul.f32 %v5839_v60, %v1384_v23  ;;  %vm1392_vm15 = vweird.f32 %v5839_v60 }
 0xa24   :  { %v1301_v30 = vmul.f32 %v5841_v34, %v1299_v26  ;;  %vm1307_vm2 = vweird.f32 %v5841_v34  ;;  %vm1393_vm4 = vmor %vm1391_vm3, %vm1392_vm15 }
 0xa25   :  { %v1387_v31 = vmul.f32 %v5839_v60, %v1386_v21  ;;  %vm1308_vm6 = vmor %vm1306_vm5, %vm1307_vm2  ;;  %v1131_v21 = vsub.f32 1.0, %v6744_v14 }
 0xa26   :  { %v1302_v33 = vmul.f32 %v5841_v34, %v1301_v30 }
 0xa27   :  { %v1388_v25 = vmul.f32 0.5, %v1387_v31 }
 0xa28   :  { %v1303_v27 = vmul.f32 0.5, %v1302_v33 }
 0xa29   :  { %v1389_v45 = vsub.f32 1.5, %v1388_v25 }
 0xa2a   :  { %v1304_v35 = vsub.f32 1.5, %v1303_v27 }
 0xa2b   :  { %v1390_v36 = vmul.f32 %v5839_v60, %v1389_v45 }
 0xa2c   :  { %v1305_v40 = vmul.f32 %v5841_v34, %v1304_v35 }
 0xa2d   :  { %v1394_v44 = vsel %vm1393_vm4, %v5839_v60, %v1390_v36 }
 0xa2e   :  { %v1309_v28 = vsel %vm1308_vm6, %v5841_v34, %v1305_v40  ;;  %v1395_v49 = vmul.f32 %v1394_v44, %v6738_v12 }
 0xa2f   :  { %v1310_v50 = vmul.f32 %v1309_v28, %v6729_v2 }
 0xa31   :  { %v1426_v55 = vadd.f32 %v1395_v49, %v1310_v50 }
 0xa33   :  { %v5237_v63 = vmul.f32 -1.442695, %v1426_v55 }
 0xa35   :  { %5842 = vpow2.f32 %v5237_v63 }
 0xa37   :  { %v1738_v57 = vpop.permute.xlu1 %1737 }
 0xa38   :  { %v1740_v34 = vsel %vm122_vm0, %v1738_v57, 0.0 }
 0xa3b   :  { %v5843_v10 = vpop.eup %5842 }
 0xa3c   :  { %v1430_v22 = vadd.f32 1.0, %v5843_v10 }
 0xa3e   :  { %5844 = vrcp.f32 %v1430_v22  ;;  %v1442_v16 = vand.u32 2147483648, %v1430_v22  ;;  %vm1436_vm8 = vweird.f32 %v1430_v22  ;;  %v1440_v15 = vand.u32 2147483647, %v1430_v22 }
 0xa40   :  { %v1443_v19 = vor.u32 1.1754944e-38, %v1442_v16  ;;  %vm1441_vm10 = vcmp.eq.f32.partialorder %v1440_v15, 8.507059e+37 }
 0xa41   :  { %387 = vadd.xlane.f32.xlu0 %v386_v18  ;;  %v6150_v18 = vld [vmem:[#allocation3] sm:$0xff] }
 0xa42   :  { %v1132_v31 = vmul.f32 %v6150_v18, %v1131_v21 }
 0xa44   :  { %v5845_v6 = vpop.eup %5844 }
 0xa45   :  { %v1432_v32 = vmul.f32 %v5845_v6, %v1430_v22  ;;  %vm1437_vm7 = vweird.f32 %v5845_v6 }
 0xa46   :  { %vm1438_vm9 = vmor %vm1436_vm8, %vm1437_vm7 }
 0xa47   :  { %v1433_v37 = vsub.f32 1.0, %v1432_v32 }
 0xa49   :  { %v1434_v3 = vmul.f32 %v5845_v6, %v1433_v37 }
 0xa4b   :  { %v1435_v7 = vadd.f32 %v5845_v6, %v1434_v3 }
 0xa4d   :  { %v1439_v9 = vsel %vm1438_vm9, %v5845_v6, %v1435_v7 }
 0xa4e   :  { %v6801_v26 = vsel %vm1441_vm10, %v1443_v19, %v1439_v9 }
 0xa51   :  { %v173_v46 = vpop.xlane.xlu2 %172 }
 0xa52   :  { %v198_v54 = vmul.f32 %v6393_v29, %v173_v46 }
 0xa54   :  { %v6781_v62 = vsub.f32 %v6716_v41, %v198_v54 }
 0xa56   :  { %v214_v51 = vmul.f32 %v6781_v62, %v6781_v62 }
 0xa58   :  { %v226_v56 = vsel %vm164_vm1, %v214_v51, 0.0 }
 0xa59   :  { %227 = vadd.xlane.f32.xlu2 %v226_v56 }
 0xa62   :  { %v1706_v1 = vpop.xlane.xlu1 %1705 }
 0xa63   :  { %v1707_v59 = vmul.f32 %v1706_v1, %v6393_v29 }
 0xa65   :  { %v6789_v12 = vsub.f32 %v6684_v43, %v1707_v59  ;;  %v5687_v43 = vld [vmem:[%s8289_s4 + $0x20] sm:$0xff] }
 0xa66   :  { %1492 = vmatpush.bf16.msrb.mxu3 %v5687_v43 }
 0xa67   :  { %v1709_v2 = vmul.f32 %v6789_v12, %v6789_v12 }
 0xa69   :  { %v1710_v39 = vsel %vm164_vm1, %v1709_v2, 0.0 }
 0xa6a   :  { %1711 = vadd.xlane.f32.xlu2 %v1710_v39 }
 0xa81   :  { %v1408_v4 = vpop.permute.xlu0 %1407 }
 0xa82   :  { %v1410_v38 = vsel %vm122_vm0, %v1408_v4, 0.0 }
 0xa83   :  { %1411 = vadd.xlane.f32.xlu2 %v1410_v38 }
 0xa89   :  { %v1448_v23 = vpop.permute.xlu0 %1447 }
 0xa8a   :  { %v1450_v60 = vmul.f32 %v1448_v23, %v6801_v26 }
 0xa8b   :  { %1741 = vadd.xlane.f32.xlu2 %v1740_v34 }
 0xa8c   :  { %1452 = vrot.lane.b32.xlu1 %v1450_v60, %s6281_s5 }
 0xa94   :  { %v1135_v30 = vpop.permute.xlu1 %1134 }
 0xa95   :  { %v1137_v33 = vmul.f32 %v1135_v30, %v6744_v14 }
 0xa97   :  { %v6808_v25 = vadd.f32 %v1137_v33, %v1132_v31 }
 0xa99   :  { %1139 = vst.msk [vmem:[#allocation2] sm:$0xff] %vm122_vm0, %v6808_v25  ;;  %v1465_v27 = vpack.c.bf16 %v6808_v25, %v6808_v25 }
 0xa9b   :  { %5250 = vmatmul.msk.bf16.vlgmr.msrb.gmra.mxu3 %vm122_vm0, %v1465_v27 }
 0xab4   :  { %v388_v45 = vpop.xlane.xlu0 %387 }
 0xab5   :  { %v413_v35 = vmul.f32 %v6409_v48, %v388_v45 }
 0xab7   :  { %v6817_v36 = vsub.f32 %v6716_v41, %v413_v35 }
 0xab9   :  { %v429_v40 = vmul.f32 %v6817_v36, %v6817_v36 }
 0xabb   :  { %447 = vrot.lane.b32.xlu2 %v429_v40, %s6276_s23 }
 0xacc   :  { %v228_v14 = vpop.xlane.xlu2 %227 }
 0xacd   :  { %v246_v15 = vmul.f32 %v228_v14, %v6393_v29 }
 0xacf   :  { %v254_v19 = vadd.f32 1e-05, %v246_v15 }
 0xad1   :  { %vm286_vm7 = vweird.f32 %v254_v19 }
 0xadd   :  { %v1712_v44 = vpop.xlane.xlu2 %1711 }
 0xade   :  { %v1713_v16 = vmul.f32 %v1712_v44, %v6393_v29 }
 0xae0   :  { %v1714_v9 = vadd.f32 1e-05, %v1713_v16 }
 0xae2   :  { %vm1721_vm5 = vweird.f32 %v1714_v9 }
 0xaf6   :  { %v1412_v46 = vpop.xlane.xlu2 %1411 }
 0xaf7   :  { %v1413_v54 = vmul.f32 %v1412_v46, %v6409_v48 }
 0xaf9   :  { %v1414_v28 = vadd.f32 1e-05, %v1413_v54 }
 0xafb   :  { %5846 = vrsqrt.f32 %v1414_v28  ;;  %vm1421_vm12 = vweird.f32 %v1414_v28 }
 0xafe   :  { %v1742_v49 = vpop.xlane.xlu2 %1741  ;;  %v1453_v47 = vpop.permute.xlu1 %1452 }
 0xaff   :  { %v1743_v50 = vmul.f32 %v1742_v49, %v6409_v48 }
 0xb01   :  { %v5847_v51 = vpop.eup %5846  ;;  %v1744_v55 = vadd.f32 1e-05, %v1743_v50 }
 0xb02   :  { %v1416_v56 = vmul.f32 %v5847_v51, %v1414_v28  ;;  %vm1422_vm11 = vweird.f32 %v5847_v51 }
 0xb03   :  { %5848 = vrsqrt.f32 %v1744_v55  ;;  %vm1423_vm13 = vmor %vm1421_vm12, %vm1422_vm11  ;;  %vm1751_vm15 = vweird.f32 %v1744_v55 }
 0xb04   :  { %v1417_v41 = vmul.f32 %v5847_v51, %v1416_v56  ;;  %v5690_v56 = vld [vmem:[%s8287_s2 + $0x28] sm:$0xff] }
 0xb05   :  { %1576 = vmatpush.bf16.msra.mxu1 %v5690_v56  ;;  %v5701_v56 = vld [vmem:[%s8289_s4] sm:$0xff] }
 0xb06   :  { %v1418_v57 = vmul.f32 0.5, %v1417_v41  ;;  %v5694_v41 = vld [vmem:[%s8289_s4 + $0x18] sm:$0xff] }
 0xb07   :  { %1817 = vmatpush.bf16.msra.mxu3 %v5694_v41 }
 0xb08   :  { %v1419_v63 = vsub.f32 1.5, %v1418_v57 }
 0xb09   :  { %v5849_v1 = vpop.eup %5848 }
 0xb0a   :  { %v1420_v59 = vmul.f32 %v5847_v51, %v1419_v63  ;;  %v1746_v10 = vmul.f32 %v5849_v1, %v1744_v55  ;;  %vm1752_vm14 = vweird.f32 %v5849_v1 }
 0xb0b   :  { %vm1753_vm2 = vmor %vm1751_vm15, %vm1752_vm14 }
 0xb0c   :  { %v1424_v2 = vsel %vm1423_vm13, %v5847_v51, %v1420_v59  ;;  %v1747_v39 = vmul.f32 %v5849_v1, %v1746_v10 }
 0xb0d   :  { %v1425_v22 = vmul.f32 %v1424_v2, %v6765_v58 }
 0xb0e   :  { %v1748_v32 = vmul.f32 0.5, %v1747_v39 }
 0xb0f   :  { %v1455_v6 = vadd.f32 %v1453_v47, %v1425_v22  ;;  %v1457_v47 = vsub.f32 1.0, %v6801_v26 }
 0xb10   :  { %v1749_v43 = vsub.f32 1.5, %v1748_v32 }
 0xb11   :  { %5850 = vtanh.f32 %v1455_v6 }
 0xb12   :  { %v1750_v37 = vmul.f32 %v5849_v1, %v1749_v43  ;;  %5852 = vrsqrt.f32 %v1714_v9 }
 0xb13   :  { %5854 = vrsqrt.f32 %v254_v19 }
 0xb14   :  { %v1754_v3 = vsel %vm1753_vm2, %v5849_v1, %v1750_v37 }
 0xb15   :  { %v1755_v4 = vmul.f32 %v1754_v3, %v6752_v11  ;;  %v448_v21 = vpop.permute.xlu2 %447 }
 0xb16   :  { %v473_v30 = vsel %vm122_vm0, %v448_v21, 0.0 }
 0xb17   :  { %v5851_v38 = vpop.eup %5850  ;;  %1777 = vrot.lane.b32.xlu0 %v1755_v4, %s6280_s24 }
 0xb18   :  { %1460 = vrot.lane.b32.xlu1 %v5851_v38, %s6276_s23  ;;  %v5853_v23 = vpop.eup %5852  ;;  %v1458_v38 = vmul.f32 %v1457_v47, %v6620_v0 }
 0xb19   :  { %v5855_v60 = vpop.eup %5854  ;;  %v1716_v34 = vmul.f32 %v5853_v23, %v1714_v9  ;;  %vm1722_vm3 = vweird.f32 %v5853_v23 }
 0xb1a   :  { %v281_v11 = vmul.f32 %v5855_v60, %v254_v19  ;;  %vm287_vm4 = vweird.f32 %v5855_v60  ;;  %vm1723_vm6 = vmor %vm1721_vm5, %vm1722_vm3 }
 0xb1b   :  { %v1717_v18 = vmul.f32 %v5853_v23, %v1716_v34  ;;  %vm288_vm8 = vmor %vm286_vm7, %vm287_vm4 }
 0xb1c   :  { %v282_v31 = vmul.f32 %v5855_v60, %v281_v11 }
 0xb1d   :  { %v1718_v27 = vmul.f32 0.5, %v1717_v18 }
 0xb1e   :  { %v1494_v7 = vpop.f32.mrf.mxu3  ;;  %v283_v45 = vmul.f32 0.5, %v282_v31 }
 0xb1f   :  { %v6832_v33 = vadd.f32 %v6592_v61, %v1494_v7  ;;  %v1719_v40 = vsub.f32 1.5, %v1718_v27 }
 0xb20   :  { %v284_v14 = vsub.f32 1.5, %v283_v45 }
 0xb21   :  { %v1498_v35 = vsel %vm164_vm1, %v6832_v33, 0.0  ;;  %v1720_v44 = vmul.f32 %v5853_v23, %v1719_v40 }
 0xb22   :  { %v285_v46 = vmul.f32 %v5855_v60, %v284_v14 }
 0xb23   :  { %v1724_v54 = vsel %vm1723_vm6, %v5853_v23, %v1720_v44 }
 0xb24   :  { %v289_v28 = vsel %vm288_vm8, %v5855_v60, %v285_v46  ;;  %v1725_v61 = vmul.f32 %v1724_v54, %v6789_v12  ;;  %v5689_v12 = vld [vmem:[%s8287_s2 + $0x20] sm:$0xff] }
 0xb25   :  { %v342_v49 = vmul.f32 %v289_v28, %v6781_v62  ;;  %v5693_v62 = vld [vmem:[%s8289_s4 + $0x10] sm:$0xff]  ;;  %1577 = vmatpush.bf16.msra.mxu1 %v5689_v12 }
 0xb26   :  { %v1496_v58 = vpop.f32.mrf.mxu3  ;;  %1818 = vmatpush.bf16.msra.mxu3 %v5693_v62 }
 0xb27   :  { %v1756_v50 = vadd.f32 %v1725_v61, %v342_v49 }
 0xb29   :  { %v5274_v51 = vmul.f32 -1.442695, %v1756_v50  ;;  %v5696_v50 = vld [vmem:[%s8287_s2 + $0x18] sm:$0xff] }
 0xb2a   :  { %1902 = vmatpush.bf16.msrb.mxu0 %v5696_v50 }
 0xb2b   :  { %5856 = vpow2.f32 %v5274_v51  ;;  %v5702_v51 = vld [vmem:[%s8289_s4 + $0x8] sm:$0xff] }
 0xb2c   :  { %2232 = vmatpush.bf16.msrb.mxu3 %v5702_v51 }
 0xb30   :  { %2233 = vmatpush.bf16.msrb.mxu3 %v5701_v56 }
 0xb31   :  { %v5857_v55 = vpop.eup %5856 }
 0xb32   :  { %v1760_v57 = vadd.f32 1.0, %v5857_v55  ;;  %v5695_v55 = vld [vmem:[%s8287_s2 + $0x10] sm:$0xff] }
 0xb33   :  { %1903 = vmatpush.bf16.msrb.mxu0 %v5695_v55 }
 0xb34   :  { %5858 = vrcp.f32 %v1760_v57  ;;  %v1772_v22 = vand.u32 2147483648, %v1760_v57  ;;  %vm1766_vm10 = vweird.f32 %v1760_v57  ;;  %v1770_v39 = vand.u32 2147483647, %v1760_v57 }
 0xb36   :  { %v1773_v32 = vor.u32 1.1754944e-38, %v1772_v22  ;;  %vm1771_vm12 = vcmp.eq.f32.partialorder %v1770_v39, 8.507059e+37  ;;  %v6897_v39 = vld [vmem:[#allocation7 + $0x1] ss:$0 sm:$0xff] }
 0xb3a   :  { %v5859_v63 = vpop.eup %5858 }
 0xb3b   :  { %v1762_v1 = vmul.f32 %v5859_v63, %v1760_v57  ;;  %vm1767_vm9 = vweird.f32 %v5859_v63 }
 0xb3c   :  { %vm1768_vm11 = vmor %vm1766_vm10, %vm1767_vm9 }
 0xb3d   :  { %v1763_v59 = vsub.f32 1.0, %v1762_v1 }
 0xb3f   :  { %v1764_v10 = vmul.f32 %v5859_v63, %v1763_v59 }
 0xb41   :  { %v1765_v2 = vadd.f32 %v5859_v63, %v1764_v10 }
 0xb42   :  { %474 = vadd.xlane.f32.xlu1 %v473_v30 }
 0xb43   :  { %v1769_v6 = vsel %vm1768_vm11, %v5859_v63, %v1765_v2 }
 0xb44   :  { %v1774_v43 = vsel %vm1771_vm12, %v1773_v32, %v1769_v6 }
 0xb45   :  { %v1787_v41 = vsub.f32 1.0, %v1774_v43 }
 0xb47   :  { %v1788_v12 = vmul.f32 %v1787_v41, %v6650_v13 }
 0xb4a   :  { %1499 = vadd.xlane.f32.xlu1 %v1498_v35 }
 0xb89   :  { %v1778_v37 = vpop.permute.xlu0 %1777 }
 0xb8a   :  { %v1461_v3 = vpop.permute.xlu1 %1460  ;;  %v1780_v4 = vmul.f32 %v1778_v37, %v1774_v43 }
 0xb8b   :  { %v1463_v7 = vmul.f32 %v1461_v3, %v6801_v26 }
 0xb8c   :  { %1782 = vrot.lane.b32.xlu0 %v1780_v4, %s6281_s5 }
 0xb8d   :  { %v6853_v58 = vadd.f32 %v1463_v7, %v1458_v38 }
 0xb8f   :  { %v1550_v16 = vpack.c.bf16 %v6853_v58, %v6853_v58 }
 0xb91   :  { %5263 = vmatmul.msk.bf16.vlgmr.msra.gmra.mxu1 %vm122_vm0, %v1550_v16  ;;  %5287 = vmatmul.msk.bf16.vlgmr.msra.gmra.mxu3 %vm122_vm0, %v1550_v16 }
 0xb94   :  { %1521 = vrot.lane.b32.xlu0 %v6832_v33, %s6276_s23 }
 0xbb5   :  { %v475_v15 = vpop.xlane.xlu1 %474 }
 0xbb6   :  { %v493_v60 = vmul.f32 %v475_v15, %v6409_v48 }
 0xbb8   :  { %v501_v34 = vadd.f32 1e-05, %v493_v60 }
 0xbba   :  { %5860 = vrsqrt.f32 %v501_v34  ;;  %vm533_vm14 = vweird.f32 %v501_v34 }
 0xbbd   :  { %v1500_v9 = vpop.xlane.xlu1 %1499 }
 0xbbe   :  { %v1501_v0 = vmul.f32 %v1500_v9, %v6393_v29 }
 0xbc0   :  { %v6864_v26 = vsub.f32 %v6832_v33, %v1501_v0  ;;  %v5861_v21 = vpop.eup %5860 }
 0xbc1   :  { %v528_v11 = vmul.f32 %v5861_v21, %v501_v34  ;;  %vm534_vm13 = vweird.f32 %v5861_v21 }
 0xbc2   :  { %v1503_v19 = vmul.f32 %v6864_v26, %v6864_v26  ;;  %vm535_vm15 = vmor %vm533_vm14, %vm534_vm13 }
 0xbc3   :  { %v529_v30 = vmul.f32 %v5861_v21, %v528_v11 }
 0xbc4   :  { %v1504_v23 = vsel %vm164_vm1, %v1503_v19, 0.0 }
 0xbc5   :  { %1505 = vadd.xlane.f32.xlu1 %v1504_v23  ;;  %v530_v18 = vmul.f32 0.5, %v529_v30 }
 0xbc7   :  { %v531_v31 = vsub.f32 1.5, %v530_v18 }
 0xbc9   :  { %v532_v27 = vmul.f32 %v5861_v21, %v531_v31 }
 0xbcb   :  { %v536_v45 = vsel %vm535_vm15, %v5861_v21, %v532_v27 }
 0xbcc   :  { %v589_v35 = vmul.f32 %v536_v45, %v6817_v36 }
 0xbfe   :  { %v1783_v40 = vpop.permute.xlu0 %1782 }
 0xbff   :  { %v1785_v14 = vadd.f32 %v1783_v40, %v589_v35 }
 0xc01   :  { %5862 = vtanh.f32 %v1785_v14 }
 0xc06   :  { %v1522_v49 = vpop.permute.xlu0 %1521 }
 0xc07   :  { %v5863_v44 = vpop.eup %5862  ;;  %v1524_v36 = vsel %vm122_vm0, %v1522_v49, 0.0 }
 0xc08   :  { %1790 = vrot.lane.b32.xlu2 %v5863_v44, %s6276_s23 }
 0xc0e   :  { %v1579_v46 = vpop.f32.mrf.mxu1 }
 0xc0f   :  { %v1580_v13 = vadd.f32 %v6668_v24, %v1579_v46 }
 0xc11   :  { %v1583_v6 = vsel %vm164_vm1, %v1580_v13, 0.0 }
 0xc14   :  { %v1820_v54 = vpop.f32.mrf.mxu3 }
 0xc15   :  { %v6900_v47 = vadd.f32 %v6897_v39, %v1820_v54 }
 0xc16   :  { %v1581_v28 = vpop.f32.mrf.mxu1 }
 0xc17   :  { %v1824_v34 = vsel %vm164_vm1, %v6900_v47, 0.0 }
 0xc1c   :  { %v1822_v61 = vpop.f32.mrf.mxu3 }
 0xc31   :  { %1525 = vadd.xlane.f32.xlu2 %v1524_v36 }
 0xc38   :  { %v1506_v11 = vpop.xlane.xlu1 %1505 }
 0xc62   :  { %v1791_v57 = vpop.permute.xlu2 %1790 }
 0xc63   :  { %v1793_v62 = vmul.f32 %v1791_v57, %v1774_v43  ;;  %v6946_v57 = vadd.f32 %v6712_v5, %v6386_v17 }
 0xc65   :  { %v6886_v63 = vadd.f32 %v1793_v62, %v1788_v12  ;;  %v1507_v12 = vmul.f32 %v1506_v11, %v6393_v29  ;;  %v174_v17 = vsel %vm164_vm1, %v6946_v57, 0.0 }
 0xc67   :  { %v1876_v1 = vpack.c.bf16 %v6886_v63, %v6886_v63  ;;  %v1508_v62 = vadd.f32 1e-05, %v1507_v12 }
 0xc69   :  { %5300 = vmatmul.msk.bf16.vlgmr.msrb.gmra.mxu0 %vm122_vm0, %v1876_v1  ;;  %5337 = vmatmul.msk.bf16.vlgmr.msrb.gmra.mxu3 %vm122_vm0, %v1876_v1  ;;  %vm1515_vm6 = vweird.f32 %v1508_v62 }
 0xca4   :  { %v1526_v59 = vpop.xlane.xlu2 %1525 }
 0xca5   :  { %v1527_v10 = vmul.f32 %v1526_v59, %v6409_v48 }
 0xca7   :  { %v1528_v2 = vsub.f32 %v6832_v33, %v1527_v10 }
 0xca9   :  { %v1529_v22 = vmul.f32 %v1528_v2, %v1528_v2 }
 0xcab   :  { %1531 = vrot.lane.b32.xlu0 %v1529_v22, %s6276_s23 }
 0xcb3   :  { %1606 = vrot.lane.b32.xlu0 %v1580_v13, %s6276_s23 }
 0xcbb   :  { %1847 = vrot.lane.b32.xlu0 %v6900_v47, %s6276_s23 }
 0xce5   :  { %1584 = vadd.xlane.f32.xlu0 %v1583_v6 }
 0xce6   :  { %v1905_v32 = vpop.f32.mrf.mxu0 }
 0xcec   :  { %v2235_v33 = vpop.f32.mrf.mxu3 }
 0xced   :  { %v6909_v15 = vadd.f32 %v6681_v42, %v2235_v33  ;;  %v6921_v42 = vld [vmem:[#allocation5 + $0x1] ss:$0 sm:$0xff] }
 0xcee   :  { %v1907_v43 = vpop.f32.mrf.mxu0  ;;  %v6924_v21 = vadd.f32 %v6921_v42, %v1905_v32 }
 0xcf0   :  { %v1909_v14 = vsel %vm164_vm1, %v6924_v21, 0.0 }
 0xcf4   :  { %v2237_v37 = vpop.f32.mrf.mxu3 }
 0xd1d   :  { %v1532_v3 = vpop.permute.xlu0 %1531 }
 0xd1e   :  { %v1534_v24 = vsel %vm122_vm0, %v1532_v3, 0.0 }
 0xd1f   :  { %1535 = vadd.xlane.f32.xlu2 %v1534_v24 }
 0xd25   :  { %v1607_v4 = vpop.permute.xlu0 %1606 }
 0xd26   :  { %v1609_v38 = vsel %vm122_vm0, %v1607_v4, 0.0 }
 0xd27   :  { %1610 = vadd.xlane.f32.xlu1 %v1609_v38 }
 0xd2d   :  { %v1848_v7 = vpop.permute.xlu0 %1847 }
 0xd2e   :  { %v1850_v16 = vsel %vm122_vm0, %v1848_v7, 0.0 }
 0xd2f   :  { %1851 = vadd.xlane.f32.xlu1 %v1850_v16 }
 0xd48   :  { %2262 = vrot.lane.b32.xlu1 %v6909_v15, %s6276_s23 }
 0xd58   :  { %v1585_v9 = vpop.xlane.xlu0 %1584 }
 0xd59   :  { %v1586_v0 = vmul.f32 %v1585_v9, %v6393_v29 }
 0xd5b   :  { %v6914_v19 = vsub.f32 %v1580_v13, %v1586_v0 }
 0xd5d   :  { %v1588_v23 = vmul.f32 %v6914_v19, %v6914_v19 }
 0xd5f   :  { %v1589_v60 = vsel %vm164_vm1, %v1588_v23, 0.0 }
 0xd60   :  { %1590 = vadd.xlane.f32.xlu2 %v1589_v60 }
 0xd72   :  { %1825 = vadd.xlane.f32.xlu1 %v1824_v34 }
 0xd78   :  { %1932 = vrot.lane.b32.xlu2 %v6924_v21, %s6276_s23 }
 0xd92   :  { %v1536_v30 = vpop.xlane.xlu2 %1535 }
 0xd93   :  { %v1537_v18 = vmul.f32 %v1536_v30, %v6409_v48 }
 0xd95   :  { %v1538_v31 = vadd.f32 1e-05, %v1537_v18 }
 0xd97   :  { %5864 = vrsqrt.f32 %v1538_v31  ;;  %vm1545_vm3 = vweird.f32 %v1538_v31 }
 0xd98   :  { %5866 = vrsqrt.f32 %v1508_v62 }
 0xd9a   :  { %v1611_v27 = vpop.xlane.xlu1 %1610 }
 0xd9b   :  { %v1612_v50 = vmul.f32 %v1611_v27, %v6409_v48 }
 0xd9d   :  { %v5865_v45 = vpop.eup %5864  ;;  %v6940_v56 = vsub.f32 %v1580_v13, %v1612_v50 }
 0xd9e   :  { %v1540_v35 = vmul.f32 %v5865_v45, %v1538_v31  ;;  %vm1546_vm2 = vweird.f32 %v5865_v45  ;;  %v5867_v1 = vpop.eup %5866 }
 0xd9f   :  { %vm1547_vm4 = vmor %vm1545_vm3, %vm1546_vm2  ;;  %v1614_v41 = vmul.f32 %v6940_v56, %v6940_v56  ;;  %v1510_v59 = vmul.f32 %v5867_v1, %v1508_v62  ;;  %vm1516_vm5 = vweird.f32 %v5867_v1 }
 0xda0   :  { %v1541_v40 = vmul.f32 %v5865_v45, %v1540_v35  ;;  %vm1517_vm8 = vmor %vm1515_vm6, %vm1516_vm5 }
 0xda1   :  { %1910 = vadd.xlane.f32.xlu2 %v1909_v14  ;;  %v1511_v13 = vmul.f32 %v5867_v1, %v1510_v59 }
 0xda2   :  { %v1542_v44 = vmul.f32 0.5, %v1541_v40  ;;  %v1852_v46 = vpop.xlane.xlu1 %1851 }
 0xda3   :  { %v1853_v54 = vmul.f32 %v1852_v46, %v6409_v48  ;;  %v1512_v6 = vmul.f32 0.5, %v1511_v13 }
 0xda4   :  { %v1543_v28 = vsub.f32 1.5, %v1542_v44 }
 0xda5   :  { %v6933_v61 = vsub.f32 %v6900_v47, %v1853_v54  ;;  %v1513_v33 = vsub.f32 1.5, %v1512_v6 }
 0xda6   :  { %v1544_v49 = vmul.f32 %v5865_v45, %v1543_v28 }
 0xda7   :  { %v1855_v51 = vmul.f32 %v6933_v61, %v6933_v61  ;;  %v1514_v3 = vmul.f32 %v5867_v1, %v1513_v33 }
 0xda8   :  { %v1548_v36 = vsel %vm1547_vm4, %v5865_v45, %v1544_v49 }
 0xda9   :  { %1857 = vrot.lane.b32.xlu0 %v1855_v51, %s6276_s23  ;;  %v1549_v55 = vmul.f32 %v1548_v36, %v1528_v2  ;;  %v1518_v16 = vsel %vm1517_vm8, %v5867_v1, %v1514_v3 }
 0xdaa   :  { %v1519_v60 = vmul.f32 %v1518_v16, %v6864_v26 }
 0xdab   :  { %1656 = vrot.lane.b32.xlu1 %v1549_v55, %s6280_s24 }
 0xdb1   :  { %1616 = vrot.lane.b32.xlu0 %v1614_v41, %s6276_s23 }
 0xdb3   :  { %362 = vrot.lane.b32.xlu1 %v6946_v57, %s6276_s23 }
 0xdba   :  { %v2263_v5 = vpop.permute.xlu1 %2262 }
 0xdbb   :  { %v2265_v27 = vsel %vm122_vm0, %v2263_v5, 0.0 }
 0xdd3   :  { %v1591_v10 = vpop.xlane.xlu2 %1590 }
 0xdd4   :  { %v1592_v2 = vmul.f32 %v1591_v10, %v6393_v29 }
 0xdd6   :  { %v1593_v22 = vadd.f32 1e-05, %v1592_v2 }
 0xdd8   :  { %5868 = vrsqrt.f32 %v1593_v22  ;;  %vm1600_vm9 = vweird.f32 %v1593_v22 }
 0xddb   :  { %v1933_v12 = vpop.permute.xlu2 %1932 }
 0xddc   :  { %v1935_v2 = vsel %vm122_vm0, %v1933_v12, 0.0 }
 0xddd   :  { %175 = vadd.xlane.f32.xlu1 %v174_v17  ;;  %v2239_v17 = vsel %vm164_vm1, %v6909_v15, 0.0 }
 0xdde   :  { %v5869_v32 = vpop.eup %5868 }
 0xddf   :  { %v1595_v43 = vmul.f32 %v5869_v32, %v1593_v22  ;;  %vm1601_vm7 = vweird.f32 %v5869_v32 }
 0xde0   :  { %vm1602_vm10 = vmor %vm1600_vm9, %vm1601_vm7 }
 0xde1   :  { %v1596_v37 = vmul.f32 %v5869_v32, %v1595_v43 }
 0xde3   :  { %v1597_v24 = vmul.f32 0.5, %v1596_v37 }
 0xde5   :  { %v1598_v4 = vsub.f32 1.5, %v1597_v24  ;;  %v1826_v38 = vpop.xlane.xlu1 %1825 }
 0xde6   :  { %v1827_v7 = vmul.f32 %v1826_v38, %v6393_v29 }
 0xde7   :  { %v1599_v9 = vmul.f32 %v5869_v32, %v1598_v4 }
 0xde8   :  { %v6957_v0 = vsub.f32 %v6900_v47, %v1827_v7 }
 0xde9   :  { %v1603_v23 = vsel %vm1602_vm10, %v5869_v32, %v1599_v9 }
 0xdea   :  { %v1604_v34 = vmul.f32 %v1603_v23, %v6914_v19  ;;  %v1829_v11 = vmul.f32 %v6957_v0, %v6957_v0 }
 0xdec   :  { %v1635_v30 = vadd.f32 %v1604_v34, %v1519_v60  ;;  %v1830_v18 = vsel %vm164_vm1, %v1829_v11, 0.0 }
 0xded   :  { %1831 = vadd.xlane.f32.xlu0 %v1830_v18 }
 0xdee   :  { %v5264_v31 = vmul.f32 -1.442695, %v1635_v30 }
 0xdf0   :  { %5870 = vpow2.f32 %v5264_v31 }
 0xdf5   :  { %2266 = vadd.xlane.f32.xlu0 %v2265_v27 }
 0xdf6   :  { %v5871_v45 = vpop.eup %5870 }
 0xdf7   :  { %v1639_v47 = vadd.f32 1.0, %v5871_v45 }
 0xdf9   :  { %5872 = vrcp.f32 %v1639_v47  ;;  %v1651_v44 = vand.u32 2147483648, %v1639_v47  ;;  %vm1645_vm12 = vweird.f32 %v1639_v47  ;;  %v1649_v46 = vand.u32 2147483647, %v1639_v47 }
 0xdfb   :  { %v1652_v49 = vor.u32 1.1754944e-38, %v1651_v44  ;;  %vm1650_vm14 = vcmp.eq.f32.partialorder %v1649_v46, 8.507059e+37 }
 0xdff   :  { %v5873_v35 = vpop.eup %5872 }
 0xe00   :  { %v1641_v40 = vmul.f32 %v5873_v35, %v1639_v47  ;;  %vm1646_vm11 = vweird.f32 %v5873_v35 }
 0xe01   :  { %vm1647_vm13 = vmor %vm1645_vm12, %vm1646_vm11 }
 0xe02   :  { %v1642_v26 = vsub.f32 1.0, %v1641_v40 }
 0xe04   :  { %v1643_v14 = vmul.f32 %v5873_v35, %v1642_v26 }
 0xe06   :  { %v1644_v19 = vadd.f32 %v5873_v35, %v1643_v14 }
 0xe08   :  { %v1648_v54 = vsel %vm1647_vm13, %v5873_v35, %v1644_v19 }
 0xe09   :  { %v6965_v50 = vsel %vm1650_vm14, %v1652_v49, %v1648_v54 }
 0xe14   :  { %v1911_v1 = vpop.xlane.xlu2 %1910 }
 0xe15   :  { %v1912_v59 = vmul.f32 %v1911_v1, %v6393_v29 }
 0xe17   :  { %v6973_v10 = vsub.f32 %v6924_v21, %v1912_v59 }
 0xe19   :  { %v1914_v22 = vmul.f32 %v6973_v10, %v6973_v10 }
 0xe1b   :  { %v1858_v28 = vpop.permute.xlu0 %1857  ;;  %v1915_v13 = vsel %vm164_vm1, %v1914_v22, 0.0 }
 0xe1c   :  { %v1860_v62 = vsel %vm122_vm0, %v1858_v28, 0.0 }
 0xe1d   :  { %v1657_v51 = vpop.permute.xlu1 %1656 }
 0xe1e   :  { %v1659_v36 = vmul.f32 %v1657_v51, %v6965_v50 }
 0xe20   :  { %1661 = vrot.lane.b32.xlu0 %v1659_v36, %s6281_s5 }
 0xe23   :  { %v1617_v55 = vpop.permute.xlu0 %1616 }
 0xe24   :  { %v1619_v41 = vsel %vm122_vm0, %v1617_v55, 0.0 }
 0xe25   :  { %1620 = vadd.xlane.f32.xlu2 %v1619_v41  ;;  %v6979_v6 = vpop.permute.xlu1 %362 }
 0xe2d   :  { %1861 = vadd.xlane.f32.xlu2 %v1860_v62 }
 0xe35   :  { %1936 = vadd.xlane.f32.xlu2 %v1935_v2 }
 0xe3d   :  { %1916 = vadd.xlane.f32.xlu2 %v1915_v13 }
 0xe4a   :  { %2240 = vadd.xlane.f32.xlu0 %v2239_v17 }
 0xe50   :  { %v176_v5 = vpop.xlane.xlu1 %175 }
 0xe51   :  { %v199_v32 = vmul.f32 %v6393_v29, %v176_v5 }
 0xe53   :  { %v6985_v33 = vsub.f32 %v6946_v57, %v199_v32 }
 0xe55   :  { %v215_v43 = vmul.f32 %v6985_v33, %v6985_v33 }
 0xe57   :  { %v229_v37 = vsel %vm164_vm1, %v215_v43, 0.0 }
 0xe58   :  { %230 = vadd.xlane.f32.xlu0 %v229_v37 }
 0xe60   :  { %v1832_v3 = vpop.xlane.xlu0 %1831 }
 0xe61   :  { %v1833_v59 = vmul.f32 %v1832_v3, %v6393_v29 }
 0xe63   :  { %v1834_v22 = vadd.f32 1e-05, %v1833_v59  ;;  %v1666_v59 = vsub.f32 1.0, %v6965_v50 }
 0xe65   :  { %vm1841_vm11 = vweird.f32 %v1834_v22 }
 0xe68   :  { %v2267_v24 = vpop.xlane.xlu0 %2266 }
 0xe69   :  { %v2268_v4 = vmul.f32 %v2267_v24, %v6409_v48 }
 0xe6b   :  { %v6992_v38 = vsub.f32 %v6909_v15, %v2268_v4 }
 0xe6d   :  { %v2270_v7 = vmul.f32 %v6992_v38, %v6992_v38 }
 0xe6f   :  { %2272 = vrot.lane.b32.xlu2 %v2270_v7, %s6276_s23 }
 0xe92   :  { %v1662_v49 = vpop.permute.xlu0 %1661 }
 0xe98   :  { %v1621_v16 = vpop.xlane.xlu2 %1620 }
 0xe99   :  { %v1622_v9 = vmul.f32 %v1621_v16, %v6409_v48 }
 0xe9b   :  { %v1623_v23 = vadd.f32 1e-05, %v1622_v9 }
 0xe9d   :  { %5874 = vrsqrt.f32 %v1623_v23  ;;  %vm1630_vm2 = vweird.f32 %v1623_v23 }
 0xea0   :  { %v1862_v60 = vpop.xlane.xlu2 %1861 }
 0xea1   :  { %v1863_v34 = vmul.f32 %v1862_v60, %v6409_v48 }
 0xea3   :  { %v5875_v11 = vpop.eup %5874  ;;  %v1864_v30 = vadd.f32 1e-05, %v1863_v34 }
 0xea4   :  { %v1625_v18 = vmul.f32 %v5875_v11, %v1623_v23  ;;  %vm1631_vm15 = vweird.f32 %v5875_v11 }
 0xea5   :  { %5876 = vrsqrt.f32 %v1864_v30  ;;  %vm1632_vm3 = vmor %vm1630_vm2, %vm1631_vm15  ;;  %vm1871_vm5 = vweird.f32 %v1864_v30 }
 0xea6   :  { %v1626_v31 = vmul.f32 %v5875_v11, %v1625_v18 }
 0xea8   :  { %v1627_v27 = vmul.f32 0.5, %v1626_v31  ;;  %v1937_v45 = vpop.xlane.xlu2 %1936 }
 0xea9   :  { %v1938_v47 = vmul.f32 %v1937_v45, %v6409_v48  ;;  %v389_v45 = vsel %vm122_vm0, %v6979_v6, 0.0 }
 0xeaa   :  { %v1628_v35 = vsub.f32 1.5, %v1627_v27 }
 0xeab   :  { %v5877_v40 = vpop.eup %5876  ;;  %v7001_v26 = vsub.f32 %v6924_v21, %v1938_v47 }
 0xeac   :  { %v1629_v14 = vmul.f32 %v5875_v11, %v1628_v35  ;;  %v1866_v19 = vmul.f32 %v5877_v40, %v1864_v30  ;;  %vm1872_vm4 = vweird.f32 %v5877_v40 }
 0xead   :  { %v1940_v44 = vmul.f32 %v7001_v26, %v7001_v26  ;;  %vm1873_vm6 = vmor %vm1871_vm5, %vm1872_vm4 }
 0xeae   :  { %v1867_v46 = vmul.f32 %v5877_v40, %v1866_v19  ;;  %v1633_v54 = vsel %vm1632_vm3, %v5875_v11, %v1629_v14 }
 0xeaf   :  { %1942 = vrot.lane.b32.xlu2 %v1940_v44, %s6276_s23  ;;  %v1634_v28 = vmul.f32 %v1633_v54, %v6940_v56  ;;  %v5698_v44 = vld [vmem:[%s8289_s4 + $0x28] sm:$0xff] }
 0xeb0   :  { %v1868_v51 = vmul.f32 0.5, %v1867_v46  ;;  %v1917_v21 = vpop.xlane.xlu2 %1916  ;;  %2026 = vmatpush.bf16.msrb.mxu1 %v5698_v44 }
 0xeb1   :  { %v1664_v36 = vadd.f32 %v1662_v49, %v1634_v28  ;;  %v1918_v12 = vmul.f32 %v1917_v21, %v6393_v29 }
 0xeb2   :  { %v1869_v55 = vsub.f32 1.5, %v1868_v51 }
 0xeb3   :  { %5878 = vtanh.f32 %v1664_v36  ;;  %v1919_v56 = vadd.f32 1e-05, %v1918_v12 }
 0xeb4   :  { %v1870_v41 = vmul.f32 %v5877_v40, %v1869_v55  ;;  %v5697_v55 = vld [vmem:[%s8289_s4 + $0x20] sm:$0xff] }
 0xeb5   :  { %5880 = vrsqrt.f32 %v1919_v56  ;;  %vm1926_vm9 = vweird.f32 %v1919_v56  ;;  %2027 = vmatpush.bf16.msrb.mxu1 %v5697_v55 }
 0xeb6   :  { %v1874_v62 = vsel %vm1873_vm6, %v5877_v40, %v1870_v41  ;;  %5882 = vrsqrt.f32 %v1834_v22 }
 0xeb7   :  { %v1875_v1 = vmul.f32 %v1874_v62, %v6933_v61 }
 0xeb9   :  { %v5879_v2 = vpop.eup %5878  ;;  %1982 = vrot.lane.b32.xlu2 %v1875_v1, %s6280_s24 }
 0xeba   :  { %1669 = vrot.lane.b32.xlu1 %v5879_v2, %s6276_s23 }
 0xebb   :  { %v5881_v32 = vpop.eup %5880 }
 0xebc   :  { %v5883_v37 = vpop.eup %5882  ;;  %v1921_v3 = vmul.f32 %v5881_v32, %v1919_v56  ;;  %vm1927_vm7 = vweird.f32 %v5881_v32  ;;  %v1667_v56 = vmul.f32 %v1666_v59, %v6808_v25 }
 0xebd   :  { %v2241_v13 = vpop.xlane.xlu0 %2240  ;;  %v1836_v24 = vmul.f32 %v5883_v37, %v1834_v22  ;;  %vm1842_vm8 = vweird.f32 %v5883_v37  ;;  %vm1928_vm10 = vmor %vm1926_vm9, %vm1927_vm7 }
 0xebe   :  { %v2242_v17 = vmul.f32 %v2241_v13, %v6393_v29  ;;  %v1922_v4 = vmul.f32 %v5881_v32, %v1921_v3  ;;  %vm1843_vm12 = vmor %vm1841_vm11, %vm1842_vm8 }
 0xebf   :  { %v1837_v7 = vmul.f32 %v5883_v37, %v1836_v24 }
 0xec0   :  { %v7014_v5 = vsub.f32 %v6909_v15, %v2242_v17  ;;  %v1923_v16 = vmul.f32 0.5, %v1922_v4 }
 0xec1   :  { %v1838_v9 = vmul.f32 0.5, %v1837_v7 }
 0xec2   :  { %v2244_v61 = vmul.f32 %v7014_v5, %v7014_v5  ;;  %v1924_v23 = vsub.f32 1.5, %v1923_v16 }
 0xec3   :  { %v1839_v60 = vsub.f32 1.5, %v1838_v9 }
 0xec4   :  { %v2245_v43 = vsel %vm164_vm1, %v2244_v61, 0.0  ;;  %v1925_v34 = vmul.f32 %v5881_v32, %v1924_v23 }
 0xec5   :  { %2246 = vadd.xlane.f32.xlu0 %v2245_v43  ;;  %v1840_v15 = vmul.f32 %v5883_v37, %v1839_v60 }
 0xec6   :  { %v1929_v11 = vsel %vm1928_vm10, %v5881_v32, %v1925_v34 }
 0xec7   :  { %v1844_v30 = vsel %vm1843_vm12, %v5883_v37, %v1840_v15  ;;  %v1930_v18 = vmul.f32 %v1929_v11, %v6973_v10 }
 0xec8   :  { %v1845_v31 = vmul.f32 %v1844_v30, %v6957_v0 }
 0xec9   :  { %v2273_v27 = vpop.permute.xlu2 %2272 }
 0xeca   :  { %v1961_v47 = vadd.f32 %v1930_v18, %v1845_v31  ;;  %v2275_v35 = vsel %vm122_vm0, %v2273_v27, 0.0 }
 0xecb   :  { %v231_v4 = vpop.xlane.xlu0 %230 }
 0xecc   :  { %v5301_v40 = vmul.f32 -1.442695, %v1961_v47  ;;  %v247_v30 = vmul.f32 %v231_v4, %v6393_v29 }
 0xece   :  { %5884 = vpow2.f32 %v5301_v40  ;;  %v255_v31 = vadd.f32 1e-05, %v247_v30 }
 0xed0   :  { %vm296_vm10 = vweird.f32 %v255_v31 }
 0xed4   :  { %v5885_v14 = vpop.eup %5884 }
 0xed5   :  { %v1965_v19 = vadd.f32 1.0, %v5885_v14 }
 0xed7   :  { %5886 = vrcp.f32 %v1965_v19  ;;  %v1977_v51 = vand.u32 2147483648, %v1965_v19  ;;  %vm1971_vm14 = vweird.f32 %v1965_v19  ;;  %v1975_v36 = vand.u32 2147483647, %v1965_v19 }
 0xed9   :  { %v1978_v41 = vor.u32 1.1754944e-38, %v1977_v51  ;;  %vm1976_vm2 = vcmp.eq.f32.partialorder %v1975_v36, 8.507059e+37 }
 0xedd   :  { %v5887_v0 = vpop.eup %5886 }
 0xede   :  { %v1967_v10 = vmul.f32 %v5887_v0, %v1965_v19  ;;  %vm1972_vm13 = vweird.f32 %v5887_v0 }
 0xedf   :  { %vm1973_vm15 = vmor %vm1971_vm14, %vm1972_vm13 }
 0xee0   :  { %v1968_v46 = vsub.f32 1.0, %v1967_v10 }
 0xee2   :  { %390 = vadd.xlane.f32.xlu2 %v389_v45  ;;  %v1969_v54 = vmul.f32 %v5887_v0, %v1968_v46 }
 0xee4   :  { %2276 = vadd.xlane.f32.xlu1 %v2275_v35  ;;  %v1970_v49 = vadd.f32 %v5887_v0, %v1969_v54 }
 0xee6   :  { %v1974_v21 = vsel %vm1973_vm15, %v5887_v0, %v1970_v49 }
 0xee7   :  { %v7031_v12 = vsel %vm1976_vm2, %v1978_v41, %v1974_v21 }
 0xf09   :  { %v1943_v6 = vpop.permute.xlu2 %1942 }
 0xf0a   :  { %v1945_v28 = vsel %vm122_vm0, %v1943_v6, 0.0 }
 0xf0b   :  { %1946 = vadd.xlane.f32.xlu0 %v1945_v28 }
 0xf13   :  { %v1983_v62 = vpop.permute.xlu2 %1982 }
 0xf14   :  { %v1985_v1 = vmul.f32 %v1983_v62, %v7031_v12 }
 0xf16   :  { %1987 = vrot.lane.b32.xlu1 %v1985_v1, %s6281_s5 }
 0xf2c   :  { %v1670_v2 = vpop.permute.xlu1 %1669 }
 0xf2d   :  { %v1672_v22 = vmul.f32 %v1670_v2, %v6965_v50 }
 0xf2f   :  { %v7038_v13 = vadd.f32 %v1672_v22, %v1667_v56 }
 0xf31   :  { %1674 = vst.msk [vmem:[#allocation2 + $0x8] sm:$0xff] %vm122_vm0, %v7038_v13  ;;  %v2000_v17 = vpack.c.bf16 %v7038_v13, %v7038_v13 }
 0xf33   :  { %5314 = vmatmul.msk.bf16.vlgmr.msrb.gmra.mxu1 %vm122_vm0, %v2000_v17 }
 0xf38   :  { %v2247_v60 = vpop.xlane.xlu0 %2246 }
 0xf55   :  { %v391_v61 = vpop.xlane.xlu2 %390 }
 0xf56   :  { %v414_v32 = vmul.f32 %v6409_v48, %v391_v61 }
 0xf57   :  { %v2277_v43 = vpop.xlane.xlu1 %2276 }
 0xf58   :  { %v2278_v37 = vmul.f32 %v2277_v43, %v6409_v48  ;;  %v7048_v25 = vsub.f32 %v6946_v57, %v414_v32  ;;  %v2248_v57 = vmul.f32 %v2247_v60, %v6393_v29 }
 0xf5a   :  { %v2279_v50 = vadd.f32 1e-05, %v2278_v37  ;;  %v430_v3 = vmul.f32 %v7048_v25, %v7048_v25  ;;  %v2249_v18 = vadd.f32 1e-05, %v2248_v57 }
 0xf5c   :  { %5888 = vrsqrt.f32 %v2279_v50  ;;  %449 = vrot.lane.b32.xlu0 %v430_v3, %s6276_s23  ;;  %vm2286_vm4 = vweird.f32 %v2279_v50  ;;  %vm2256_vm8 = vweird.f32 %v2249_v18 }
 0xf5d   :  { %5890 = vrsqrt.f32 %v2249_v18 }
 0xf5e   :  { %5892 = vrsqrt.f32 %v255_v31 }
 0xf62   :  { %v5889_v24 = vpop.eup %5888 }
 0xf63   :  { %v2281_v7 = vmul.f32 %v5889_v24, %v2279_v50  ;;  %vm2287_vm3 = vweird.f32 %v5889_v24  ;;  %v5891_v27 = vpop.eup %5890 }
 0xf64   :  { %vm2288_vm5 = vmor %vm2286_vm4, %vm2287_vm3  ;;  %v5893_v45 = vpop.eup %5892  ;;  %v2251_v47 = vmul.f32 %v5891_v27, %v2249_v18  ;;  %vm2257_vm6 = vweird.f32 %v5891_v27 }
 0xf65   :  { %v2282_v16 = vmul.f32 %v5889_v24, %v2281_v7  ;;  %v291_v14 = vmul.f32 %v5893_v45, %v255_v31  ;;  %vm297_vm7 = vweird.f32 %v5893_v45  ;;  %vm2258_vm11 = vmor %vm2256_vm8, %vm2257_vm6 }
 0xf66   :  { %v2252_v44 = vmul.f32 %v5891_v27, %v2251_v47  ;;  %vm298_vm12 = vmor %vm296_vm10, %vm297_vm7 }
 0xf67   :  { %v2283_v9 = vmul.f32 0.5, %v2282_v16  ;;  %v292_v0 = vmul.f32 %v5893_v45, %v291_v14  ;;  %v5703_v14 = vld [vmem:[%s8289_s4 + $0x10] sm:$0xff] }
 0xf69   :  { %v2284_v23 = vsub.f32 1.5, %v2283_v9  ;;  %v293_v10 = vmul.f32 0.5, %v292_v0 }
 0xf6b   :  { %v2285_v34 = vmul.f32 %v5889_v24, %v2284_v23  ;;  %v294_v28 = vsub.f32 1.5, %v293_v10 }
 0xf6d   :  { %v2289_v15 = vsel %vm2288_vm5, %v5889_v24, %v2285_v34  ;;  %v295_v55 = vmul.f32 %v5893_v45, %v294_v28 }
 0xf6e   :  { %v2290_v11 = vmul.f32 %v2289_v15, %v6992_v38  ;;  %v2253_v38 = vmul.f32 0.5, %v2252_v44 }
 0xf6f   :  { %v299_v1 = vsel %vm298_vm12, %v5893_v45, %v295_v55  ;;  %v7073_v45 = vld [vmem:[#allocation7 + $0x2] ss:$0 sm:$0xff] }
 0xf70   :  { %2312 = vrot.lane.b32.xlu2 %v2290_v11, %s6280_s24  ;;  %v2254_v54 = vsub.f32 1.5, %v2253_v38  ;;  %v343_v17 = vmul.f32 %v299_v1, %v6985_v33  ;;  %v5704_v33 = vld [vmem:[%s8289_s4 + $0x18] sm:$0xff] }
 0xf71   :  { %2352 = vmatpush.bf16.msra.mxu0 %v5704_v33 }
 0xf72   :  { %v2255_v51 = vmul.f32 %v5891_v27, %v2254_v54 }
 0xf74   :  { %v2259_v41 = vsel %vm2258_vm11, %v5891_v27, %v2255_v51 }
 0xf75   :  { %v2260_v2 = vmul.f32 %v2259_v41, %v7014_v5  ;;  %2353 = vmatpush.bf16.msra.mxu0 %v5703_v14 }
 0xf77   :  { %v2291_v32 = vadd.f32 %v2260_v2, %v343_v17 }
 0xf79   :  { %v5338_v43 = vmul.f32 -1.442695, %v2291_v32  ;;  %v5706_v32 = vld [vmem:[%s8287_s2 + $0x18] sm:$0xff] }
 0xf7a   :  { %2437 = vmatpush.bf16.msra.mxu1 %v5706_v32 }
 0xf7e   :  { %v1947_v35 = vpop.xlane.xlu0 %1946 }
 0xf7f   :  { %v1948_v40 = vmul.f32 %v1947_v35, %v6409_v48 }
 0xf81   :  { %v1949_v19 = vadd.f32 1e-05, %v1948_v40  ;;  %v5699_v40 = vld [vmem:[%s8287_s2 + $0x20] sm:$0xff] }
 0xf83   :  { %5894 = vrsqrt.f32 %v1949_v19  ;;  %vm1956_vm13 = vweird.f32 %v1949_v19 }
 0xf88   :  { %v1988_v22 = vpop.permute.xlu1 %1987 }
 0xf89   :  { %v5895_v46 = vpop.eup %5894 }
 0xf8a   :  { %v1951_v6 = vmul.f32 %v5895_v46, %v1949_v19  ;;  %vm1957_vm9 = vweird.f32 %v5895_v46  ;;  %v1992_v19 = vsub.f32 1.0, %v7031_v12 }
 0xf8b   :  { %vm1958_vm14 = vmor %vm1956_vm13, %vm1957_vm9 }
 0xf8c   :  { %v1952_v49 = vmul.f32 %v5895_v46, %v1951_v6  ;;  %v1993_v0 = vmul.f32 %v1992_v19, %v6853_v58 }
 0xf8e   :  { %v1953_v36 = vmul.f32 0.5, %v1952_v49 }
 0xf90   :  { %v1954_v21 = vsub.f32 1.5, %v1953_v36 }
 0xf92   :  { %v1955_v62 = vmul.f32 %v5895_v46, %v1954_v21 }
 0xf94   :  { %v1959_v59 = vsel %vm1958_vm14, %v5895_v46, %v1955_v62 }
 0xf95   :  { %v1960_v56 = vmul.f32 %v1959_v59, %v7001_v26  ;;  %v5700_v26 = vld [vmem:[%s8287_s2 + $0x28] sm:$0xff] }
 0xf96   :  { %2111 = vmatpush.bf16.msrb.mxu2 %v5700_v26 }
 0xf97   :  { %v1990_v61 = vadd.f32 %v1988_v22, %v1960_v56 }
 0xf99   :  { %5896 = vtanh.f32 %v1990_v61 }
 0xf9a   :  { %5898 = vpow2.f32 %v5338_v43  ;;  %2112 = vmatpush.bf16.msrb.mxu2 %v5699_v40  ;;  %v5712_v43 = vld [vmem:[%s8289_s4 + $0x8] sm:$0xff] }
 0xf9b   :  { %2767 = vmatpush.bf16.msrb.mxu0 %v5712_v43  ;;  %v7174_v43 = vld [vmem:[#allocation5] ss:$0 sm:$0xff] }
 0xf9f   :  { %v5897_v37 = vpop.eup %5896 }
 0xfa0   :  { %1995 = vrot.lane.b32.xlu1 %v5897_v37, %s6276_s23  ;;  %v5899_v50 = vpop.eup %5898 }
 0xfa1   :  { %v2295_v3 = vadd.f32 1.0, %v5899_v50 }
 0xfa3   :  { %5900 = vrcp.f32 %v2295_v3  ;;  %v2307_v60 = vand.u32 2147483648, %v2295_v3  ;;  %vm2301_vm2 = vweird.f32 %v2295_v3  ;;  %v2305_v34 = vand.u32 2147483647, %v2295_v3 }
 0xfa5   :  { %v2308_v15 = vor.u32 1.1754944e-38, %v2307_v60  ;;  %vm2306_vm4 = vcmp.eq.f32.partialorder %v2305_v34, 8.507059e+37 }
 0xfa9   :  { %v5901_v4 = vpop.eup %5900 }
 0xfaa   :  { %v2297_v7 = vmul.f32 %v5901_v4, %v2295_v3  ;;  %vm2302_vm15 = vweird.f32 %v5901_v4 }
 0xfab   :  { %vm2303_vm3 = vmor %vm2301_vm2, %vm2302_vm15 }
 0xfac   :  { %v2298_v16 = vsub.f32 1.0, %v2297_v7  ;;  %v5711_v7 = vld [vmem:[%s8289_s4] sm:$0xff] }
 0xfad   :  { %2768 = vmatpush.bf16.msrb.mxu0 %v5711_v7 }
 0xfae   :  { %v2299_v9 = vmul.f32 %v5901_v4, %v2298_v16 }
 0xfb0   :  { %v2029_v24 = vpop.f32.mrf.mxu1  ;;  %v2300_v23 = vadd.f32 %v5901_v4, %v2299_v9 }
 0xfb1   :  { %v7076_v47 = vadd.f32 %v7073_v45, %v2029_v24 }
 0xfb2   :  { %v2304_v57 = vsel %vm2303_vm3, %v5901_v4, %v2300_v23  ;;  %v5705_v4 = vld [vmem:[%s8287_s2 + $0x10] sm:$0xff] }
 0xfb3   :  { %v7068_v11 = vsel %vm2306_vm4, %v2308_v15, %v2304_v57  ;;  %v2033_v35 = vsel %vm164_vm1, %v7076_v47, 0.0  ;;  %2438 = vmatpush.bf16.msra.mxu1 %v5705_v4 }
 0xfb4   :  { %v2322_v26 = vsub.f32 1.0, %v7068_v11 }
 0xfb6   :  { %v2323_v16 = vmul.f32 %v2322_v26, %v6886_v63 }
 0xfb8   :  { %v2031_v5 = vpop.f32.mrf.mxu1 }
 0xfca   :  { %v2313_v30 = vpop.permute.xlu2 %2312 }
 0xfcb   :  { %v2315_v18 = vmul.f32 %v2313_v30, %v7068_v11 }
 0xfcd   :  { %2317 = vrot.lane.b32.xlu0 %v2315_v18, %s6281_s5 }
 0xfce   :  { %v450_v31 = vpop.permute.xlu0 %449 }
 0xfcf   :  { %v476_v27 = vsel %vm122_vm0, %v450_v31, 0.0 }
 0xfd0   :  { %477 = vadd.xlane.f32.xlu1 %v476_v27 }
 0xfd5   :  { %2056 = vrot.lane.b32.xlu0 %v7076_v47, %s6276_s23 }
 0xfd8   :  { %2034 = vadd.xlane.f32.xlu1 %v2033_v35 }
0x1012   :  { %v1996_v44 = vpop.permute.xlu1 %1995 }
0x1013   :  { %v1998_v38 = vmul.f32 %v1996_v44, %v7031_v12 }
0x1015   :  { %v7091_v10 = vadd.f32 %v1998_v38, %v1993_v0 }
0x1017   :  { %v2085_v46 = vpack.c.bf16 %v7091_v10, %v7091_v10 }
0x1019   :  { %5327 = vmatmul.msk.bf16.vlgmr.msrb.gmra.mxu2 %vm122_vm0, %v2085_v46  ;;  %5351 = vmatmul.msk.bf16.vlgmr.msra.gmra.mxu0 %vm122_vm0, %v2085_v46  ;;  %v7149_v46 = vld [vmem:[#allocation7] ss:$0 sm:$0xff] }
0x103f   :  { %v2318_v22 = vpop.permute.xlu0 %2317 }
0x1043   :  { %v478_v54 = vpop.xlane.xlu1 %477 }
0x1044   :  { %v494_v6 = vmul.f32 %v478_v54, %v6409_v48 }
0x1046   :  { %v502_v28 = vadd.f32 1e-05, %v494_v6 }
0x1047   :  { %v2057_v37 = vpop.permute.xlu0 %2056 }
0x1048   :  { %5902 = vrsqrt.f32 %v502_v28  ;;  %vm543_vm6 = vweird.f32 %v502_v28  ;;  %v2059_v50 = vsel %vm122_vm0, %v2057_v37, 0.0  ;;  %v7178_v37 = vadd.f32 %v7174_v43, %v6438_v8 }
0x104b   :  { %v2035_v49 = vpop.xlane.xlu1 %2034 }
0x104c   :  { %v2036_v51 = vmul.f32 %v2035_v49, %v6393_v29 }
0x104e   :  { %v5903_v58 = vpop.eup %5902  ;;  %v7100_v12 = vsub.f32 %v7076_v47, %v2036_v51 }
0x104f   :  { %v538_v36 = vmul.f32 %v5903_v58, %v502_v28  ;;  %vm544_vm5 = vweird.f32 %v5903_v58 }
0x1050   :  { %v2038_v55 = vmul.f32 %v7100_v12, %v7100_v12  ;;  %vm545_vm7 = vmor %vm543_vm6, %vm544_vm5 }
0x1051   :  { %v539_v21 = vmul.f32 %v5903_v58, %v538_v36 }
0x1052   :  { %v2039_v41 = vsel %vm164_vm1, %v2038_v55, 0.0 }
0x1053   :  { %v540_v62 = vmul.f32 0.5, %v539_v21  ;;  %2040 = vadd.xlane.f32.xlu1 %v2039_v41 }
0x1055   :  { %v541_v1 = vsub.f32 1.5, %v540_v62 }
0x1057   :  { %v542_v59 = vmul.f32 %v5903_v58, %v541_v1 }
0x1059   :  { %v546_v2 = vsel %vm545_vm7, %v5903_v58, %v542_v59 }
0x105a   :  { %v590_v56 = vmul.f32 %v546_v2, %v7048_v25 }
0x105c   :  { %v2320_v17 = vadd.f32 %v2318_v22, %v590_v56 }
0x105e   :  { %5904 = vtanh.f32 %v2320_v17 }
0x1064   :  { %v5905_v61 = vpop.eup %5904 }
0x1065   :  { %2325 = vrot.lane.b32.xlu2 %v5905_v61, %s6276_s23 }
0x108e   :  { %2060 = vadd.xlane.f32.xlu2 %v2059_v50 }
0x1096   :  { %v2355_v25 = vpop.f32.mrf.mxu0 }
0x1097   :  { %v7133_v63 = vadd.f32 %v6897_v39, %v2355_v25 }
0x1099   :  { %v2359_v36 = vsel %vm164_vm1, %v7133_v63, 0.0 }
0x109c   :  { %v2114_v3 = vpop.f32.mrf.mxu2 }
0x109e   :  { %v2357_v24 = vpop.f32.mrf.mxu0 }
0x10a4   :  { %v2116_v5 = vpop.f32.mrf.mxu2 }
0x10bf   :  { %v2326_v33 = vpop.permute.xlu2 %2325 }
0x10c0   :  { %v2328_v9 = vmul.f32 %v2326_v33, %v7068_v11  ;;  %v7137_v11 = vld [vmem:[#allocation5 + $0x2] ss:$0 sm:$0xff] }
0x10c1   :  { %v7140_v18 = vadd.f32 %v7137_v11, %v2114_v3 }
0x10c2   :  { %v7123_v23 = vadd.f32 %v2328_v9, %v2323_v16 }
0x10c3   :  { %v2118_v31 = vsel %vm164_vm1, %v7140_v18, 0.0 }
0x10c4   :  { %v2411_v60 = vpack.c.bf16 %v7123_v23, %v7123_v23 }
0x10c6   :  { %5364 = vmatmul.msk.bf16.vlgmr.msra.gmra.mxu1 %vm122_vm0, %v2411_v60  ;;  %5401 = vmatmul.msk.bf16.vlgmr.msrb.gmra.mxu0 %vm122_vm0, %v2411_v60  ;;  %v2041_v50 = vpop.xlane.xlu1 %2040 }
0x1101   :  { %v2061_v34 = vpop.xlane.xlu2 %2060 }
0x1102   :  { %v2062_v57 = vmul.f32 %v2061_v34, %v6409_v48  ;;  %v2042_v34 = vmul.f32 %v2041_v50, %v6393_v29 }
0x1104   :  { %v2063_v15 = vsub.f32 %v7076_v47, %v2062_v57 }
0x1106   :  { %v2064_v30 = vmul.f32 %v2063_v15, %v2063_v15 }
0x1108   :  { %2066 = vrot.lane.b32.xlu0 %v2064_v30, %s6276_s23 }
0x1110   :  { %2382 = vrot.lane.b32.xlu0 %v7133_v63, %s6276_s23 }
0x1118   :  { %2141 = vrot.lane.b32.xlu0 %v7140_v18, %s6276_s23 }
0x1142   :  { %2119 = vadd.xlane.f32.xlu0 %v2118_v31 }
0x1143   :  { %v2440_v27 = vpop.f32.mrf.mxu1  ;;  %v2770_v47 = vpop.f32.mrf.mxu0 }
0x1144   :  { %v7152_v54 = vadd.f32 %v7149_v46, %v2770_v47  ;;  %v7166_v55 = vadd.f32 %v6921_v42, %v2440_v27 }
0x1146   :  { %v2444_v56 = vsel %vm164_vm1, %v7166_v55, 0.0 }
0x114b   :  { %v2442_v35 = vpop.f32.mrf.mxu1  ;;  %v2772_v39 = vpop.f32.mrf.mxu0 }
0x117a   :  { %v2067_v40 = vpop.permute.xlu0 %2066 }
0x117b   :  { %v2069_v14 = vsel %vm122_vm0, %v2067_v40, 0.0 }
0x117c   :  { %2070 = vadd.xlane.f32.xlu2 %v2069_v14 }
0x1182   :  { %v2383_v19 = vpop.permute.xlu0 %2382 }
0x1183   :  { %v2385_v44 = vsel %vm122_vm0, %v2383_v19, 0.0 }
0x1184   :  { %2386 = vadd.xlane.f32.xlu1 %v2385_v44 }
0x118a   :  { %v2142_v0 = vpop.permute.xlu0 %2141 }
0x118b   :  { %v2144_v38 = vsel %vm122_vm0, %v2142_v0, 0.0 }
0x118c   :  { %2145 = vadd.xlane.f32.xlu1 %v2144_v38 }
0x11a5   :  { %2797 = vrot.lane.b32.xlu1 %v7152_v54, %s6276_s23 }
0x11b5   :  { %v2120_v6 = vpop.xlane.xlu0 %2119 }
0x11b6   :  { %v2121_v28 = vmul.f32 %v2120_v6, %v6393_v29 }
0x11b8   :  { %v7158_v49 = vsub.f32 %v7140_v18, %v2121_v28 }
0x11ba   :  { %v2123_v51 = vmul.f32 %v7158_v49, %v7158_v49 }
0x11bc   :  { %v2124_v58 = vsel %vm164_vm1, %v2123_v51, 0.0 }
0x11bd   :  { %2125 = vadd.xlane.f32.xlu2 %v2124_v58 }
0x11cf   :  { %2360 = vadd.xlane.f32.xlu1 %v2359_v36 }
0x11d5   :  { %2467 = vrot.lane.b32.xlu2 %v7166_v55, %s6276_s23 }
0x11ef   :  { %v2071_v21 = vpop.xlane.xlu2 %2070 }
0x11f0   :  { %v2072_v41 = vmul.f32 %v2071_v21, %v6409_v48 }
0x11f2   :  { %v2073_v62 = vadd.f32 1e-05, %v2072_v41 }
0x11f4   :  { %5906 = vrsqrt.f32 %v2073_v62  ;;  %vm2080_vm9 = vweird.f32 %v2073_v62 }
0x11f7   :  { %v2387_v25 = vpop.xlane.xlu1 %2386 }
0x11f8   :  { %v2388_v30 = vmul.f32 %v2387_v25, %v6409_v48 }
0x11fa   :  { %v5907_v1 = vpop.eup %5906  ;;  %v7194_v31 = vsub.f32 %v7133_v63, %v2388_v30 }
0x11fb   :  { %v2075_v59 = vmul.f32 %v5907_v1, %v2073_v62  ;;  %vm2081_vm8 = vweird.f32 %v5907_v1 }
0x11fc   :  { %vm2082_vm10 = vmor %vm2080_vm9, %vm2081_vm8  ;;  %v2390_v39 = vmul.f32 %v7194_v31, %v7194_v31 }
0x11fd   :  { %v2076_v2 = vmul.f32 %v5907_v1, %v2075_v59 }
0x11fe   :  { %2445 = vadd.xlane.f32.xlu2 %v2444_v56 }
0x11ff   :  { %v2077_v22 = vmul.f32 0.5, %v2076_v2  ;;  %v2146_v24 = vpop.xlane.xlu1 %2145 }
0x1200   :  { %v2147_v35 = vmul.f32 %v2146_v24, %v6409_v48  ;;  %v2774_v24 = vsel %vm164_vm1, %v7152_v54, 0.0 }
0x1201   :  { %v2078_v17 = vsub.f32 1.5, %v2077_v22 }
0x1202   :  { %v7201_v19 = vsub.f32 %v7140_v18, %v2147_v35 }
0x1203   :  { %v2079_v42 = vmul.f32 %v5907_v1, %v2078_v17 }
0x1205   :  { %v2083_v61 = vsel %vm2082_vm10, %v5907_v1, %v2079_v42 }
0x1206   :  { %v2084_v32 = vmul.f32 %v2083_v61, %v2063_v15  ;;  %v2043_v15 = vadd.f32 1e-05, %v2042_v34 }
0x1208   :  { %2191 = vrot.lane.b32.xlu1 %v2084_v32, %s6280_s24  ;;  %vm2050_vm15 = vweird.f32 %v2043_v15 }
0x1216   :  { %364 = vrot.lane.b32.xlu2 %v7178_v37, %s6276_s23 }
0x1217   :  { %v2798_v4 = vpop.permute.xlu1 %2797 }
0x1218   :  { %v2800_v50 = vsel %vm122_vm0, %v2798_v4, 0.0 }
0x1230   :  { %v2126_v3 = vpop.xlane.xlu2 %2125 }
0x1231   :  { %v2127_v60 = vmul.f32 %v2126_v3, %v6393_v29 }
0x1233   :  { %v2128_v57 = vadd.f32 1e-05, %v2127_v60 }
0x1235   :  { %5908 = vrsqrt.f32 %v2128_v57  ;;  %vm2135_vm13 = vweird.f32 %v2128_v57 }
0x1236   :  { %5910 = vrsqrt.f32 %v2043_v15 }
0x1238   :  { %v2468_v7 = vpop.permute.xlu2 %2467 }
0x1239   :  { %v2470_v5 = vsel %vm122_vm0, %v2468_v7, 0.0 }
0x123b   :  { %v5909_v27 = vpop.eup %5908 }
0x123c   :  { %v5911_v47 = vpop.eup %5910  ;;  %v2130_v40 = vmul.f32 %v5909_v27, %v2128_v57  ;;  %vm2136_vm11 = vweird.f32 %v5909_v27 }
0x123d   :  { %v2045_v14 = vmul.f32 %v5911_v47, %v2043_v15  ;;  %vm2051_vm12 = vweird.f32 %v5911_v47  ;;  %vm2137_vm14 = vmor %vm2135_vm13, %vm2136_vm11 }
0x123e   :  { %v2131_v44 = vmul.f32 %v5909_v27, %v2130_v40  ;;  %vm2052_vm2 = vmor %vm2050_vm15, %vm2051_vm12 }
0x123f   :  { %2471 = vadd.xlane.f32.xlu2 %v2470_v5  ;;  %v2046_v0 = vmul.f32 %v5911_v47, %v2045_v14 }
0x1240   :  { %v2132_v38 = vmul.f32 0.5, %v2131_v44 }
0x1241   :  { %v2047_v6 = vmul.f32 0.5, %v2046_v0  ;;  %v177_v0 = vsel %vm164_vm1, %v7178_v37, 0.0 }
0x1242   :  { %v2361_v26 = vpop.xlane.xlu1 %2360  ;;  %v2133_v28 = vsub.f32 1.5, %v2132_v38 }
0x1243   :  { %v2362_v33 = vmul.f32 %v2361_v26, %v6393_v29  ;;  %v2048_v51 = vsub.f32 1.5, %v2047_v6 }
0x1244   :  { %v2134_v58 = vmul.f32 %v5909_v27, %v2133_v28 }
0x1245   :  { %v7185_v16 = vsub.f32 %v7133_v63, %v2362_v33  ;;  %v2149_v63 = vmul.f32 %v7201_v19, %v7201_v19  ;;  %v2049_v36 = vmul.f32 %v5911_v47, %v2048_v51 }
0x1246   :  { %v2138_v18 = vsel %vm2137_vm14, %v5909_v27, %v2134_v58 }
0x1247   :  { %v2364_v8 = vmul.f32 %v7185_v16, %v7185_v16  ;;  %v2053_v41 = vsel %vm2052_vm2, %v5911_v47, %v2049_v36  ;;  %v2139_v62 = vmul.f32 %v2138_v18, %v7158_v49 }
0x1248   :  { %v2054_v1 = vmul.f32 %v2053_v41, %v7100_v12 }
0x1249   :  { %v2365_v9 = vsel %vm164_vm1, %v2364_v8, 0.0 }
0x124a   :  { %2366 = vadd.xlane.f32.xlu0 %v2365_v9  ;;  %v2170_v2 = vadd.f32 %v2139_v62, %v2054_v1 }
0x124c   :  { %v5328_v42 = vmul.f32 -1.442695, %v2170_v2 }
0x124e   :  { %5912 = vpow2.f32 %v5328_v42 }
0x1254   :  { %v5913_v49 = vpop.eup %5912 }
0x1255   :  { %v2174_v12 = vadd.f32 1.0, %v5913_v49 }
0x1257   :  { %5914 = vrcp.f32 %v2174_v12  ;;  %v2186_v33 = vand.u32 2147483648, %v2174_v12  ;;  %vm2180_vm4 = vweird.f32 %v2174_v12  ;;  %v2184_v8 = vand.u32 2147483647, %v2174_v12 }
0x1259   :  { %v2187_v60 = vor.u32 1.1754944e-38, %v2186_v33  ;;  %vm2185_vm6 = vcmp.eq.f32.partialorder %v2184_v8, 8.507059e+37 }
0x125d   :  { %v5915_v25 = vpop.eup %5914 }
0x125e   :  { %2392 = vrot.lane.b32.xlu0 %v2390_v39, %s6276_s23  ;;  %v2176_v3 = vmul.f32 %v5915_v25, %v2174_v12  ;;  %vm2181_vm3 = vweird.f32 %v5915_v25 }
0x125f   :  { %vm2182_vm5 = vmor %vm2180_vm4, %vm2181_vm3 }
0x1260   :  { %v2177_v7 = vsub.f32 1.0, %v2176_v3 }
0x1262   :  { %v2178_v5 = vmul.f32 %v5915_v25, %v2177_v7 }
0x1264   :  { %v2179_v26 = vadd.f32 %v5915_v25, %v2178_v5 }
0x1266   :  { %2151 = vrot.lane.b32.xlu0 %v2149_v63, %s6276_s23  ;;  %v2183_v9 = vsel %vm2182_vm5, %v5915_v25, %v2179_v26 }
0x1267   :  { %v7219_v4 = vsel %vm2185_vm6, %v2187_v60, %v2183_v9 }
0x1271   :  { %v2446_v21 = vpop.xlane.xlu2 %2445 }
0x1272   :  { %v2447_v59 = vmul.f32 %v2446_v21, %v6393_v29 }
0x1274   :  { %v7210_v22 = vsub.f32 %v7166_v55, %v2447_v59 }
0x1276   :  { %v2449_v61 = vmul.f32 %v7210_v22, %v7210_v22 }
0x1278   :  { %v2450_v32 = vsel %vm164_vm1, %v2449_v61, 0.0 }
0x1279   :  { %v365_v56 = vpop.permute.xlu2 %364 }
0x127a   :  { %v392_v17 = vsel %vm122_vm0, %v365_v56, 0.0  ;;  %v2192_v34 = vpop.permute.xlu1 %2191 }
0x127b   :  { %393 = vadd.xlane.f32.xlu1 %v392_v17  ;;  %v2194_v57 = vmul.f32 %v2192_v34, %v7219_v4 }
0x1283   :  { %2451 = vadd.xlane.f32.xlu1 %v2450_v32 }
0x1290   :  { %2801 = vadd.xlane.f32.xlu0 %v2800_v50 }
0x1298   :  { %2775 = vadd.xlane.f32.xlu0 %v2774_v24 }
0x12ac   :  { %2196 = vrot.lane.b32.xlu0 %v2194_v57, %s6281_s5 }
0x12b2   :  { %v2472_v15 = vpop.xlane.xlu2 %2471 }
0x12b3   :  { %v2473_v30 = vmul.f32 %v2472_v15, %v6409_v48 }
0x12b5   :  { %v7225_v27 = vsub.f32 %v7166_v55, %v2473_v30 }
0x12b7   :  { %v2475_v47 = vmul.f32 %v7225_v27, %v7225_v27 }
0x12b9   :  { %2477 = vrot.lane.b32.xlu1 %v2475_v47, %s6276_s23 }
0x12bd   :  { %v2367_v35 = vpop.xlane.xlu0 %2366 }
0x12be   :  { %v2368_v3 = vmul.f32 %v2367_v35, %v6393_v29 }
0x12c0   :  { %v2369_v5 = vadd.f32 1e-05, %v2368_v3 }
0x12c2   :  { %vm2376_vm3 = vweird.f32 %v2369_v5 }
0x12d0   :  { %v2393_v39 = vpop.permute.xlu0 %2392 }
0x12d1   :  { %v2395_v40 = vsel %vm122_vm0, %v2393_v39, 0.0 }
0x12d2   :  { %2396 = vadd.xlane.f32.xlu2 %v2395_v40 }
0x12d8   :  { %v2152_v14 = vpop.permute.xlu0 %2151 }
0x12d9   :  { %v2154_v44 = vsel %vm122_vm0, %v2152_v14, 0.0 }
0x12da   :  { %2155 = vadd.xlane.f32.xlu2 %v2154_v44 }
0x12e2   :  { %178 = vadd.xlane.f32.xlu2 %v177_v0 }
0x12ee   :  { %v7249_v1 = vpop.xlane.xlu1 %393 }
0x12f6   :  { %v2452_v42 = vpop.xlane.xlu1 %2451 }
0x12f7   :  { %v2453_v49 = vmul.f32 %v2452_v42, %v6393_v29 }
0x12f9   :  { %v2454_v24 = vadd.f32 1e-05, %v2453_v49 }
0x12fb   :  { %vm2461_vm12 = vweird.f32 %v2454_v24 }
0x1303   :  { %v2802_v55 = vpop.xlane.xlu0 %2801 }
0x1304   :  { %v2803_v63 = vmul.f32 %v2802_v55, %v6409_v48 }
0x1306   :  { %v7236_v38 = vsub.f32 %v7152_v54, %v2803_v63 }
0x1308   :  { %v2805_v6 = vmul.f32 %v7236_v38, %v7236_v38 }
0x130a   :  { %2807 = vrot.lane.b32.xlu0 %v2805_v6, %s6276_s23 }
0x130b   :  { %v2776_v28 = vpop.xlane.xlu0 %2775 }
0x130c   :  { %v2777_v51 = vmul.f32 %v2776_v28, %v6393_v29 }
0x130e   :  { %v7243_v58 = vsub.f32 %v7152_v54, %v2777_v51 }
0x1310   :  { %v2779_v36 = vmul.f32 %v7243_v58, %v7243_v58 }
0x1312   :  { %v2780_v18 = vsel %vm164_vm1, %v2779_v36, 0.0 }
0x1313   :  { %2781 = vadd.xlane.f32.xlu1 %v2780_v18 }
0x131e   :  { %v2197_v47 = vpop.permute.xlu0 %2196 }
0x1345   :  { %v2397_v21 = vpop.xlane.xlu2 %2396 }
0x1346   :  { %v2398_v41 = vmul.f32 %v2397_v21, %v6409_v48 }
0x1348   :  { %v2399_v62 = vadd.f32 1e-05, %v2398_v41  ;;  %v2478_v41 = vpop.permute.xlu1 %2477 }
0x134a   :  { %5916 = vrsqrt.f32 %v2399_v62  ;;  %vm2406_vm8 = vweird.f32 %v2399_v62 }
0x134b   :  { %5918 = vrsqrt.f32 %v2454_v24 }
0x134d   :  { %v2156_v61 = vpop.xlane.xlu2 %2155 }
0x134e   :  { %v2157_v12 = vmul.f32 %v2156_v61, %v6409_v48 }
0x1350   :  { %v5917_v59 = vpop.eup %5916  ;;  %v2158_v7 = vadd.f32 1e-05, %v2157_v12 }
0x1351   :  { %v2401_v2 = vmul.f32 %v5917_v59, %v2399_v62  ;;  %vm2407_vm7 = vweird.f32 %v5917_v59  ;;  %v5919_v26 = vpop.eup %5918 }
0x1352   :  { %vm2408_vm9 = vmor %vm2406_vm8, %vm2407_vm7  ;;  %5920 = vrsqrt.f32 %v2158_v7  ;;  %v2456_v9 = vmul.f32 %v5919_v26, %v2454_v24  ;;  %vm2462_vm10 = vweird.f32 %v5919_v26  ;;  %vm2165_vm15 = vweird.f32 %v2158_v7 }
0x1353   :  { %v2402_v56 = vmul.f32 %v5917_v59, %v2401_v2  ;;  %5922 = vrsqrt.f32 %v2369_v5  ;;  %vm2463_vm14 = vmor %vm2461_vm12, %vm2462_vm10  ;;  %v2480_v2 = vsel %vm122_vm0, %v2478_v41, 0.0 }
0x1354   :  { %v2457_v57 = vmul.f32 %v5919_v26, %v2456_v9 }
0x1355   :  { %v2403_v17 = vmul.f32 0.5, %v2402_v56 }
0x1357   :  { %v2404_v54 = vsub.f32 1.5, %v2403_v17 }
0x1358   :  { %v5921_v33 = vpop.eup %5920 }
0x1359   :  { %v2405_v32 = vmul.f32 %v5917_v59, %v2404_v54  ;;  %v5923_v8 = vpop.eup %5922  ;;  %v2160_v60 = vmul.f32 %v5921_v33, %v2158_v7  ;;  %vm2166_vm11 = vweird.f32 %v5921_v33 }
0x135a   :  { %v2371_v34 = vmul.f32 %v5923_v8, %v2369_v5  ;;  %vm2377_vm13 = vweird.f32 %v5923_v8  ;;  %vm2167_vm2 = vmor %vm2165_vm15, %vm2166_vm11 }
0x135b   :  { %v2409_v50 = vsel %vm2408_vm9, %v5917_v59, %v2405_v32  ;;  %v2161_v15 = vmul.f32 %v5921_v33, %v2160_v60  ;;  %vm2378_vm4 = vmor %vm2376_vm3, %vm2377_vm13 }
0x135c   :  { %v2410_v25 = vmul.f32 %v2409_v50, %v7194_v31  ;;  %v2372_v30 = vmul.f32 %v5923_v8, %v2371_v34  ;;  %v2458_v31 = vmul.f32 0.5, %v2457_v57 }
0x135d   :  { %v2162_v35 = vmul.f32 0.5, %v2161_v15 }
0x135e   :  { %2517 = vrot.lane.b32.xlu2 %v2410_v25, %s6280_s24  ;;  %v2373_v39 = vmul.f32 0.5, %v2372_v30  ;;  %v2459_v40 = vsub.f32 1.5, %v2458_v31  ;;  %v179_v25 = vpop.xlane.xlu2 %178  ;;  %v5707_v30 = vld [vmem:[%s8289_s4 + $0x20] sm:$0xff] }
0x135f   :  { %v2163_v14 = vsub.f32 1.5, %v2162_v35  ;;  %v200_v24 = vmul.f32 %v6393_v29, %v179_v25 }
0x1360   :  { %v2374_v44 = vsub.f32 1.5, %v2373_v39  ;;  %v2460_v0 = vmul.f32 %v5919_v26, %v2459_v40 }
0x1361   :  { %v2164_v55 = vmul.f32 %v5921_v33, %v2163_v14  ;;  %v7272_v5 = vsub.f32 %v7178_v37, %v200_v24 }
0x1362   :  { %v2375_v28 = vmul.f32 %v5923_v8, %v2374_v44  ;;  %v2464_v51 = vsel %vm2463_vm14, %v5919_v26, %v2460_v0  ;;  %v2201_v44 = vsub.f32 1.0, %v7219_v4 }
0x1363   :  { %v2168_v36 = vsel %vm2167_vm2, %v5921_v33, %v2164_v55  ;;  %v2465_v21 = vmul.f32 %v2464_v51, %v7210_v22  ;;  %v415_v22 = vmul.f32 %v6409_v48, %v7249_v1  ;;  %v216_v9 = vmul.f32 %v7272_v5, %v7272_v5 }
0x1364   :  { %v2379_v18 = vsel %vm2378_vm4, %v5923_v8, %v2375_v28  ;;  %v2169_v62 = vmul.f32 %v2168_v36, %v7201_v19  ;;  %v2202_v36 = vmul.f32 %v2201_v44, %v7038_v13 }
0x1365   :  { %v2380_v59 = vmul.f32 %v2379_v18, %v7185_v16  ;;  %v7265_v19 = vsub.f32 %v7178_v37, %v415_v22  ;;  %v232_v15 = vsel %vm164_vm1, %v216_v9, 0.0  ;;  %v5708_v37 = vld [vmem:[%s8289_s4 + $0x28] sm:$0xff] }
0x1366   :  { %v2199_v17 = vadd.f32 %v2197_v47, %v2169_v62  ;;  %2561 = vmatpush.bf16.msra.mxu2 %v5708_v37 }
0x1367   :  { %v2496_v56 = vadd.f32 %v2465_v21, %v2380_v59  ;;  %v431_v16 = vmul.f32 %v7265_v19, %v7265_v19 }
0x1368   :  { %5924 = vtanh.f32 %v2199_v17 }
0x1369   :  { %v5365_v42 = vmul.f32 -1.442695, %v2496_v56 }
0x136a   :  { %2562 = vmatpush.bf16.msra.mxu2 %v5707_v30 }
0x136b   :  { %5926 = vpow2.f32 %v5365_v42 }
0x136e   :  { %v5925_v54 = vpop.eup %5924 }
0x1371   :  { %v5927_v61 = vpop.eup %5926 }
0x1372   :  { %v2500_v32 = vadd.f32 1.0, %v5927_v61 }
0x1374   :  { %5928 = vrcp.f32 %v2500_v32  ;;  %v2512_v1 = vand.u32 2147483648, %v2500_v32  ;;  %vm2506_vm6 = vweird.f32 %v2500_v32  ;;  %v2510_v26 = vand.u32 2147483647, %v2500_v32 }
0x1376   :  { %v2513_v8 = vor.u32 1.1754944e-38, %v2512_v1  ;;  %vm2511_vm8 = vcmp.eq.f32.partialorder %v2510_v26, 8.507059e+37 }
0x137a   :  { %v5929_v49 = vpop.eup %5928 }
0x137b   :  { %v2502_v12 = vmul.f32 %v5929_v49, %v2500_v32  ;;  %vm2507_vm5 = vweird.f32 %v5929_v49 }
0x137c   :  { %v2808_v63 = vpop.permute.xlu0 %2807  ;;  %vm2508_vm7 = vmor %vm2506_vm6, %vm2507_vm5 }
0x137d   :  { %v2810_v6 = vsel %vm122_vm0, %v2808_v63, 0.0  ;;  %v2503_v50 = vsub.f32 1.0, %v2502_v12 }
0x137e   :  { %2811 = vadd.xlane.f32.xlu0 %v2810_v6 }
0x137f   :  { %v2504_v3 = vmul.f32 %v5929_v49, %v2503_v50 }
0x1381   :  { %v2505_v7 = vadd.f32 %v5929_v49, %v2504_v3 }
0x1383   :  { %v2509_v33 = vsel %vm2508_vm7, %v5929_v49, %v2505_v7 }
0x1384   :  { %v7276_v34 = vsel %vm2511_vm8, %v2513_v8, %v2509_v33 }
0x1386   :  { %v2782_v42 = vpop.xlane.xlu1 %2781 }
0x1387   :  { %2481 = vadd.xlane.f32.xlu2 %v2480_v2 }
0x1392   :  { %2204 = vrot.lane.b32.xlu0 %v5925_v54, %s6276_s23  ;;  %v2783_v54 = vmul.f32 %v2782_v42, %v6393_v29  ;;  %v5713_v42 = vld [vmem:[%s8289_s4 + $0x10] sm:$0xff] }
0x139f   :  { %451 = vrot.lane.b32.xlu2 %v431_v16, %s6276_s23 }
0x13b8   :  { %v2518_v60 = vpop.permute.xlu2 %2517 }
0x13b9   :  { %v2520_v57 = vmul.f32 %v2518_v60, %v7276_v34 }
0x13bb   :  { %2522 = vrot.lane.b32.xlu1 %v2520_v57, %s6281_s5 }
0x13bc   :  { %233 = vadd.xlane.f32.xlu0 %v232_v15 }
0x13f1   :  { %v2812_v31 = vpop.xlane.xlu0 %2811 }
0x13f2   :  { %v2813_v47 = vmul.f32 %v2812_v31, %v6409_v48 }
0x13f4   :  { %v2814_v35 = vadd.f32 1e-05, %v2813_v47 }
0x13f6   :  { %5930 = vrsqrt.f32 %v2814_v35  ;;  %vm2821_vm10 = vweird.f32 %v2814_v35 }
0x13fa   :  { %v2482_v55 = vpop.xlane.xlu2 %2481 }
0x13fb   :  { %v2483_v6 = vmul.f32 %v2482_v55, %v6409_v48 }
0x13fc   :  { %v5931_v39 = vpop.eup %5930 }
0x13fd   :  { %v2816_v40 = vmul.f32 %v5931_v39, %v2814_v35  ;;  %vm2822_vm9 = vweird.f32 %v5931_v39  ;;  %v2484_v62 = vadd.f32 1e-05, %v2483_v6 }
0x13fe   :  { %vm2823_vm11 = vmor %vm2821_vm10, %vm2822_vm9 }
0x13ff   :  { %v2817_v14 = vmul.f32 %v5931_v39, %v2816_v40  ;;  %5932 = vrsqrt.f32 %v2484_v62  ;;  %vm2491_vm13 = vweird.f32 %v2484_v62 }
0x1401   :  { %v2818_v0 = vmul.f32 0.5, %v2817_v14 }
0x1402   :  { %v452_v3 = vpop.permute.xlu2 %451 }
0x1403   :  { %v2819_v63 = vsub.f32 1.5, %v2818_v0  ;;  %v479_v26 = vsel %vm122_vm0, %v452_v3, 0.0 }
0x1404   :  { %v2205_v28 = vpop.permute.xlu0 %2204 }
0x1405   :  { %v2820_v51 = vmul.f32 %v5931_v39, %v2819_v63  ;;  %v2207_v18 = vmul.f32 %v2205_v28, %v7219_v4  ;;  %v5933_v13 = vpop.eup %5932 }
0x1406   :  { %v2486_v4 = vmul.f32 %v5933_v13, %v2484_v62  ;;  %vm2492_vm12 = vweird.f32 %v5933_v13 }
0x1407   :  { %v7292_v21 = vadd.f32 %v2207_v18, %v2202_v36  ;;  %v2824_v41 = vsel %vm2823_vm11, %v5931_v39, %v2820_v51  ;;  %vm2493_vm14 = vmor %vm2491_vm13, %vm2492_vm12 }
0x1408   :  { %v2825_v59 = vmul.f32 %v2824_v41, %v7236_v38  ;;  %v2487_v56 = vmul.f32 %v5933_v13, %v2486_v4  ;;  %v2784_v38 = vadd.f32 1e-05, %v2783_v54  ;;  %v5710_v4 = vld [vmem:[%s8287_s2 + $0x28] sm:$0xff] }
0x1409   :  { %2209 = vst.msk [vmem:[#allocation2 + $0x10] sm:$0xff] %vm122_vm0, %v7292_v21  ;;  %v2535_v2 = vpack.c.bf16 %v7292_v21, %v7292_v21  ;;  %2646 = vmatpush.bf16.msra.mxu3 %v5710_v4 }
0x140a   :  { %2847 = vrot.lane.b32.xlu1 %v2825_v59, %s6280_s24  ;;  %v2488_v17 = vmul.f32 0.5, %v2487_v56  ;;  %5934 = vrsqrt.f32 %v2784_v38  ;;  %vm2791_vm4 = vweird.f32 %v2784_v38  ;;  %v5714_v56 = vld [vmem:[%s8289_s4 + $0x18] sm:$0xff] }
0x140b   :  { %5378 = vmatmul.msk.bf16.vlgmr.msra.gmra.mxu2 %vm122_vm0, %v2535_v2  ;;  %2887 = vmatpush.bf16.msrb.mxu1 %v5714_v56 }
0x140c   :  { %v2489_v61 = vsub.f32 1.5, %v2488_v17  ;;  %v5709_v17 = vld [vmem:[%s8287_s2 + $0x20] sm:$0xff] }
0x140d   :  { %2647 = vmatpush.bf16.msra.mxu3 %v5709_v17 }
0x140e   :  { %v2490_v22 = vmul.f32 %v5933_v13, %v2489_v61 }
0x140f   :  { %2888 = vmatpush.bf16.msrb.mxu1 %v5713_v42 }
0x1410   :  { %v2494_v32 = vsel %vm2493_vm14, %v5933_v13, %v2490_v22  ;;  %v5935_v50 = vpop.eup %5934 }
0x1411   :  { %v2495_v16 = vmul.f32 %v2494_v32, %v7225_v27  ;;  %v2786_v7 = vmul.f32 %v5935_v50, %v2784_v38  ;;  %vm2792_vm2 = vweird.f32 %v5935_v50  ;;  %v2527_v32 = vsub.f32 1.0, %v7276_v34 }
0x1412   :  { %vm2793_vm6 = vmor %vm2791_vm4, %vm2792_vm2 }
0x1413   :  { %v2787_v8 = vmul.f32 %v5935_v50, %v2786_v7 }
0x1415   :  { %v2788_v27 = vmul.f32 0.5, %v2787_v8 }
0x1417   :  { %v2789_v15 = vsub.f32 1.5, %v2788_v27 }
0x1419   :  { %v2790_v31 = vmul.f32 %v5935_v50, %v2789_v15 }
0x141b   :  { %v2794_v39 = vsel %vm2793_vm6, %v5935_v50, %v2790_v31 }
0x141c   :  { %v2795_v14 = vmul.f32 %v2794_v39, %v7243_v58  ;;  %v5716_v39 = vld [vmem:[%s8287_s2 + $0x18] sm:$0xff] }
0x141d   :  { %2972 = vmatpush.bf16.msrb.mxu2 %v5716_v39 }
0x142d   :  { %v2523_v49 = vpop.permute.xlu1 %2522 }
0x142e   :  { %v2525_v12 = vadd.f32 %v2523_v49, %v2495_v16  ;;  %v2528_v49 = vmul.f32 %v2527_v32, %v7091_v10 }
0x142f   :  { %v234_v25 = vpop.xlane.xlu0 %233 }
0x1430   :  { %5936 = vtanh.f32 %v2525_v12  ;;  %v248_v24 = vmul.f32 %v234_v25, %v6393_v29 }
0x1432   :  { %v256_v1 = vadd.f32 1e-05, %v248_v24 }
0x1434   :  { %5938 = vrsqrt.f32 %v256_v1  ;;  %480 = vadd.xlane.f32.xlu1 %v479_v26  ;;  %vm306_vm3 = vweird.f32 %v256_v1 }
0x1436   :  { %v5937_v33 = vpop.eup %5936 }
0x1437   :  { %2530 = vrot.lane.b32.xlu0 %v5937_v33, %s6276_s23 }
0x143a   :  { %v5939_v9 = vpop.eup %5938 }
0x143b   :  { %v301_v60 = vmul.f32 %v5939_v9, %v256_v1  ;;  %vm307_vm15 = vweird.f32 %v5939_v9 }
0x143c   :  { %vm308_vm5 = vmor %vm306_vm3, %vm307_vm15 }
0x143d   :  { %v302_v57 = vmul.f32 %v5939_v9, %v301_v60 }
0x143f   :  { %v303_v37 = vmul.f32 0.5, %v302_v57 }
0x1441   :  { %v304_v30 = vsub.f32 1.5, %v303_v37 }
0x1443   :  { %v305_v47 = vmul.f32 %v5939_v9, %v304_v30 }
0x1445   :  { %v309_v35 = vsel %vm308_vm5, %v5939_v9, %v305_v47 }
0x1446   :  { %v344_v40 = vmul.f32 %v309_v35, %v7272_v5 }
0x1448   :  { %v2826_v44 = vadd.f32 %v2795_v14, %v344_v40  ;;  %v5722_v40 = vld [vmem:[%s8289_s4 + $0x8] sm:$0xff]  ;;  %v7359_v14 = vadd.f32 %v7174_v43, %v6440_v20  ;;  %v5715_v20 = vld [vmem:[%s8287_s2 + $0x10] sm:$0xff]  ;;  %v5721_v43 = vld [vmem:[%s8289_s4] sm:$0xff] }
0x1449   :  { %3302 = vmatpush.bf16.msra.mxu1 %v5722_v40  ;;  %2973 = vmatpush.bf16.msrb.mxu2 %v5715_v20 }
0x144a   :  { %v5402_v0 = vmul.f32 -1.442695, %v2826_v44 }
0x144c   :  { %5940 = vpow2.f32 %v5402_v0  ;;  %v7363_v0 = vld [vmem:[#allocation7 + $0x1] ss:$0 sm:$0xff] }
0x144d   :  { %3303 = vmatpush.bf16.msra.mxu1 %v5721_v43 }
0x1452   :  { %v5941_v55 = vpop.eup %5940 }
0x1453   :  { %v2830_v63 = vadd.f32 1.0, %v5941_v55 }
0x1455   :  { %5942 = vrcp.f32 %v2830_v63  ;;  %v2842_v41 = vand.u32 2147483648, %v2830_v63  ;;  %vm2836_vm8 = vweird.f32 %v2830_v63  ;;  %v2840_v62 = vand.u32 2147483647, %v2830_v63 }
0x1457   :  { %v2843_v5 = vor.u32 1.1754944e-38, %v2842_v41  ;;  %vm2841_vm10 = vcmp.eq.f32.partialorder %v2840_v62, 8.507059e+37 }
0x145b   :  { %v5943_v6 = vpop.eup %5942 }
0x145c   :  { %v2832_v28 = vmul.f32 %v5943_v6, %v2830_v63  ;;  %vm2837_vm7 = vweird.f32 %v5943_v6 }
0x145d   :  { %vm2838_vm9 = vmor %vm2836_vm8, %vm2837_vm7 }
0x145e   :  { %v2833_v51 = vsub.f32 1.0, %v2832_v28 }
0x1460   :  { %v2834_v36 = vmul.f32 %v5943_v6, %v2833_v51 }
0x1462   :  { %v2835_v18 = vadd.f32 %v5943_v6, %v2834_v36 }
0x1464   :  { %v2839_v59 = vsel %vm2838_vm9, %v5943_v6, %v2835_v18 }
0x1465   :  { %v7308_v58 = vsel %vm2841_vm10, %v2843_v5, %v2839_v59 }
0x1466   :  { %v2857_v18 = vsub.f32 1.0, %v7308_v58 }
0x1468   :  { %v2858_v62 = vmul.f32 %v2857_v18, %v7123_v23 }
0x147c   :  { %v2848_v2 = vpop.permute.xlu1 %2847 }
0x147d   :  { %v2850_v13 = vmul.f32 %v2848_v2, %v7308_v58 }
0x147f   :  { %2852 = vrot.lane.b32.xlu2 %v2850_v13, %s6281_s5 }
0x148e   :  { %v2564_v54 = vpop.f32.mrf.mxu2 }
0x148f   :  { %v7325_v61 = vadd.f32 %v7073_v45, %v2564_v54 }
0x1491   :  { %2591 = vrot.lane.b32.xlu2 %v7325_v61, %s6276_s23  ;;  %v2568_v38 = vsel %vm164_vm1, %v7325_v61, 0.0 }
0x1492   :  { %2569 = vadd.xlane.f32.xlu1 %v2568_v38 }
0x1496   :  { %v2566_v22 = vpop.f32.mrf.mxu2 }
0x14a7   :  { %v481_v25 = vpop.xlane.xlu1 %480 }
0x14a8   :  { %v495_v3 = vmul.f32 %v481_v25, %v6409_v48  ;;  %v7401_v25 = vld [vmem:[#allocation5 + $0x1] ss:$0 sm:$0xff] }
0x14a9   :  { %v2531_v16 = vpop.permute.xlu0 %2530 }
0x14aa   :  { %v2533_v12 = vmul.f32 %v2531_v16, %v7276_v34  ;;  %v503_v24 = vadd.f32 1e-05, %v495_v3 }
0x14ac   :  { %v7334_v50 = vadd.f32 %v2533_v12, %v2528_v49  ;;  %5944 = vrsqrt.f32 %v503_v24  ;;  %vm553_vm12 = vweird.f32 %v503_v24 }
0x14ae   :  { %v2620_v45 = vpack.c.bf16 %v7334_v50, %v7334_v50 }
0x14b0   :  { %5391 = vmatmul.msk.bf16.vlgmr.msra.gmra.mxu3 %vm122_vm0, %v2620_v45  ;;  %5415 = vmatmul.msk.bf16.vlgmr.msrb.gmra.mxu1 %vm122_vm0, %v2620_v45 }
0x14b2   :  { %v5945_v7 = vpop.eup %5944 }
0x14b3   :  { %v548_v1 = vmul.f32 %v5945_v7, %v503_v24  ;;  %vm554_vm11 = vweird.f32 %v5945_v7 }
0x14b4   :  { %vm555_vm13 = vmor %vm553_vm12, %vm554_vm11 }
0x14b5   :  { %v549_v26 = vmul.f32 %v5945_v7, %v548_v1 }
0x14b7   :  { %v550_v10 = vmul.f32 0.5, %v549_v26 }
0x14b9   :  { %v551_v33 = vsub.f32 1.5, %v550_v10 }
0x14bb   :  { %v552_v34 = vmul.f32 %v5945_v7, %v551_v33 }
0x14bd   :  { %v556_v8 = vsel %vm555_vm13, %v5945_v7, %v552_v34 }
0x14be   :  { %v591_v9 = vmul.f32 %v556_v8, %v7265_v19 }
0x14d9   :  { %v2853_v27 = vpop.permute.xlu2 %2852 }
0x14da   :  { %v2855_v60 = vadd.f32 %v2853_v27, %v591_v9 }
0x14dc   :  { %5946 = vtanh.f32 %v2855_v60 }
0x14e2   :  { %v5947_v57 = vpop.eup %5946 }
0x14e3   :  { %2860 = vrot.lane.b32.xlu0 %v5947_v57, %s6276_s23 }
0x14eb   :  { %v2592_v31 = vpop.permute.xlu2 %2591 }
0x14ec   :  { %v2594_v35 = vsel %vm122_vm0, %v2592_v31, 0.0 }
0x1505   :  { %v2570_v15 = vpop.xlane.xlu1 %2569 }
0x1506   :  { %v2571_v37 = vmul.f32 %v2570_v15, %v6393_v29 }
0x1508   :  { %v7345_v30 = vsub.f32 %v7325_v61, %v2571_v37 }
0x150a   :  { %v2573_v47 = vmul.f32 %v7345_v30, %v7345_v30 }
0x150c   :  { %v2574_v19 = vsel %vm164_vm1, %v2573_v47, 0.0 }
0x150d   :  { %2595 = vadd.xlane.f32.xlu0 %v2594_v35  ;;  %2575 = vadd.xlane.f32.xlu1 %v2574_v19 }
0x1526   :  { %366 = vrot.lane.b32.xlu1 %v7359_v14, %s6276_s23 }
0x152d   :  { %v2890_v44 = vpop.f32.mrf.mxu1 }
0x152e   :  { %v2891_v55 = vadd.f32 %v7363_v0, %v2890_v44 }
0x1530   :  { %2917 = vrot.lane.b32.xlu2 %v2891_v55, %s6276_s23  ;;  %v2894_v63 = vsel %vm164_vm1, %v2891_v55, 0.0 }
0x1531   :  { %2895 = vadd.xlane.f32.xlu0 %v2894_v63 }
0x1533   :  { %v2649_v6 = vpop.f32.mrf.mxu3 }
0x1534   :  { %v2650_v51 = vadd.f32 %v7137_v11, %v2649_v6 }
0x1535   :  { %v2892_v28 = vpop.f32.mrf.mxu1 }
0x1536   :  { %v2653_v16 = vsel %vm164_vm1, %v2650_v51, 0.0 }
0x1538   :  { %2676 = vrot.lane.b32.xlu2 %v2650_v51, %s6276_s23 }
0x153b   :  { %v2651_v36 = vpop.f32.mrf.mxu3 }
0x1555   :  { %v2861_v41 = vpop.permute.xlu0 %2860 }
0x1556   :  { %v2863_v11 = vmul.f32 %v2861_v41, %v7308_v58 }
0x1558   :  { %v7379_v59 = vadd.f32 %v2863_v11, %v2858_v62 }
0x155a   :  { %v2946_v5 = vpack.c.bf16 %v7379_v59, %v7379_v59 }
0x155c   :  { %5428 = vmatmul.msk.bf16.vlgmr.msrb.gmra.mxu2 %vm122_vm0, %v2946_v5  ;;  %5465 = vmatmul.msk.bf16.vlgmr.msra.gmra.mxu1 %vm122_vm0, %v2946_v5 }
0x1580   :  { %v2596_v2 = vpop.xlane.xlu0 %2595  ;;  %v2576_v26 = vpop.xlane.xlu1 %2575 }
0x1581   :  { %v2597_v13 = vmul.f32 %v2596_v2, %v6409_v48 }
0x1583   :  { %v7387_v4 = vsub.f32 %v7325_v61, %v2597_v13 }
0x1585   :  { %v2599_v23 = vmul.f32 %v7387_v4, %v7387_v4 }
0x1587   :  { %2601 = vrot.lane.b32.xlu2 %v2599_v23, %s6276_s23 }
0x158a   :  { %v2918_v58 = vpop.permute.xlu2 %2917 }
0x158b   :  { %v2920_v56 = vsel %vm122_vm0, %v2918_v58, 0.0 }
0x158c   :  { %2921 = vadd.xlane.f32.xlu1 %v2920_v56  ;;  %v2577_v56 = vmul.f32 %v2576_v26, %v6393_v29 }
0x1592   :  { %v2677_v17 = vpop.permute.xlu2 %2676 }
0x1593   :  { %v2679_v42 = vsel %vm122_vm0, %v2677_v17, 0.0  ;;  %v2578_v17 = vadd.f32 1e-05, %v2577_v56 }
0x1594   :  { %2680 = vadd.xlane.f32.xlu1 %v2679_v42 }
0x1595   :  { %vm2585_vm4 = vweird.f32 %v2578_v17 }
0x1598   :  { %v7409_v10 = vpop.permute.xlu1 %366 }
0x15a4   :  { %v2896_v54 = vpop.xlane.xlu0 %2895 }
0x15a5   :  { %v2897_v38 = vmul.f32 %v2896_v54, %v6393_v29 }
0x15a7   :  { %v7395_v22 = vsub.f32 %v2891_v55, %v2897_v38 }
0x15a9   :  { %v2899_v61 = vmul.f32 %v7395_v22, %v7395_v22 }
0x15ab   :  { %v2900_v32 = vsel %vm164_vm1, %v2899_v61, 0.0 }
0x15ac   :  { %2901 = vadd.xlane.f32.xlu0 %v2900_v32 }
0x15b0   :  { %2654 = vadd.xlane.f32.xlu2 %v2653_v16 }
0x15d9   :  { %v3305_v49 = vpop.f32.mrf.mxu1 }
0x15da   :  { %v7432_v40 = vadd.f32 %v7149_v46, %v3305_v49 }
0x15df   :  { %v2975_v12 = vpop.f32.mrf.mxu2 }
0x15e0   :  { %v7404_v45 = vadd.f32 %v7401_v25, %v2975_v12 }
0x15e1   :  { %v3307_v3 = vpop.f32.mrf.mxu1  ;;  %v2602_v24 = vpop.permute.xlu2 %2601 }
0x15e2   :  { %3002 = vrot.lane.b32.xlu1 %v7404_v45, %s6276_s23  ;;  %v2604_v7 = vsel %vm122_vm0, %v2602_v24, 0.0  ;;  %v2979_v15 = vsel %vm164_vm1, %v7404_v45, 0.0 }
0x15e3   :  { %2605 = vadd.xlane.f32.xlu0 %v2604_v7 }
0x15e7   :  { %v2977_v1 = vpop.f32.mrf.mxu2 }
0x15ff   :  { %v2922_v33 = vpop.xlane.xlu1 %2921 }
0x1600   :  { %v2923_v34 = vmul.f32 %v2922_v33, %v6409_v48 }
0x1602   :  { %v7412_v8 = vsub.f32 %v2891_v55, %v2923_v34 }
0x1604   :  { %v2925_v9 = vmul.f32 %v7412_v8, %v7412_v8 }
0x1606   :  { %2927 = vrot.lane.b32.xlu2 %v2925_v9, %s6276_s23 }
0x1607   :  { %v2681_v27 = vpop.xlane.xlu1 %2680 }
0x1608   :  { %v2682_v60 = vmul.f32 %v2681_v27, %v6409_v48 }
0x160a   :  { %v7418_v57 = vsub.f32 %v2650_v51, %v2682_v60 }
0x160c   :  { %2980 = vadd.xlane.f32.xlu1 %v2979_v15  ;;  %v2684_v37 = vmul.f32 %v7418_v57, %v7418_v57 }
0x160e   :  { %2686 = vrot.lane.b32.xlu2 %v2684_v37, %s6276_s23 }
0x161f   :  { %v7436_v44 = vpop.xlane.xlu0 %2901 }
0x1623   :  { %v2655_v31 = vpop.xlane.xlu2 %2654 }
0x1624   :  { %v2656_v47 = vmul.f32 %v2655_v31, %v6393_v29 }
0x1626   :  { %v7426_v35 = vsub.f32 %v2650_v51, %v2656_v47 }
0x1628   :  { %v2658_v19 = vmul.f32 %v7426_v35, %v7426_v35 }
0x162a   :  { %v2659_v39 = vsel %vm164_vm1, %v2658_v19, 0.0 }
0x162b   :  { %2660 = vadd.xlane.f32.xlu0 %v2659_v39 }
0x163f   :  { %3332 = vrot.lane.b32.xlu0 %v7432_v40, %s6276_s23 }
0x1654   :  { %v3003_v55 = vpop.permute.xlu1 %3002 }
0x1655   :  { %v3005_v63 = vsel %vm122_vm0, %v3003_v55, 0.0 }
0x1656   :  { %v2606_v6 = vpop.xlane.xlu0 %2605  ;;  %3006 = vadd.xlane.f32.xlu2 %v3005_v63 }
0x1657   :  { %v2607_v28 = vmul.f32 %v2606_v6, %v6409_v48 }
0x1659   :  { %v2608_v51 = vadd.f32 1e-05, %v2607_v28 }
0x165b   :  { %5948 = vrsqrt.f32 %v2608_v51  ;;  %vm2615_vm15 = vweird.f32 %v2608_v51 }
0x165c   :  { %5950 = vrsqrt.f32 %v2578_v17 }
0x1660   :  { %v2928_v31 = vpop.permute.xlu2 %2927 }
0x1661   :  { %v5949_v20 = vpop.eup %5948  ;;  %v2930_v55 = vsel %vm122_vm0, %v2928_v31, 0.0 }
0x1662   :  { %v2610_v43 = vmul.f32 %v5949_v20, %v2608_v51  ;;  %vm2616_vm14 = vweird.f32 %v5949_v20  ;;  %v5951_v42 = vpop.eup %5950 }
0x1663   :  { %vm2617_vm2 = vmor %vm2615_vm15, %vm2616_vm14  ;;  %v2580_v54 = vmul.f32 %v5951_v42, %v2578_v17  ;;  %vm2586_vm3 = vweird.f32 %v5951_v42  ;;  %v395_v17 = vsel %vm122_vm0, %v7409_v10, 0.0 }
0x1664   :  { %v2611_v36 = vmul.f32 %v5949_v20, %v2610_v43  ;;  %vm2587_vm6 = vmor %vm2585_vm4, %vm2586_vm3 }
0x1665   :  { %v2581_v16 = vmul.f32 %v5951_v42, %v2580_v54 }
0x1666   :  { %v2612_v18 = vmul.f32 0.5, %v2611_v36 }
0x1667   :  { %v2582_v49 = vmul.f32 0.5, %v2581_v16 }
0x1668   :  { %v2613_v46 = vsub.f32 1.5, %v2612_v18  ;;  %v2687_v63 = vpop.permute.xlu2 %2686 }
0x1669   :  { %v2583_v3 = vsub.f32 1.5, %v2582_v49  ;;  %v2689_v51 = vsel %vm122_vm0, %v2687_v63, 0.0 }
0x166a   :  { %v2614_v41 = vmul.f32 %v5949_v20, %v2613_v46 }
0x166b   :  { %v2584_v1 = vmul.f32 %v5951_v42, %v2583_v3 }
0x166c   :  { %v2618_v62 = vsel %vm2617_vm2, %v5949_v20, %v2614_v41 }
0x166d   :  { %v2619_v11 = vmul.f32 %v2618_v62, %v7387_v4  ;;  %v180_v4 = vsel %vm164_vm1, %v7359_v14, 0.0  ;;  %v2588_v9 = vsel %vm2587_vm6, %v5951_v42, %v2584_v1 }
0x166e   :  { %v2589_v37 = vmul.f32 %v2588_v9, %v7345_v30 }
0x166f   :  { %2726 = vrot.lane.b32.xlu1 %v2619_v11, %s6280_s24 }
0x167f   :  { %v2981_v5 = vpop.xlane.xlu1 %2980 }
0x1680   :  { %v2982_v2 = vmul.f32 %v2981_v5, %v6393_v29 }
0x1682   :  { %v7444_v13 = vsub.f32 %v7404_v45, %v2982_v2 }
0x1684   :  { %v2984_v23 = vmul.f32 %v7444_v13, %v7444_v13 }
0x1686   :  { %v2985_v58 = vsel %vm164_vm1, %v2984_v23, 0.0 }
0x1687   :  { %2986 = vadd.xlane.f32.xlu2 %v2985_v58 }
0x1699   :  { %181 = vadd.xlane.f32.xlu1 %v180_v4  ;;  %v3309_v4 = vsel %vm164_vm1, %v7432_v40, 0.0 }
0x169e   :  { %v2661_v38 = vpop.xlane.xlu0 %2660 }
0x169f   :  { %v2662_v61 = vmul.f32 %v2661_v38, %v6393_v29 }
0x16a1   :  { %v2663_v32 = vadd.f32 1e-05, %v2662_v61 }
0x16a3   :  { %5952 = vrsqrt.f32 %v2663_v32  ;;  %vm2670_vm7 = vweird.f32 %v2663_v32 }
0x16a9   :  { %v5953_v12 = vpop.eup %5952 }
0x16aa   :  { %v2665_v24 = vmul.f32 %v5953_v12, %v2663_v32  ;;  %vm2671_vm5 = vweird.f32 %v5953_v12 }
0x16ab   :  { %vm2672_vm8 = vmor %vm2670_vm7, %vm2671_vm5 }
0x16ac   :  { %v2666_v7 = vmul.f32 %v5953_v12, %v2665_v24 }
0x16ae   :  { %v2667_v26 = vmul.f32 0.5, %v2666_v7 }
0x16b0   :  { %v2668_v33 = vsub.f32 1.5, %v2667_v26 }
0x16b1   :  { %v3333_v34 = vpop.permute.xlu0 %3332 }
0x16b2   :  { %v2669_v27 = vmul.f32 %v5953_v12, %v2668_v33  ;;  %v3335_v60 = vsel %vm122_vm0, %v3333_v34, 0.0 }
0x16b3   :  { %3336 = vadd.xlane.f32.xlu0 %v3335_v60 }
0x16b4   :  { %v2673_v15 = vsel %vm2672_vm8, %v5953_v12, %v2669_v27 }
0x16b5   :  { %v2674_v47 = vmul.f32 %v2673_v15, %v7426_v35 }
0x16b7   :  { %v2705_v19 = vadd.f32 %v2674_v47, %v2589_v37 }
0x16b9   :  { %v5392_v39 = vmul.f32 -1.442695, %v2705_v19 }
0x16bb   :  { %5954 = vpow2.f32 %v5392_v39  ;;  %2931 = vadd.xlane.f32.xlu0 %v2930_v55 }
0x16c1   :  { %v5955_v6 = vpop.eup %5954 }
0x16c2   :  { %v2709_v28 = vadd.f32 1.0, %v5955_v6 }
0x16c3   :  { %2690 = vadd.xlane.f32.xlu0 %v2689_v51 }
0x16c4   :  { %5956 = vrcp.f32 %v2709_v28  ;;  %v2721_v11 = vand.u32 2147483648, %v2709_v28  ;;  %vm2715_vm10 = vweird.f32 %v2709_v28  ;;  %v2719_v5 = vand.u32 2147483647, %v2709_v28 }
0x16c6   :  { %v2722_v23 = vor.u32 1.1754944e-38, %v2721_v11  ;;  %vm2720_vm12 = vcmp.eq.f32.partialorder %v2719_v5, 8.507059e+37 }
0x16c9   :  { %v3007_v20 = vpop.xlane.xlu2 %3006 }
0x16ca   :  { %v5957_v43 = vpop.eup %5956  ;;  %v3008_v30 = vmul.f32 %v3007_v20, %v6409_v48 }
0x16cb   :  { %v2711_v36 = vmul.f32 %v5957_v43, %v2709_v28  ;;  %vm2716_vm9 = vweird.f32 %v5957_v43 }
0x16cc   :  { %v7460_v35 = vsub.f32 %v7404_v45, %v3008_v30  ;;  %vm2717_vm11 = vmor %vm2715_vm10, %vm2716_vm9 }
0x16cd   :  { %v2712_v18 = vsub.f32 1.0, %v2711_v36 }
0x16ce   :  { %v3010_v46 = vmul.f32 %v7460_v35, %v7460_v35 }
0x16cf   :  { %v2713_v41 = vmul.f32 %v5957_v43, %v2712_v18 }
0x16d1   :  { %v2714_v62 = vadd.f32 %v5957_v43, %v2713_v41 }
0x16d3   :  { %v2718_v2 = vsel %vm2717_vm11, %v5957_v43, %v2714_v62 }
0x16d4   :  { %v7465_v58 = vsel %vm2720_vm12, %v2722_v23, %v2718_v2 }
0x16d7   :  { %3012 = vrot.lane.b32.xlu0 %v3010_v46, %s6276_s23 }
0x16e1   :  { %v2727_v45 = vpop.permute.xlu1 %2726 }
0x16e2   :  { %v2729_v56 = vmul.f32 %v2727_v45, %v7465_v58 }
0x16e4   :  { %2731 = vrot.lane.b32.xlu2 %v2729_v56, %s6281_s5 }
0x16fa   :  { %v2987_v31 = vpop.xlane.xlu2 %2986 }
0x16fb   :  { %v2988_v18 = vmul.f32 %v2987_v31, %v6393_v29 }
0x16fd   :  { %v2989_v46 = vadd.f32 1e-05, %v2988_v18 }
0x16ff   :  { %vm2996_vm7 = vweird.f32 %v2989_v46 }
0x1701   :  { %396 = vadd.xlane.f32.xlu0 %v395_v17 }
0x170c   :  { %v182_v19 = vpop.xlane.xlu1 %181 }
0x170d   :  { %3310 = vadd.xlane.f32.xlu2 %v3309_v4  ;;  %v201_v55 = vmul.f32 %v6393_v29, %v182_v19 }
0x170f   :  { %v7487_v51 = vsub.f32 %v7359_v14, %v201_v55 }
0x1711   :  { %v217_v43 = vmul.f32 %v7487_v51, %v7487_v51 }
0x1713   :  { %v235_v30 = vsel %vm164_vm1, %v217_v43, 0.0 }
0x1726   :  { %v3337_v42 = vpop.xlane.xlu0 %3336 }
0x1727   :  { %v3338_v54 = vmul.f32 %v3337_v42, %v6409_v48 }
0x1729   :  { %v7475_v38 = vsub.f32 %v7432_v40, %v3338_v54 }
0x172b   :  { %v3340_v61 = vmul.f32 %v7475_v38, %v7475_v38 }
0x172d   :  { %3342 = vrot.lane.b32.xlu1 %v3340_v61, %s6276_s23 }
0x172e   :  { %v2932_v32 = vpop.xlane.xlu0 %2931 }
0x172f   :  { %v2933_v16 = vmul.f32 %v2932_v32, %v6409_v48 }
0x1731   :  { %v2934_v10 = vadd.f32 1e-05, %v2933_v16 }
0x1733   :  { %5958 = vrsqrt.f32 %v2934_v10  ;;  %vm2941_vm14 = vweird.f32 %v2934_v10 }
0x1736   :  { %v2691_v49 = vpop.xlane.xlu0 %2690 }
0x1737   :  { %v2692_v12 = vmul.f32 %v2691_v49, %v6409_v48 }
0x1739   :  { %v5959_v3 = vpop.eup %5958  ;;  %v2693_v24 = vadd.f32 1e-05, %v2692_v12 }
0x173a   :  { %v2936_v7 = vmul.f32 %v5959_v3, %v2934_v10  ;;  %vm2942_vm13 = vweird.f32 %v5959_v3 }
0x173b   :  { %5960 = vrsqrt.f32 %v2693_v24  ;;  %vm2943_vm15 = vmor %vm2941_vm14, %vm2942_vm13  ;;  %vm2700_vm3 = vweird.f32 %v2693_v24 }
0x173c   :  { %v2937_v1 = vmul.f32 %v5959_v3, %v2936_v7 }
0x173e   :  { %v2938_v26 = vmul.f32 0.5, %v2937_v1  ;;  %v2732_v20 = vpop.permute.xlu2 %2731 }
0x1740   :  { %v2939_v33 = vsub.f32 1.5, %v2938_v26 }
0x1741   :  { %v5961_v34 = vpop.eup %5960 }
0x1742   :  { %v2940_v9 = vmul.f32 %v5959_v3, %v2939_v33  ;;  %v2695_v27 = vmul.f32 %v5961_v34, %v2693_v24  ;;  %vm2701_vm2 = vweird.f32 %v5961_v34 }
0x1743   :  { %vm2702_vm4 = vmor %vm2700_vm3, %vm2701_vm2 }
0x1744   :  { %v2696_v60 = vmul.f32 %v5961_v34, %v2695_v27  ;;  %v2944_v15 = vsel %vm2943_vm15, %v5959_v3, %v2940_v9  ;;  %v5717_v27 = vld [vmem:[%s8289_s4 + $0x20] sm:$0xff] }
0x1745   :  { %v2945_v37 = vmul.f32 %v2944_v15, %v7412_v8 }
0x1746   :  { %v2697_v47 = vmul.f32 0.5, %v2696_v60 }
0x1747   :  { %3052 = vrot.lane.b32.xlu0 %v2945_v37, %s6280_s24 }
0x1748   :  { %v2698_v39 = vsub.f32 1.5, %v2697_v47 }
0x1749   :  { %v3013_v12 = vpop.permute.xlu0 %3012 }
0x174a   :  { %v2699_v63 = vmul.f32 %v5961_v34, %v2698_v39  ;;  %v3015_v47 = vsel %vm122_vm0, %v3013_v12, 0.0 }
0x174c   :  { %v2703_v6 = vsel %vm2702_vm4, %v5961_v34, %v2699_v63 }
0x174d   :  { %v2704_v28 = vmul.f32 %v2703_v6, %v7418_v57  ;;  %v2903_v57 = vmul.f32 %v7436_v44, %v6393_v29 }
0x174f   :  { %v2734_v8 = vadd.f32 %v2732_v20, %v2704_v28  ;;  %v2904_v41 = vadd.f32 1e-05, %v2903_v57 }
0x1751   :  { %5962 = vtanh.f32 %v2734_v8  ;;  %vm2911_vm9 = vweird.f32 %v2904_v41 }
0x1752   :  { %5964 = vrsqrt.f32 %v2989_v46 }
0x1753   :  { %5966 = vrsqrt.f32 %v2904_v41 }
0x1757   :  { %v5963_v36 = vpop.eup %5962  ;;  %236 = vadd.xlane.f32.xlu1 %v235_v30 }
0x1758   :  { %2739 = vrot.lane.b32.xlu2 %v5963_v36, %s6276_s23  ;;  %v5965_v62 = vpop.eup %5964 }
0x1759   :  { %v5967_v11 = vpop.eup %5966  ;;  %v2991_v5 = vmul.f32 %v5965_v62, %v2989_v46  ;;  %vm2997_vm5 = vweird.f32 %v5965_v62 }
0x175a   :  { %v2906_v2 = vmul.f32 %v5967_v11, %v2904_v41  ;;  %vm2912_vm6 = vweird.f32 %v5967_v11  ;;  %vm2998_vm8 = vmor %vm2996_vm7, %vm2997_vm5 }
0x175b   :  { %v2992_v23 = vmul.f32 %v5965_v62, %v2991_v5  ;;  %vm2913_vm10 = vmor %vm2911_vm9, %vm2912_vm6 }
0x175c   :  { %v2907_v45 = vmul.f32 %v5967_v11, %v2906_v2 }
0x175d   :  { %v2993_v56 = vmul.f32 0.5, %v2992_v23 }
0x175e   :  { %v2908_v17 = vmul.f32 0.5, %v2907_v45 }
0x175f   :  { %v2994_v4 = vsub.f32 1.5, %v2993_v56 }
0x1760   :  { %v2909_v54 = vsub.f32 1.5, %v2908_v17 }
0x1761   :  { %v2995_v32 = vmul.f32 %v5965_v62, %v2994_v4 }
0x1762   :  { %v2910_v16 = vmul.f32 %v5967_v11, %v2909_v54 }
0x1763   :  { %v2999_v49 = vsel %vm2998_vm8, %v5965_v62, %v2995_v32 }
0x1764   :  { %v2914_v24 = vsel %vm2913_vm10, %v5967_v11, %v2910_v16  ;;  %v3000_v7 = vmul.f32 %v2999_v49, %v7444_v13 }
0x1765   :  { %v2915_v1 = vmul.f32 %v2914_v24, %v7395_v22 }
0x1767   :  { %v3031_v26 = vadd.f32 %v3000_v7, %v2915_v1 }
0x1769   :  { %v5429_v34 = vmul.f32 -1.442695, %v3031_v26 }
0x176b   :  { %5968 = vpow2.f32 %v5429_v34 }
0x1771   :  { %v5969_v15 = vpop.eup %5968 }
0x1772   :  { %v3035_v22 = vadd.f32 1.0, %v5969_v15 }
0x1774   :  { %v397_v33 = vpop.xlane.xlu0 %396  ;;  %5970 = vrcp.f32 %v3035_v22  ;;  %v3047_v36 = vand.u32 2147483648, %v3035_v22  ;;  %vm3041_vm12 = vweird.f32 %v3035_v22  ;;  %v3045_v18 = vand.u32 2147483647, %v3035_v22 }
0x1775   :  { %v416_v9 = vmul.f32 %v6409_v48, %v397_v33 }
0x1776   :  { %vm3046_vm14 = vcmp.eq.f32.partialorder %v3045_v18, 8.507059e+37 }
0x1777   :  { %v7513_v60 = vsub.f32 %v7359_v14, %v416_v9  ;;  %v2736_v14 = vsub.f32 1.0, %v7465_v58 }
0x1779   :  { %v432_v13 = vmul.f32 %v7513_v60, %v7513_v60  ;;  %v2737_v6 = vmul.f32 %v2736_v14, %v7292_v21 }
0x177a   :  { %v5971_v19 = vpop.eup %5970 }
0x177b   :  { %v3037_v39 = vmul.f32 %v5971_v19, %v3035_v22  ;;  %vm3042_vm11 = vweird.f32 %v5971_v19 }
0x177c   :  { %vm3043_vm13 = vmor %vm3041_vm12, %vm3042_vm11 }
0x177d   :  { %v3038_v55 = vsub.f32 1.0, %v3037_v39 }
0x177f   :  { %v3039_v20 = vmul.f32 %v5971_v19, %v3038_v55 }
0x1780   :  { %v3311_v42 = vpop.xlane.xlu2 %3310 }
0x1781   :  { %v3312_v61 = vmul.f32 %v3311_v42, %v6393_v29  ;;  %v3040_v30 = vadd.f32 %v5971_v19, %v3039_v20 }
0x1783   :  { %v7498_v44 = vsub.f32 %v7432_v40, %v3312_v61  ;;  %v5718_v40 = vld [vmem:[%s8289_s4 + $0x28] sm:$0xff]  ;;  %v3044_v21 = vsel %vm3043_vm13, %v5971_v19, %v3040_v30 }
0x1784   :  { %3096 = vmatpush.bf16.msrb.mxu3 %v5718_v40 }
0x1785   :  { %v3314_v10 = vmul.f32 %v7498_v44, %v7498_v44 }
0x1787   :  { %v3315_v3 = vsel %vm164_vm1, %v3314_v10, 0.0 }
0x1788   :  { %3316 = vadd.xlane.f32.xlu0 %v3315_v3  ;;  %3097 = vmatpush.bf16.msrb.mxu3 %v5717_v27 }
0x179c   :  { %453 = vrot.lane.b32.xlu0 %v432_v13, %s6276_s23 }
0x179f   :  { %v3343_v37 = vpop.permute.xlu1 %3342 }
0x17a0   :  { %v3345_v31 = vsel %vm122_vm0, %v3343_v37, 0.0 }
0x17a1   :  { %3346 = vadd.xlane.f32.xlu1 %v3345_v31 }
0x17a9   :  { %3016 = vadd.xlane.f32.xlu1 %v3015_v47 }
0x17b2   :  { %v2740_v63 = vpop.permute.xlu2 %2739 }
0x17b3   :  { %v2742_v28 = vmul.f32 %v2740_v63, %v7465_v58  ;;  %v3048_v58 = vor.u32 1.1754944e-38, %v3047_v36 }
0x17b5   :  { %v7523_v8 = vadd.f32 %v2742_v28, %v2737_v6  ;;  %v7530_v46 = vsel %vm3046_vm14, %v3048_v58, %v3044_v21 }
0x17b7   :  { %2744 = vst.msk [vmem:[#allocation2 + $0x18] sm:$0xff] %vm122_vm0, %v7523_v8  ;;  %v3070_v43 = vpack.c.bf16 %v7523_v8, %v7523_v8 }
0x17b9   :  { %5442 = vmatmul.msk.bf16.vlgmr.msrb.gmra.mxu3 %vm122_vm0, %v3070_v43  ;;  %v3053_v57 = vpop.permute.xlu0 %3052 }
0x17ba   :  { %v3055_v41 = vmul.f32 %v3053_v57, %v7530_v46 }
0x17c2   :  { %3057 = vrot.lane.b32.xlu1 %v3055_v41, %s6281_s5 }
0x17ca   :  { %v237_v11 = vpop.xlane.xlu1 %236 }
0x17cb   :  { %v249_v26 = vmul.f32 %v237_v11, %v6393_v29 }
0x17cd   :  { %v257_v27 = vadd.f32 1e-05, %v249_v26 }
0x17cf   :  { %vm316_vm11 = vweird.f32 %v257_v27 }
0x17fb   :  { %v3317_v62 = vpop.xlane.xlu0 %3316 }
0x17fc   :  { %v3318_v24 = vmul.f32 %v3317_v62, %v6393_v29 }
0x17fe   :  { %v3319_v34 = vadd.f32 1e-05, %v3318_v24  ;;  %v7558_v24 = vld [vmem:[#allocation7 + $0x2] ss:$0 sm:$0xff] }
0x1800   :  { %vm3326_vm9 = vweird.f32 %v3319_v34 }
0x180e   :  { %v454_v5 = vpop.permute.xlu0 %453 }
0x180f   :  { %v482_v2 = vsel %vm122_vm0, %v454_v5, 0.0 }
0x1810   :  { %483 = vadd.xlane.f32.xlu0 %v482_v2 }
0x1814   :  { %v3347_v23 = vpop.xlane.xlu1 %3346 }
0x1815   :  { %v3348_v45 = vmul.f32 %v3347_v23, %v6409_v48 }
0x1817   :  { %v3349_v56 = vadd.f32 1e-05, %v3348_v45 }
0x1819   :  { %5972 = vrsqrt.f32 %v3349_v56  ;;  %vm3356_vm2 = vweird.f32 %v3349_v56 }
0x181c   :  { %v3017_v17 = vpop.xlane.xlu1 %3016 }
0x181d   :  { %v3018_v4 = vmul.f32 %v3017_v17, %v6409_v48  ;;  %v5724_v17 = vld [vmem:[%s8289_s4 + $0x18] sm:$0xff] }
0x181e   :  { %3422 = vmatpush.bf16.msra.mxu2 %v5724_v17 }
0x181f   :  { %v5973_v42 = vpop.eup %5972  ;;  %v3019_v54 = vadd.f32 1e-05, %v3018_v4  ;;  %v5723_v4 = vld [vmem:[%s8289_s4 + $0x10] sm:$0xff] }
0x1820   :  { %v3351_v61 = vmul.f32 %v5973_v42, %v3349_v56  ;;  %vm3357_vm15 = vweird.f32 %v5973_v42  ;;  %v5720_v56 = vld [vmem:[%s8287_s2 + $0x28] sm:$0xff] }
0x1821   :  { %5974 = vrsqrt.f32 %v3019_v54  ;;  %vm3358_vm3 = vmor %vm3356_vm2, %vm3357_vm15  ;;  %vm3026_vm5 = vweird.f32 %v3019_v54  ;;  %3181 = vmatpush.bf16.msra.mxu0 %v5720_v56 }
0x1822   :  { %v3352_v32 = vmul.f32 %v5973_v42, %v3351_v61  ;;  %5976 = vrsqrt.f32 %v3319_v34  ;;  %3423 = vmatpush.bf16.msra.mxu2 %v5723_v4 }
0x1823   :  { %5978 = vrsqrt.f32 %v257_v27 }
0x1824   :  { %v3353_v16 = vmul.f32 0.5, %v3352_v32 }
0x1826   :  { %v3354_v10 = vsub.f32 1.5, %v3353_v16 }
0x1827   :  { %v5975_v49 = vpop.eup %5974 }
0x1828   :  { %v3355_v12 = vmul.f32 %v5973_v42, %v3354_v10  ;;  %v3021_v3 = vmul.f32 %v5975_v49, %v3019_v54  ;;  %vm3027_vm4 = vweird.f32 %v5975_v49 }
0x1829   :  { %vm3028_vm6 = vmor %vm3026_vm5, %vm3027_vm4 }
0x182a   :  { %v3359_v40 = vsel %vm3358_vm3, %v5973_v42, %v3355_v12  ;;  %v3022_v7 = vmul.f32 %v5975_v49, %v3021_v3 }
0x182b   :  { %v3360_v1 = vmul.f32 %v3359_v40, %v7475_v38  ;;  %v5977_v38 = vpop.eup %5976 }
0x182c   :  { %v3023_v33 = vmul.f32 0.5, %v3022_v7  ;;  %v5979_v47 = vpop.eup %5978  ;;  %v3321_v19 = vmul.f32 %v5977_v38, %v3319_v34  ;;  %vm3327_vm7 = vweird.f32 %v5977_v38  ;;  %v3062_v7 = vsub.f32 1.0, %v7530_v46 }
0x182d   :  { %3382 = vrot.lane.b32.xlu2 %v3360_v1, %s6280_s24  ;;  %v311_v14 = vmul.f32 %v5979_v47, %v257_v27  ;;  %vm317_vm8 = vweird.f32 %v5979_v47  ;;  %vm3328_vm10 = vmor %vm3326_vm9, %vm3327_vm7 }
0x182e   :  { %v3024_v9 = vsub.f32 1.5, %v3023_v33  ;;  %v3322_v63 = vmul.f32 %v5977_v38, %v3321_v19  ;;  %vm318_vm12 = vmor %vm316_vm11, %vm317_vm8  ;;  %v3063_v26 = vmul.f32 %v3062_v7, %v7334_v50 }
0x182f   :  { %v312_v6 = vmul.f32 %v5979_v47, %v311_v14 }
0x1830   :  { %v3025_v13 = vmul.f32 %v5975_v49, %v3024_v9  ;;  %v3323_v28 = vmul.f32 0.5, %v3322_v63  ;;  %v5726_v63 = vld [vmem:[%s8287_s2 + $0x18] sm:$0xff] }
0x1831   :  { %v313_v43 = vmul.f32 0.5, %v312_v6  ;;  %v5732_v6 = vld [vmem:[%s8289_s4 + $0x8] sm:$0xff]  ;;  %3507 = vmatpush.bf16.msra.mxu3 %v5726_v63 }
0x1832   :  { %v3029_v15 = vsel %vm3028_vm6, %v5975_v49, %v3025_v13  ;;  %v3324_v30 = vsub.f32 1.5, %v3323_v28  ;;  %3837 = vmatpush.bf16.msrb.mxu2 %v5732_v6 }
0x1833   :  { %v3030_v22 = vmul.f32 %v3029_v15, %v7460_v35  ;;  %v314_v36 = vsub.f32 1.5, %v313_v43  ;;  %v7584_v43 = vld [vmem:[#allocation5 + $0x2] ss:$0 sm:$0xff] }
0x1834   :  { %v3058_v37 = vpop.permute.xlu1 %3057  ;;  %v3325_v18 = vmul.f32 %v5977_v38, %v3324_v30 }
0x1835   :  { %v3060_v31 = vadd.f32 %v3058_v37, %v3030_v22  ;;  %v315_v35 = vmul.f32 %v5979_v47, %v314_v36 }
0x1836   :  { %v3329_v21 = vsel %vm3328_vm10, %v5977_v38, %v3325_v18 }
0x1837   :  { %5980 = vtanh.f32 %v3060_v31  ;;  %v319_v57 = vsel %vm318_vm12, %v5979_v47, %v315_v35  ;;  %v3330_v58 = vmul.f32 %v3329_v21, %v7498_v44 }
0x1838   :  { %v345_v41 = vmul.f32 %v319_v57, %v7487_v51  ;;  %v5719_v51 = vld [vmem:[%s8287_s2 + $0x20] sm:$0xff] }
0x1839   :  { %3182 = vmatpush.bf16.msra.mxu0 %v5719_v51 }
0x183a   :  { %v3361_v62 = vadd.f32 %v3330_v58, %v345_v41  ;;  %v5725_v58 = vld [vmem:[%s8287_s2 + $0x10] sm:$0xff]  ;;  %v5731_v41 = vld [vmem:[%s8289_s4] sm:$0xff] }
0x183b   :  { %3508 = vmatpush.bf16.msra.mxu3 %v5725_v58  ;;  %3838 = vmatpush.bf16.msrb.mxu2 %v5731_v41 }
0x183c   :  { %v3099_v39 = vpop.f32.mrf.mxu3  ;;  %v5466_v11 = vmul.f32 -1.442695, %v3361_v62 }
0x183d   :  { %v5981_v55 = vpop.eup %5980  ;;  %v7561_v40 = vadd.f32 %v7558_v24, %v3099_v39 }
0x183e   :  { %3065 = vrot.lane.b32.xlu2 %v5981_v55, %s6276_s23  ;;  %5982 = vpow2.f32 %v5466_v11 }
0x1844   :  { %v3101_v20 = vpop.f32.mrf.mxu3  ;;  %v5983_v5 = vpop.eup %5982 }
0x1845   :  { %v3365_v2 = vadd.f32 1.0, %v5983_v5 }
0x1847   :  { %5984 = vrcp.f32 %v3365_v2  ;;  %v3377_v61 = vand.u32 2147483648, %v3365_v2  ;;  %vm3371_vm14 = vweird.f32 %v3365_v2  ;;  %v3375_v32 = vand.u32 2147483647, %v3365_v2 }
0x1849   :  { %v3378_v10 = vor.u32 1.1754944e-38, %v3377_v61  ;;  %vm3376_vm2 = vcmp.eq.f32.partialorder %v3375_v32, 8.507059e+37 }
0x184d   :  { %v5985_v23 = vpop.eup %5984 }
0x184e   :  { %v3367_v45 = vmul.f32 %v5985_v23, %v3365_v2  ;;  %vm3372_vm13 = vweird.f32 %v5985_v23 }
0x184f   :  { %vm3373_vm15 = vmor %vm3371_vm14, %vm3372_vm13 }
0x1850   :  { %v3368_v44 = vsub.f32 1.0, %v3367_v45 }
0x1852   :  { %v3369_v42 = vmul.f32 %v5985_v23, %v3368_v44 }
0x1854   :  { %v3370_v54 = vadd.f32 %v5985_v23, %v3369_v42 }
0x1856   :  { %v3374_v16 = vsel %vm3373_vm15, %v5985_v23, %v3370_v54 }
0x1857   :  { %v3379_v49 = vsel %vm3376_vm2, %v3378_v10, %v3374_v16  ;;  %v3103_v10 = vsel %vm164_vm1, %v7561_v40, 0.0 }
0x1858   :  { %v3392_v62 = vsub.f32 1.0, %v3379_v49 }
0x185a   :  { %v3393_v5 = vmul.f32 %v3392_v62, %v7379_v59 }
0x1883   :  { %v484_v27 = vpop.xlane.xlu0 %483 }
0x1884   :  { %v496_v13 = vmul.f32 %v484_v27, %v6409_v48 }
0x1886   :  { %v504_v15 = vadd.f32 1e-05, %v496_v13 }
0x1887   :  { %v3383_v12 = vpop.permute.xlu2 %3382 }
0x1888   :  { %v3385_v3 = vmul.f32 %v3383_v12, %v3379_v49  ;;  %5986 = vrsqrt.f32 %v504_v15  ;;  %vm563_vm4 = vweird.f32 %v504_v15 }
0x188a   :  { %3387 = vrot.lane.b32.xlu2 %v3385_v3, %s6281_s5  ;;  %v7624_v3 = vld [vmem:[#allocation7] ss:$0 sm:$0xff] }
0x188e   :  { %v5987_v22 = vpop.eup %5986 }
0x188f   :  { %v558_v37 = vmul.f32 %v5987_v22, %v504_v15  ;;  %vm564_vm3 = vweird.f32 %v5987_v22 }
0x1890   :  { %vm565_vm5 = vmor %vm563_vm4, %vm564_vm3 }
0x1891   :  { %v559_v31 = vmul.f32 %v5987_v22, %v558_v37 }
0x1892   :  { %3126 = vrot.lane.b32.xlu2 %v7561_v40, %s6276_s23 }
0x1893   :  { %v560_v50 = vmul.f32 0.5, %v559_v31 }
0x1895   :  { %v561_v38 = vsub.f32 1.5, %v560_v50 }
0x1898   :  { %v3066_v1 = vpop.permute.xlu2 %3065 }
0x1899   :  { %v3068_v33 = vmul.f32 %v3066_v1, %v7530_v46  ;;  %v562_v46 = vmul.f32 %v5987_v22, %v561_v38 }
0x189b   :  { %v7568_v34 = vadd.f32 %v3068_v33, %v3063_v26  ;;  %v566_v47 = vsel %vm565_vm5, %v5987_v22, %v562_v46 }
0x189c   :  { %v592_v19 = vmul.f32 %v566_v47, %v7513_v60 }
0x189d   :  { %v3155_v9 = vpack.c.bf16 %v7568_v34, %v7568_v34 }
0x189f   :  { %5455 = vmatmul.msk.bf16.vlgmr.msra.gmra.mxu0 %vm122_vm0, %v3155_v9  ;;  %5479 = vmatmul.msk.bf16.vlgmr.msra.gmra.mxu2 %vm122_vm0, %v3155_v9 }
0x18e4   :  { %v3388_v39 = vpop.permute.xlu2 %3387 }
0x18e5   :  { %v3390_v14 = vadd.f32 %v3388_v39, %v592_v19 }
0x18e7   :  { %5988 = vtanh.f32 %v3390_v14 }
0x18ec   :  { %v3127_v28 = vpop.permute.xlu2 %3126 }
0x18ed   :  { %v5989_v55 = vpop.eup %5988  ;;  %v3129_v20 = vsel %vm122_vm0, %v3127_v28, 0.0 }
0x18ee   :  { %3395 = vrot.lane.b32.xlu1 %v5989_v55, %s6276_s23 }
0x1918   :  { %3130 = vadd.xlane.f32.xlu1 %v3129_v20 }
0x191c   :  { %v3184_v60 = vpop.f32.mrf.mxu0 }
0x191d   :  { %v7587_v30 = vadd.f32 %v7584_v43, %v3184_v60 }
0x191f   :  { %3211 = vrot.lane.b32.xlu2 %v7587_v30, %s6276_s23  ;;  %v3188_v36 = vsel %vm164_vm1, %v7587_v30, 0.0 }
0x1920   :  { %3189 = vadd.xlane.f32.xlu0 %v3188_v36 }
0x1922   :  { %v3425_v18 = vpop.f32.mrf.mxu2 }
0x1923   :  { %v7594_v21 = vadd.f32 %v7363_v0, %v3425_v18 }
0x1924   :  { %v3186_v35 = vpop.f32.mrf.mxu0 }
0x1925   :  { %v3429_v31 = vsel %vm164_vm1, %v7594_v21, 0.0  ;;  %v6162_v35 = vld [vmem:[#allocation5] ss:$0 sm:$0xff] }
0x1927   :  { %3452 = vrot.lane.b32.xlu2 %v7594_v21, %s6276_s23 }
0x192a   :  { %v3427_v57 = vpop.f32.mrf.mxu2 }
0x192b   :  { %v7653_v57 = vadd.f32 %v6162_v35, %v6494_v52 }
0x192d   :  { %v183_v58 = vsel %vm164_vm1, %v7653_v57, 0.0 }
0x1960   :  { %v3396_v11 = vpop.permute.xlu1 %3395 }
0x1961   :  { %v3398_v0 = vmul.f32 %v3396_v11, %v3379_v49 }
0x1963   :  { %v7605_v2 = vadd.f32 %v3398_v0, %v3393_v5 }
0x1965   :  { %v3481_v23 = vpack.c.bf16 %v7605_v2, %v7605_v2 }
0x1967   :  { %5492 = vmatmul.msk.bf16.vlgmr.msra.gmra.mxu3 %vm122_vm0, %v3481_v23  ;;  %5529 = vmatmul.msk.bf16.vlgmr.msrb.gmra.mxu2 %vm122_vm0, %v3481_v23 }
0x1979   :  { %v3212_v45 = vpop.permute.xlu2 %3211 }
0x197a   :  { %v3214_v50 = vsel %vm122_vm0, %v3212_v45, 0.0 }
0x1981   :  { %v3453_v56 = vpop.permute.xlu2 %3452 }
0x1982   :  { %v3455_v17 = vsel %vm122_vm0, %v3453_v56, 0.0 }
0x1983   :  { %3456 = vadd.xlane.f32.xlu0 %v3455_v17 }
0x198b   :  { %v3131_v44 = vpop.xlane.xlu1 %3130 }
0x198c   :  { %v3132_v51 = vmul.f32 %v3131_v44, %v6409_v48 }
0x198e   :  { %v3133_v59 = vsub.f32 %v7561_v40, %v3132_v51 }
0x1990   :  { %v3134_v4 = vmul.f32 %v3133_v59, %v3133_v59 }
0x1992   :  { %3136 = vrot.lane.b32.xlu2 %v3134_v4, %s6276_s23 }
0x1993   :  { %v3190_v42 = vpop.xlane.xlu0 %3189 }
0x1994   :  { %v3191_v54 = vmul.f32 %v3190_v42, %v6393_v29 }
0x1996   :  { %v7617_v61 = vsub.f32 %v7587_v30, %v3191_v54 }
0x1998   :  { %v3193_v32 = vmul.f32 %v7617_v61, %v7617_v61 }
0x199a   :  { %v3194_v16 = vsel %vm164_vm1, %v3193_v32, 0.0 }
0x199b   :  { %3195 = vadd.xlane.f32.xlu0 %v3194_v16 }
0x19bb   :  { %3104 = vadd.xlane.f32.xlu2 %v3103_v10 }
0x19ea   :  { %v3510_v49 = vpop.f32.mrf.mxu3  ;;  %v3840_v12 = vpop.f32.mrf.mxu2 }
0x19eb   :  { %v7627_v7 = vadd.f32 %v7624_v3, %v3840_v12  ;;  %v7645_v47 = vadd.f32 %v7401_v25, %v3510_v49 }
0x19ec   :  { %v3137_v1 = vpop.permute.xlu2 %3136 }
0x19ed   :  { %v3139_v26 = vsel %vm122_vm0, %v3137_v1, 0.0  ;;  %3867 = vrot.lane.b32.xlu2 %v7627_v7, %s6276_s23 }
0x19ee   :  { %3140 = vadd.xlane.f32.xlu0 %v3139_v26 }
0x19f2   :  { %v3512_v33 = vpop.f32.mrf.mxu3  ;;  %v3842_v9 = vpop.f32.mrf.mxu2 }
0x19f6   :  { %v7642_v38 = vpop.xlane.xlu0 %3456 }
0x1a0e   :  { %v3196_v46 = vpop.xlane.xlu0 %3195 }
0x1a0f   :  { %v3197_v36 = vmul.f32 %v3196_v46, %v6393_v29 }
0x1a11   :  { %v3198_v18 = vadd.f32 1e-05, %v3197_v36 }
0x1a13   :  { %vm3205_vm10 = vweird.f32 %v3198_v18 }
0x1a2e   :  { %v3105_v27 = vpop.xlane.xlu2 %3104 }
0x1a2f   :  { %v3106_v13 = vmul.f32 %v3105_v27, %v6393_v29 }
0x1a31   :  { %v7634_v15 = vsub.f32 %v7561_v40, %v3106_v13 }
0x1a33   :  { %v3108_v22 = vmul.f32 %v7634_v15, %v7634_v15 }
0x1a35   :  { %v3109_v37 = vsel %vm164_vm1, %v3108_v22, 0.0 }
0x1a36   :  { %3110 = vadd.xlane.f32.xlu1 %v3109_v37  ;;  %v3514_v37 = vsel %vm164_vm1, %v7645_v47, 0.0 }
0x1a3e   :  { %3430 = vadd.xlane.f32.xlu1 %v3429_v31 }
0x1a46   :  { %3215 = vadd.xlane.f32.xlu1 %v3214_v50  ;;  %v3458_v50 = vmul.f32 %v7642_v38, %v6409_v48 }
0x1a47   :  { %v3868_v35 = vpop.permute.xlu2 %3867 }
0x1a5f   :  { %3537 = vrot.lane.b32.xlu1 %v7645_v47, %s6276_s23 }
0x1a61   :  { %v3141_v40 = vpop.xlane.xlu0 %3140 }
0x1a62   :  { %v3142_v19 = vmul.f32 %v3141_v40, %v6409_v48 }
0x1a64   :  { %v3143_v39 = vadd.f32 1e-05, %v3142_v19  ;;  %v7679_v19 = vsub.f32 %v7594_v21, %v3458_v50 }
0x1a66   :  { %5990 = vrsqrt.f32 %v3143_v39  ;;  %vm3150_vm7 = vweird.f32 %v3143_v39 }
0x1a67   :  { %5992 = vrsqrt.f32 %v3198_v18 }
0x1a6c   :  { %v5991_v14 = vpop.eup %5990 }
0x1a6d   :  { %v3145_v55 = vmul.f32 %v5991_v14, %v3143_v39  ;;  %vm3151_vm6 = vweird.f32 %v5991_v14  ;;  %v5993_v41 = vpop.eup %5992 }
0x1a6e   :  { %vm3152_vm8 = vmor %vm3150_vm7, %vm3151_vm6  ;;  %v3200_v62 = vmul.f32 %v5993_v41, %v3198_v18  ;;  %vm3206_vm9 = vweird.f32 %v5993_v41 }
0x1a6f   :  { %v3146_v63 = vmul.f32 %v5991_v14, %v3145_v55  ;;  %vm3207_vm12 = vmor %vm3205_vm10, %vm3206_vm9 }
0x1a70   :  { %v3201_v23 = vmul.f32 %v5993_v41, %v3200_v62 }
0x1a71   :  { %v3147_v6 = vmul.f32 0.5, %v3146_v63 }
0x1a72   :  { %v3202_v45 = vmul.f32 0.5, %v3201_v23 }
0x1a73   :  { %v3148_v28 = vsub.f32 1.5, %v3147_v6 }
0x1a74   :  { %v3203_v51 = vsub.f32 1.5, %v3202_v45 }
0x1a75   :  { %v3149_v20 = vmul.f32 %v5991_v14, %v3148_v28 }
0x1a76   :  { %v3204_v32 = vmul.f32 %v5993_v41, %v3203_v51 }
0x1a77   :  { %v3153_v60 = vsel %vm3152_vm8, %v5991_v14, %v3149_v20 }
0x1a78   :  { %v3154_v25 = vmul.f32 %v3153_v60, %v3133_v59  ;;  %v3208_v26 = vsel %vm3207_vm12, %v5993_v41, %v3204_v32 }
0x1a79   :  { %v3209_v13 = vmul.f32 %v3208_v26, %v7617_v61  ;;  %v3460_v61 = vmul.f32 %v7679_v19, %v7679_v19  ;;  %v3844_v26 = vsel %vm164_vm1, %v7627_v7, 0.0 }
0x1a7a   :  { %3261 = vrot.lane.b32.xlu1 %v3154_v25, %s6280_s24 }
0x1aa4   :  { %184 = vadd.xlane.f32.xlu1 %v183_v58  ;;  %v3870_v58 = vsel %vm122_vm0, %v3868_v35, 0.0 }
0x1aa9   :  { %v3111_v11 = vpop.xlane.xlu1 %3110 }
0x1aaa   :  { %v3112_v5 = vmul.f32 %v3111_v11, %v6393_v29 }
0x1aac   :  { %v3113_v0 = vadd.f32 1e-05, %v3112_v5 }
0x1aae   :  { %5994 = vrsqrt.f32 %v3113_v0  ;;  %vm3120_vm13 = vweird.f32 %v3113_v0 }
0x1ab1   :  { %v3431_v56 = vpop.xlane.xlu1 %3430 }
0x1ab2   :  { %v3432_v17 = vmul.f32 %v3431_v56, %v6393_v29 }
0x1ab4   :  { %v5995_v44 = vpop.eup %5994  ;;  %v7660_v52 = vsub.f32 %v7594_v21, %v3432_v17 }
0x1ab5   :  { %v3115_v59 = vmul.f32 %v5995_v44, %v3113_v0  ;;  %vm3121_vm11 = vweird.f32 %v5995_v44 }
0x1ab6   :  { %v3434_v4 = vmul.f32 %v7660_v52, %v7660_v52  ;;  %vm3122_vm14 = vmor %vm3120_vm13, %vm3121_vm11 }
0x1ab7   :  { %v3116_v42 = vmul.f32 %v5995_v44, %v3115_v59 }
0x1ab8   :  { %v3435_v54 = vsel %vm164_vm1, %v3434_v4, 0.0 }
0x1ab9   :  { %v3117_v16 = vmul.f32 0.5, %v3116_v42  ;;  %3436 = vadd.xlane.f32.xlu0 %v3435_v54  ;;  %v3216_v10 = vpop.xlane.xlu1 %3215 }
0x1aba   :  { %v3217_v49 = vmul.f32 %v3216_v10, %v6409_v48 }
0x1abb   :  { %v3118_v12 = vsub.f32 1.5, %v3117_v16 }
0x1abc   :  { %v7667_v1 = vsub.f32 %v7587_v30, %v3217_v49 }
0x1abd   :  { %v3119_v33 = vmul.f32 %v5995_v44, %v3118_v12 }
0x1abe   :  { %v3219_v9 = vmul.f32 %v7667_v1, %v7667_v1 }
0x1abf   :  { %v3123_v27 = vsel %vm3122_vm14, %v5995_v44, %v3119_v33 }
0x1ac0   :  { %v3124_v22 = vmul.f32 %v3123_v27, %v7634_v15  ;;  %3221 = vrot.lane.b32.xlu2 %v3219_v9, %s6276_s23 }
0x1ac1   :  { %3515 = vadd.xlane.f32.xlu0 %v3514_v37 }
0x1ac2   :  { %v3240_v30 = vadd.f32 %v3209_v13, %v3124_v22 }
0x1ac4   :  { %v5456_v31 = vmul.f32 -1.442695, %v3240_v30 }
0x1ac6   :  { %5996 = vpow2.f32 %v5456_v31 }
0x1acc   :  { %v5997_v46 = vpop.eup %5996 }
0x1acd   :  { %v3244_v40 = vadd.f32 1.0, %v5997_v46 }
0x1acf   :  { %5998 = vrcp.f32 %v3244_v40  ;;  %v3256_v28 = vand.u32 2147483648, %v3244_v40  ;;  %vm3250_vm2 = vweird.f32 %v3244_v40  ;;  %v3254_v38 = vand.u32 2147483647, %v3244_v40 }
0x1ad1   :  { %v3538_v63 = vpop.permute.xlu1 %3537  ;;  %v3257_v60 = vor.u32 1.1754944e-38, %v3256_v28  ;;  %vm3255_vm4 = vcmp.eq.f32.partialorder %v3254_v38, 8.507059e+37 }
0x1ad2   :  { %v3540_v20 = vsel %vm122_vm0, %v3538_v63, 0.0 }
0x1ad5   :  { %3462 = vrot.lane.b32.xlu0 %v3460_v61, %s6276_s23  ;;  %v5999_v15 = vpop.eup %5998 }
0x1ad6   :  { %v3246_v39 = vmul.f32 %v5999_v15, %v3244_v40  ;;  %vm3251_vm15 = vweird.f32 %v5999_v15 }
0x1ad7   :  { %vm3252_vm3 = vmor %vm3250_vm2, %vm3251_vm15 }
0x1ad8   :  { %v3247_v14 = vsub.f32 1.0, %v3246_v39 }
0x1ada   :  { %v3248_v55 = vmul.f32 %v5999_v15, %v3247_v14 }
0x1adc   :  { %v3249_v6 = vadd.f32 %v5999_v15, %v3248_v55 }
0x1ade   :  { %v3253_v21 = vsel %vm3252_vm3, %v5999_v15, %v3249_v6 }
0x1adf   :  { %v7685_v25 = vsel %vm3255_vm4, %v3257_v60, %v3253_v21 }
0x1ae9   :  { %3541 = vadd.xlane.f32.xlu2 %v3540_v20 }
0x1aec   :  { %v3262_v36 = vpop.permute.xlu1 %3261 }
0x1aed   :  { %v3264_v18 = vmul.f32 %v3262_v36, %v7685_v25 }
0x1aef   :  { %3266 = vrot.lane.b32.xlu1 %v3264_v18, %s6281_s5 }
0x1aff   :  { %3871 = vadd.xlane.f32.xlu0 %v3870_v58 }
0x1b17   :  { %v185_v16 = vpop.xlane.xlu1 %184 }
0x1b18   :  { %v202_v12 = vmul.f32 %v6393_v29, %v185_v16 }
0x1b1a   :  { %v3222_v41 = vpop.permute.xlu2 %3221 }
0x1b1b   :  { %v3224_v62 = vsel %vm122_vm0, %v3222_v41, 0.0 }
0x1b1c   :  { %3225 = vadd.xlane.f32.xlu0 %v3224_v62 }
0x1b2c   :  { %v3437_v11 = vpop.xlane.xlu0 %3436 }
0x1b2d   :  { %v3438_v27 = vmul.f32 %v3437_v11, %v6393_v29 }
0x1b2f   :  { %v3439_v13 = vadd.f32 1e-05, %v3438_v27 }
0x1b31   :  { %6000 = vrsqrt.f32 %v3439_v13  ;;  %vm3446_vm6 = vweird.f32 %v3439_v13 }
0x1b34   :  { %v3516_v5 = vpop.xlane.xlu0 %3515 }
0x1b35   :  { %v3517_v0 = vmul.f32 %v3516_v5, %v6393_v29 }
0x1b37   :  { %v7693_v23 = vsub.f32 %v7645_v47, %v3517_v0  ;;  %v6001_v22 = vpop.eup %6000 }
0x1b38   :  { %v3441_v37 = vmul.f32 %v6001_v22, %v3439_v13  ;;  %vm3447_vm5 = vweird.f32 %v6001_v22 }
0x1b39   :  { %v3519_v45 = vmul.f32 %v7693_v23, %v7693_v23  ;;  %vm3448_vm8 = vmor %vm3446_vm6, %vm3447_vm5 }
0x1b3a   :  { %v3442_v46 = vmul.f32 %v6001_v22, %v3441_v37 }
0x1b3b   :  { %v3520_v56 = vsel %vm164_vm1, %v3519_v45, 0.0 }
0x1b3c   :  { %3521 = vadd.xlane.f32.xlu2 %v3520_v56  ;;  %v3443_v61 = vmul.f32 0.5, %v3442_v46 }
0x1b3e   :  { %v3444_v63 = vsub.f32 1.5, %v3443_v61 }
0x1b40   :  { %v3445_v60 = vmul.f32 %v6001_v22, %v3444_v63 }
0x1b42   :  { %v3449_v58 = vsel %vm3448_vm8, %v6001_v22, %v3445_v60 }
0x1b43   :  { %v3450_v5 = vmul.f32 %v3449_v58, %v7660_v52  ;;  %v5727_v58 = vld [vmem:[%s8289_s4 + $0x20] sm:$0xff] }
0x1b47   :  { %v3463_v17 = vpop.permute.xlu0 %3462 }
0x1b48   :  { %v3465_v44 = vsel %vm122_vm0, %v3463_v17, 0.0 }
0x1b49   :  { %3466 = vadd.xlane.f32.xlu0 %v3465_v44 }
0x1b54   :  { %368 = vrot.lane.b32.xlu2 %v7653_v57, %s6276_s23 }
0x1b5c   :  { %v3542_v51 = vpop.xlane.xlu2 %3541 }
0x1b5d   :  { %v3543_v59 = vmul.f32 %v3542_v51, %v6409_v48 }
0x1b5f   :  { %v7703_v4 = vsub.f32 %v7645_v47, %v3543_v59  ;;  %v7717_v47 = vsub.f32 %v7653_v57, %v202_v12 }
0x1b61   :  { %v3545_v42 = vmul.f32 %v7703_v4, %v7703_v4  ;;  %v218_v33 = vmul.f32 %v7717_v47, %v7717_v47  ;;  %v3267_v13 = vpop.permute.xlu1 %3266 }
0x1b63   :  { %3547 = vrot.lane.b32.xlu0 %v3545_v42, %s6276_s23  ;;  %v238_v9 = vsel %vm164_vm1, %v218_v33, 0.0 }
0x1b72   :  { %v3872_v54 = vpop.xlane.xlu0 %3871 }
0x1b73   :  { %v3873_v32 = vmul.f32 %v3872_v54, %v6409_v48 }
0x1b75   :  { %v7710_v10 = vsub.f32 %v7627_v7, %v3873_v32 }
0x1b77   :  { %v3875_v49 = vmul.f32 %v7710_v10, %v7710_v10 }
0x1b79   :  { %3877 = vrot.lane.b32.xlu1 %v3875_v49, %s6276_s23 }
0x1b7d   :  { %3845 = vadd.xlane.f32.xlu2 %v3844_v26 }
0x1b85   :  { %239 = vadd.xlane.f32.xlu2 %v238_v9 }
0x1b8f   :  { %v3226_v40 = vpop.xlane.xlu0 %3225 }
0x1b90   :  { %v3227_v39 = vmul.f32 %v3226_v40, %v6409_v48 }
0x1b92   :  { %v3228_v28 = vadd.f32 1e-05, %v3227_v39 }
0x1b94   :  { %vm3235_vm15 = vweird.f32 %v3228_v28 }
0x1baf   :  { %v3522_v30 = vpop.xlane.xlu2 %3521 }
0x1bb0   :  { %v3523_v31 = vmul.f32 %v3522_v30, %v6393_v29 }
0x1bb2   :  { %v3524_v50 = vadd.f32 1e-05, %v3523_v31 }
0x1bb4   :  { %6002 = vrsqrt.f32 %v3524_v50  ;;  %vm3531_vm9 = vweird.f32 %v3524_v50 }
0x1bb5   :  { %6004 = vrsqrt.f32 %v3228_v28 }
0x1bb7   :  { %v369_v15 = vpop.permute.xlu2 %368 }
0x1bb8   :  { %v398_v14 = vsel %vm122_vm0, %v369_v15, 0.0 }
0x1bb9   :  { %399 = vadd.xlane.f32.xlu0 %v398_v14 }
0x1bba   :  { %v6003_v55 = vpop.eup %6002 }
0x1bbb   :  { %v3526_v6 = vmul.f32 %v6003_v55, %v3524_v50  ;;  %vm3532_vm7 = vweird.f32 %v6003_v55  ;;  %v6005_v11 = vpop.eup %6004 }
0x1bbc   :  { %v3467_v38 = vpop.xlane.xlu0 %3466  ;;  %vm3533_vm10 = vmor %vm3531_vm9, %vm3532_vm7  ;;  %v3230_v44 = vmul.f32 %v6005_v11, %v3228_v28  ;;  %vm3236_vm14 = vweird.f32 %v6005_v11 }
0x1bbd   :  { %v3527_v20 = vmul.f32 %v6003_v55, %v3526_v6  ;;  %v3468_v21 = vmul.f32 %v3467_v38, %v6409_v48  ;;  %vm3237_vm2 = vmor %vm3235_vm15, %vm3236_vm14 }
0x1bbe   :  { %v3231_v42 = vmul.f32 %v6005_v11, %v3230_v44 }
0x1bbf   :  { %v3528_v36 = vmul.f32 0.5, %v3527_v20  ;;  %v3469_v18 = vadd.f32 1e-05, %v3468_v21 }
0x1bc0   :  { %v3232_v16 = vmul.f32 0.5, %v3231_v42 }
0x1bc1   :  { %v3529_v35 = vsub.f32 1.5, %v3528_v36  ;;  %6006 = vrsqrt.f32 %v3469_v18  ;;  %vm3476_vm12 = vweird.f32 %v3469_v18  ;;  %v5728_v36 = vld [vmem:[%s8289_s4 + $0x28] sm:$0xff] }
0x1bc2   :  { %v3233_v52 = vsub.f32 1.5, %v3232_v16  ;;  %3631 = vmatpush.bf16.msrb.mxu0 %v5728_v36 }
0x1bc3   :  { %v3530_v41 = vmul.f32 %v6003_v55, %v3529_v35 }
0x1bc4   :  { %v3234_v33 = vmul.f32 %v6005_v11, %v3233_v52 }
0x1bc5   :  { %v3534_v62 = vsel %vm3533_vm10, %v6003_v55, %v3530_v41 }
0x1bc6   :  { %v3535_v0 = vmul.f32 %v3534_v62, %v7693_v23  ;;  %v3238_v9 = vsel %vm3237_vm2, %v6005_v11, %v3234_v33  ;;  %3632 = vmatpush.bf16.msrb.mxu0 %v5727_v58 }
0x1bc7   :  { %v6007_v45 = vpop.eup %6006  ;;  %v3239_v27 = vmul.f32 %v3238_v9, %v7667_v1 }
0x1bc8   :  { %v3566_v56 = vadd.f32 %v3535_v0, %v3450_v5  ;;  %v3471_v17 = vmul.f32 %v6007_v45, %v3469_v18  ;;  %vm3477_vm11 = vweird.f32 %v6007_v45 }
0x1bc9   :  { %vm3478_vm13 = vmor %vm3476_vm12, %vm3477_vm11  ;;  %v3269_v22 = vadd.f32 %v3267_v13, %v3239_v27 }
0x1bca   :  { %v3472_v51 = vmul.f32 %v6007_v45, %v3471_v17  ;;  %v5493_v61 = vmul.f32 -1.442695, %v3566_v56 }
0x1bcb   :  { %6008 = vtanh.f32 %v3269_v22 }
0x1bcc   :  { %v3473_v59 = vmul.f32 0.5, %v3472_v51  ;;  %6010 = vpow2.f32 %v5493_v61 }
0x1bce   :  { %v3474_v54 = vsub.f32 1.5, %v3473_v59 }
0x1bd0   :  { %v3475_v32 = vmul.f32 %v6007_v45, %v3474_v54 }
0x1bd1   :  { %v6009_v30 = vpop.eup %6008 }
0x1bd2   :  { %v3479_v49 = vsel %vm3478_vm13, %v6007_v45, %v3475_v32  ;;  %v6011_v15 = vpop.eup %6010  ;;  %v3271_v45 = vsub.f32 1.0, %v7685_v25 }
0x1bd3   :  { %v3480_v12 = vmul.f32 %v3479_v49, %v7679_v19  ;;  %v3570_v39 = vadd.f32 1.0, %v6011_v15 }
0x1bd4   :  { %v3272_v59 = vmul.f32 %v3271_v45, %v7523_v8 }
0x1bd5   :  { %v3548_v26 = vpop.permute.xlu0 %3547  ;;  %3587 = vrot.lane.b32.xlu0 %v3480_v12, %s6280_s24  ;;  %6012 = vrcp.f32 %v3570_v39  ;;  %v3582_v60 = vand.u32 2147483648, %v3570_v39  ;;  %vm3576_vm4 = vweird.f32 %v3570_v39  ;;  %v3580_v18 = vand.u32 2147483647, %v3570_v39 }
0x1bd6   :  { %v3550_v23 = vsel %vm122_vm0, %v3548_v26, 0.0 }
0x1bd7   :  { %3551 = vadd.xlane.f32.xlu1 %v3550_v23  ;;  %v3583_v35 = vor.u32 1.1754944e-38, %v3582_v60  ;;  %vm3581_vm6 = vcmp.eq.f32.partialorder %v3580_v18, 8.507059e+37 }
0x1bdb   :  { %v6013_v6 = vpop.eup %6012 }
0x1bdc   :  { %v3572_v28 = vmul.f32 %v6013_v6, %v3570_v39  ;;  %vm3577_vm3 = vweird.f32 %v6013_v6 }
0x1bdd   :  { %vm3578_vm5 = vmor %vm3576_vm4, %vm3577_vm3 }
0x1bde   :  { %v3573_v38 = vsub.f32 1.0, %v3572_v28 }
0x1be0   :  { %v3574_v20 = vmul.f32 %v6013_v6, %v3573_v38 }
0x1be2   :  { %v3575_v21 = vadd.f32 %v6013_v6, %v3574_v20 }
0x1beb   :  { %v3878_v37 = vpop.permute.xlu1 %3877 }
0x1bec   :  { %v3880_v19 = vsel %vm122_vm0, %v3878_v37, 0.0 }
0x1bed   :  { %3881 = vadd.xlane.f32.xlu2 %v3880_v19 }
0x1bf0   :  { %3274 = vrot.lane.b32.xlu1 %v6009_v30, %s6276_s23  ;;  %v3846_v31 = vpop.xlane.xlu2 %3845 }
0x1bf1   :  { %v3847_v50 = vmul.f32 %v3846_v31, %v6393_v29 }
0x1bf3   :  { %v7739_v46 = vsub.f32 %v7627_v7, %v3847_v50 }
0x1bf5   :  { %v3849_v40 = vmul.f32 %v7739_v46, %v7739_v46 }
0x1bf7   :  { %v3850_v1 = vsel %vm164_vm1, %v3849_v40, 0.0 }
0x1bf8   :  { %v240_v5 = vpop.xlane.xlu2 %239 }
0x1bf9   :  { %v250_v19 = vmul.f32 %v240_v5, %v6393_v29 }
0x1bfb   :  { %v258_v50 = vadd.f32 1e-05, %v250_v19 }
0x1bfd   :  { %vm326_vm3 = vweird.f32 %v258_v50 }
0x1bff   :  { %3851 = vadd.xlane.f32.xlu0 %v3850_v1 }
0x1c2c   :  { %v400_v14 = vpop.xlane.xlu0 %399 }
0x1c2d   :  { %v417_v55 = vmul.f32 %v6409_v48, %v400_v14 }
0x1c2f   :  { %v7746_v63 = vsub.f32 %v7653_v57, %v417_v55  ;;  %v3579_v57 = vsel %vm3578_vm5, %v6013_v6, %v3575_v21 }
0x1c30   :  { %v7757_v41 = vsel %vm3581_vm6, %v3583_v35, %v3579_v57 }
0x1c31   :  { %v433_v7 = vmul.f32 %v7746_v63, %v7746_v63 }
0x1c33   :  { %455 = vrot.lane.b32.xlu0 %v433_v7, %s6276_s23 }
0x1c47   :  { %v3588_v62 = vpop.permute.xlu0 %3587 }
0x1c48   :  { %v3590_v11 = vmul.f32 %v3588_v62, %v7757_v41 }
0x1c4a   :  { %3592 = vrot.lane.b32.xlu2 %v3590_v11, %s6281_s5  ;;  %v3552_v0 = vpop.xlane.xlu1 %3551 }
0x1c4b   :  { %v3553_v33 = vmul.f32 %v3552_v0, %v6409_v48 }
0x1c4d   :  { %v3554_v9 = vadd.f32 1e-05, %v3553_v33 }
0x1c4f   :  { %vm3561_vm11 = vweird.f32 %v3554_v9 }
0x1c60   :  { %v3882_v56 = vpop.xlane.xlu2 %3881 }
0x1c61   :  { %v3883_v17 = vmul.f32 %v3882_v56, %v6409_v48 }
0x1c62   :  { %v3275_v44 = vpop.permute.xlu1 %3274 }
0x1c63   :  { %v3884_v51 = vadd.f32 1e-05, %v3883_v17  ;;  %v3277_v42 = vmul.f32 %v3275_v44, %v7685_v25 }
0x1c65   :  { %6014 = vrsqrt.f32 %v3884_v51  ;;  %v7765_v54 = vadd.f32 %v3277_v42, %v3272_v59  ;;  %vm3891_vm8 = vweird.f32 %v3884_v51 }
0x1c66   :  { %6016 = vrsqrt.f32 %v3554_v9 }
0x1c67   :  { %3279 = vst.msk [vmem:[#allocation2 + $0x20] sm:$0xff] %vm122_vm0, %v7765_v54  ;;  %v3605_v32 = vpack.c.bf16 %v7765_v54, %v7765_v54 }
0x1c69   :  { %5506 = vmatmul.msk.bf16.vlgmr.msrb.gmra.mxu0 %vm122_vm0, %v3605_v32 }
0x1c6b   :  { %v6015_v16 = vpop.eup %6014 }
0x1c6c   :  { %v3886_v49 = vmul.f32 %v6015_v16, %v3884_v51  ;;  %vm3892_vm7 = vweird.f32 %v6015_v16  ;;  %v6017_v27 = vpop.eup %6016 }
0x1c6d   :  { %vm3893_vm9 = vmor %vm3891_vm8, %vm3892_vm7  ;;  %v3556_v22 = vmul.f32 %v6017_v27, %v3554_v9  ;;  %vm3562_vm10 = vweird.f32 %v6017_v27 }
0x1c6e   :  { %v3887_v12 = vmul.f32 %v6015_v16, %v3886_v49  ;;  %vm3563_vm12 = vmor %vm3561_vm11, %vm3562_vm10 }
0x1c6f   :  { %v3557_v30 = vmul.f32 %v6017_v27, %v3556_v22  ;;  %v5729_v22 = vld [vmem:[%s8287_s2 + $0x20] sm:$0xff] }
0x1c70   :  { %v3888_v26 = vmul.f32 0.5, %v3887_v12 }
0x1c71   :  { %v3558_v40 = vmul.f32 0.5, %v3557_v30 }
0x1c72   :  { %v3889_v52 = vsub.f32 1.5, %v3888_v26  ;;  %v3852_v13 = vpop.xlane.xlu0 %3851 }
0x1c73   :  { %v3853_v37 = vmul.f32 %v3852_v13, %v6393_v29  ;;  %v5734_v13 = vld [vmem:[%s8289_s4 + $0x18] sm:$0xff] }
0x1c74   :  { %v3890_v8 = vmul.f32 %v6015_v16, %v3889_v52  ;;  %3957 = vmatpush.bf16.msrb.mxu3 %v5734_v13 }
0x1c75   :  { %v3854_v31 = vadd.f32 1e-05, %v3853_v37  ;;  %v3597_v37 = vsub.f32 1.0, %v7757_v41 }
0x1c76   :  { %v3894_v25 = vsel %vm3893_vm9, %v6015_v16, %v3890_v8 }
0x1c77   :  { %v3895_v23 = vmul.f32 %v3894_v25, %v7710_v10  ;;  %6018 = vrsqrt.f32 %v3854_v31  ;;  %v3559_v10 = vsub.f32 1.5, %v3558_v40  ;;  %vm3861_vm15 = vweird.f32 %v3854_v31 }
0x1c78   :  { %6020 = vrsqrt.f32 %v258_v50  ;;  %v3598_v30 = vmul.f32 %v3597_v37, %v7568_v34 }
0x1c79   :  { %3917 = vrot.lane.b32.xlu1 %v3895_v23, %s6280_s24  ;;  %v3560_v61 = vmul.f32 %v6017_v27, %v3559_v10 }
0x1c7b   :  { %v3564_v14 = vsel %vm3563_vm12, %v6017_v27, %v3560_v61  ;;  %v5730_v27 = vld [vmem:[%s8287_s2 + $0x28] sm:$0xff] }
0x1c7c   :  { %v3565_v7 = vmul.f32 %v3564_v14, %v7703_v4  ;;  %3716 = vmatpush.bf16.msrb.mxu1 %v5730_v27 }
0x1c7d   :  { %v6019_v1 = vpop.eup %6018 }
0x1c7e   :  { %v6021_v15 = vpop.eup %6020  ;;  %v3856_v39 = vmul.f32 %v6019_v1, %v3854_v31  ;;  %vm3862_vm13 = vweird.f32 %v6019_v1 }
0x1c7f   :  { %v321_v55 = vmul.f32 %v6021_v15, %v258_v50  ;;  %vm327_vm14 = vweird.f32 %v6021_v15  ;;  %vm3863_vm2 = vmor %vm3861_vm15, %vm3862_vm13 }
0x1c80   :  { %v3857_v6 = vmul.f32 %v6019_v1, %v3856_v39  ;;  %vm328_vm4 = vmor %vm326_vm3, %vm327_vm14  ;;  %3717 = vmatpush.bf16.msrb.mxu1 %v5729_v22 }
0x1c81   :  { %v322_v38 = vmul.f32 %v6021_v15, %v321_v55 }
0x1c82   :  { %v3858_v36 = vmul.f32 0.5, %v3857_v6 }
0x1c83   :  { %v323_v18 = vmul.f32 0.5, %v322_v38 }
0x1c84   :  { %v3859_v57 = vsub.f32 1.5, %v3858_v36  ;;  %v5736_v36 = vld [vmem:[%s8287_s2 + $0x18] sm:$0xff] }
0x1c85   :  { %v324_v58 = vsub.f32 1.5, %v323_v18  ;;  %v5742_v18 = vld [vmem:[%s8289_s4 + $0x8] sm:$0xff]  ;;  %4042 = vmatpush.bf16.msra.mxu0 %v5736_v36 }
0x1c86   :  { %v3860_v62 = vmul.f32 %v6019_v1, %v3859_v57 }
0x1c87   :  { %v325_v11 = vmul.f32 %v6021_v15, %v324_v58  ;;  %v5735_v58 = vld [vmem:[%s8287_s2 + $0x10] sm:$0xff] }
0x1c88   :  { %v3864_v4 = vsel %vm3863_vm2, %v6019_v1, %v3860_v62  ;;  %v5741_v62 = vld [vmem:[%s8289_s4] sm:$0xff] }
0x1c89   :  { %v329_v5 = vsel %vm328_vm4, %v6021_v15, %v325_v11  ;;  %v3865_v0 = vmul.f32 %v3864_v4, %v7739_v46  ;;  %4043 = vmatpush.bf16.msra.mxu0 %v5735_v58  ;;  %v7835_v4 = vld [vmem:[#allocation7 + $0x1] ss:$0 sm:$0xff] }
0x1c8a   :  { %v346_v45 = vmul.f32 %v329_v5, %v7717_v47 }
0x1c8c   :  { %v3896_v56 = vadd.f32 %v3865_v0, %v346_v45 }
0x1c8e   :  { %v5530_v17 = vmul.f32 -1.442695, %v3896_v56 }
0x1ca4   :  { %v3593_v28 = vpop.permute.xlu2 %3592 }
0x1ca5   :  { %v3595_v20 = vadd.f32 %v3593_v28, %v3565_v7  ;;  %v456_v21 = vpop.permute.xlu0 %455 }
0x1ca6   :  { %v485_v60 = vsel %vm122_vm0, %v456_v21, 0.0 }
0x1ca7   :  { %6022 = vtanh.f32 %v3595_v20  ;;  %486 = vadd.xlane.f32.xlu0 %v485_v60 }
0x1ca8   :  { %6024 = vpow2.f32 %v5530_v17 }
0x1cad   :  { %v6023_v35 = vpop.eup %6022 }
0x1cae   :  { %3600 = vrot.lane.b32.xlu1 %v6023_v35, %s6276_s23  ;;  %v6025_v44 = vpop.eup %6024 }
0x1caf   :  { %v3900_v51 = vadd.f32 1.0, %v6025_v44 }
0x1cb1   :  { %6026 = vrcp.f32 %v3900_v51  ;;  %v3912_v12 = vand.u32 2147483648, %v3900_v51  ;;  %vm3906_vm6 = vweird.f32 %v3900_v51  ;;  %v3910_v52 = vand.u32 2147483647, %v3900_v51 }
0x1cb3   :  { %v3913_v8 = vor.u32 1.1754944e-38, %v3912_v12  ;;  %vm3911_vm8 = vcmp.eq.f32.partialorder %v3910_v52, 8.507059e+37 }
0x1cb7   :  { %v6027_v59 = vpop.eup %6026 }
0x1cb8   :  { %v3902_v42 = vmul.f32 %v6027_v59, %v3900_v51  ;;  %vm3907_vm5 = vweird.f32 %v6027_v59 }
0x1cb9   :  { %vm3908_vm7 = vmor %vm3906_vm6, %vm3907_vm5 }
0x1cba   :  { %v3903_v32 = vsub.f32 1.0, %v3902_v42 }
0x1cbc   :  { %v3904_v16 = vmul.f32 %v6027_v59, %v3903_v32 }
0x1cbe   :  { %v3905_v49 = vadd.f32 %v6027_v59, %v3904_v16 }
0x1cc0   :  { %v3909_v46 = vsel %vm3908_vm7, %v6027_v59, %v3905_v49 }
0x1cc1   :  { %v7782_v47 = vsel %vm3911_vm8, %v3913_v8, %v3909_v46 }
0x1cc2   :  { %v3927_v45 = vsub.f32 1.0, %v7782_v47 }
0x1cc4   :  { %v3928_v17 = vmul.f32 %v3927_v45, %v7605_v2 }
0x1ce6   :  { %v3634_v26 = vpop.f32.mrf.mxu0 }
0x1ce7   :  { %v7787_v9 = vadd.f32 %v7558_v24, %v3634_v26  ;;  %v5733_v24 = vld [vmem:[%s8289_s4 + $0x10] sm:$0xff] }
0x1ce8   :  { %3958 = vmatpush.bf16.msrb.mxu3 %v5733_v24 }
0x1ce9   :  { %v3638_v52 = vsel %vm164_vm1, %v7787_v9, 0.0 }
0x1ceb   :  { %v3918_v25 = vpop.permute.xlu1 %3917 }
0x1cec   :  { %v3920_v23 = vmul.f32 %v3918_v25, %v7782_v47  ;;  %4372 = vmatpush.bf16.msra.mxu3 %v5742_v18 }
0x1cee   :  { %v3636_v33 = vpop.f32.mrf.mxu0  ;;  %3922 = vrot.lane.b32.xlu1 %v3920_v23, %s6281_s5 }
0x1cf0   :  { %4373 = vmatpush.bf16.msra.mxu3 %v5741_v62 }
0x1cf6   :  { %3661 = vrot.lane.b32.xlu1 %v7787_v9, %s6276_s23 }
0x1d1a   :  { %v487_v10 = vpop.xlane.xlu0 %486 }
0x1d1b   :  { %v497_v1 = vmul.f32 %v487_v10, %v6409_v48 }
0x1d1d   :  { %v505_v61 = vadd.f32 1e-05, %v497_v1 }
0x1d1f   :  { %6028 = vrsqrt.f32 %v505_v61  ;;  %vm573_vm10 = vweird.f32 %v505_v61 }
0x1d20   :  { %v3601_v19 = vpop.permute.xlu1 %3600 }
0x1d21   :  { %v3603_v31 = vmul.f32 %v3601_v19, %v7757_v41  ;;  %v6164_v19 = vld [vmem:[#allocation5 + $0x1] ss:$0 sm:$0xff] }
0x1d23   :  { %v7806_v50 = vadd.f32 %v3603_v31, %v3598_v30 }
0x1d25   :  { %v3690_v40 = vpack.c.bf16 %v7806_v50, %v7806_v50  ;;  %v6029_v15 = vpop.eup %6028 }
0x1d26   :  { %v568_v39 = vmul.f32 %v6029_v15, %v505_v61  ;;  %vm574_vm9 = vweird.f32 %v6029_v15 }
0x1d27   :  { %5519 = vmatmul.msk.bf16.vlgmr.msrb.gmra.mxu1 %vm122_vm0, %v3690_v40  ;;  %5543 = vmatmul.msk.bf16.vlgmr.msrb.gmra.mxu3 %vm122_vm0, %v3690_v40  ;;  %vm575_vm11 = vmor %vm573_vm10, %vm574_vm9 }
0x1d28   :  { %v569_v14 = vmul.f32 %v6029_v15, %v568_v39 }
0x1d2a   :  { %v570_v34 = vmul.f32 0.5, %v569_v14 }
0x1d2c   :  { %v571_v55 = vsub.f32 1.5, %v570_v34 }
0x1d2e   :  { %v572_v41 = vmul.f32 %v6029_v15, %v571_v55 }
0x1d30   :  { %v576_v6 = vsel %vm575_vm11, %v6029_v15, %v572_v41 }
0x1d31   :  { %v593_v7 = vmul.f32 %v576_v6, %v7746_v63 }
0x1d60   :  { %v3923_v28 = vpop.permute.xlu1 %3922 }
0x1d61   :  { %v3925_v38 = vadd.f32 %v3923_v28, %v593_v7 }
0x1d63   :  { %6030 = vtanh.f32 %v3925_v38 }
0x1d68   :  { %v3662_v21 = vpop.permute.xlu1 %3661 }
0x1d69   :  { %v6031_v20 = vpop.eup %6030  ;;  %v3664_v60 = vsel %vm122_vm0, %v3662_v21, 0.0 }
0x1d6a   :  { %3930 = vrot.lane.b32.xlu2 %v6031_v20, %s6276_s23 }
0x1d93   :  { %3665 = vadd.xlane.f32.xlu2 %v3664_v60 }
0x1da4   :  { %v3719_v63 = vpop.f32.mrf.mxu1 }
0x1da5   :  { %v7823_v57 = vadd.f32 %v7584_v43, %v3719_v63 }
0x1da7   :  { %3746 = vrot.lane.b32.xlu1 %v7823_v57, %s6276_s23  ;;  %v3723_v35 = vsel %vm164_vm1, %v7823_v57, 0.0 }
0x1da8   :  { %3724 = vadd.xlane.f32.xlu0 %v3723_v35 }
0x1daa   :  { %v3960_v11 = vpop.f32.mrf.mxu3 }
0x1dab   :  { %v7838_v5 = vadd.f32 %v7835_v4, %v3960_v11 }
0x1dac   :  { %v3721_v43 = vpop.f32.mrf.mxu1 }
0x1dad   :  { %v3964_v41 = vsel %vm164_vm1, %v7838_v5, 0.0 }
0x1daf   :  { %3987 = vrot.lane.b32.xlu1 %v7838_v5, %s6276_s23 }
0x1db2   :  { %v3962_v0 = vpop.f32.mrf.mxu3 }
0x1dc4   :  { %v3931_v56 = vpop.permute.xlu2 %3930 }
0x1dc5   :  { %v3933_v44 = vmul.f32 %v3931_v56, %v7782_v47 }
0x1dc7   :  { %v7845_v51 = vadd.f32 %v3933_v44, %v3928_v17 }
0x1dc9   :  { %v4016_v59 = vpack.c.bf16 %v7845_v51, %v7845_v51 }
0x1dcb   :  { %5556 = vmatmul.msk.bf16.vlgmr.msra.gmra.mxu0 %vm122_vm0, %v4016_v59  ;;  %5593 = vmatmul.msk.bf16.vlgmr.msra.gmra.mxu3 %vm122_vm0, %v4016_v59 }
0x1e06   :  { %v3666_v42 = vpop.xlane.xlu2 %3665 }
0x1e07   :  { %v3667_v32 = vmul.f32 %v3666_v42, %v6409_v48 }
0x1e09   :  { %v7853_v16 = vsub.f32 %v7787_v9, %v3667_v32 }
0x1e0b   :  { %v3669_v2 = vmul.f32 %v7853_v16, %v7853_v16 }
0x1e0d   :  { %3671 = vrot.lane.b32.xlu1 %v3669_v2, %s6276_s23 }
0x1e19   :  { %v3747_v49 = vpop.permute.xlu1 %3746 }
0x1e1a   :  { %v3749_v6 = vsel %vm122_vm0, %v3747_v49, 0.0 }
0x1e1b   :  { %v3725_v33 = vpop.xlane.xlu0 %3724 }
0x1e1c   :  { %v3726_v27 = vmul.f32 %v3725_v33, %v6393_v29 }
0x1e1e   :  { %v7868_v22 = vsub.f32 %v7823_v57, %v3726_v27 }
0x1e20   :  { %v3728_v37 = vmul.f32 %v7868_v22, %v7868_v22 }
0x1e21   :  { %v3988_v12 = vpop.permute.xlu1 %3987 }
0x1e22   :  { %v3990_v26 = vsel %vm122_vm0, %v3988_v12, 0.0 }
0x1e23   :  { %3991 = vadd.xlane.f32.xlu0 %v3990_v26 }
0x1e37   :  { %3639 = vadd.xlane.f32.xlu1 %v3638_v52 }
0x1e48   :  { %v4045_v46 = vpop.f32.mrf.mxu0 }
0x1e49   :  { %v7874_v30 = vadd.f32 %v6164_v19, %v4045_v46 }
0x1e4b   :  { %v4049_v31 = vsel %vm164_vm1, %v7874_v30, 0.0 }
0x1e4e   :  { %v4375_v8 = vpop.f32.mrf.mxu3 }
0x1e4f   :  { %v7862_v47 = vadd.f32 %v7624_v3, %v4375_v8  ;;  %v3729_v3 = vsel %vm164_vm1, %v3728_v37, 0.0 }
0x1e50   :  { %v4047_v25 = vpop.f32.mrf.mxu0 }
0x1e51   :  { %4402 = vrot.lane.b32.xlu1 %v7862_v47, %s6276_s23 }
0x1e56   :  { %v4377_v23 = vpop.f32.mrf.mxu3 }
0x1e7f   :  { %v3672_v13 = vpop.permute.xlu1 %3671 }
0x1e80   :  { %v3674_v24 = vsel %vm122_vm0, %v3672_v13, 0.0 }
0x1e81   :  { %3675 = vadd.xlane.f32.xlu0 %v3674_v24 }
0x1e89   :  { %3730 = vadd.xlane.f32.xlu0 %v3729_v3 }
0x1e91   :  { %4050 = vadd.xlane.f32.xlu0 %v4049_v31 }
0x1e96   :  { %v3992_v40 = vpop.xlane.xlu0 %3991 }
0x1e97   :  { %v3993_v10 = vmul.f32 %v3992_v40, %v6409_v48 }
0x1e99   :  { %v7880_v1 = vsub.f32 %v7838_v5, %v3993_v10 }
0x1e9b   :  { %v3995_v61 = vmul.f32 %v7880_v1, %v7880_v1 }
0x1ea5   :  { %3997 = vrot.lane.b32.xlu0 %v3995_v61, %s6276_s23 }
0x1eaa   :  { %v3640_v15 = vpop.xlane.xlu1 %3639 }
0x1eab   :  { %v3641_v39 = vmul.f32 %v3640_v15, %v6393_v29 }
0x1ead   :  { %v7887_v14 = vsub.f32 %v7787_v9, %v3641_v39 }
0x1eaf   :  { %v3643_v34 = vmul.f32 %v7887_v14, %v7887_v14 }
0x1eb1   :  { %v3644_v55 = vsel %vm164_vm1, %v3643_v34, 0.0 }
0x1eb2   :  { %3645 = vadd.xlane.f32.xlu2 %v3644_v55 }
0x1eba   :  { %3965 = vadd.xlane.f32.xlu2 %v3964_v41 }
0x1ec2   :  { %3750 = vadd.xlane.f32.xlu2 %v3749_v6 }
0x1ec3   :  { %v4403_v3 = vpop.permute.xlu1 %4402 }
0x1ec4   :  { %v4405_v15 = vsel %vm122_vm0, %v4403_v3, 0.0 }
0x1eda   :  { %4072 = vrot.lane.b32.xlu2 %v7874_v30, %s6276_s23 }
0x1ef4   :  { %v3676_v7 = vpop.xlane.xlu0 %3675 }
0x1ef5   :  { %v3677_v63 = vmul.f32 %v3676_v7, %v6409_v48 }
0x1ef7   :  { %v3678_v35 = vadd.f32 1e-05, %v3677_v63 }
0x1ef9   :  { %vm3685_vm5 = vweird.f32 %v3678_v35 }
0x1efc   :  { %v3731_v28 = vpop.xlane.xlu0 %3730 }
0x1efd   :  { %v3732_v36 = vmul.f32 %v3731_v28, %v6393_v29 }
0x1eff   :  { %v3733_v18 = vadd.f32 1e-05, %v3732_v36 }
0x1f01   :  { %6032 = vrsqrt.f32 %v3733_v18  ;;  %vm3740_vm13 = vweird.f32 %v3733_v18 }
0x1f02   :  { %6034 = vrsqrt.f32 %v3678_v35 }
0x1f04   :  { %v4051_v9 = vpop.xlane.xlu0 %4050 }
0x1f05   :  { %v4052_v38 = vmul.f32 %v4051_v9, %v6393_v29 }
0x1f07   :  { %v7899_v20 = vsub.f32 %v7874_v30, %v4052_v38  ;;  %v6033_v58 = vpop.eup %6032 }
0x1f08   :  { %v3735_v62 = vmul.f32 %v6033_v58, %v3733_v18  ;;  %v6035_v0 = vpop.eup %6034  ;;  %vm3741_vm12 = vweird.f32 %v6033_v58 }
0x1f09   :  { %v4054_v21 = vmul.f32 %v7899_v20, %v7899_v20  ;;  %v3680_v17 = vmul.f32 %v6035_v0, %v3678_v35  ;;  %vm3742_vm15 = vmor %vm3740_vm13, %vm3741_vm12  ;;  %vm3686_vm4 = vweird.f32 %v6035_v0 }
0x1f0a   :  { %v3736_v56 = vmul.f32 %v6033_v58, %v3735_v62  ;;  %vm3687_vm6 = vmor %vm3685_vm5, %vm3686_vm4 }
0x1f0b   :  { %v4055_v60 = vsel %vm164_vm1, %v4054_v21, 0.0  ;;  %v3681_v32 = vmul.f32 %v6035_v0, %v3680_v17 }
0x1f0c   :  { %4056 = vadd.xlane.f32.xlu2 %v4055_v60  ;;  %v3737_v44 = vmul.f32 0.5, %v3736_v56 }
0x1f0d   :  { %v3682_v46 = vmul.f32 0.5, %v3681_v32 }
0x1f0e   :  { %v3738_v12 = vsub.f32 1.5, %v3737_v44 }
0x1f0f   :  { %v3683_v24 = vsub.f32 1.5, %v3682_v46 }
0x1f10   :  { %v3739_v23 = vmul.f32 %v6033_v58, %v3738_v12 }
0x1f11   :  { %v3684_v10 = vmul.f32 %v6035_v0, %v3683_v24 }
0x1f12   :  { %v3743_v19 = vsel %vm3742_vm15, %v6033_v58, %v3739_v23 }
0x1f13   :  { %v3744_v39 = vmul.f32 %v3743_v19, %v7868_v22  ;;  %v3688_v55 = vsel %vm3687_vm6, %v6035_v0, %v3684_v10 }
0x1f14   :  { %v3689_v41 = vmul.f32 %v3688_v55, %v7853_v16 }
0x1f17   :  { %v3998_v38 = vpop.permute.xlu0 %3997 }
0x1f18   :  { %v4000_v17 = vsel %vm122_vm0, %v3998_v38, 0.0 }
0x1f25   :  { %v3646_v11 = vpop.xlane.xlu2 %3645 }
0x1f26   :  { %v3647_v43 = vmul.f32 %v3646_v11, %v6393_v29 }
0x1f28   :  { %v3648_v45 = vadd.f32 1e-05, %v3647_v43 }
0x1f2a   :  { %6036 = vrsqrt.f32 %v3648_v45  ;;  %vm3655_vm2 = vweird.f32 %v3648_v45 }
0x1f2d   :  { %v3966_v59 = vpop.xlane.xlu2 %3965 }
0x1f2e   :  { %v3967_v42 = vmul.f32 %v3966_v59, %v6393_v29 }
0x1f30   :  { %v6037_v2 = vpop.eup %6036  ;;  %v7909_v49 = vsub.f32 %v7838_v5, %v3967_v42 }
0x1f31   :  { %v3650_v26 = vmul.f32 %v6037_v2, %v3648_v45  ;;  %vm3656_vm14 = vweird.f32 %v6037_v2 }
0x1f32   :  { %v3969_v52 = vmul.f32 %v7909_v49, %v7909_v49  ;;  %vm3657_vm3 = vmor %vm3655_vm2, %vm3656_vm14 }
0x1f33   :  { %v3651_v8 = vmul.f32 %v6037_v2, %v3650_v26 }
0x1f34   :  { %v3970_v25 = vsel %vm164_vm1, %v3969_v52, 0.0 }
0x1f35   :  { %v3652_v33 = vmul.f32 0.5, %v3651_v8  ;;  %3971 = vadd.xlane.f32.xlu0 %v3970_v25  ;;  %v3751_v27 = vpop.xlane.xlu2 %3750 }
0x1f36   :  { %v3752_v13 = vmul.f32 %v3751_v27, %v6409_v48 }
0x1f37   :  { %v3653_v5 = vsub.f32 1.5, %v3652_v33 }
0x1f38   :  { %v7916_v37 = vsub.f32 %v7823_v57, %v3752_v13 }
0x1f39   :  { %v3654_v31 = vmul.f32 %v6037_v2, %v3653_v5 }
0x1f3a   :  { %v3754_v40 = vmul.f32 %v7916_v37, %v7916_v37 }
0x1f3b   :  { %v3658_v61 = vsel %vm3657_vm3, %v6037_v2, %v3654_v31  ;;  %v6165_v2 = vld [vmem:[#allocation5] ss:$0 sm:$0xff] }
0x1f3c   :  { %v3659_v34 = vmul.f32 %v3658_v61, %v7887_v14  ;;  %3756 = vrot.lane.b32.xlu1 %v3754_v40, %s6276_s23  ;;  %v7943_v12 = vadd.f32 %v6165_v2, %v6496_v53  ;;  %v4379_v53 = vsel %vm164_vm1, %v7862_v47, 0.0 }
0x1f3d   :  { %4406 = vadd.xlane.f32.xlu0 %v4405_v15  ;;  %v4073_v6 = vpop.permute.xlu2 %4072 }
0x1f3e   :  { %v3775_v57 = vadd.f32 %v3744_v39, %v3659_v34  ;;  %v4075_v7 = vsel %vm122_vm0, %v4073_v6, 0.0  ;;  %v186_v25 = vsel %vm164_vm1, %v7943_v12, 0.0 }
0x1f40   :  { %v5520_v28 = vmul.f32 -1.442695, %v3775_v57 }
0x1f42   :  { %6038 = vpow2.f32 %v5520_v28 }
0x1f44   :  { %3796 = vrot.lane.b32.xlu1 %v3689_v41, %s6280_s24 }
0x1f48   :  { %v6039_v22 = vpop.eup %6038 }
0x1f49   :  { %v3779_v9 = vadd.f32 1.0, %v6039_v22 }
0x1f4b   :  { %6040 = vrcp.f32 %v3779_v9  ;;  %v3791_v58 = vand.u32 2147483648, %v3779_v9  ;;  %vm3785_vm8 = vweird.f32 %v3779_v9  ;;  %v3789_v62 = vand.u32 2147483647, %v3779_v9 }
0x1f4d   :  { %v3792_v0 = vor.u32 1.1754944e-38, %v3791_v58  ;;  %vm3790_vm10 = vcmp.eq.f32.partialorder %v3789_v62, 8.507059e+37 }
0x1f51   :  { %v6041_v14 = vpop.eup %6040 }
0x1f52   :  { %v3781_v21 = vmul.f32 %v6041_v14, %v3779_v9  ;;  %vm3786_vm7 = vweird.f32 %v6041_v14 }
0x1f53   :  { %vm3787_vm9 = vmor %vm3785_vm8, %vm3786_vm7 }
0x1f54   :  { %v3782_v60 = vsub.f32 1.0, %v3781_v21 }
0x1f56   :  { %v3783_v18 = vmul.f32 %v6041_v14, %v3782_v60 }
0x1f58   :  { %v3784_v35 = vadd.f32 %v6041_v14, %v3783_v18 }
0x1f5a   :  { %v3788_v11 = vsel %vm3787_vm9, %v6041_v14, %v3784_v35 }
0x1f5b   :  { %v7930_v45 = vsel %vm3790_vm10, %v3792_v0, %v3788_v11 }
0x1f6e   :  { %4076 = vadd.xlane.f32.xlu1 %v4075_v7 }
0x1f7f   :  { %v4057_v23 = vpop.xlane.xlu2 %4056 }
0x1fa8   :  { %v7927_v36 = vpop.xlane.xlu0 %3971 }
0x1fa9   :  { %v3973_v60 = vmul.f32 %v7927_v36, %v6393_v29 }
0x1fab   :  { %v3974_v18 = vadd.f32 1e-05, %v3973_v60 }
0x1fad   :  { %vm3981_vm5 = vweird.f32 %v3974_v18 }
0x1fae   :  { %v3757_v63 = vpop.permute.xlu1 %3756 }
0x1faf   :  { %v3759_v16 = vsel %vm122_vm0, %v3757_v63, 0.0 }
0x1fb0   :  { %3760 = vadd.xlane.f32.xlu2 %v3759_v16  ;;  %v4407_v43 = vpop.xlane.xlu0 %4406 }
0x1fb1   :  { %v4408_v44 = vmul.f32 %v4407_v43, %v6409_v48 }
0x1fb3   :  { %v7937_v42 = vsub.f32 %v7862_v47, %v4408_v44 }
0x1fb5   :  { %v4410_v32 = vmul.f32 %v7937_v42, %v7937_v42 }
0x1fb6   :  { %v3797_v56 = vpop.permute.xlu1 %3796 }
0x1fb7   :  { %v3799_v59 = vmul.f32 %v3797_v56, %v7930_v45 }
0x1fb8   :  { %4001 = vadd.xlane.f32.xlu2 %v4000_v17 }
0x1fb9   :  { %3801 = vrot.lane.b32.xlu0 %v3799_v59, %s6281_s5 }
0x1fc1   :  { %4412 = vrot.lane.b32.xlu0 %v4410_v32, %s6276_s23 }
0x1fd0   :  { %370 = vrot.lane.b32.xlu2 %v7943_v12, %s6276_s23 }
0x1fe1   :  { %v4077_v26 = vpop.xlane.xlu1 %4076 }
0x1fe2   :  { %v4078_v52 = vmul.f32 %v4077_v26, %v6409_v48 }
0x1fe4   :  { %v7949_v46 = vsub.f32 %v7874_v30, %v4078_v52 }
0x1fe6   :  { %v4080_v8 = vmul.f32 %v7949_v46, %v7949_v46 }
0x1fe8   :  { %4082 = vrot.lane.b32.xlu1 %v4080_v8, %s6276_s23 }
0x1feb   :  { %187 = vadd.xlane.f32.xlu0 %v186_v25 }
0x1ff9   :  { %4380 = vadd.xlane.f32.xlu2 %v4379_v53 }
0x2023   :  { %v3761_v33 = vpop.xlane.xlu2 %3760 }
0x2024   :  { %v3762_v27 = vmul.f32 %v3761_v33, %v6409_v48 }
0x2026   :  { %v3763_v13 = vadd.f32 1e-05, %v3762_v27 }
0x2028   :  { %6042 = vrsqrt.f32 %v3763_v13  ;;  %vm3770_vm12 = vweird.f32 %v3763_v13 }
0x202b   :  { %v4002_v30 = vpop.xlane.xlu2 %4001  ;;  %v3802_v28 = vpop.permute.xlu0 %3801 }
0x202c   :  { %v4003_v24 = vmul.f32 %v4002_v30, %v6409_v48 }
0x202e   :  { %v6043_v5 = vpop.eup %6042  ;;  %v4004_v3 = vadd.f32 1e-05, %v4003_v24 }
0x202f   :  { %v3765_v19 = vmul.f32 %v6043_v5, %v3763_v13  ;;  %vm3771_vm11 = vweird.f32 %v6043_v5 }
0x2030   :  { %6044 = vrsqrt.f32 %v4004_v3  ;;  %vm3772_vm13 = vmor %vm3770_vm12, %vm3771_vm11  ;;  %vm4011_vm15 = vweird.f32 %v4004_v3 }
0x2031   :  { %v3766_v31 = vmul.f32 %v6043_v5, %v3765_v19 }
0x2033   :  { %v3767_v40 = vmul.f32 0.5, %v3766_v31  ;;  %v4413_v21 = vpop.permute.xlu0 %4412  ;;  %v371_v62 = vpop.permute.xlu2 %370 }
0x2034   :  { %v401_v33 = vsel %vm122_vm0, %v371_v62, 0.0  ;;  %v4415_v24 = vsel %vm122_vm0, %v4413_v21, 0.0  ;;  %v3806_v21 = vsub.f32 1.0, %v7930_v45 }
0x2035   :  { %v3768_v10 = vsub.f32 1.5, %v3767_v40 }
0x2036   :  { %v6045_v61 = vpop.eup %6044 }
0x2037   :  { %v4006_v15 = vmul.f32 %v6045_v61, %v4004_v3  ;;  %v3769_v39 = vmul.f32 %v6043_v5, %v3768_v10  ;;  %vm4012_vm14 = vweird.f32 %v6045_v61 }
0x2038   :  { %vm4013_vm2 = vmor %vm4011_vm15, %vm4012_vm14 }
0x2039   :  { %v4007_v34 = vmul.f32 %v6045_v61, %v4006_v15  ;;  %v3773_v57 = vsel %vm3772_vm13, %v6043_v5, %v3769_v39  ;;  %v5738_v39 = vld [vmem:[%s8289_s4 + $0x28] sm:$0xff] }
0x203a   :  { %v3774_v6 = vmul.f32 %v3773_v57, %v7916_v37  ;;  %v4058_v37 = vmul.f32 %v4057_v23, %v6393_v29  ;;  %4166 = vmatpush.bf16.msra.mxu1 %v5738_v39  ;;  %v5737_v57 = vld [vmem:[%s8289_s4 + $0x20] sm:$0xff] }
0x203b   :  { %v4008_v55 = vmul.f32 0.5, %v4007_v34 }
0x203c   :  { %v3804_v22 = vadd.f32 %v3802_v28, %v3774_v6  ;;  %v4059_v16 = vadd.f32 1e-05, %v4058_v37  ;;  %v3807_v37 = vmul.f32 %v3806_v21, %v7765_v54 }
0x203d   :  { %v4009_v41 = vsub.f32 1.5, %v4008_v55 }
0x203e   :  { %6046 = vtanh.f32 %v3804_v22  ;;  %vm4066_vm7 = vweird.f32 %v4059_v16  ;;  %4167 = vmatpush.bf16.msra.mxu1 %v5737_v57 }
0x203f   :  { %v4010_v7 = vmul.f32 %v6045_v61, %v4009_v41  ;;  %6048 = vrsqrt.f32 %v3974_v18 }
0x2040   :  { %6050 = vrsqrt.f32 %v4059_v16 }
0x2041   :  { %v4014_v9 = vsel %vm4013_vm2, %v6045_v61, %v4010_v7 }
0x2042   :  { %v4015_v14 = vmul.f32 %v4014_v9, %v7880_v1 }
0x2044   :  { %4122 = vrot.lane.b32.xlu1 %v4015_v14, %s6280_s24  ;;  %v6047_v38 = vpop.eup %6046 }
0x2045   :  { %v6049_v36 = vpop.eup %6048 }
0x2046   :  { %v6051_v43 = vpop.eup %6050  ;;  %v3976_v0 = vmul.f32 %v6049_v36, %v3974_v18  ;;  %vm3982_vm3 = vweird.f32 %v6049_v36 }
0x2047   :  { %v4061_v17 = vmul.f32 %v6051_v43, %v4059_v16  ;;  %vm4067_vm4 = vweird.f32 %v6051_v43  ;;  %vm3983_vm6 = vmor %vm3981_vm5, %vm3982_vm3 }
0x2048   :  { %v3977_v2 = vmul.f32 %v6049_v36, %v3976_v0  ;;  %vm4068_vm8 = vmor %vm4066_vm7, %vm4067_vm4 }
0x2049   :  { %v4062_v52 = vmul.f32 %v6051_v43, %v4061_v17 }
0x204a   :  { %v3978_v25 = vmul.f32 0.5, %v3977_v2 }
0x204b   :  { %v4063_v23 = vmul.f32 0.5, %v4062_v52 }
0x204c   :  { %3809 = vrot.lane.b32.xlu1 %v6047_v38, %s6276_s23  ;;  %v3979_v27 = vsub.f32 1.5, %v3978_v25 }
0x204d   :  { %v4064_v13 = vsub.f32 1.5, %v4063_v23 }
0x204e   :  { %v3980_v30 = vmul.f32 %v6049_v36, %v3979_v27 }
0x2050   :  { %v3984_v5 = vsel %vm3983_vm6, %v6049_v36, %v3980_v30 }
0x2051   :  { %v3985_v19 = vmul.f32 %v3984_v5, %v7909_v49 }
0x205a   :  { %v4083_v56 = vpop.permute.xlu1 %4082 }
0x205b   :  { %v4085_v59 = vsel %vm122_vm0, %v4083_v56, 0.0 }
0x205e   :  { %v188_v63 = vpop.xlane.xlu0 %187 }
0x205f   :  { %v203_v35 = vmul.f32 %v6393_v29, %v188_v63 }
0x2061   :  { %v7969_v1 = vsub.f32 %v7943_v12, %v203_v35 }
0x2063   :  { %v219_v58 = vmul.f32 %v7969_v1, %v7969_v1 }
0x2065   :  { %v241_v11 = vsel %vm164_vm1, %v219_v58, 0.0 }
0x2066   :  { %242 = vadd.xlane.f32.xlu2 %v241_v11 }
0x206c   :  { %v4381_v44 = vpop.xlane.xlu2 %4380 }
0x206d   :  { %v4382_v32 = vmul.f32 %v4381_v44, %v6393_v29 }
0x206e   :  { %4086 = vadd.xlane.f32.xlu2 %v4085_v59 }
0x206f   :  { %v7977_v26 = vsub.f32 %v7862_v47, %v4382_v32  ;;  %v4065_v47 = vmul.f32 %v6051_v43, %v4064_v13 }
0x2071   :  { %v4384_v8 = vmul.f32 %v7977_v26, %v7977_v26  ;;  %v4069_v3 = vsel %vm4068_vm8, %v6051_v43, %v4065_v47 }
0x2072   :  { %v4070_v31 = vmul.f32 %v4069_v3, %v7899_v20 }
0x2073   :  { %v4385_v53 = vsel %vm164_vm1, %v4384_v8, 0.0 }
0x2074   :  { %4386 = vadd.xlane.f32.xlu0 %v4385_v53  ;;  %v4101_v40 = vadd.f32 %v4070_v31, %v3985_v19 }
0x2076   :  { %402 = vadd.xlane.f32.xlu1 %v401_v33  ;;  %v5557_v10 = vmul.f32 -1.442695, %v4101_v40 }
0x2078   :  { %6052 = vpow2.f32 %v5557_v10 }
0x207c   :  { %4416 = vadd.xlane.f32.xlu0 %v4415_v24 }
0x207e   :  { %v6053_v61 = vpop.eup %6052 }
0x207f   :  { %v4105_v15 = vadd.f32 1.0, %v6053_v61 }
0x2081   :  { %6054 = vrcp.f32 %v4105_v15  ;;  %v4117_v6 = vand.u32 2147483648, %v4105_v15  ;;  %vm4111_vm10 = vweird.f32 %v4105_v15  ;;  %v4115_v7 = vand.u32 2147483647, %v4105_v15 }
0x2083   :  { %v4118_v22 = vor.u32 1.1754944e-38, %v4117_v6  ;;  %vm4116_vm12 = vcmp.eq.f32.partialorder %v4115_v7, 8.507059e+37 }
0x2087   :  { %v6055_v34 = vpop.eup %6054 }
0x2088   :  { %v4107_v55 = vmul.f32 %v6055_v34, %v4105_v15  ;;  %vm4112_vm9 = vweird.f32 %v6055_v34 }
0x2089   :  { %vm4113_vm11 = vmor %vm4111_vm10, %vm4112_vm9 }
0x208a   :  { %v4108_v49 = vsub.f32 1.0, %v4107_v55 }
0x208c   :  { %v4109_v20 = vmul.f32 %v6055_v34, %v4108_v49 }
0x208e   :  { %v4110_v41 = vadd.f32 %v6055_v34, %v4109_v20 }
0x2090   :  { %v4114_v28 = vsel %vm4113_vm11, %v6055_v34, %v4110_v41 }
0x2091   :  { %v7992_v9 = vsel %vm4116_vm12, %v4118_v22, %v4114_v28 }
0x20b6   :  { %v4123_v14 = vpop.permute.xlu1 %4122 }
0x20b7   :  { %v4125_v38 = vmul.f32 %v4123_v14, %v7992_v9 }
0x20b9   :  { %4127 = vrot.lane.b32.xlu2 %v4125_v38, %s6281_s5 }
0x20be   :  { %v3810_v60 = vpop.permute.xlu1 %3809 }
0x20bf   :  { %v3812_v18 = vmul.f32 %v3810_v60, %v7930_v45 }
0x20c1   :  { %v7999_v63 = vadd.f32 %v3812_v18, %v3807_v37  ;;  %v8023_v18 = vld [vmem:[#allocation7 + $0x2] ss:$0 sm:$0xff] }
0x20c3   :  { %3814 = vst.msk [vmem:[#allocation2 + $0x28] sm:$0xff] %vm122_vm0, %v7999_v63  ;;  %v4140_v16 = vpack.c.bf16 %v7999_v63, %v7999_v63 }
0x20c5   :  { %5570 = vmatmul.msk.bf16.vlgmr.msra.gmra.mxu1 %vm122_vm0, %v4140_v16 }
0x20d9   :  { %v243_v35 = vpop.xlane.xlu2 %242 }
0x20da   :  { %v251_v58 = vmul.f32 %v243_v35, %v6393_v29 }
0x20dc   :  { %v259_v62 = vadd.f32 1e-05, %v251_v58 }
0x20de   :  { %6056 = vrsqrt.f32 %v259_v62  ;;  %vm336_vm14 = vweird.f32 %v259_v62 }
0x20e1   :  { %v4087_v54 = vpop.xlane.xlu2 %4086 }
0x20e2   :  { %v4088_v56 = vmul.f32 %v4087_v54, %v6409_v48 }
0x20e4   :  { %v6057_v11 = vpop.eup %6056  ;;  %v4089_v2 = vadd.f32 1e-05, %v4088_v56 }
0x20e5   :  { %v331_v36 = vmul.f32 %v6057_v11, %v259_v62  ;;  %vm337_vm13 = vweird.f32 %v6057_v11  ;;  %v5740_v62 = vld [vmem:[%s8287_s2 + $0x28] sm:$0xff] }
0x20e6   :  { %vm338_vm2 = vmor %vm336_vm14, %vm337_vm13  ;;  %vm4096_vm9 = vweird.f32 %v4089_v2  ;;  %4251 = vmatpush.bf16.msra.mxu2 %v5740_v62 }
0x20e7   :  { %v4387_v43 = vpop.xlane.xlu0 %4386  ;;  %v332_v59 = vmul.f32 %v6057_v11, %v331_v36 }
0x20e8   :  { %v4388_v45 = vmul.f32 %v4387_v43, %v6393_v29 }
0x20e9   :  { %v403_v0 = vpop.xlane.xlu1 %402  ;;  %v333_v8 = vmul.f32 0.5, %v332_v59  ;;  %v5743_v59 = vld [vmem:[%s8289_s4 + $0x10] sm:$0xff] }
0x20ea   :  { %v4389_v17 = vadd.f32 1e-05, %v4388_v45  ;;  %v418_v44 = vmul.f32 %v6409_v48, %v403_v0 }
0x20eb   :  { %v334_v27 = vsub.f32 1.5, %v333_v8 }
0x20ec   :  { %6058 = vrsqrt.f32 %v4389_v17  ;;  %v8011_v32 = vsub.f32 %v7943_v12, %v418_v44  ;;  %vm4396_vm3 = vweird.f32 %v4389_v17  ;;  %v5739_v44 = vld [vmem:[%s8287_s2 + $0x20] sm:$0xff] }
0x20ed   :  { %6060 = vrsqrt.f32 %v4089_v2  ;;  %v335_v24 = vmul.f32 %v6057_v11, %v334_v27  ;;  %4252 = vmatpush.bf16.msra.mxu2 %v5739_v44 }
0x20ee   :  { %v434_v52 = vmul.f32 %v8011_v32, %v8011_v32 }
0x20ef   :  { %v4417_v25 = vpop.xlane.xlu0 %4416  ;;  %v339_v19 = vsel %vm338_vm2, %v6057_v11, %v335_v24  ;;  %v5744_v11 = vld [vmem:[%s8289_s4 + $0x18] sm:$0xff]  ;;  %v4132_v24 = vsub.f32 1.0, %v7992_v9 }
0x20f0   :  { %v4418_v53 = vmul.f32 %v4417_v25, %v6409_v48  ;;  %457 = vrot.lane.b32.xlu0 %v434_v52, %s6276_s23  ;;  %v347_v39 = vmul.f32 %v339_v19, %v7969_v1  ;;  %4492 = vmatpush.bf16.msrb.mxu0 %v5744_v11  ;;  %v5752_v25 = vld [vmem:[#allocation8 + $0x8] sm:$0xff] }
0x20f2   :  { %v6059_v23 = vpop.eup %6058  ;;  %v4419_v33 = vadd.f32 1e-05, %v4418_v53 }
0x20f3   :  { %v4391_v13 = vmul.f32 %v6059_v23, %v4389_v17  ;;  %v6061_v47 = vpop.eup %6060  ;;  %vm4397_vm15 = vweird.f32 %v6059_v23 }
0x20f4   :  { %6062 = vrsqrt.f32 %v4419_v33  ;;  %v4091_v31 = vmul.f32 %v6061_v47, %v4089_v2  ;;  %vm4398_vm4 = vmor %vm4396_vm3, %vm4397_vm15  ;;  %vm4426_vm6 = vweird.f32 %v4419_v33  ;;  %vm4097_vm8 = vweird.f32 %v6061_v47  ;;  %4493 = vmatpush.bf16.msrb.mxu0 %v5743_v59 }
0x20f5   :  { %v4392_v30 = vmul.f32 %v6059_v23, %v4391_v13  ;;  %vm4098_vm10 = vmor %vm4096_vm9, %vm4097_vm8 }
0x20f6   :  { %v4092_v57 = vmul.f32 %v6061_v47, %v4091_v31  ;;  %v4886_v31 = vld [vmem:[#allocation2 + $0x8] sm:$0xff] }
0x20f7   :  { %v4393_v12 = vmul.f32 0.5, %v4392_v30 }
0x20f8   :  { %v4093_v41 = vmul.f32 0.5, %v4092_v57  ;;  %4935 = vmatpush.bf16.msra.mxu0 %v5752_v25 }
0x20f9   :  { %v4394_v5 = vsub.f32 1.5, %v4393_v12 }
0x20fa   :  { %v6063_v3 = vpop.eup %6062  ;;  %v4094_v22 = vsub.f32 1.5, %v4093_v41 }
0x20fb   :  { %v4395_v40 = vmul.f32 %v6059_v23, %v4394_v5  ;;  %v4421_v10 = vmul.f32 %v6063_v3, %v4419_v33  ;;  %vm4427_vm5 = vweird.f32 %v6063_v3  ;;  %v5751_v33 = vld [vmem:[#allocation8] sm:$0xff] }
0x20fc   :  { %vm4428_vm7 = vmor %vm4426_vm6, %vm4427_vm5  ;;  %v4095_v14 = vmul.f32 %v6061_v47, %v4094_v22  ;;  %4936 = vmatpush.bf16.msra.mxu0 %v5751_v33 }
0x20fd   :  { %v4399_v61 = vsel %vm4398_vm4, %v6059_v23, %v4395_v40  ;;  %v4422_v15 = vmul.f32 %v6063_v3, %v4421_v10  ;;  %v4885_v40 = vld [vmem:[#allocation2] sm:$0xff] }
0x20fe   :  { %v4400_v34 = vmul.f32 %v4399_v61, %v7977_v26  ;;  %v4099_v1 = vsel %vm4098_vm10, %v6061_v47, %v4095_v14  ;;  %v4133_v47 = vmul.f32 %v4132_v24, %v7806_v50  ;;  %v4893_v10 = vpack.c.bf16 %v4886_v31, %v4885_v40  ;;  %v4888_v61 = vld [vmem:[#allocation2 + $0x18] sm:$0xff]  ;;  %v4890_v50 = vld [vmem:[#allocation2 + $0x28] sm:$0xff] }
0x20ff   :  { %v4423_v55 = vmul.f32 0.5, %v4422_v15  ;;  %v4100_v26 = vmul.f32 %v4099_v1, %v7949_v46  ;;  %v4887_v15 = vld [vmem:[#allocation2 + $0x10] sm:$0xff] }
0x2100   :  { %v4431_v49 = vadd.f32 %v4400_v34, %v347_v39  ;;  %v4894_v39 = vpack.c.bf16 %v4888_v61, %v4887_v15 }
0x2101   :  { %v4424_v20 = vsub.f32 1.5, %v4423_v55 }
0x2102   :  { %v5594_v35 = vmul.f32 -1.442695, %v4431_v49 }
0x2103   :  { %v4425_v6 = vmul.f32 %v6063_v3, %v4424_v20 }
0x2105   :  { %v4429_v7 = vsel %vm4428_vm7, %v6063_v3, %v4425_v6 }
0x2106   :  { %v4430_v28 = vmul.f32 %v4429_v7, %v7937_v42 }
0x2108   :  { %4452 = vrot.lane.b32.xlu1 %v4430_v28, %s6280_s24 }
0x2113   :  { %v4128_v38 = vpop.permute.xlu2 %4127 }
0x2114   :  { %v4130_v21 = vadd.f32 %v4128_v38, %v4100_v26 }
0x2116   :  { %6064 = vtanh.f32 %v4130_v21 }
0x2117   :  { %6066 = vpow2.f32 %v5594_v35 }
0x211c   :  { %v6065_v60 = vpop.eup %6064 }
0x211d   :  { %4135 = vrot.lane.b32.xlu0 %v6065_v60, %s6276_s23  ;;  %v6067_v58 = vpop.eup %6066 }
0x211e   :  { %v4435_v46 = vadd.f32 1.0, %v6067_v58 }
0x2120   :  { %6068 = vrcp.f32 %v4435_v46  ;;  %v4447_v52 = vand.u32 2147483648, %v4435_v46  ;;  %vm4441_vm12 = vweird.f32 %v4435_v46  ;;  %v4445_v8 = vand.u32 2147483647, %v4435_v46 }
0x2122   :  { %v4448_v23 = vor.u32 1.1754944e-38, %v4447_v52  ;;  %vm4446_vm14 = vcmp.eq.f32.partialorder %v4445_v8, 8.507059e+37 }
0x2126   :  { %v6069_v43 = vpop.eup %6068 }
0x2127   :  { %v4437_v45 = vmul.f32 %v6069_v43, %v4435_v46  ;;  %vm4442_vm11 = vweird.f32 %v6069_v43 }
0x2128   :  { %vm4443_vm13 = vmor %vm4441_vm12, %vm4442_vm11 }
0x2129   :  { %v4438_v56 = vsub.f32 1.0, %v4437_v45 }
0x212b   :  { %v4439_v17 = vmul.f32 %v6069_v43, %v4438_v56 }
0x212d   :  { %v4440_v2 = vadd.f32 %v6069_v43, %v4439_v17 }
0x212f   :  { %v4444_v53 = vsel %vm4443_vm13, %v6069_v43, %v4440_v2 }
0x2130   :  { %v8045_v27 = vsel %vm4446_vm14, %v4448_v23, %v4444_v53 }
0x2142   :  { %v4169_v37 = vpop.f32.mrf.mxu1 }
0x2143   :  { %v8026_v42 = vadd.f32 %v8023_v18, %v4169_v37 }
0x2145   :  { %4196 = vrot.lane.b32.xlu1 %v8026_v42, %s6276_s23  ;;  %v4173_v0 = vsel %vm164_vm1, %v8026_v42, 0.0 }
0x214a   :  { %v4171_v16 = vpop.f32.mrf.mxu1 }
0x2162   :  { %v458_v36 = vpop.permute.xlu0 %457 }
0x2163   :  { %v488_v54 = vsel %vm122_vm0, %v458_v36, 0.0 }
0x2164   :  { %489 = vadd.xlane.f32.xlu2 %v488_v54 }
0x216c   :  { %4174 = vadd.xlane.f32.xlu2 %v4173_v0 }
0x217a   :  { %v4453_v13 = vpop.permute.xlu1 %4452 }
0x217b   :  { %v4455_v30 = vmul.f32 %v4453_v13, %v8045_v27 }
0x217d   :  { %4457 = vrot.lane.b32.xlu0 %v4455_v30, %s6281_s5 }
0x218f   :  { %v4136_v12 = vpop.permute.xlu0 %4135 }
0x2190   :  { %v4138_v5 = vmul.f32 %v4136_v12, %v7992_v9  ;;  %v4889_v9 = vld [vmem:[#allocation2 + $0x20] sm:$0xff] }
0x2191   :  { %v4895_v34 = vpack.c.bf16 %v4890_v50, %v4889_v9 }
0x2192   :  { %v8052_v3 = vadd.f32 %v4138_v5, %v4133_v47 }
0x2194   :  { %v4225_v19 = vpack.c.bf16 %v8052_v3, %v8052_v3 }
0x2196   :  { %5583 = vmatmul.msk.bf16.vlgmr.msra.gmra.mxu2 %vm122_vm0, %v4225_v19  ;;  %5607 = vmatmul.msk.bf16.vlgmr.msrb.gmra.mxu0 %vm122_vm0, %v4225_v19 }
0x21a6   :  { %5657 = vmatmul.msk.bf16.vlgmr.msra.gmra.mxu0 %vm122_vm0, %v4893_v10 }
0x21b6   :  { %5658 = vmatmul.msk.bf16.gmra.mxu0 %vm122_vm0, %v4894_v39 }
0x21b7   :  { %v4197_v54 = vpop.permute.xlu1 %4196 }
0x21b8   :  { %v4199_v45 = vsel %vm122_vm0, %v4197_v54, 0.0 }
0x21c6   :  { %5659 = vmatmul.msk.bf16.gmra.mxu0 %vm122_vm0, %v4895_v34 }
0x21d7   :  { %v490_v57 = vpop.xlane.xlu2 %489 }
0x21d8   :  { %v498_v55 = vmul.f32 %v490_v57, %v6409_v48 }
0x21da   :  { %v506_v49 = vadd.f32 1e-05, %v498_v55 }
0x21dc   :  { %6070 = vrsqrt.f32 %v506_v49  ;;  %vm583_vm2 = vweird.f32 %v506_v49 }
0x21df   :  { %v4175_v20 = vpop.xlane.xlu2 %4174 }
0x21e0   :  { %v4176_v41 = vmul.f32 %v4175_v20, %v6393_v29 }
0x21e2   :  { %v6071_v6 = vpop.eup %6070  ;;  %v8064_v7 = vsub.f32 %v8026_v42, %v4176_v41 }
0x21e3   :  { %v578_v28 = vmul.f32 %v6071_v6, %v506_v49  ;;  %vm584_vm15 = vweird.f32 %v6071_v6 }
0x21e4   :  { %v4178_v22 = vmul.f32 %v8064_v7, %v8064_v7  ;;  %vm585_vm3 = vmor %vm583_vm2, %vm584_vm15 }
0x21e5   :  { %v579_v14 = vmul.f32 %v6071_v6, %v578_v28 }
0x21e6   :  { %v4179_v1 = vsel %vm164_vm1, %v4178_v22, 0.0 }
0x21e7   :  { %v580_v26 = vmul.f32 0.5, %v579_v14  ;;  %4180 = vadd.xlane.f32.xlu2 %v4179_v1 }
0x21e9   :  { %v581_v38 = vsub.f32 1.5, %v580_v26 }
0x21eb   :  { %v582_v21 = vmul.f32 %v6071_v6, %v581_v38 }
0x21ed   :  { %v586_v60 = vsel %vm585_vm3, %v6071_v6, %v582_v21 }
0x21ee   :  { %v594_v37 = vmul.f32 %v586_v60, %v8011_v32  ;;  %v8081_v32 = vld [vmem:[%s8292_s7] ss:$0 sm:$0xff] }
0x21ef   :  { %v4458_v16 = vpop.permute.xlu0 %4457 }
0x21f0   :  { %v4460_v35 = vadd.f32 %v4458_v16, %v594_v37 }
0x21f2   :  { %6072 = vtanh.f32 %v4460_v35 }
0x21f8   :  { %v6073_v58 = vpop.eup %6072 }
0x21f9   :  { %4465 = vrot.lane.b32.xlu0 %v6073_v58, %s6276_s23  ;;  %v5746_v58 = vld [vmem:[%s8287_s2 + $0x18] sm:$0xff] }
0x21fa   :  { %4577 = vmatpush.bf16.msrb.mxu1 %v5746_v58 }
0x2213   :  { %v4495_v46 = vpop.f32.mrf.mxu0 }
0x2214   :  { %v8072_v62 = vadd.f32 %v7835_v4, %v4495_v46 }
0x2216   :  { %4522 = vrot.lane.b32.xlu1 %v8072_v62, %s6276_s23 }
0x2219   :  { %v8076_v11 = vpop.f32.mrf.mxu2 }
0x221b   :  { %v4497_v36 = vpop.f32.mrf.mxu0 }
0x2221   :  { %v4256_v43 = vpop.f32.mrf.mxu2 }
0x2223   :  { %v4938_v0 = vpop.f32.mrf.mxu0  ;;  %4200 = vadd.xlane.f32.xlu0 %v4199_v45 }
0x2224   :  { %v4939_v4 = vadd.f32 %v8081_v32, %v4938_v0 }
0x2226   :  { %v5661_v56 = vmul.f32 -1.442695, %v4939_v4 }
0x2228   :  { %6074 = vpow2.f32 %v5661_v56 }
0x222b   :  { %v4940_v17 = vpop.f32.mrf.mxu0 }
0x222c   :  { %v4941_v44 = vadd.f32 %v8081_v32, %v4940_v17  ;;  %v5745_v17 = vld [vmem:[%s8287_s2 + $0x10] sm:$0xff] }
0x222d   :  { %4578 = vmatpush.bf16.msrb.mxu1 %v5745_v17 }
0x222e   :  { %v6075_v59 = vpop.eup %6074  ;;  %v5662_v2 = vmul.f32 -1.442695, %v4941_v44 }
0x222f   :  { %v4982_v52 = vadd.f32 1.0, %v6075_v59 }
0x2230   :  { %6076 = vpow2.f32 %v5662_v2 }
0x2231   :  { %6078 = vrcp.f32 %v4982_v52  ;;  %v5001_v12 = vand.u32 2147483648, %v4982_v52  ;;  %v4999_v19 = vand.u32 2147483647, %v4982_v52  ;;  %vm4995_vm5 = vweird.f32 %v4982_v52 }
0x2233   :  { %v4943_v8 = vpop.f32.mrf.mxu0  ;;  %v5002_v39 = vor.u32 1.1754944e-38, %v5001_v12  ;;  %vm5000_vm7 = vcmp.eq.f32.partialorder %v4999_v19, 8.507059e+37 }
0x2234   :  { %v4944_v25 = vadd.f32 %v8081_v32, %v4943_v8 }
0x2236   :  { %v6077_v53 = vpop.eup %6076  ;;  %v5663_v23 = vmul.f32 -1.442695, %v4944_v25 }
0x2237   :  { %v6079_v33 = vpop.eup %6078  ;;  %v4983_v13 = vadd.f32 1.0, %v6077_v53 }
0x2238   :  { %v4991_v30 = vmul.f32 %v6079_v33, %v4982_v52  ;;  %6080 = vpow2.f32 %v5663_v23  ;;  %vm4996_vm4 = vweird.f32 %v6079_v33 }
0x2239   :  { %6082 = vrcp.f32 %v4983_v13  ;;  %vm4997_vm6 = vmor %vm4995_vm5, %vm4996_vm4  ;;  %v5016_v49 = vand.u32 2147483648, %v4983_v13  ;;  %v5014_v6 = vand.u32 2147483647, %v4983_v13  ;;  %vm5010_vm9 = vweird.f32 %v4983_v13 }
0x223a   :  { %v4992_v24 = vsub.f32 1.0, %v4991_v30 }
0x223b   :  { %v4945_v47 = vpop.f32.mrf.mxu0  ;;  %v5017_v38 = vor.u32 1.1754944e-38, %v5016_v49  ;;  %vm5015_vm11 = vcmp.eq.f32.partialorder %v5014_v6, 8.507059e+37 }
0x223c   :  { %v4993_v5 = vmul.f32 %v6079_v33, %v4992_v24  ;;  %v4946_v31 = vadd.f32 %v8081_v32, %v4945_v47 }
0x223e   :  { %v6081_v40 = vpop.eup %6080  ;;  %v4994_v10 = vadd.f32 %v6079_v33, %v4993_v5  ;;  %v5664_v61 = vmul.f32 -1.442695, %v4946_v31 }
0x223f   :  { %v6083_v15 = vpop.eup %6082  ;;  %v4984_v50 = vadd.f32 1.0, %v6081_v40 }
0x2240   :  { %v4998_v9 = vsel %vm4997_vm6, %v6079_v33, %v4994_v10  ;;  %v5006_v34 = vmul.f32 %v6083_v15, %v4983_v13  ;;  %6084 = vpow2.f32 %v5664_v61  ;;  %vm5011_vm8 = vweird.f32 %v6083_v15 }
0x2241   :  { %v5003_v57 = vsel %vm5000_vm7, %v5002_v39, %v4998_v9  ;;  %6086 = vrcp.f32 %v4984_v50  ;;  %vm5012_vm10 = vmor %vm5010_vm9, %vm5011_vm8  ;;  %v5031_v46 = vand.u32 2147483648, %v4984_v50  ;;  %v5029_v43 = vand.u32 2147483647, %v4984_v50 }
0x2242   :  { %5110 = vst.msk [vmem:[%s8293_s8] sm:$0xff] %vm122_vm0, %v5003_v57  ;;  %v5007_v55 = vsub.f32 1.0, %v5006_v34  ;;  %vm5025_vm13 = vweird.f32 %v4984_v50 }
0x2243   :  { %v4948_v20 = vpop.f32.mrf.mxu0  ;;  %v5032_v59 = vor.u32 1.1754944e-38, %v5031_v46  ;;  %vm5030_vm15 = vcmp.eq.f32.partialorder %v5029_v43, 8.507059e+37 }
0x2244   :  { %v5008_v41 = vmul.f32 %v6083_v15, %v5007_v55  ;;  %v4949_v28 = vadd.f32 %v8081_v32, %v4948_v20 }
0x2246   :  { %v6085_v22 = vpop.eup %6084  ;;  %v5009_v14 = vadd.f32 %v6083_v15, %v5008_v41  ;;  %v5665_v1 = vmul.f32 -1.442695, %v4949_v28 }
0x2247   :  { %v6087_v26 = vpop.eup %6086  ;;  %v4985_v21 = vadd.f32 1.0, %v6085_v22 }
0x2248   :  { %v5013_v60 = vsel %vm5012_vm10, %v6083_v15, %v5009_v14  ;;  %v5021_v37 = vmul.f32 %v6087_v26, %v4984_v50  ;;  %6088 = vpow2.f32 %v5665_v1  ;;  %vm5026_vm12 = vweird.f32 %v6087_v26 }
0x2249   :  { %v5018_v16 = vsel %vm5015_vm11, %v5017_v38, %v5013_v60  ;;  %6090 = vrcp.f32 %v4985_v21  ;;  %vm5027_vm14 = vmor %vm5025_vm13, %vm5026_vm12  ;;  %v5046_v53 = vand.u32 2147483648, %v4985_v21  ;;  %v5044_v33 = vand.u32 2147483647, %v4985_v21 }
0x224a   :  { %5111 = vst.msk [vmem:[%s8293_s8 + $0x8] sm:$0xff] %vm122_vm0, %v5018_v16  ;;  %v5022_v35 = vsub.f32 1.0, %v5021_v37  ;;  %vm5040_vm3 = vweird.f32 %v4985_v21  ;;  %v4462_v14 = vsub.f32 1.0, %v8045_v27 }
0x224b   :  { %v4950_v36 = vpop.f32.mrf.mxu0  ;;  %v5047_v12 = vor.u32 1.1754944e-38, %v5046_v53  ;;  %vm5045_vm5 = vcmp.eq.f32.partialorder %v5044_v33, 8.507059e+37 }
0x224c   :  { %v5023_v54 = vmul.f32 %v6087_v26, %v5022_v35  ;;  %v4951_v45 = vadd.f32 %v8081_v32, %v4950_v36 }
0x224e   :  { %v6089_v0 = vpop.eup %6088  ;;  %v5024_v4 = vadd.f32 %v6087_v26, %v5023_v54  ;;  %v5666_v56 = vmul.f32 -1.442695, %v4951_v45  ;;  %v8128_v45 = vld [vmem:[#allocation5 + $0x2] ss:$0 sm:$0xff] }
0x224f   :  { %v6091_v44 = vpop.eup %6090  ;;  %v4986_v2 = vadd.f32 1.0, %v6089_v0 }
0x2250   :  { %v5028_v52 = vsel %vm5027_vm14, %v6087_v26, %v5024_v4  ;;  %v5036_v8 = vmul.f32 %v6091_v44, %v4985_v21  ;;  %6092 = vpow2.f32 %v5666_v56  ;;  %vm5041_vm2 = vweird.f32 %v6091_v44 }
0x2251   :  { %v5033_v25 = vsel %vm5030_vm15, %v5032_v59, %v5028_v52  ;;  %6094 = vrcp.f32 %v4986_v2  ;;  %vm5042_vm4 = vmor %vm5040_vm3, %vm5041_vm2  ;;  %v5061_v10 = vand.u32 2147483648, %v4986_v2  ;;  %v5059_v15 = vand.u32 2147483647, %v4986_v2 }
0x2252   :  { %5112 = vst.msk [vmem:[%s8293_s8 + $0x10] sm:$0xff] %vm122_vm0, %v5033_v25  ;;  %v5037_v32 = vsub.f32 1.0, %v5036_v8  ;;  %vm5055_vm7 = vweird.f32 %v4986_v2  ;;  %v4463_v21 = vmul.f32 %v4462_v14, %v7845_v51  ;;  %v4255_v51 = vadd.f32 %v8128_v45, %v8076_v11  ;;  %v6168_v25 = vld [vmem:[#allocation5 + $0x1] ss:$0 sm:$0xff] }
0x2253   :  { %v5062_v9 = vor.u32 1.1754944e-38, %v5061_v10  ;;  %vm5060_vm9 = vcmp.eq.f32.partialorder %v5059_v15, 8.507059e+37 }
0x2254   :  { %v5038_v23 = vmul.f32 %v6091_v44, %v5037_v32 }
0x2256   :  { %v6093_v13 = vpop.eup %6092  ;;  %v5039_v30 = vadd.f32 %v6091_v44, %v5038_v23 }
0x2257   :  { %v6095_v24 = vpop.eup %6094  ;;  %v4987_v47 = vadd.f32 1.0, %v6093_v13 }
0x2258   :  { %v5043_v5 = vsel %vm5042_vm4, %v6091_v44, %v5039_v30  ;;  %v5051_v19 = vmul.f32 %v6095_v24, %v4986_v2  ;;  %vm5056_vm6 = vweird.f32 %v6095_v24 }
0x2259   :  { %v5048_v31 = vsel %vm5045_vm5, %v5047_v12, %v5043_v5  ;;  %6096 = vrcp.f32 %v4987_v47  ;;  %vm5057_vm8 = vmor %vm5055_vm7, %vm5056_vm6  ;;  %v5076_v20 = vand.u32 2147483648, %v4987_v47  ;;  %v5074_v6 = vand.u32 2147483647, %v4987_v47 }
0x225a   :  { %5113 = vst.msk [vmem:[%s8293_s8 + $0x18] sm:$0xff] %vm122_vm0, %v5048_v31  ;;  %v5052_v40 = vsub.f32 1.0, %v5051_v19  ;;  %vm5070_vm11 = vweird.f32 %v4987_v47  ;;  %v4181_v4 = vpop.xlane.xlu2 %4180 }
0x225b   :  { %v5077_v22 = vor.u32 1.1754944e-38, %v5076_v20  ;;  %vm5075_vm13 = vcmp.eq.f32.partialorder %v5074_v6, 8.507059e+37  ;;  %v4182_v6 = vmul.f32 %v4181_v4, %v6393_v29 }
0x225c   :  { %v5053_v61 = vmul.f32 %v6095_v24, %v5052_v40 }
0x225d   :  { %v4183_v14 = vadd.f32 1e-05, %v4182_v6 }
0x225e   :  { %v5054_v39 = vadd.f32 %v6095_v24, %v5053_v61 }
0x225f   :  { %v6097_v50 = vpop.eup %6096  ;;  %vm4190_vm7 = vweird.f32 %v4183_v14 }
0x2260   :  { %v5058_v34 = vsel %vm5057_vm8, %v6095_v24, %v5054_v39  ;;  %v5066_v57 = vmul.f32 %v6097_v50, %v4987_v47  ;;  %vm5071_vm10 = vweird.f32 %v6097_v50  ;;  %v4499_v24 = vsel %vm164_vm1, %v8072_v62, 0.0 }
0x2261   :  { %v5063_v55 = vsel %vm5060_vm9, %v5062_v9, %v5058_v34  ;;  %vm5072_vm12 = vmor %vm5070_vm11, %vm5071_vm10 }
0x2262   :  { %5114 = vst.msk [vmem:[%s8293_s8 + $0x20] sm:$0xff] %vm122_vm0, %v5063_v55  ;;  %v5067_v49 = vsub.f32 1.0, %v5066_v57 }
0x2264   :  { %v5068_v41 = vmul.f32 %v6097_v50, %v5067_v49 }
0x2266   :  { %v5069_v28 = vadd.f32 %v6097_v50, %v5068_v41 }
0x2268   :  { %v5073_v1 = vsel %vm5072_vm12, %v6097_v50, %v5069_v28 }
0x2269   :  { %v5078_v26 = vsel %vm5075_vm13, %v5077_v22, %v5073_v1 }
0x226a   :  { %5115 = vst.msk [vmem:[%s8293_s8 + $0x28] sm:$0xff] %vm122_vm0, %v5078_v26 }
0x226b   :  { %v4466_v38 = vpop.permute.xlu0 %4465 }
0x226c   :  { %v4468_v60 = vmul.f32 %v4466_v38, %v8045_v27  ;;  %v4258_v27 = vsel %vm164_vm1, %v4255_v51, 0.0 }
0x226e   :  { %v4469_v37 = vadd.f32 %v4468_v60, %v4463_v21 }
0x2270   :  { %v4551_v16 = vpack.c.bf16 %v4469_v37, %v4469_v37 }
0x2272   :  { %5620 = vmatmul.msk.bf16.vlgmr.msrb.gmra.mxu1 %vm122_vm0, %v4551_v16 }
0x2288   :  { %v4523_v35 = vpop.permute.xlu1 %4522 }
0x2289   :  { %v4525_v58 = vsel %vm122_vm0, %v4523_v35, 0.0 }
0x228a   :  { %4526 = vadd.xlane.f32.xlu2 %v4525_v58 }
0x2296   :  { %v4201_v46 = vpop.xlane.xlu0 %4200 }
0x2297   :  { %v4202_v36 = vmul.f32 %v4201_v46, %v6409_v48 }
0x2299   :  { %v4203_v54 = vsub.f32 %v8026_v42, %v4202_v36 }
0x229b   :  { %v4204_v43 = vmul.f32 %v4203_v54, %v4203_v54 }
0x229d   :  { %4206 = vrot.lane.b32.xlu1 %v4204_v43, %s6276_s23 }
0x22a5   :  { %4281 = vrot.lane.b32.xlu1 %v4255_v51, %s6276_s23 }
0x22cf   :  { %4259 = vadd.xlane.f32.xlu1 %v4258_v27 }
0x22ef   :  { %v4580_v0 = vpop.f32.mrf.mxu1 }
0x22f0   :  { %v8143_v32 = vadd.f32 %v6168_v25, %v4580_v0 }
0x22f2   :  { %v4584_v49 = vsel %vm164_vm1, %v8143_v32, 0.0 }
0x22f7   :  { %v4582_v56 = vpop.f32.mrf.mxu1 }
0x22fd   :  { %v4527_v17 = vpop.xlane.xlu2 %4526 }
0x22fe   :  { %v4528_v44 = vmul.f32 %v4527_v17, %v6409_v48 }
0x2300   :  { %v8136_v42 = vsub.f32 %v8072_v62, %v4528_v44 }
0x2302   :  { %v4530_v59 = vmul.f32 %v8136_v42, %v8136_v42 }
0x2304   :  { %4532 = vrot.lane.b32.xlu1 %v4530_v59, %s6276_s23 }
0x230f   :  { %v4207_v11 = vpop.permute.xlu1 %4206 }
0x2310   :  { %v4209_v2 = vsel %vm122_vm0, %v4207_v11, 0.0 }
0x2311   :  { %4210 = vadd.xlane.f32.xlu0 %v4209_v2 }
0x2317   :  { %v4282_v52 = vpop.permute.xlu1 %4281 }
0x2318   :  { %v4284_v8 = vsel %vm122_vm0, %v4282_v52, 0.0 }
0x2319   :  { %4285 = vadd.xlane.f32.xlu2 %v4284_v8 }
0x2331   :  { %4607 = vrot.lane.b32.xlu2 %v8143_v32, %s6276_s23 }
0x2342   :  { %v4260_v53 = vpop.xlane.xlu1 %4259 }
0x2343   :  { %v4261_v23 = vmul.f32 %v4260_v53, %v6393_v29 }
0x2345   :  { %v8148_v33 = vsub.f32 %v4255_v51, %v4261_v23 }
0x2347   :  { %v4263_v13 = vmul.f32 %v8148_v33, %v8148_v33 }
0x2349   :  { %v4264_v30 = vsel %vm164_vm1, %v4263_v13, 0.0 }
0x234a   :  { %4265 = vadd.xlane.f32.xlu0 %v4264_v30 }
0x235a   :  { %4500 = vadd.xlane.f32.xlu2 %v4499_v24 }
0x2384   :  { %v4211_v12 = vpop.xlane.xlu0 %4210 }
0x2385   :  { %v4212_v47 = vmul.f32 %v4211_v12, %v6409_v48  ;;  %v4533_v12 = vpop.permute.xlu1 %4532 }
0x2387   :  { %v4213_v5 = vadd.f32 1e-05, %v4212_v47 }
0x2389   :  { %6098 = vrsqrt.f32 %v4213_v5  ;;  %vm4220_vm15 = vweird.f32 %v4213_v5 }
0x238c   :  { %v4286_v19 = vpop.xlane.xlu2 %4285 }
0x238d   :  { %v4287_v31 = vmul.f32 %v4286_v19, %v6409_v48 }
0x238f   :  { %v6099_v40 = vpop.eup %6098  ;;  %v8157_v10 = vsub.f32 %v4255_v51, %v4287_v31 }
0x2390   :  { %v4215_v61 = vmul.f32 %v6099_v40, %v4213_v5  ;;  %vm4221_vm14 = vweird.f32 %v6099_v40 }
0x2391   :  { %v4289_v15 = vmul.f32 %v8157_v10, %v8157_v10  ;;  %vm4222_vm2 = vmor %vm4220_vm15, %vm4221_vm14 }
0x2392   :  { %v4216_v39 = vmul.f32 %v6099_v40, %v4215_v61 }
0x2393   :  { %4291 = vrot.lane.b32.xlu0 %v4289_v15, %s6276_s23 }
0x2394   :  { %v4217_v50 = vmul.f32 0.5, %v4216_v39  ;;  %v4608_v28 = vpop.permute.xlu2 %4607 }
0x2395   :  { %v4610_v1 = vsel %vm122_vm0, %v4608_v28, 0.0 }
0x2396   :  { %v4218_v9 = vsub.f32 1.5, %v4217_v50 }
0x2398   :  { %v4219_v34 = vmul.f32 %v6099_v40, %v4218_v9 }
0x239a   :  { %v4223_v57 = vsel %vm4222_vm2, %v6099_v40, %v4219_v34 }
0x239b   :  { %v4224_v55 = vmul.f32 %v4223_v57, %v4203_v54  ;;  %v4535_v57 = vsel %vm122_vm0, %v4533_v12, 0.0 }
0x239d   :  { %4331 = vrot.lane.b32.xlu1 %v4224_v55, %s6280_s24 }
0x23bd   :  { %4585 = vadd.xlane.f32.xlu0 %v4584_v49  ;;  %v4266_v20 = vpop.xlane.xlu0 %4265 }
0x23be   :  { %v4267_v41 = vmul.f32 %v4266_v20, %v6393_v29 }
0x23c0   :  { %v4268_v22 = vadd.f32 1e-05, %v4267_v41 }
0x23c2   :  { %6100 = vrsqrt.f32 %v4268_v22  ;;  %vm4275_vm5 = vweird.f32 %v4268_v22 }
0x23c3   :  { %6102 = vrsqrt.f32 %v4183_v14 }
0x23c7   :  { %4611 = vadd.xlane.f32.xlu1 %v4610_v1 }
0x23c8   :  { %v6101_v26 = vpop.eup %6100 }
0x23c9   :  { %v6103_v60 = vpop.eup %6102  ;;  %v4270_v37 = vmul.f32 %v6101_v26, %v4268_v22  ;;  %vm4276_vm3 = vweird.f32 %v6101_v26 }
0x23ca   :  { %v4185_v35 = vmul.f32 %v6103_v60, %v4183_v14  ;;  %vm4191_vm4 = vweird.f32 %v6103_v60  ;;  %vm4277_vm6 = vmor %vm4275_vm5, %vm4276_vm3 }
0x23cb   :  { %v4271_v46 = vmul.f32 %v6101_v26, %v4270_v37  ;;  %vm4192_vm8 = vmor %vm4190_vm7, %vm4191_vm4 }
0x23cc   :  { %v4186_v54 = vmul.f32 %v6103_v60, %v4185_v35 }
0x23cd   :  { %v4501_v38 = vpop.xlane.xlu2 %4500  ;;  %v4272_v43 = vmul.f32 0.5, %v4271_v46 }
0x23ce   :  { %v4502_v21 = vmul.f32 %v4501_v38, %v6393_v29  ;;  %v4187_v51 = vmul.f32 0.5, %v4186_v54 }
0x23cf   :  { %v4273_v27 = vsub.f32 1.5, %v4272_v43 }
0x23d0   :  { %v8170_v16 = vsub.f32 %v8072_v62, %v4502_v21  ;;  %v4188_v0 = vsub.f32 1.5, %v4187_v51 }
0x23d1   :  { %v4274_v4 = vmul.f32 %v6101_v26, %v4273_v27 }
0x23d2   :  { %v4504_v58 = vmul.f32 %v8170_v16, %v8170_v16  ;;  %v4189_v56 = vmul.f32 %v6103_v60, %v4188_v0 }
0x23d3   :  { %v4278_v62 = vsel %vm4277_vm6, %v6101_v26, %v4274_v4 }
0x23d4   :  { %v4505_v36 = vsel %vm164_vm1, %v4504_v58, 0.0  ;;  %v4193_v17 = vsel %vm4192_vm8, %v6103_v60, %v4189_v56  ;;  %v4279_v44 = vmul.f32 %v4278_v62, %v8148_v33 }
0x23d5   :  { %4506 = vadd.xlane.f32.xlu2 %v4505_v36  ;;  %v4194_v59 = vmul.f32 %v4193_v17, %v8064_v7 }
0x23d7   :  { %v4310_v11 = vadd.f32 %v4279_v44, %v4194_v59 }
0x23d9   :  { %v5584_v2 = vmul.f32 -1.442695, %v4310_v11 }
0x23db   :  { %6104 = vpow2.f32 %v5584_v2 }
0x23e1   :  { %v6105_v52 = vpop.eup %6104 }
0x23e2   :  { %v4314_v8 = vadd.f32 1.0, %v6105_v52 }
0x23e4   :  { %6106 = vrcp.f32 %v4314_v8  ;;  %v4326_v33 = vand.u32 2147483648, %v4314_v8  ;;  %vm4320_vm10 = vweird.f32 %v4314_v8  ;;  %v4324_v7 = vand.u32 2147483647, %v4314_v8 }
0x23e6   :  { %v4327_v19 = vor.u32 1.1754944e-38, %v4326_v33  ;;  %vm4325_vm12 = vcmp.eq.f32.partialorder %v4324_v7, 8.507059e+37 }
0x23ea   :  { %v6107_v53 = vpop.eup %6106 }
0x23eb   :  { %v4316_v13 = vmul.f32 %v6107_v53, %v4314_v8  ;;  %vm4321_vm9 = vweird.f32 %v6107_v53 }
0x23ec   :  { %vm4322_vm11 = vmor %vm4320_vm10, %vm4321_vm9 }
0x23ed   :  { %v4317_v30 = vsub.f32 1.0, %v4316_v13 }
0x23ef   :  { %v4318_v24 = vmul.f32 %v6107_v53, %v4317_v30 }
0x23f1   :  { %v4319_v47 = vadd.f32 %v6107_v53, %v4318_v24 }
0x23f3   :  { %v4323_v5 = vsel %vm4322_vm11, %v6107_v53, %v4319_v47 }
0x23f4   :  { %v8178_v40 = vsel %vm4325_vm12, %v4327_v19, %v4323_v5 }
0x2405   :  { %v4292_v25 = vpop.permute.xlu0 %4291 }
0x2406   :  { %v4294_v23 = vsel %vm122_vm0, %v4292_v25, 0.0 }
0x2407   :  { %4295 = vadd.xlane.f32.xlu2 %v4294_v23 }
0x240f   :  { %v4332_v31 = vpop.permute.xlu1 %4331 }
0x2410   :  { %v4334_v61 = vmul.f32 %v4332_v31, %v8178_v40 }
0x241f   :  { %4336 = vrot.lane.b32.xlu2 %v4334_v61, %s6281_s5 }
0x2430   :  { %v4586_v15 = vpop.xlane.xlu0 %4585 }
0x2431   :  { %v4587_v39 = vmul.f32 %v4586_v15, %v6393_v29 }
0x2433   :  { %v8184_v50 = vsub.f32 %v8143_v32, %v4587_v39 }
0x2435   :  { %v4589_v9 = vmul.f32 %v8184_v50, %v8184_v50 }
0x2437   :  { %v4590_v34 = vsel %vm164_vm1, %v4589_v9, 0.0 }
0x2438   :  { %4591 = vadd.xlane.f32.xlu0 %v4590_v34 }
0x243a   :  { %v4612_v55 = vpop.xlane.xlu1 %4611 }
0x243b   :  { %v4613_v49 = vmul.f32 %v4612_v55, %v6409_v48 }
0x243d   :  { %v8192_v20 = vsub.f32 %v8143_v32, %v4613_v49 }
0x243f   :  { %v4615_v41 = vmul.f32 %v8192_v20, %v8192_v20 }
0x2440   :  { %4536 = vadd.xlane.f32.xlu0 %v4535_v57 }
0x2448   :  { %v4507_v6 = vpop.xlane.xlu2 %4506 }
0x2449   :  { %v4508_v36 = vmul.f32 %v4507_v6, %v6393_v29 }
0x244b   :  { %v4509_v43 = vadd.f32 1e-05, %v4508_v36 }
0x244d   :  { %vm4516_vm3 = vweird.f32 %v4509_v43 }
0x2454   :  { %4617 = vrot.lane.b32.xlu0 %v4615_v41, %s6276_s23 }
0x247a   :  { %v4296_v28 = vpop.xlane.xlu2 %4295 }
0x247b   :  { %v4297_v22 = vmul.f32 %v4296_v28, %v6409_v48 }
0x247d   :  { %v4298_v14 = vadd.f32 1e-05, %v4297_v22 }
0x247f   :  { %6108 = vrsqrt.f32 %v4298_v14  ;;  %vm4305_vm14 = vweird.f32 %v4298_v14 }
0x2482   :  { %v4337_v58 = vpop.permute.xlu2 %4336 }
0x2485   :  { %v6109_v1 = vpop.eup %6108 }
0x2486   :  { %v4300_v26 = vmul.f32 %v6109_v1, %v4298_v14  ;;  %vm4306_vm13 = vweird.f32 %v6109_v1 }
0x2487   :  { %vm4307_vm15 = vmor %vm4305_vm14, %vm4306_vm13 }
0x2488   :  { %v4301_v38 = vmul.f32 %v6109_v1, %v4300_v26 }
0x248a   :  { %v4302_v21 = vmul.f32 0.5, %v4301_v38 }
0x248c   :  { %v4303_v60 = vsub.f32 1.5, %v4302_v21 }
0x248e   :  { %v4304_v32 = vmul.f32 %v6109_v1, %v4303_v60 }
0x2490   :  { %v4308_v37 = vsel %vm4307_vm15, %v6109_v1, %v4304_v32 }
0x2491   :  { %v4309_v35 = vmul.f32 %v4308_v37, %v8157_v10  ;;  %v5748_v10 = vld [vmem:[%s8289_s4 + $0x28] sm:$0xff] }
0x2492   :  { %4701 = vmatpush.bf16.msrb.mxu2 %v5748_v10 }
0x2493   :  { %v4339_v46 = vadd.f32 %v4337_v58, %v4309_v35 }
0x2495   :  { %6110 = vtanh.f32 %v4339_v46 }
0x2496   :  { %6112 = vrsqrt.f32 %v4509_v43 }
0x249b   :  { %v6111_v54 = vpop.eup %6110 }
0x249c   :  { %4344 = vrot.lane.b32.xlu0 %v6111_v54, %s6276_s23  ;;  %v6113_v51 = vpop.eup %6112 }
0x249d   :  { %v4511_v27 = vmul.f32 %v6113_v51, %v4509_v43  ;;  %vm4517_vm2 = vweird.f32 %v6113_v51 }
0x249e   :  { %vm4518_vm5 = vmor %vm4516_vm3, %vm4517_vm2 }
0x249f   :  { %v4512_v62 = vmul.f32 %v6113_v51, %v4511_v27 }
0x24a1   :  { %v4513_v17 = vmul.f32 0.5, %v4512_v62 }
0x24a3   :  { %v4514_v52 = vsub.f32 1.5, %v4513_v17 }
0x24a5   :  { %v4515_v53 = vmul.f32 %v6113_v51, %v4514_v52 }
0x24a7   :  { %v4519_v24 = vsel %vm4518_vm5, %v6113_v51, %v4515_v53 }
0x24a8   :  { %v4520_v5 = vmul.f32 %v4519_v24, %v8170_v16  ;;  %v5747_v16 = vld [vmem:[%s8289_s4 + $0x20] sm:$0xff] }
0x24a9   :  { %4702 = vmatpush.bf16.msrb.mxu2 %v5747_v16 }
0x24ab   :  { %v4592_v0 = vpop.xlane.xlu0 %4591 }
0x24ac   :  { %v4593_v4 = vmul.f32 %v4592_v0, %v6393_v29 }
0x24ae   :  { %v4594_v56 = vadd.f32 1e-05, %v4593_v4 }
0x24b0   :  { %6114 = vrsqrt.f32 %v4594_v56  ;;  %vm4601_vm6 = vweird.f32 %v4594_v56 }
0x24b3   :  { %v4537_v44 = vpop.xlane.xlu0 %4536 }
0x24b4   :  { %v4538_v59 = vmul.f32 %v4537_v44, %v6409_v48 }
0x24b6   :  { %v6115_v11 = vpop.eup %6114  ;;  %v4539_v2 = vadd.f32 1e-05, %v4538_v59 }
0x24b7   :  { %v4596_v8 = vmul.f32 %v6115_v11, %v4594_v56  ;;  %vm4602_vm4 = vweird.f32 %v6115_v11 }
0x24b8   :  { %6116 = vrsqrt.f32 %v4539_v2  ;;  %vm4603_vm7 = vmor %vm4601_vm6, %vm4602_vm4  ;;  %vm4546_vm9 = vweird.f32 %v4539_v2 }
0x24b9   :  { %v4597_v25 = vmul.f32 %v6115_v11, %v4596_v8 }
0x24bb   :  { %v4598_v23 = vmul.f32 0.5, %v4597_v25 }
0x24bd   :  { %v4599_v13 = vsub.f32 1.5, %v4598_v23 }
0x24be   :  { %v6117_v30 = vpop.eup %6116 }
0x24bf   :  { %v4600_v12 = vmul.f32 %v6115_v11, %v4599_v13  ;;  %v4541_v47 = vmul.f32 %v6117_v30, %v4539_v2  ;;  %vm4547_vm8 = vweird.f32 %v6117_v30  ;;  %v5750_v13 = vld [vmem:[%s8287_s2 + $0x28] sm:$0xff] }
0x24c0   :  { %vm4548_vm10 = vmor %vm4546_vm9, %vm4547_vm8  ;;  %4786 = vmatpush.bf16.msrb.mxu3 %v5750_v13 }
0x24c1   :  { %v4604_v33 = vsel %vm4603_vm7, %v6115_v11, %v4600_v12  ;;  %v4542_v7 = vmul.f32 %v6117_v30, %v4541_v47 }
0x24c2   :  { %v4605_v19 = vmul.f32 %v4604_v33, %v8184_v50  ;;  %v4341_v50 = vsub.f32 1.0, %v8178_v40 }
0x24c3   :  { %v4543_v31 = vmul.f32 0.5, %v4542_v7 }
0x24c4   :  { %v4636_v61 = vadd.f32 %v4605_v19, %v4520_v5  ;;  %v4342_v41 = vmul.f32 %v4341_v50, %v7999_v63 }
0x24c5   :  { %v4544_v15 = vsub.f32 1.5, %v4543_v31 }
0x24c6   :  { %v4618_v39 = vpop.permute.xlu0 %4617  ;;  %v5621_v28 = vmul.f32 -1.442695, %v4636_v61 }
0x24c7   :  { %v4545_v9 = vmul.f32 %v6117_v30, %v4544_v15  ;;  %v4620_v34 = vsel %vm122_vm0, %v4618_v39, 0.0 }
0x24c8   :  { %4621 = vadd.xlane.f32.xlu2 %v4620_v34  ;;  %6118 = vpow2.f32 %v5621_v28 }
0x24c9   :  { %v4549_v57 = vsel %vm4548_vm10, %v6117_v30, %v4545_v9  ;;  %v5749_v30 = vld [vmem:[%s8287_s2 + $0x20] sm:$0xff] }
0x24ca   :  { %v4550_v55 = vmul.f32 %v4549_v57, %v8136_v42  ;;  %4787 = vmatpush.bf16.msrb.mxu3 %v5749_v30 }
0x24cc   :  { %4657 = vrot.lane.b32.xlu1 %v4550_v55, %s6280_s24 }
0x24ce   :  { %v6119_v14 = vpop.eup %6118 }
0x24cf   :  { %v4640_v1 = vadd.f32 1.0, %v6119_v14 }
0x24d1   :  { %6120 = vrcp.f32 %v4640_v1  ;;  %v4652_v60 = vand.u32 2147483648, %v4640_v1  ;;  %vm4646_vm12 = vweird.f32 %v4640_v1  ;;  %v4650_v32 = vand.u32 2147483647, %v4640_v1 }
0x24d3   :  { %v4653_v35 = vor.u32 1.1754944e-38, %v4652_v60  ;;  %vm4651_vm14 = vcmp.eq.f32.partialorder %v4650_v32, 8.507059e+37 }
0x24d7   :  { %v6121_v26 = vpop.eup %6120 }
0x24d8   :  { %v4642_v38 = vmul.f32 %v6121_v26, %v4640_v1  ;;  %vm4647_vm11 = vweird.f32 %v6121_v26 }
0x24d9   :  { %vm4648_vm13 = vmor %vm4646_vm12, %vm4647_vm11 }
0x24da   :  { %v4643_v63 = vsub.f32 1.0, %v4642_v38 }
0x24dc   :  { %v4644_v21 = vmul.f32 %v6121_v26, %v4643_v63 }
0x250e   :  { %v4345_v49 = vpop.permute.xlu0 %4344 }
0x250f   :  { %v4347_v6 = vmul.f32 %v4345_v49, %v8178_v40  ;;  %v4645_v40 = vadd.f32 %v6121_v26, %v4644_v21 }
0x2511   :  { %v8217_v22 = vadd.f32 %v4347_v6, %v4342_v41  ;;  %v4649_v37 = vsel %vm4648_vm13, %v6121_v26, %v4645_v40 }
0x2512   :  { %v4654_v58 = vsel %vm4651_vm14, %v4653_v35, %v4649_v37 }
0x2513   :  { %4349 = vst.msk [vmem:[#allocation2 + $0x30] sm:$0xff] %vm122_vm0, %v8217_v22  ;;  %v4675_v42 = vpack.c.bf16 %v8217_v22, %v8217_v22  ;;  %v4667_v7 = vsub.f32 1.0, %v4654_v58 }
0x2515   :  { %5634 = vmatmul.msk.bf16.vlgmr.msrb.gmra.mxu2 %vm122_vm0, %v4675_v42  ;;  %v4668_v19 = vmul.f32 %v4667_v7, %v8052_v3 }
0x253b   :  { %v4622_v54 = vpop.xlane.xlu2 %4621 }
0x253c   :  { %v4623_v43 = vmul.f32 %v4622_v54, %v6409_v48 }
0x253e   :  { %v4658_v46 = vpop.permute.xlu1 %4657  ;;  %v4624_v51 = vadd.f32 1e-05, %v4623_v43 }
0x253f   :  { %v4660_v36 = vmul.f32 %v4658_v46, %v4654_v58 }
0x2540   :  { %6122 = vrsqrt.f32 %v4624_v51  ;;  %vm4631_vm2 = vweird.f32 %v4624_v51 }
0x2541   :  { %4662 = vrot.lane.b32.xlu0 %v4660_v36, %s6281_s5 }
0x2546   :  { %v6123_v27 = vpop.eup %6122 }
0x2547   :  { %v4626_v56 = vmul.f32 %v6123_v27, %v4624_v51  ;;  %vm4632_vm15 = vweird.f32 %v6123_v27 }
0x2548   :  { %vm4633_vm3 = vmor %vm4631_vm2, %vm4632_vm15 }
0x2549   :  { %v4627_v10 = vmul.f32 %v6123_v27, %v4626_v56 }
0x254b   :  { %v4628_v44 = vmul.f32 0.5, %v4627_v10 }
0x254d   :  { %v4629_v59 = vsub.f32 1.5, %v4628_v44 }
0x254f   :  { %v4630_v11 = vmul.f32 %v6123_v27, %v4629_v59 }
0x2551   :  { %v4634_v2 = vsel %vm4633_vm3, %v6123_v27, %v4630_v11 }
0x2552   :  { %v4635_v52 = vmul.f32 %v4634_v2, %v8192_v20 }
0x2598   :  { %v4704_v0 = vpop.f32.mrf.mxu2 }
0x2599   :  { %v4705_v4 = vadd.f32 %v8023_v18, %v4704_v0 }
0x259b   :  { %4731 = vrot.lane.b32.xlu2 %v4705_v4, %s6276_s23  ;;  %v4708_v62 = vsel %vm164_vm1, %v4705_v4, 0.0 }
0x259c   :  { %4709 = vadd.xlane.f32.xlu0 %v4708_v62 }
0x25a0   :  { %v4706_v17 = vpop.f32.mrf.mxu2 }
0x25b3   :  { %v4663_v8 = vpop.permute.xlu0 %4662 }
0x25b4   :  { %v4665_v25 = vadd.f32 %v4663_v8, %v4635_v52 }
0x25b6   :  { %6124 = vtanh.f32 %v4665_v25 }
0x25bc   :  { %v6125_v18 = vpop.eup %6124 }
0x25bd   :  { %4670 = vrot.lane.b32.xlu1 %v6125_v18, %s6276_s23 }
0x25f5   :  { %v4732_v53 = vpop.permute.xlu2 %4731 }
0x25f6   :  { %v4734_v23 = vsel %vm122_vm0, %v4732_v53, 0.0 }
0x25f7   :  { %4735 = vadd.xlane.f32.xlu0 %v4734_v23 }
0x260f   :  { %v4710_v20 = vpop.xlane.xlu0 %4709 }
0x2610   :  { %v4711_v24 = vmul.f32 %v4710_v20, %v6393_v29 }
0x2612   :  { %v8239_v12 = vsub.f32 %v4705_v4, %v4711_v24 }
0x2614   :  { %v4713_v47 = vmul.f32 %v8239_v12, %v8239_v12 }
0x2616   :  { %v4714_v33 = vsel %vm164_vm1, %v4713_v47, 0.0 }
0x2617   :  { %4715 = vadd.xlane.f32.xlu1 %v4714_v33 }
0x262f   :  { %v4671_v5 = vpop.permute.xlu1 %4670 }
0x2630   :  { %v4673_v31 = vmul.f32 %v4671_v5, %v4654_v58 }
0x2632   :  { %v4674_v61 = vadd.f32 %v4673_v31, %v4668_v19 }
0x2634   :  { %v4760_v15 = vpack.c.bf16 %v4674_v61, %v4674_v61 }
0x2636   :  { %5647 = vmatmul.msk.bf16.vlgmr.msrb.gmra.mxu3 %vm122_vm0, %v4760_v15 }
0x266a   :  { %v4736_v39 = vpop.xlane.xlu0 %4735 }
0x266b   :  { %v4737_v9 = vmul.f32 %v4736_v39, %v6409_v48 }
0x266d   :  { %v4738_v34 = vsub.f32 %v4705_v4, %v4737_v9 }
0x266f   :  { %v4739_v57 = vmul.f32 %v4738_v34, %v4738_v34 }
0x2671   :  { %4741 = vrot.lane.b32.xlu1 %v4739_v57, %s6276_s23 }
0x268a   :  { %v4716_v14 = vpop.xlane.xlu1 %4715 }
0x268b   :  { %v4717_v62 = vmul.f32 %v4716_v14, %v6393_v29 }
0x268d   :  { %v4718_v17 = vadd.f32 1e-05, %v4717_v62 }
0x268f   :  { %vm4725_vm10 = vweird.f32 %v4718_v17 }
0x26b9   :  { %v4789_v55 = vpop.f32.mrf.mxu3 }
0x26ba   :  { %v4790_v16 = vadd.f32 %v8128_v45, %v4789_v55 }
0x26bc   :  { %4816 = vrot.lane.b32.xlu0 %v4790_v16, %s6276_s23  ;;  %v4793_v50 = vsel %vm164_vm1, %v4790_v16, 0.0 }
0x26bd   :  { %4794 = vadd.xlane.f32.xlu2 %v4793_v50 }
0x26c1   :  { %v4791_v3 = vpop.f32.mrf.mxu3 }
0x26e3   :  { %v4742_v45 = vpop.permute.xlu1 %4741 }
0x26e4   :  { %v4744_v38 = vsel %vm122_vm0, %v4742_v45, 0.0 }
0x272e   :  { %v4817_v49 = vpop.permute.xlu0 %4816 }
0x272f   :  { %v4819_v41 = vsel %vm122_vm0, %v4817_v49, 0.0 }
0x2730   :  { %v4795_v6 = vpop.xlane.xlu2 %4794  ;;  %4820 = vadd.xlane.f32.xlu1 %v4819_v41 }
0x2731   :  { %v4796_v28 = vmul.f32 %v4795_v6, %v6393_v29 }
0x2733   :  { %v4797_v42 = vsub.f32 %v4790_v16, %v4796_v28 }
0x2735   :  { %v4798_v1 = vmul.f32 %v4797_v42, %v4797_v42 }
0x2737   :  { %v4799_v26 = vsel %vm164_vm1, %v4798_v1, 0.0 }
0x2738   :  { %4800 = vadd.xlane.f32.xlu0 %v4799_v26 }
0x2740   :  { %4745 = vadd.xlane.f32.xlu0 %v4744_v38 }
0x27a3   :  { %v4821_v63 = vpop.xlane.xlu1 %4820 }
0x27a4   :  { %v4822_v21 = vmul.f32 %v4821_v63, %v6409_v48 }
0x27a6   :  { %v8256_v40 = vsub.f32 %v4790_v16, %v4822_v21 }
0x27a8   :  { %v4824_v60 = vmul.f32 %v8256_v40, %v8256_v40 }
0x27aa   :  { %4826 = vrot.lane.b32.xlu0 %v4824_v60, %s6276_s23 }
0x27ab   :  { %v4801_v32 = vpop.xlane.xlu0 %4800 }
0x27ac   :  { %v4802_v56 = vmul.f32 %v4801_v32, %v6393_v29 }
0x27ae   :  { %v4803_v10 = vadd.f32 1e-05, %v4802_v56 }
0x27b0   :  { %vm4810_vm8 = vweird.f32 %v4803_v10 }
0x27b3   :  { %v4746_v37 = vpop.xlane.xlu0 %4745 }
0x27b4   :  { %v4747_v35 = vmul.f32 %v4746_v37, %v6409_v48 }
0x27b6   :  { %v4748_v58 = vadd.f32 1e-05, %v4747_v35 }
0x27b8   :  { %6126 = vrsqrt.f32 %v4748_v58  ;;  %vm4755_vm4 = vweird.f32 %v4748_v58 }
0x27b9   :  { %6128 = vrsqrt.f32 %v4803_v10 }
0x27ba   :  { %6130 = vrsqrt.f32 %v4718_v17 }
0x27be   :  { %v6127_v46 = vpop.eup %6126 }
0x27bf   :  { %v4750_v36 = vmul.f32 %v6127_v46, %v4748_v58  ;;  %vm4756_vm1 = vweird.f32 %v6127_v46  ;;  %v6129_v44 = vpop.eup %6128 }
0x27c0   :  { %vm4757_vm5 = vmor %vm4755_vm4, %vm4756_vm1  ;;  %v6131_v59 = vpop.eup %6130  ;;  %v4805_v11 = vmul.f32 %v6129_v44, %v4803_v10  ;;  %vm4811_vm6 = vweird.f32 %v6129_v44 }
0x27c1   :  { %v4751_v54 = vmul.f32 %v6127_v46, %v4750_v36  ;;  %v4720_v2 = vmul.f32 %v6131_v59, %v4718_v17  ;;  %vm4726_vm7 = vweird.f32 %v6131_v59  ;;  %vm4812_vm9 = vmor %vm4810_vm8, %vm4811_vm6 }
0x27c2   :  { %v4806_v52 = vmul.f32 %v6129_v44, %v4805_v11  ;;  %vm4727_vm11 = vmor %vm4725_vm10, %vm4726_vm7 }
0x27c3   :  { %v4752_v43 = vmul.f32 0.5, %v4751_v54  ;;  %v4721_v8 = vmul.f32 %v6131_v59, %v4720_v2 }
0x27c4   :  { %v4807_v25 = vmul.f32 0.5, %v4806_v52 }
0x27c5   :  { %v4753_v51 = vsub.f32 1.5, %v4752_v43  ;;  %v4722_v18 = vmul.f32 0.5, %v4721_v8  ;;  %v4891_v43 = vld [vmem:[#allocation2 + $0x30] sm:$0xff] }
0x27c6   :  { %v4808_v53 = vsub.f32 1.5, %v4807_v25 }
0x27c7   :  { %v4754_v27 = vmul.f32 %v6127_v46, %v4753_v51  ;;  %v4723_v23 = vsub.f32 1.5, %v4722_v18 }
0x27c8   :  { %v4809_v13 = vmul.f32 %v6129_v44, %v4808_v53 }
0x27c9   :  { %v4758_v0 = vsel %vm4757_vm5, %v6127_v46, %v4754_v27  ;;  %v4724_v30 = vmul.f32 %v6131_v59, %v4723_v23 }
0x27ca   :  { %v4759_v4 = vmul.f32 %v4758_v0, %v4738_v34  ;;  %v4813_v29 = vsel %vm4812_vm9, %v6129_v44, %v4809_v13  ;;  %v6169_v0 = vld [vmem:[%s8292_s7] ss:$0 sm:$0xff] }
0x27cb   :  { %v4728_v20 = vsel %vm4727_vm11, %v6131_v59, %v4724_v30  ;;  %v4814_v24 = vmul.f32 %v4813_v29, %v4797_v42 }
0x27cc   :  { %4866 = vrot.lane.b32.xlu0 %v4759_v4, %s6280_s24  ;;  %v4729_v47 = vmul.f32 %v4728_v20, %v8239_v12 }
0x27ce   :  { %v4845_v33 = vadd.f32 %v4814_v24, %v4729_v47 }
0x27d0   :  { %v5648_v7 = vmul.f32 -1.442695, %v4845_v33 }
0x27d2   :  { %6132 = vpow2.f32 %v5648_v7 }
0x27d8   :  { %v6133_v5 = vpop.eup %6132 }
0x27d9   :  { %v4849_v61 = vadd.f32 1.0, %v6133_v5 }
0x27db   :  { %6134 = vrcp.f32 %v4849_v61  ;;  %v4861_v55 = vand.u32 2147483648, %v4849_v61  ;;  %vm4855_vm13 = vweird.f32 %v4849_v61  ;;  %v4859_v16 = vand.u32 2147483647, %v4849_v61 }
0x27dd   :  { %v4862_v50 = vor.u32 1.1754944e-38, %v4861_v55  ;;  %vm4860_vm15 = vcmp.eq.f32.partialorder %v4859_v16, 8.507059e+37 }
0x27e1   :  { %v6135_v15 = vpop.eup %6134 }
0x27e2   :  { %v4851_v39 = vmul.f32 %v6135_v15, %v4849_v61  ;;  %vm4856_vm12 = vweird.f32 %v6135_v15 }
0x27e3   :  { %vm4857_vm14 = vmor %vm4855_vm13, %vm4856_vm12 }
0x27e4   :  { %v4852_v9 = vsub.f32 1.0, %v4851_v39 }
0x27e6   :  { %v4853_v34 = vmul.f32 %v6135_v15, %v4852_v9 }
0x27e8   :  { %v4854_v57 = vadd.f32 %v6135_v15, %v4853_v34 }
0x27ea   :  { %v4858_v12 = vsel %vm4857_vm14, %v6135_v15, %v4854_v57 }
0x27eb   :  { %v4863_v3 = vsel %vm4860_vm15, %v4862_v50, %v4858_v12 }
0x281c   :  { %v4827_v19 = vpop.permute.xlu0 %4826 }
0x281d   :  { %v4829_v31 = vsel %vm122_vm0, %v4827_v19, 0.0 }
0x281e   :  { %4830 = vadd.xlane.f32.xlu2 %v4829_v31 }
0x283e   :  { %v4867_v49 = vpop.permute.xlu0 %4866 }
0x283f   :  { %v4869_v41 = vmul.f32 %v4867_v49, %v4863_v3 }
0x2841   :  { %4871 = vrot.lane.b32.xlu2 %v4869_v41, %s6281_s5 }
0x2891   :  { %v4831_v6 = vpop.xlane.xlu2 %4830 }
0x2892   :  { %v4832_v28 = vmul.f32 %v4831_v6, %v6409_v48  ;;  %v4876_v48 = vsub.f32 1.0, %v4863_v3 }
0x2894   :  { %v4833_v42 = vadd.f32 1e-05, %v4832_v28  ;;  %v4877_v46 = vmul.f32 %v4876_v48, %v8217_v22 }
0x2896   :  { %6136 = vrsqrt.f32 %v4833_v42  ;;  %vm4840_vm3 = vweird.f32 %v4833_v42 }
0x289b   :  { %v4872_v32 = vpop.permute.xlu2 %4871 }
0x289c   :  { %v6137_v14 = vpop.eup %6136 }
0x289d   :  { %v4835_v1 = vmul.f32 %v6137_v14, %v4833_v42  ;;  %vm4841_vm2 = vweird.f32 %v6137_v14 }
0x289e   :  { %vm4842_vm1 = vmor %vm4840_vm3, %vm4841_vm2 }
0x289f   :  { %v4836_v26 = vmul.f32 %v6137_v14, %v4835_v1 }
0x28a1   :  { %v4837_v45 = vmul.f32 0.5, %v4836_v26 }
0x28a3   :  { %v4838_v38 = vsub.f32 1.5, %v4837_v45 }
0x28a5   :  { %v4839_v63 = vmul.f32 %v6137_v14, %v4838_v38 }
0x28a7   :  { %v4843_v21 = vsel %vm4842_vm1, %v6137_v14, %v4839_v63 }
0x28a8   :  { %v4844_v60 = vmul.f32 %v4843_v21, %v8256_v40 }
0x28aa   :  { %v4874_v37 = vadd.f32 %v4872_v32, %v4844_v60 }
0x28ac   :  { %6138 = vtanh.f32 %v4874_v37 }
0x28b2   :  { %v6139_v35 = vpop.eup %6138 }
0x28b3   :  { %4879 = vrot.lane.b32.xlu0 %v6139_v35, %s6276_s23 }
0x2925   :  { %v4880_v58 = vpop.permute.xlu0 %4879 }
0x2926   :  { %v4882_v36 = vmul.f32 %v4880_v58, %v4863_v3 }
0x2928   :  { %v4883_v54 = vadd.f32 %v4882_v36, %v4877_v46 }
0x292a   :  { %4884 = vst.msk [vmem:[#allocation2 + $0x38] sm:$0xff] %vm122_vm0, %v4883_v54 }
0x2931   :  { %v4892_v51 = vld [vmem:[#allocation2 + $0x38] sm:$0xff] }
0x2932   :  { %v4896_v27 = vpack.c.bf16 %v4892_v51, %v4891_v43 }
0x2934   :  { %5660 = vmatmul.msk.bf16.gmra.mxu0 %vm122_vm0, %v4896_v27 }
0x29b1   :  { %v4953_v40 = vpop.f32.mrf.mxu0 }
0x29b2   :  { %v4954_v4 = vadd.f32 %v6169_v0, %v4953_v40 }
0x29b4   :  { %v5667_v56 = vmul.f32 -1.442695, %v4954_v4 }
0x29b6   :  { %6140 = vpow2.f32 %v5667_v56 }
0x29b9   :  { %v4955_v62 = vpop.f32.mrf.mxu0 }
0x29ba   :  { %v4956_v10 = vadd.f32 %v6169_v0, %v4955_v62 }
0x29bc   :  { %v6141_v22 = vpop.eup %6140  ;;  %v5668_v17 = vmul.f32 -1.442695, %v4956_v10 }
0x29bd   :  { %v4988_v44 = vadd.f32 1.0, %v6141_v22 }
0x29be   :  { %6142 = vpow2.f32 %v5668_v17 }
0x29bf   :  { %6144 = vrcp.f32 %v4988_v44  ;;  %v5091_v25 = vand.u32 2147483648, %v4988_v44  ;;  %v5089_v53 = vand.u32 2147483647, %v4988_v44  ;;  %vm5085_vm5 = vweird.f32 %v4988_v44 }
0x29c1   :  { %v5092_v30 = vor.u32 1.1754944e-38, %v5091_v25  ;;  %vm5090_vm7 = vcmp.eq.f32.partialorder %v5089_v53, 8.507059e+37 }
0x29c4   :  { %v6143_v59 = vpop.eup %6142 }
0x29c5   :  { %v6145_v11 = vpop.eup %6144  ;;  %v4989_v2 = vadd.f32 1.0, %v6143_v59 }
0x29c6   :  { %v5081_v52 = vmul.f32 %v6145_v11, %v4988_v44  ;;  %vm5086_vm4 = vweird.f32 %v6145_v11 }
0x29c7   :  { %6146 = vrcp.f32 %v4989_v2  ;;  %vm5087_vm6 = vmor %vm5085_vm5, %vm5086_vm4  ;;  %v5106_v33 = vand.u32 2147483648, %v4989_v2  ;;  %v5104_v5 = vand.u32 2147483647, %v4989_v2  ;;  %vm5100_vm9 = vweird.f32 %v4989_v2 }
0x29c8   :  { %v5082_v8 = vsub.f32 1.0, %v5081_v52 }
0x29c9   :  { %v5107_v31 = vor.u32 1.1754944e-38, %v5106_v33  ;;  %vm5105_vm11 = vcmp.eq.f32.partialorder %v5104_v5, 8.507059e+37 }
0x29ca   :  { %v5083_v18 = vmul.f32 %v6145_v11, %v5082_v8 }
0x29cc   :  { %v5084_v23 = vadd.f32 %v6145_v11, %v5083_v18 }
0x29cd   :  { %v6147_v13 = vpop.eup %6146 }
0x29ce   :  { %v5088_v29 = vsel %vm5087_vm6, %v6145_v11, %v5084_v23  ;;  %v5096_v20 = vmul.f32 %v6147_v13, %v4989_v2  ;;  %vm5101_vm8 = vweird.f32 %v6147_v13 }
0x29cf   :  { %v5093_v24 = vsel %vm5090_vm7, %v5092_v30, %v5088_v29  ;;  %vm5102_vm10 = vmor %vm5100_vm9, %vm5101_vm8 }
0x29d0   :  { %5116 = vst.msk [vmem:[%s8293_s8 + $0x30] sm:$0xff] %vm122_vm0, %v5093_v24  ;;  %v5097_v47 = vsub.f32 1.0, %v5096_v20 }
0x29d2   :  { %v5098_v7 = vmul.f32 %v6147_v13, %v5097_v47 }
0x29d4   :  { %v5099_v19 = vadd.f32 %v6147_v13, %v5098_v7 }
0x29d6   :  { %v5103_v61 = vsel %vm5102_vm10, %v6147_v13, %v5099_v19 }
0x29d7   :  { %v5108_v15 = vsel %vm5105_vm11, %v5107_v31, %v5103_v61 }
0x29d8   :  { %5117 = vst.msk [vmem:[%s8293_s8 + $0x38] sm:$0xff] %vm122_vm0, %v5108_v15 }
0x29d9   :  { %5122 = vsyncpa [#allocation4], 1 }
0x29da   :  { %5123 = vsyncpa [#allocation6], 1 }
0x29db   :  { %5124 = vsyncpa [#allocation9], 1 }

</bundles_post_ra>
